<compile_context>
chip_gen: v6e
topology: v6e:2x2x1
jax: 0.10.0
libtpu: 0.0.40
codegen_flags: <defaults>
</compile_context>

<pallas_src>
import functools

import jax
import jax.numpy as jnp
from jax.experimental import pallas as pl
from jax.experimental.pallas import tpu as pltpu


# ---------------------------------------------------------------------------
# Fused GLSA3d kernel (one batch element per grid step, everything in VMEM)
# ---------------------------------------------------------------------------
def _glsa_kernel(x0_ref, x1_ref, w_in_ref, b_in_ref, w_pw_ref, w_dw_ref,
                 sb_ref, o_ref, pad_buf, dw_buf, *, D, H, W):
    E = o_ref.shape[-1]
    DHW = D * H * W

    sb = sb_ref[...]          # (2, 8, E) f32 : [0]=folded-BN scale, [1]=bias
    b_in = b_in_ref[...]      # (2, E)    f32 : local/global 1x1x1 conv biases

    def sigmoid(y):
        # exp already on the EUP; approx reciprocal also on the EUP slot.
        return pl.reciprocal(1.0 + jnp.exp(-y), approx=True)

    def pointwise(z, widx, sb_idx, act):
        # fused 1x1x1 conv (bf16 MXU, f32 accumulate) + folded BN + activation
        y = jnp.dot(z.astype(jnp.bfloat16), w_pw_ref[widx],
                    preferred_element_type=jnp.float32)
        if sb_idx is not None:
            y = y * sb[0, sb_idx] + sb[1, sb_idx]
        if act == "relu":
            y = jnp.maximum(y, 0.0)
        elif act == "silu":
            y = y * sigmoid(y)
        return y

    # Zero the halo once per grid step; the interior is fully rewritten by
    # every depthwise layer, so the halo stays zero.
    pad_buf[...] = jnp.zeros_like(pad_buf)

    def dw_residual(z, layer, sb_idx):
        # z + relu(bn(depthwise_conv3x3x3(z))), plane-by-plane so the running
        # accumulator stays in vregs (no 27x full-block accumulator RMW).
        pad_buf[1:1 + D, 1:1 + H, 1:1 + W, :] = z.reshape(D, H, W, E)
        w27 = w_dw_ref[layer]          # (27, E) f32 depthwise taps
        scale = sb[0, sb_idx]
        bias = sb[1, sb_idx]

        @pl.loop(0, D)
        def _(d):
            planes = (pad_buf[d], pad_buf[d + 1], pad_buf[d + 2])
            acc = jnp.zeros((H, W, E), jnp.float32)
            for kd in range(3):
                for kh in range(3):
                    for kw in range(3):
                        acc = acc + (planes[kd][kh:kh + H, kw:kw + W, :]
                                     * w27[kd * 9 + kh * 3 + kw])
            y = jnp.maximum(acc * scale + bias, 0.0)
            dw_buf[d] = planes[1][1:1 + H, 1:1 + W, :] + y

        return dw_buf[...].reshape(DHW, E)

    x0 = x0_ref[0]            # (DHW, half) bf16
    x1 = x1_ref[0]            # (DHW, half) bf16

    # local_11conv / global_11conv: 1x1x1 conv with bias (no BN, no activation)
    a = jnp.dot(x0, w_in_ref[0], preferred_element_type=jnp.float32) + b_in[0]
    g = jnp.dot(x1, w_in_ref[1], preferred_element_type=jnp.float32) + b_in[1]
    # TODO(synk): rsaBlock (GlobelBlock) definition is not provided in the
    # reference module; the global stage is treated as identity.

    # ConvBranch3d on the local branch, fully fused (activations stay in VMEM)
    z = pointwise(a, 0, 0, "relu")     # conv1: 1x1x1 + BN + ReLU
    z = dw_residual(z, 0, 1)           # conv2: dw3x3x3 + BN + ReLU, +residual
    z = pointwise(z, 1, 2, "relu")     # conv3
    z = dw_residual(z, 1, 3)           # conv4
    z = pointwise(z, 2, 4, "silu")     # conv5: 1x1x1 + BN + SiLU
    z = dw_residual(z, 2, 5)           # conv6
    m = pointwise(z, 3, None, "relu")  # conv7: 1x1x1 (no bias, no BN) + ReLU
    local = a + a * sigmoid(m)         # res2 + res1 * sigmoid_spatial

    # conv1_1 on concat([local, global]) without materializing the concat:
    # split the (2E, E) weight into two (E, E) matmuls that accumulate.
    y = (jnp.dot(local.astype(jnp.bfloat16), w_pw_ref[4],
                 preferred_element_type=jnp.float32)
         + jnp.dot(g.astype(jnp.bfloat16), w_pw_ref[5],
                   preferred_element_type=jnp.float32))
    y = jnp.maximum(y * sb[0, 6] + sb[1, 6], 0.0)   # BN + ReLU
    o_ref[0] = y


# ---------------------------------------------------------------------------
# Parameter construction (deterministic, synthetic, BN folded to scale/bias)
# ---------------------------------------------------------------------------
def init_params(key, input_dim, embed_dim, eps=1e-5):
    half = input_dim // 2
    E = embed_dim
    keys = iter(jax.random.split(key, 64))

    def w(shape, scale=0.1):
        return jax.random.normal(next(keys), shape, jnp.float32) * scale

    def bn(c):
        gamma = 1.0 + 0.1 * jax.random.normal(next(keys), (c,), jnp.float32)
        beta = 0.1 * jax.random.normal(next(keys), (c,), jnp.float32)
        mean = 0.1 * jax.random.normal(next(keys), (c,), jnp.float32)
        var = jnp.abs(jax.random.normal(next(keys), (c,), jnp.float32)) + 1.0
        s = gamma / jnp.sqrt(var + eps)
        b = beta - mean * s
        return s, b

    # local_11conv / global_11conv weights + biases
    w_in = jnp.stack([w((half, E)), w((half, E))])            # (2, half, E)
    b_in = jnp.stack([w((E,)), w((E,))])                      # (2, E)

    # pointwise weights: c1, c3, c5, c7, c11_local, c11_global
    c11 = w((2 * E, E))                                       # conv1_1 (2E->E)
    w_pw = jnp.stack([w((E, E)), w((E, E)), w((E, E)), w((E, E)),
                      c11[:E], c11[E:]])                      # (6, E, E)

    # depthwise 3x3x3 taps: c2, c4, c6  -> (kd*kh*kw, C)
    w_dw = jnp.stack([w((27, E)), w((27, E)), w((27, E))])    # (3, 27, E)

    # folded-BN scale/bias for [c1, c2, c3, c4, c5, c6, c11, spare]
    scales, biases = [], []
    for _ in range(7):
        s, b = bn(E)
        scales.append(s)
        biases.append(b)
    scales.append(jnp.ones((E,), jnp.float32))
    biases.append(jnp.zeros((E,), jnp.float32))
    sb = jnp.stack([jnp.stack(scales), jnp.stack(biases)])    # (2, 8, E)

    return {
        "embed_dim": E,
        "w_in": w_in.astype(jnp.bfloat16),   # matmul weights in bf16
        "b_in": b_in,                        # biases / BN params stay f32
        "w_pw": w_pw.astype(jnp.bfloat16),
        "w_dw": w_dw,                        # depthwise taps used on VPU: f32
        "sb": sb,
    }


# ---------------------------------------------------------------------------
# GLSA3d forward (PyTorch NCDHW at the edges; one fused Pallas call inside)
# ---------------------------------------------------------------------------
def glsa3d_forward(x, params):
    B, Cin, D, H, W = x.shape
    half = Cin // 2
    E = params["embed_dim"]
    DHW = D * H * W

    # NCDHW -> per-batch channels-last slabs; bf16 halves HBM read traffic.
    xt = jnp.transpose(x, (0, 2, 3, 4, 1)).reshape(B, DHW, Cin)
    x0 = xt[..., :half].astype(jnp.bfloat16)
    x1 = xt[..., half:].astype(jnp.bfloat16)

    out = pl.pallas_call(
        functools.partial(_glsa_kernel, D=D, H=H, W=W),
        out_shape=jax.ShapeDtypeStruct((B, DHW, E), jnp.float32),
        grid=(B,),
        in_specs=[
            pl.BlockSpec((1, DHW, half), lambda b: (b, 0, 0)),   # x0
            pl.BlockSpec((1, DHW, half), lambda b: (b, 0, 0)),   # x1
            pl.BlockSpec((2, half, E), lambda b: (0, 0, 0)),     # w_in
            pl.BlockSpec((2, E), lambda b: (0, 0)),              # b_in
            pl.BlockSpec((6, E, E), lambda b: (0, 0, 0)),        # w_pw
            pl.BlockSpec((3, 27, E), lambda b: (0, 0, 0)),       # w_dw
            pl.BlockSpec((2, 8, E), lambda b: (0, 0, 0)),        # sb
        ],
        out_specs=pl.BlockSpec((1, DHW, E), lambda b: (b, 0, 0)),
        scratch_shapes=[
            pltpu.VMEM((D + 2, H + 2, W + 2, E), jnp.float32),   # padded input
            pltpu.VMEM((D, H, W, E), jnp.float32),               # dw output
        ],
        compiler_params=pltpu.CompilerParams(
            dimension_semantics=("parallel",)),
    )(x0, x1, params["w_in"], params["b_in"], params["w_pw"],
      params["w_dw"], params["sb"])

    out = out.reshape(B, D, H, W, E)
    return jnp.transpose(out, (0, 4, 1, 2, 3))   # back to NCDHW


if __name__ == "__main__":
    key = jax.random.PRNGKey(0)
    kx, kp = jax.random.split(key)

    B, input_dim, D, H, W = 2, 8, 4, 8, 8
    embed_dim = 8

    x = jax.random.normal(kx, (B, input_dim, D, H, W), jnp.float32)
    params = init_params(kp, input_dim, embed_dim)

    out = jax.jit(lambda v: glsa3d_forward(v, params))(x)
    out = jax.block_until_ready(out)
    assert out.shape == (B, embed_dim, D, H, W), out.shape
    assert bool(jnp.all(jnp.isfinite(out)))
    print("KERNEL_OK")
</pallas_src>

<mosaic_0001>
module attributes {stable_mosaic.version = 11 : i64} {
  func.func @_glsa_kernel(%arg0: i32, %arg1: memref<1x256x4xbf16, #tpu.memory_space<vmem>>, %arg2: memref<1x256x4xbf16, #tpu.memory_space<vmem>>, %arg3: memref<2x4x8xbf16, #tpu.memory_space<vmem>>, %arg4: memref<2x8xf32, #tpu.memory_space<vmem>>, %arg5: memref<6x8x8xbf16, #tpu.memory_space<vmem>>, %arg6: memref<3x27x8xf32, #tpu.memory_space<vmem>>, %arg7: memref<2x8x8xf32, #tpu.memory_space<vmem>>, %arg8: memref<1x256x8xf32, #tpu.memory_space<vmem>>, %arg9: memref<6x10x10x8xf32, #tpu.memory_space<vmem>>, %arg10: memref<4x8x8x8xf32, #tpu.memory_space<vmem>>) attributes {dimension_semantics = [#tpu.dimension_semantics<parallel>], iteration_bounds = array<i64: 2>, scalar_prefetch = 0 : i64, scratch_operands = 2 : i64, tpu.core_type = #tpu.core_type<tc>, window_params = [{transform_indices = @transform_0, window_bounds = array<i64: 1, 256, 4>}, {transform_indices = @transform_1, window_bounds = array<i64: 1, 256, 4>}, {pipeline_mode = #tpu.pipeline_mode<synchronous>, transform_indices = @transform_2, window_bounds = array<i64: 2, 4, 8>}, {pipeline_mode = #tpu.pipeline_mode<synchronous>, transform_indices = @transform_3, window_bounds = array<i64: 2, 8>}, {pipeline_mode = #tpu.pipeline_mode<synchronous>, transform_indices = @transform_4, window_bounds = array<i64: 6, 8, 8>}, {pipeline_mode = #tpu.pipeline_mode<synchronous>, transform_indices = @transform_5, window_bounds = array<i64: 3, 27, 8>}, {pipeline_mode = #tpu.pipeline_mode<synchronous>, transform_indices = @transform_6, window_bounds = array<i64: 2, 8, 8>}, {transform_indices = @transform_7, window_bounds = array<i64: 1, 256, 8>}]} {
    %c0 = arith.constant 0 : index
    %c0_0 = arith.constant 0 : index
    %c0_1 = arith.constant 0 : index
    %0 = vector.load %arg7[%c0, %c0_0, %c0_1] : memref<2x8x8xf32, #tpu.memory_space<vmem>>, vector<2x8x8xf32>
    %c0_2 = arith.constant 0 : index
    %c0_3 = arith.constant 0 : index
    %1 = vector.load %arg4[%c0_2, %c0_3] : memref<2x8xf32, #tpu.memory_space<vmem>>, vector<2x8xf32>
    %cst = arith.constant 0.000000e+00 : f32
    %2 = vector.broadcast %cst : f32 to vector<6x10x10x8xf32>
    %c0_4 = arith.constant 0 : index
    %c0_5 = arith.constant 0 : index
    %c0_6 = arith.constant 0 : index
    %c0_7 = arith.constant 0 : index
    %3 = vector.load %arg9[%c0_4, %c0_5, %c0_6, %c0_7] : memref<6x10x10x8xf32, #tpu.memory_space<vmem>>, vector<6x10x10x8xf32>
    tpu.vector_store %arg9[%c0_4, %c0_5, %c0_6, %c0_7], %2 {strides = array<i32>} : memref<6x10x10x8xf32, #tpu.memory_space<vmem>>, vector<6x10x10x8xf32>,
    %c0_8 = arith.constant 0 : index
    %c0_9 = arith.constant 0 : index
    %c0_10 = arith.constant 0 : index
    %4 = vector.load %arg1[%c0_8, %c0_9, %c0_10] : memref<1x256x4xbf16, #tpu.memory_space<vmem>>, vector<1x256x4xbf16>
    %5 = vector.shape_cast %4 : vector<1x256x4xbf16> to vector<256x4xbf16>
    %c0_11 = arith.constant 0 : index
    %c0_12 = arith.constant 0 : index
    %c0_13 = arith.constant 0 : index
    %6 = vector.load %arg2[%c0_11, %c0_12, %c0_13] : memref<1x256x4xbf16, #tpu.memory_space<vmem>>, vector<1x256x4xbf16>
    %7 = vector.shape_cast %6 : vector<1x256x4xbf16> to vector<256x4xbf16>
    %c0_14 = arith.constant 0 : index
    %c0_15 = arith.constant 0 : index
    %c0_16 = arith.constant 0 : index
    %8 = vector.load %arg3[%c0_14, %c0_15, %c0_16] : memref<2x4x8xbf16, #tpu.memory_space<vmem>>, vector<1x4x8xbf16>
    %9 = vector.shape_cast %8 : vector<1x4x8xbf16> to vector<4x8xbf16>
    %cst_17 = arith.constant dense<0.000000e+00> : vector<256x8xf32>
    %10 = tpu.matmul %5, %9, %cst_17 {dimension_numbers = #tpu.dot_dimension_numbers<[1], [0], [0], [1], [0, 0, 1, 1], [], []>} : vector<256x4xbf16>, vector<4x8xbf16>, vector<256x8xf32> -> vector<256x8xf32>
    %11 = vector.extract_strided_slice %1 {offsets = [0, 0], sizes = [1, 8], strides = [1, 1]} : vector<2x8xf32> to vector<1x8xf32>
    %12 = vector.shape_cast %11 : vector<1x8xf32> to vector<8xf32>
    %13 = vector.shape_cast %12 : vector<8xf32> to vector<1x8xf32>
    %14 = vector.broadcast %13 : vector<1x8xf32> to vector<256x8xf32>
    %15 = arith.addf %10, %14 : vector<256x8xf32>
    %c1 = arith.constant 1 : index
    %c0_18 = arith.constant 0 : index
    %c0_19 = arith.constant 0 : index
    %16 = vector.load %arg3[%c1, %c0_18, %c0_19] : memref<2x4x8xbf16, #tpu.memory_space<vmem>>, vector<1x4x8xbf16>
    %17 = vector.shape_cast %16 : vector<1x4x8xbf16> to vector<4x8xbf16>
    %cst_20 = arith.constant dense<0.000000e+00> : vector<256x8xf32>
    %18 = tpu.matmul %7, %17, %cst_20 {dimension_numbers = #tpu.dot_dimension_numbers<[1], [0], [0], [1], [0, 0, 1, 1], [], []>} : vector<256x4xbf16>, vector<4x8xbf16>, vector<256x8xf32> -> vector<256x8xf32>
    %19 = vector.extract_strided_slice %1 {offsets = [1, 0], sizes = [1, 8], strides = [1, 1]} : vector<2x8xf32> to vector<1x8xf32>
    %20 = vector.shape_cast %19 : vector<1x8xf32> to vector<8xf32>
    %21 = vector.shape_cast %20 : vector<8xf32> to vector<1x8xf32>
    %22 = vector.broadcast %21 : vector<1x8xf32> to vector<256x8xf32>
    %23 = arith.addf %18, %22 : vector<256x8xf32>
    %24 = arith.truncf %15 : vector<256x8xf32> to vector<256x8xbf16>
    %c0_21 = arith.constant 0 : index
    %c0_22 = arith.constant 0 : index
    %c0_23 = arith.constant 0 : index
    %25 = vector.load %arg5[%c0_21, %c0_22, %c0_23] : memref<6x8x8xbf16, #tpu.memory_space<vmem>>, vector<1x8x8xbf16>
    %26 = vector.shape_cast %25 : vector<1x8x8xbf16> to vector<8x8xbf16>
    %cst_24 = arith.constant dense<0.000000e+00> : vector<256x8xf32>
    %27 = tpu.matmul %24, %26, %cst_24 {dimension_numbers = #tpu.dot_dimension_numbers<[1], [0], [0], [1], [0, 0, 1, 1], [], []>} : vector<256x8xbf16>, vector<8x8xbf16>, vector<256x8xf32> -> vector<256x8xf32>
    %28 = vector.extract_strided_slice %0 {offsets = [0, 0, 0], sizes = [1, 1, 8], strides = [1, 1, 1]} : vector<2x8x8xf32> to vector<1x1x8xf32>
    %29 = vector.shape_cast %28 : vector<1x1x8xf32> to vector<8xf32>
    %30 = vector.shape_cast %29 : vector<8xf32> to vector<1x8xf32>
    %31 = vector.broadcast %30 : vector<1x8xf32> to vector<256x8xf32>
    %32 = arith.mulf %27, %31 : vector<256x8xf32>
    %33 = vector.extract_strided_slice %0 {offsets = [1, 0, 0], sizes = [1, 1, 8], strides = [1, 1, 1]} : vector<2x8x8xf32> to vector<1x1x8xf32>
    %34 = vector.shape_cast %33 : vector<1x1x8xf32> to vector<8xf32>
    %35 = vector.shape_cast %34 : vector<8xf32> to vector<1x8xf32>
    %36 = vector.broadcast %35 : vector<1x8xf32> to vector<256x8xf32>
    %37 = arith.addf %32, %36 : vector<256x8xf32>
    %cst_25 = arith.constant 0.000000e+00 : f32
    %38 = vector.broadcast %cst_25 : f32 to vector<256x8xf32>
    %39 = arith.maximumf %37, %38 : vector<256x8xf32>
    %40 = vector.shape_cast %39 : vector<256x8xf32> to vector<4x8x8x8xf32>
    %c1_26 = arith.constant 1 : index
    %c1_27 = arith.constant 1 : index
    %c1_28 = arith.constant 1 : index
    %c0_29 = arith.constant 0 : index
    %41 = vector.load %arg9[%c1_26, %c1_27, %c1_28, %c0_29] : memref<6x10x10x8xf32, #tpu.memory_space<vmem>>, vector<4x8x8x8xf32>
    tpu.vector_store %arg9[%c1_26, %c1_27, %c1_28, %c0_29], %40 {strides = array<i32>} : memref<6x10x10x8xf32, #tpu.memory_space<vmem>>, vector<4x8x8x8xf32>,
    %c0_30 = arith.constant 0 : index
    %c0_31 = arith.constant 0 : index
    %c0_32 = arith.constant 0 : index
    %42 = vector.load %arg6[%c0_30, %c0_31, %c0_32] : memref<3x27x8xf32, #tpu.memory_space<vmem>>, vector<1x27x8xf32>
    %43 = vector.shape_cast %42 : vector<1x27x8xf32> to vector<27x8xf32>
    %44 = vector.extract_strided_slice %0 {offsets = [0, 1, 0], sizes = [1, 1, 8], strides = [1, 1, 1]} : vector<2x8x8xf32> to vector<1x1x8xf32>
    %45 = vector.shape_cast %44 : vector<1x1x8xf32> to vector<8xf32>
    %46 = vector.extract_strided_slice %0 {offsets = [1, 1, 0], sizes = [1, 1, 8], strides = [1, 1, 1]} : vector<2x8x8xf32> to vector<1x1x8xf32>
    %47 = vector.shape_cast %46 : vector<1x1x8xf32> to vector<8xf32>
    %c0_i32 = arith.constant 0 : i32
    %c4_i32 = arith.constant 4 : i32
    %48 = arith.addi %c0_i32, %c4_i32 : i32
    %c1_i32 = arith.constant 1 : i32
    scf.for %arg11 = %c0_i32 to %48 step %c1_i32  : i32 {
      %c1_i32_94 = arith.constant 1 : i32
      %148 = arith.muli %arg11, %c1_i32_94 : i32
      %c0_i32_95 = arith.constant 0 : i32
      %149 = arith.addi %c0_i32_95, %148 : i32
      %150 = arith.index_cast %149 : i32 to index
      %c0_96 = arith.constant 0 : index
      %c0_97 = arith.constant 0 : index
      %c0_98 = arith.constant 0 : index
      %151 = vector.load %arg9[%150, %c0_96, %c0_97, %c0_98] : memref<6x10x10x8xf32, #tpu.memory_space<vmem>>, vector<1x10x10x8xf32>
      %152 = vector.shape_cast %151 : vector<1x10x10x8xf32> to vector<10x10x8xf32>
      %c1_i32_99 = arith.constant 1 : i32
      %153 = arith.addi %149, %c1_i32_99 : i32
      %154 = arith.index_cast %153 : i32 to index
      %c0_100 = arith.constant 0 : index
      %c0_101 = arith.constant 0 : index
      %c0_102 = arith.constant 0 : index
      %155 = vector.load %arg9[%154, %c0_100, %c0_101, %c0_102] : memref<6x10x10x8xf32, #tpu.memory_space<vmem>>, vector<1x10x10x8xf32>
      %156 = vector.shape_cast %155 : vector<1x10x10x8xf32> to vector<10x10x8xf32>
      %c2_i32 = arith.constant 2 : i32
      %157 = arith.addi %149, %c2_i32 : i32
      %158 = arith.index_cast %157 : i32 to index
      %c0_103 = arith.constant 0 : index
      %c0_104 = arith.constant 0 : index
      %c0_105 = arith.constant 0 : index
      %159 = vector.load %arg9[%158, %c0_103, %c0_104, %c0_105] : memref<6x10x10x8xf32, #tpu.memory_space<vmem>>, vector<1x10x10x8xf32>
      %160 = vector.shape_cast %159 : vector<1x10x10x8xf32> to vector<10x10x8xf32>
      %cst_106 = arith.constant 0.000000e+00 : f32
      %161 = vector.broadcast %cst_106 : f32 to vector<8x8x8xf32>
      %162 = vector.extract_strided_slice %152 {offsets = [0, 0, 0], sizes = [8, 8, 8], strides = [1, 1, 1]} : vector<10x10x8xf32> to vector<8x8x8xf32>
      %163 = vector.extract_strided_slice %43 {offsets = [0, 0], sizes = [1, 8], strides = [1, 1]} : vector<27x8xf32> to vector<1x8xf32>
      %164 = vector.shape_cast %163 : vector<1x8xf32> to vector<8xf32>
      %165 = vector.shape_cast %164 : vector<8xf32> to vector<1x1x8xf32>
      %166 = vector.broadcast %165 : vector<1x1x8xf32> to vector<8x8x8xf32>
      %167 = arith.mulf %162, %166 : vector<8x8x8xf32>
      %168 = arith.addf %161, %167 : vector<8x8x8xf32>
      %169 = vector.extract_strided_slice %152 {offsets = [0, 1, 0], sizes = [8, 8, 8], strides = [1, 1, 1]} : vector<10x10x8xf32> to vector<8x8x8xf32>
      %170 = vector.extract_strided_slice %43 {offsets = [1, 0], sizes = [1, 8], strides = [1, 1]} : vector<27x8xf32> to vector<1x8xf32>
      %171 = vector.shape_cast %170 : vector<1x8xf32> to vector<8xf32>
      %172 = vector.shape_cast %171 : vector<8xf32> to vector<1x1x8xf32>
      %173 = vector.broadcast %172 : vector<1x1x8xf32> to vector<8x8x8xf32>
      %174 = arith.mulf %169, %173 : vector<8x8x8xf32>
      %175 = arith.addf %168, %174 : vector<8x8x8xf32>
      %176 = vector.extract_strided_slice %152 {offsets = [0, 2, 0], sizes = [8, 8, 8], strides = [1, 1, 1]} : vector<10x10x8xf32> to vector<8x8x8xf32>
      %177 = vector.extract_strided_slice %43 {offsets = [2, 0], sizes = [1, 8], strides = [1, 1]} : vector<27x8xf32> to vector<1x8xf32>
      %178 = vector.shape_cast %177 : vector<1x8xf32> to vector<8xf32>
      %179 = vector.shape_cast %178 : vector<8xf32> to vector<1x1x8xf32>
      %180 = vector.broadcast %179 : vector<1x1x8xf32> to vector<8x8x8xf32>
      %181 = arith.mulf %176, %180 : vector<8x8x8xf32>
      %182 = arith.addf %175, %181 : vector<8x8x8xf32>
      %183 = vector.extract_strided_slice %152 {offsets = [1, 0, 0], sizes = [8, 8, 8], strides = [1, 1, 1]} : vector<10x10x8xf32> to vector<8x8x8xf32>
      %184 = vector.extract_strided_slice %43 {offsets = [3, 0], sizes = [1, 8], strides = [1, 1]} : vector<27x8xf32> to vector<1x8xf32>
      %185 = vector.shape_cast %184 : vector<1x8xf32> to vector<8xf32>
      %186 = vector.shape_cast %185 : vector<8xf32> to vector<1x1x8xf32>
      %187 = vector.broadcast %186 : vector<1x1x8xf32> to vector<8x8x8xf32>
      %188 = arith.mulf %183, %187 : vector<8x8x8xf32>
      %189 = arith.addf %182, %188 : vector<8x8x8xf32>
      %190 = vector.extract_strided_slice %152 {offsets = [1, 1, 0], sizes = [8, 8, 8], strides = [1, 1, 1]} : vector<10x10x8xf32> to vector<8x8x8xf32>
      %191 = vector.extract_strided_slice %43 {offsets = [4, 0], sizes = [1, 8], strides = [1, 1]} : vector<27x8xf32> to vector<1x8xf32>
      %192 = vector.shape_cast %191 : vector<1x8xf32> to vector<8xf32>
      %193 = vector.shape_cast %192 : vector<8xf32> to vector<1x1x8xf32>
      %194 = vector.broadcast %193 : vector<1x1x8xf32> to vector<8x8x8xf32>
      %195 = arith.mulf %190, %194 : vector<8x8x8xf32>
      %196 = arith.addf %189, %195 : vector<8x8x8xf32>
      %197 = vector.extract_strided_slice %152 {offsets = [1, 2, 0], sizes = [8, 8, 8], strides = [1, 1, 1]} : vector<10x10x8xf32> to vector<8x8x8xf32>
      %198 = vector.extract_strided_slice %43 {offsets = [5, 0], sizes = [1, 8], strides = [1, 1]} : vector<27x8xf32> to vector<1x8xf32>
      %199 = vector.shape_cast %198 : vector<1x8xf32> to vector<8xf32>
      %200 = vector.shape_cast %199 : vector<8xf32> to vector<1x1x8xf32>
      %201 = vector.broadcast %200 : vector<1x1x8xf32> to vector<8x8x8xf32>
      %202 = arith.mulf %197, %201 : vector<8x8x8xf32>
      %203 = arith.addf %196, %202 : vector<8x8x8xf32>
      %204 = vector.extract_strided_slice %152 {offsets = [2, 0, 0], sizes = [8, 8, 8], strides = [1, 1, 1]} : vector<10x10x8xf32> to vector<8x8x8xf32>
      %205 = vector.extract_strided_slice %43 {offsets = [6, 0], sizes = [1, 8], strides = [1, 1]} : vector<27x8xf32> to vector<1x8xf32>
      %206 = vector.shape_cast %205 : vector<1x8xf32> to vector<8xf32>
      %207 = vector.shape_cast %206 : vector<8xf32> to vector<1x1x8xf32>
      %208 = vector.broadcast %207 : vector<1x1x8xf32> to vector<8x8x8xf32>
      %209 = arith.mulf %204, %208 : vector<8x8x8xf32>
      %210 = arith.addf %203, %209 : vector<8x8x8xf32>
      %211 = vector.extract_strided_slice %152 {offsets = [2, 1, 0], sizes = [8, 8, 8], strides = [1, 1, 1]} : vector<10x10x8xf32> to vector<8x8x8xf32>
      %212 = vector.extract_strided_slice %43 {offsets = [7, 0], sizes = [1, 8], strides = [1, 1]} : vector<27x8xf32> to vector<1x8xf32>
      %213 = vector.shape_cast %212 : vector<1x8xf32> to vector<8xf32>
      %214 = vector.shape_cast %213 : vector<8xf32> to vector<1x1x8xf32>
      %215 = vector.broadcast %214 : vector<1x1x8xf32> to vector<8x8x8xf32>
      %216 = arith.mulf %211, %215 : vector<8x8x8xf32>
      %217 = arith.addf %210, %216 : vector<8x8x8xf32>
      %218 = vector.extract_strided_slice %152 {offsets = [2, 2, 0], sizes = [8, 8, 8], strides = [1, 1, 1]} : vector<10x10x8xf32> to vector<8x8x8xf32>
      %219 = vector.extract_strided_slice %43 {offsets = [8, 0], sizes = [1, 8], strides = [1, 1]} : vector<27x8xf32> to vector<1x8xf32>
      %220 = vector.shape_cast %219 : vector<1x8xf32> to vector<8xf32>
      %221 = vector.shape_cast %220 : vector<8xf32> to vector<1x1x8xf32>
      %222 = vector.broadcast %221 : vector<1x1x8xf32> to vector<8x8x8xf32>
      %223 = arith.mulf %218, %222 : vector<8x8x8xf32>
      %224 = arith.addf %217, %223 : vector<8x8x8xf32>
      %225 = vector.extract_strided_slice %156 {offsets = [0, 0, 0], sizes = [8, 8, 8], strides = [1, 1, 1]} : vector<10x10x8xf32> to vector<8x8x8xf32>
      %226 = vector.extract_strided_slice %43 {offsets = [9, 0], sizes = [1, 8], strides = [1, 1]} : vector<27x8xf32> to vector<1x8xf32>
      %227 = vector.shape_cast %226 : vector<1x8xf32> to vector<8xf32>
      %228 = vector.shape_cast %227 : vector<8xf32> to vector<1x1x8xf32>
      %229 = vector.broadcast %228 : vector<1x1x8xf32> to vector<8x8x8xf32>
      %230 = arith.mulf %225, %229 : vector<8x8x8xf32>
      %231 = arith.addf %224, %230 : vector<8x8x8xf32>
      %232 = vector.extract_strided_slice %156 {offsets = [0, 1, 0], sizes = [8, 8, 8], strides = [1, 1, 1]} : vector<10x10x8xf32> to vector<8x8x8xf32>
      %233 = vector.extract_strided_slice %43 {offsets = [10, 0], sizes = [1, 8], strides = [1, 1]} : vector<27x8xf32> to vector<1x8xf32>
      %234 = vector.shape_cast %233 : vector<1x8xf32> to vector<8xf32>
      %235 = vector.shape_cast %234 : vector<8xf32> to vector<1x1x8xf32>
      %236 = vector.broadcast %235 : vector<1x1x8xf32> to vector<8x8x8xf32>
      %237 = arith.mulf %232, %236 : vector<8x8x8xf32>
      %238 = arith.addf %231, %237 : vector<8x8x8xf32>
      %239 = vector.extract_strided_slice %156 {offsets = [0, 2, 0], sizes = [8, 8, 8], strides = [1, 1, 1]} : vector<10x10x8xf32> to vector<8x8x8xf32>
      %240 = vector.extract_strided_slice %43 {offsets = [11, 0], sizes = [1, 8], strides = [1, 1]} : vector<27x8xf32> to vector<1x8xf32>
      %241 = vector.shape_cast %240 : vector<1x8xf32> to vector<8xf32>
      %242 = vector.shape_cast %241 : vector<8xf32> to vector<1x1x8xf32>
      %243 = vector.broadcast %242 : vector<1x1x8xf32> to vector<8x8x8xf32>
      %244 = arith.mulf %239, %243 : vector<8x8x8xf32>
      %245 = arith.addf %238, %244 : vector<8x8x8xf32>
      %246 = vector.extract_strided_slice %156 {offsets = [1, 0, 0], sizes = [8, 8, 8], strides = [1, 1, 1]} : vector<10x10x8xf32> to vector<8x8x8xf32>
      %247 = vector.extract_strided_slice %43 {offsets = [12, 0], sizes = [1, 8], strides = [1, 1]} : vector<27x8xf32> to vector<1x8xf32>
      %248 = vector.shape_cast %247 : vector<1x8xf32> to vector<8xf32>
      %249 = vector.shape_cast %248 : vector<8xf32> to vector<1x1x8xf32>
      %250 = vector.broadcast %249 : vector<1x1x8xf32> to vector<8x8x8xf32>
      %251 = arith.mulf %246, %250 : vector<8x8x8xf32>
      %252 = arith.addf %245, %251 : vector<8x8x8xf32>
      %253 = vector.extract_strided_slice %156 {offsets = [1, 1, 0], sizes = [8, 8, 8], strides = [1, 1, 1]} : vector<10x10x8xf32> to vector<8x8x8xf32>
      %254 = vector.extract_strided_slice %43 {offsets = [13, 0], sizes = [1, 8], strides = [1, 1]} : vector<27x8xf32> to vector<1x8xf32>
      %255 = vector.shape_cast %254 : vector<1x8xf32> to vector<8xf32>
      %256 = vector.shape_cast %255 : vector<8xf32> to vector<1x1x8xf32>
      %257 = vector.broadcast %256 : vector<1x1x8xf32> to vector<8x8x8xf32>
      %258 = arith.mulf %253, %257 : vector<8x8x8xf32>
      %259 = arith.addf %252, %258 : vector<8x8x8xf32>
      %260 = vector.extract_strided_slice %156 {offsets = [1, 2, 0], sizes = [8, 8, 8], strides = [1, 1, 1]} : vector<10x10x8xf32> to vector<8x8x8xf32>
      %261 = vector.extract_strided_slice %43 {offsets = [14, 0], sizes = [1, 8], strides = [1, 1]} : vector<27x8xf32> to vector<1x8xf32>
      %262 = vector.shape_cast %261 : vector<1x8xf32> to vector<8xf32>
      %263 = vector.shape_cast %262 : vector<8xf32> to vector<1x1x8xf32>
      %264 = vector.broadcast %263 : vector<1x1x8xf32> to vector<8x8x8xf32>
      %265 = arith.mulf %260, %264 : vector<8x8x8xf32>
      %266 = arith.addf %259, %265 : vector<8x8x8xf32>
      %267 = vector.extract_strided_slice %156 {offsets = [2, 0, 0], sizes = [8, 8, 8], strides = [1, 1, 1]} : vector<10x10x8xf32> to vector<8x8x8xf32>
      %268 = vector.extract_strided_slice %43 {offsets = [15, 0], sizes = [1, 8], strides = [1, 1]} : vector<27x8xf32> to vector<1x8xf32>
      %269 = vector.shape_cast %268 : vector<1x8xf32> to vector<8xf32>
      %270 = vector.shape_cast %269 : vector<8xf32> to vector<1x1x8xf32>
      %271 = vector.broadcast %270 : vector<1x1x8xf32> to vector<8x8x8xf32>
      %272 = arith.mulf %267, %271 : vector<8x8x8xf32>
      %273 = arith.addf %266, %272 : vector<8x8x8xf32>
      %274 = vector.extract_strided_slice %156 {offsets = [2, 1, 0], sizes = [8, 8, 8], strides = [1, 1, 1]} : vector<10x10x8xf32> to vector<8x8x8xf32>
      %275 = vector.extract_strided_slice %43 {offsets = [16, 0], sizes = [1, 8], strides = [1, 1]} : vector<27x8xf32> to vector<1x8xf32>
      %276 = vector.shape_cast %275 : vector<1x8xf32> to vector<8xf32>
      %277 = vector.shape_cast %276 : vector<8xf32> to vector<1x1x8xf32>
      %278 = vector.broadcast %277 : vector<1x1x8xf32> to vector<8x8x8xf32>
      %279 = arith.mulf %274, %278 : vector<8x8x8xf32>
      %280 = arith.addf %273, %279 : vector<8x8x8xf32>
      %281 = vector.extract_strided_slice %156 {offsets = [2, 2, 0], sizes = [8, 8, 8], strides = [1, 1, 1]} : vector<10x10x8xf32> to vector<8x8x8xf32>
      %282 = vector.extract_strided_slice %43 {offsets = [17, 0], sizes = [1, 8], strides = [1, 1]} : vector<27x8xf32> to vector<1x8xf32>
      %283 = vector.shape_cast %282 : vector<1x8xf32> to vector<8xf32>
      %284 = vector.shape_cast %283 : vector<8xf32> to vector<1x1x8xf32>
      %285 = vector.broadcast %284 : vector<1x1x8xf32> to vector<8x8x8xf32>
      %286 = arith.mulf %281, %285 : vector<8x8x8xf32>
      %287 = arith.addf %280, %286 : vector<8x8x8xf32>
      %288 = vector.extract_strided_slice %160 {offsets = [0, 0, 0], sizes = [8, 8, 8], strides = [1, 1, 1]} : vector<10x10x8xf32> to vector<8x8x8xf32>
      %289 = vector.extract_strided_slice %43 {offsets = [18, 0], sizes = [1, 8], strides = [1, 1]} : vector<27x8xf32> to vector<1x8xf32>
      %290 = vector.shape_cast %289 : vector<1x8xf32> to vector<8xf32>
      %291 = vector.shape_cast %290 : vector<8xf32> to vector<1x1x8xf32>
      %292 = vector.broadcast %291 : vector<1x1x8xf32> to vector<8x8x8xf32>
      %293 = arith.mulf %288, %292 : vector<8x8x8xf32>
      %294 = arith.addf %287, %293 : vector<8x8x8xf32>
      %295 = vector.extract_strided_slice %160 {offsets = [0, 1, 0], sizes = [8, 8, 8], strides = [1, 1, 1]} : vector<10x10x8xf32> to vector<8x8x8xf32>
      %296 = vector.extract_strided_slice %43 {offsets = [19, 0], sizes = [1, 8], strides = [1, 1]} : vector<27x8xf32> to vector<1x8xf32>
      %297 = vector.shape_cast %296 : vector<1x8xf32> to vector<8xf32>
      %298 = vector.shape_cast %297 : vector<8xf32> to vector<1x1x8xf32>
      %299 = vector.broadcast %298 : vector<1x1x8xf32> to vector<8x8x8xf32>
      %300 = arith.mulf %295, %299 : vector<8x8x8xf32>
      %301 = arith.addf %294, %300 : vector<8x8x8xf32>
      %302 = vector.extract_strided_slice %160 {offsets = [0, 2, 0], sizes = [8, 8, 8], strides = [1, 1, 1]} : vector<10x10x8xf32> to vector<8x8x8xf32>
      %303 = vector.extract_strided_slice %43 {offsets = [20, 0], sizes = [1, 8], strides = [1, 1]} : vector<27x8xf32> to vector<1x8xf32>
      %304 = vector.shape_cast %303 : vector<1x8xf32> to vector<8xf32>
      %305 = vector.shape_cast %304 : vector<8xf32> to vector<1x1x8xf32>
      %306 = vector.broadcast %305 : vector<1x1x8xf32> to vector<8x8x8xf32>
      %307 = arith.mulf %302, %306 : vector<8x8x8xf32>
      %308 = arith.addf %301, %307 : vector<8x8x8xf32>
      %309 = vector.extract_strided_slice %160 {offsets = [1, 0, 0], sizes = [8, 8, 8], strides = [1, 1, 1]} : vector<10x10x8xf32> to vector<8x8x8xf32>
      %310 = vector.extract_strided_slice %43 {offsets = [21, 0], sizes = [1, 8], strides = [1, 1]} : vector<27x8xf32> to vector<1x8xf32>
      %311 = vector.shape_cast %310 : vector<1x8xf32> to vector<8xf32>
      %312 = vector.shape_cast %311 : vector<8xf32> to vector<1x1x8xf32>
      %313 = vector.broadcast %312 : vector<1x1x8xf32> to vector<8x8x8xf32>
      %314 = arith.mulf %309, %313 : vector<8x8x8xf32>
      %315 = arith.addf %308, %314 : vector<8x8x8xf32>
      %316 = vector.extract_strided_slice %160 {offsets = [1, 1, 0], sizes = [8, 8, 8], strides = [1, 1, 1]} : vector<10x10x8xf32> to vector<8x8x8xf32>
      %317 = vector.extract_strided_slice %43 {offsets = [22, 0], sizes = [1, 8], strides = [1, 1]} : vector<27x8xf32> to vector<1x8xf32>
      %318 = vector.shape_cast %317 : vector<1x8xf32> to vector<8xf32>
      %319 = vector.shape_cast %318 : vector<8xf32> to vector<1x1x8xf32>
      %320 = vector.broadcast %319 : vector<1x1x8xf32> to vector<8x8x8xf32>
      %321 = arith.mulf %316, %320 : vector<8x8x8xf32>
      %322 = arith.addf %315, %321 : vector<8x8x8xf32>
      %323 = vector.extract_strided_slice %160 {offsets = [1, 2, 0], sizes = [8, 8, 8], strides = [1, 1, 1]} : vector<10x10x8xf32> to vector<8x8x8xf32>
      %324 = vector.extract_strided_slice %43 {offsets = [23, 0], sizes = [1, 8], strides = [1, 1]} : vector<27x8xf32> to vector<1x8xf32>
      %325 = vector.shape_cast %324 : vector<1x8xf32> to vector<8xf32>
      %326 = vector.shape_cast %325 : vector<8xf32> to vector<1x1x8xf32>
      %327 = vector.broadcast %326 : vector<1x1x8xf32> to vector<8x8x8xf32>
      %328 = arith.mulf %323, %327 : vector<8x8x8xf32>
      %329 = arith.addf %322, %328 : vector<8x8x8xf32>
      %330 = vector.extract_strided_slice %160 {offsets = [2, 0, 0], sizes = [8, 8, 8], strides = [1, 1, 1]} : vector<10x10x8xf32> to vector<8x8x8xf32>
      %331 = vector.extract_strided_slice %43 {offsets = [24, 0], sizes = [1, 8], strides = [1, 1]} : vector<27x8xf32> to vector<1x8xf32>
      %332 = vector.shape_cast %331 : vector<1x8xf32> to vector<8xf32>
      %333 = vector.shape_cast %332 : vector<8xf32> to vector<1x1x8xf32>
      %334 = vector.broadcast %333 : vector<1x1x8xf32> to vector<8x8x8xf32>
      %335 = arith.mulf %330, %334 : vector<8x8x8xf32>
      %336 = arith.addf %329, %335 : vector<8x8x8xf32>
      %337 = vector.extract_strided_slice %160 {offsets = [2, 1, 0], sizes = [8, 8, 8], strides = [1, 1, 1]} : vector<10x10x8xf32> to vector<8x8x8xf32>
      %338 = vector.extract_strided_slice %43 {offsets = [25, 0], sizes = [1, 8], strides = [1, 1]} : vector<27x8xf32> to vector<1x8xf32>
      %339 = vector.shape_cast %338 : vector<1x8xf32> to vector<8xf32>
      %340 = vector.shape_cast %339 : vector<8xf32> to vector<1x1x8xf32>
      %341 = vector.broadcast %340 : vector<1x1x8xf32> to vector<8x8x8xf32>
      %342 = arith.mulf %337, %341 : vector<8x8x8xf32>
      %343 = arith.addf %336, %342 : vector<8x8x8xf32>
      %344 = vector.extract_strided_slice %160 {offsets = [2, 2, 0], sizes = [8, 8, 8], strides = [1, 1, 1]} : vector<10x10x8xf32> to vector<8x8x8xf32>
      %345 = vector.extract_strided_slice %43 {offsets = [26, 0], sizes = [1, 8], strides = [1, 1]} : vector<27x8xf32> to vector<1x8xf32>
      %346 = vector.shape_cast %345 : vector<1x8xf32> to vector<8xf32>
      %347 = vector.shape_cast %346 : vector<8xf32> to vector<1x1x8xf32>
      %348 = vector.broadcast %347 : vector<1x1x8xf32> to vector<8x8x8xf32>
      %349 = arith.mulf %344, %348 : vector<8x8x8xf32>
      %350 = arith.addf %343, %349 : vector<8x8x8xf32>
      %351 = vector.shape_cast %45 : vector<8xf32> to vector<1x1x8xf32>
      %352 = vector.broadcast %351 : vector<1x1x8xf32> to vector<8x8x8xf32>
      %353 = arith.mulf %350, %352 : vector<8x8x8xf32>
      %354 = vector.shape_cast %47 : vector<8xf32> to vector<1x1x8xf32>
      %355 = vector.broadcast %354 : vector<1x1x8xf32> to vector<8x8x8xf32>
      %356 = arith.addf %353, %355 : vector<8x8x8xf32>
      %cst_107 = arith.constant 0.000000e+00 : f32
      %357 = vector.broadcast %cst_107 : f32 to vector<8x8x8xf32>
      %358 = arith.maximumf %356, %357 : vector<8x8x8xf32>
      %359 = vector.extract_strided_slice %156 {offsets = [1, 1, 0], sizes = [8, 8, 8], strides = [1, 1, 1]} : vector<10x10x8xf32> to vector<8x8x8xf32>
      %360 = arith.addf %359, %358 : vector<8x8x8xf32>
      %361 = arith.index_cast %149 : i32 to index
      %c0_108 = arith.constant 0 : index
      %c0_109 = arith.constant 0 : index
      %c0_110 = arith.constant 0 : index
      %362 = vector.load %arg10[%361, %c0_108, %c0_109, %c0_110] : memref<4x8x8x8xf32, #tpu.memory_space<vmem>>, vector<1x8x8x8xf32>
      %363 = vector.shape_cast %362 : vector<1x8x8x8xf32> to vector<8x8x8xf32>
      %364 = vector.shape_cast %360 : vector<8x8x8xf32> to vector<1x8x8x8xf32>
      tpu.vector_store %arg10[%361, %c0_108, %c0_109, %c0_110], %364 {strides = array<i32>} : memref<4x8x8x8xf32, #tpu.memory_space<vmem>>, vector<1x8x8x8xf32>,
    }
    %c4_i32_33 = arith.constant 4 : i32
    %c0_34 = arith.constant 0 : index
    %c0_35 = arith.constant 0 : index
    %c0_36 = arith.constant 0 : index
    %c0_37 = arith.constant 0 : index
    %49 = vector.load %arg10[%c0_34, %c0_35, %c0_36, %c0_37] : memref<4x8x8x8xf32, #tpu.memory_space<vmem>>, vector<4x8x8x8xf32>
    %50 = vector.shape_cast %49 : vector<4x8x8x8xf32> to vector<256x8xf32>
    %51 = arith.truncf %50 : vector<256x8xf32> to vector<256x8xbf16>
    %c1_38 = arith.constant 1 : index
    %c0_39 = arith.constant 0 : index
    %c0_40 = arith.constant 0 : index
    %52 = vector.load %arg5[%c1_38, %c0_39, %c0_40] : memref<6x8x8xbf16, #tpu.memory_space<vmem>>, vector<1x8x8xbf16>
    %53 = vector.shape_cast %52 : vector<1x8x8xbf16> to vector<8x8xbf16>
    %cst_41 = arith.constant dense<0.000000e+00> : vector<256x8xf32>
    %54 = tpu.matmul %51, %53, %cst_41 {dimension_numbers = #tpu.dot_dimension_numbers<[1], [0], [0], [1], [0, 0, 1, 1], [], []>} : vector<256x8xbf16>, vector<8x8xbf16>, vector<256x8xf32> -> vector<256x8xf32>
    %55 = vector.extract_strided_slice %0 {offsets = [0, 2, 0], sizes = [1, 1, 8], strides = [1, 1, 1]} : vector<2x8x8xf32> to vector<1x1x8xf32>
    %56 = vector.shape_cast %55 : vector<1x1x8xf32> to vector<8xf32>
    %57 = vector.shape_cast %56 : vector<8xf32> to vector<1x8xf32>
    %58 = vector.broadcast %57 : vector<1x8xf32> to vector<256x8xf32>
    %59 = arith.mulf %54, %58 : vector<256x8xf32>
    %60 = vector.extract_strided_slice %0 {offsets = [1, 2, 0], sizes = [1, 1, 8], strides = [1, 1, 1]} : vector<2x8x8xf32> to vector<1x1x8xf32>
    %61 = vector.shape_cast %60 : vector<1x1x8xf32> to vector<8xf32>
    %62 = vector.shape_cast %61 : vector<8xf32> to vector<1x8xf32>
    %63 = vector.broadcast %62 : vector<1x8xf32> to vector<256x8xf32>
    %64 = arith.addf %59, %63 : vector<256x8xf32>
    %cst_42 = arith.constant 0.000000e+00 : f32
    %65 = vector.broadcast %cst_42 : f32 to vector<256x8xf32>
    %66 = arith.maximumf %64, %65 : vector<256x8xf32>
    %67 = vector.shape_cast %66 : vector<256x8xf32> to vector<4x8x8x8xf32>
    %c1_43 = arith.constant 1 : index
    %c1_44 = arith.constant 1 : index
    %c1_45 = arith.constant 1 : index
    %c0_46 = arith.constant 0 : index
    %68 = vector.load %arg9[%c1_43, %c1_44, %c1_45, %c0_46] : memref<6x10x10x8xf32, #tpu.memory_space<vmem>>, vector<4x8x8x8xf32>
    tpu.vector_store %arg9[%c1_43, %c1_44, %c1_45, %c0_46], %67 {strides = array<i32>} : memref<6x10x10x8xf32, #tpu.memory_space<vmem>>, vector<4x8x8x8xf32>,
    %c1_47 = arith.constant 1 : index
    %c0_48 = arith.constant 0 : index
    %c0_49 = arith.constant 0 : index
    %69 = vector.load %arg6[%c1_47, %c0_48, %c0_49] : memref<3x27x8xf32, #tpu.memory_space<vmem>>, vector<1x27x8xf32>
    %70 = vector.shape_cast %69 : vector<1x27x8xf32> to vector<27x8xf32>
    %71 = vector.extract_strided_slice %0 {offsets = [0, 3, 0], sizes = [1, 1, 8], strides = [1, 1, 1]} : vector<2x8x8xf32> to vector<1x1x8xf32>
    %72 = vector.shape_cast %71 : vector<1x1x8xf32> to vector<8xf32>
    %73 = vector.extract_strided_slice %0 {offsets = [1, 3, 0], sizes = [1, 1, 8], strides = [1, 1, 1]} : vector<2x8x8xf32> to vector<1x1x8xf32>
    %74 = vector.shape_cast %73 : vector<1x1x8xf32> to vector<8xf32>
    %c0_i32_50 = arith.constant 0 : i32
    %c4_i32_51 = arith.constant 4 : i32
    %75 = arith.addi %c0_i32_50, %c4_i32_51 : i32
    %c1_i32_52 = arith.constant 1 : i32
    scf.for %arg11 = %c0_i32_50 to %75 step %c1_i32_52  : i32 {
      %c1_i32_94 = arith.constant 1 : i32
      %148 = arith.muli %arg11, %c1_i32_94 : i32
      %c0_i32_95 = arith.constant 0 : i32
      %149 = arith.addi %c0_i32_95, %148 : i32
      %150 = arith.index_cast %149 : i32 to index
      %c0_96 = arith.constant 0 : index
      %c0_97 = arith.constant 0 : index
      %c0_98 = arith.constant 0 : index
      %151 = vector.load %arg9[%150, %c0_96, %c0_97, %c0_98] : memref<6x10x10x8xf32, #tpu.memory_space<vmem>>, vector<1x10x10x8xf32>
      %152 = vector.shape_cast %151 : vector<1x10x10x8xf32> to vector<10x10x8xf32>
      %c1_i32_99 = arith.constant 1 : i32
      %153 = arith.addi %149, %c1_i32_99 : i32
      %154 = arith.index_cast %153 : i32 to index
      %c0_100 = arith.constant 0 : index
      %c0_101 = arith.constant 0 : index
      %c0_102 = arith.constant 0 : index
      %155 = vector.load %arg9[%154, %c0_100, %c0_101, %c0_102] : memref<6x10x10x8xf32, #tpu.memory_space<vmem>>, vector<1x10x10x8xf32>
      %156 = vector.shape_cast %155 : vector<1x10x10x8xf32> to vector<10x10x8xf32>
      %c2_i32 = arith.constant 2 : i32
      %157 = arith.addi %149, %c2_i32 : i32
      %158 = arith.index_cast %157 : i32 to index
      %c0_103 = arith.constant 0 : index
      %c0_104 = arith.constant 0 : index
      %c0_105 = arith.constant 0 : index
      %159 = vector.load %arg9[%158, %c0_103, %c0_104, %c0_105] : memref<6x10x10x8xf32, #tpu.memory_space<vmem>>, vector<1x10x10x8xf32>
      %160 = vector.shape_cast %159 : vector<1x10x10x8xf32> to vector<10x10x8xf32>
      %cst_106 = arith.constant 0.000000e+00 : f32
      %161 = vector.broadcast %cst_106 : f32 to vector<8x8x8xf32>
      %162 = vector.extract_strided_slice %152 {offsets = [0, 0, 0], sizes = [8, 8, 8], strides = [1, 1, 1]} : vector<10x10x8xf32> to vector<8x8x8xf32>
      %163 = vector.extract_strided_slice %70 {offsets = [0, 0], sizes = [1, 8], strides = [1, 1]} : vector<27x8xf32> to vector<1x8xf32>
      %164 = vector.shape_cast %163 : vector<1x8xf32> to vector<8xf32>
      %165 = vector.shape_cast %164 : vector<8xf32> to vector<1x1x8xf32>
      %166 = vector.broadcast %165 : vector<1x1x8xf32> to vector<8x8x8xf32>
      %167 = arith.mulf %162, %166 : vector<8x8x8xf32>
      %168 = arith.addf %161, %167 : vector<8x8x8xf32>
      %169 = vector.extract_strided_slice %152 {offsets = [0, 1, 0], sizes = [8, 8, 8], strides = [1, 1, 1]} : vector<10x10x8xf32> to vector<8x8x8xf32>
      %170 = vector.extract_strided_slice %70 {offsets = [1, 0], sizes = [1, 8], strides = [1, 1]} : vector<27x8xf32> to vector<1x8xf32>
      %171 = vector.shape_cast %170 : vector<1x8xf32> to vector<8xf32>
      %172 = vector.shape_cast %171 : vector<8xf32> to vector<1x1x8xf32>
      %173 = vector.broadcast %172 : vector<1x1x8xf32> to vector<8x8x8xf32>
      %174 = arith.mulf %169, %173 : vector<8x8x8xf32>
      %175 = arith.addf %168, %174 : vector<8x8x8xf32>
      %176 = vector.extract_strided_slice %152 {offsets = [0, 2, 0], sizes = [8, 8, 8], strides = [1, 1, 1]} : vector<10x10x8xf32> to vector<8x8x8xf32>
      %177 = vector.extract_strided_slice %70 {offsets = [2, 0], sizes = [1, 8], strides = [1, 1]} : vector<27x8xf32> to vector<1x8xf32>
      %178 = vector.shape_cast %177 : vector<1x8xf32> to vector<8xf32>
      %179 = vector.shape_cast %178 : vector<8xf32> to vector<1x1x8xf32>
      %180 = vector.broadcast %179 : vector<1x1x8xf32> to vector<8x8x8xf32>
      %181 = arith.mulf %176, %180 : vector<8x8x8xf32>
      %182 = arith.addf %175, %181 : vector<8x8x8xf32>
      %183 = vector.extract_strided_slice %152 {offsets = [1, 0, 0], sizes = [8, 8, 8], strides = [1, 1, 1]} : vector<10x10x8xf32> to vector<8x8x8xf32>
      %184 = vector.extract_strided_slice %70 {offsets = [3, 0], sizes = [1, 8], strides = [1, 1]} : vector<27x8xf32> to vector<1x8xf32>
      %185 = vector.shape_cast %184 : vector<1x8xf32> to vector<8xf32>
      %186 = vector.shape_cast %185 : vector<8xf32> to vector<1x1x8xf32>
      %187 = vector.broadcast %186 : vector<1x1x8xf32> to vector<8x8x8xf32>
      %188 = arith.mulf %183, %187 : vector<8x8x8xf32>
      %189 = arith.addf %182, %188 : vector<8x8x8xf32>
      %190 = vector.extract_strided_slice %152 {offsets = [1, 1, 0], sizes = [8, 8, 8], strides = [1, 1, 1]} : vector<10x10x8xf32> to vector<8x8x8xf32>
      %191 = vector.extract_strided_slice %70 {offsets = [4, 0], sizes = [1, 8], strides = [1, 1]} : vector<27x8xf32> to vector<1x8xf32>
      %192 = vector.shape_cast %191 : vector<1x8xf32> to vector<8xf32>
      %193 = vector.shape_cast %192 : vector<8xf32> to vector<1x1x8xf32>
      %194 = vector.broadcast %193 : vector<1x1x8xf32> to vector<8x8x8xf32>
      %195 = arith.mulf %190, %194 : vector<8x8x8xf32>
      %196 = arith.addf %189, %195 : vector<8x8x8xf32>
      %197 = vector.extract_strided_slice %152 {offsets = [1, 2, 0], sizes = [8, 8, 8], strides = [1, 1, 1]} : vector<10x10x8xf32> to vector<8x8x8xf32>
      %198 = vector.extract_strided_slice %70 {offsets = [5, 0], sizes = [1, 8], strides = [1, 1]} : vector<27x8xf32> to vector<1x8xf32>
      %199 = vector.shape_cast %198 : vector<1x8xf32> to vector<8xf32>
      %200 = vector.shape_cast %199 : vector<8xf32> to vector<1x1x8xf32>
      %201 = vector.broadcast %200 : vector<1x1x8xf32> to vector<8x8x8xf32>
      %202 = arith.mulf %197, %201 : vector<8x8x8xf32>
      %203 = arith.addf %196, %202 : vector<8x8x8xf32>
      %204 = vector.extract_strided_slice %152 {offsets = [2, 0, 0], sizes = [8, 8, 8], strides = [1, 1, 1]} : vector<10x10x8xf32> to vector<8x8x8xf32>
      %205 = vector.extract_strided_slice %70 {offsets = [6, 0], sizes = [1, 8], strides = [1, 1]} : vector<27x8xf32> to vector<1x8xf32>
      %206 = vector.shape_cast %205 : vector<1x8xf32> to vector<8xf32>
      %207 = vector.shape_cast %206 : vector<8xf32> to vector<1x1x8xf32>
      %208 = vector.broadcast %207 : vector<1x1x8xf32> to vector<8x8x8xf32>
      %209 = arith.mulf %204, %208 : vector<8x8x8xf32>
      %210 = arith.addf %203, %209 : vector<8x8x8xf32>
      %211 = vector.extract_strided_slice %152 {offsets = [2, 1, 0], sizes = [8, 8, 8], strides = [1, 1, 1]} : vector<10x10x8xf32> to vector<8x8x8xf32>
      %212 = vector.extract_strided_slice %70 {offsets = [7, 0], sizes = [1, 8], strides = [1, 1]} : vector<27x8xf32> to vector<1x8xf32>
      %213 = vector.shape_cast %212 : vector<1x8xf32> to vector<8xf32>
      %214 = vector.shape_cast %213 : vector<8xf32> to vector<1x1x8xf32>
      %215 = vector.broadcast %214 : vector<1x1x8xf32> to vector<8x8x8xf32>
      %216 = arith.mulf %211, %215 : vector<8x8x8xf32>
      %217 = arith.addf %210, %216 : vector<8x8x8xf32>
      %218 = vector.extract_strided_slice %152 {offsets = [2, 2, 0], sizes = [8, 8, 8], strides = [1, 1, 1]} : vector<10x10x8xf32> to vector<8x8x8xf32>
      %219 = vector.extract_strided_slice %70 {offsets = [8, 0], sizes = [1, 8], strides = [1, 1]} : vector<27x8xf32> to vector<1x8xf32>
      %220 = vector.shape_cast %219 : vector<1x8xf32> to vector<8xf32>
      %221 = vector.shape_cast %220 : vector<8xf32> to vector<1x1x8xf32>
      %222 = vector.broadcast %221 : vector<1x1x8xf32> to vector<8x8x8xf32>
      %223 = arith.mulf %218, %222 : vector<8x8x8xf32>
      %224 = arith.addf %217, %223 : vector<8x8x8xf32>
      %225 = vector.extract_strided_slice %156 {offsets = [0, 0, 0], sizes = [8, 8, 8], strides = [1, 1, 1]} : vector<10x10x8xf32> to vector<8x8x8xf32>
      %226 = vector.extract_strided_slice %70 {offsets = [9, 0], sizes = [1, 8], strides = [1, 1]} : vector<27x8xf32> to vector<1x8xf32>
      %227 = vector.shape_cast %226 : vector<1x8xf32> to vector<8xf32>
      %228 = vector.shape_cast %227 : vector<8xf32> to vector<1x1x8xf32>
      %229 = vector.broadcast %228 : vector<1x1x8xf32> to vector<8x8x8xf32>
      %230 = arith.mulf %225, %229 : vector<8x8x8xf32>
      %231 = arith.addf %224, %230 : vector<8x8x8xf32>
      %232 = vector.extract_strided_slice %156 {offsets = [0, 1, 0], sizes = [8, 8, 8], strides = [1, 1, 1]} : vector<10x10x8xf32> to vector<8x8x8xf32>
      %233 = vector.extract_strided_slice %70 {offsets = [10, 0], sizes = [1, 8], strides = [1, 1]} : vector<27x8xf32> to vector<1x8xf32>
      %234 = vector.shape_cast %233 : vector<1x8xf32> to vector<8xf32>
      %235 = vector.shape_cast %234 : vector<8xf32> to vector<1x1x8xf32>
      %236 = vector.broadcast %235 : vector<1x1x8xf32> to vector<8x8x8xf32>
      %237 = arith.mulf %232, %236 : vector<8x8x8xf32>
      %238 = arith.addf %231, %237 : vector<8x8x8xf32>
      %239 = vector.extract_strided_slice %156 {offsets = [0, 2, 0], sizes = [8, 8, 8], strides = [1, 1, 1]} : vector<10x10x8xf32> to vector<8x8x8xf32>
      %240 = vector.extract_strided_slice %70 {offsets = [11, 0], sizes = [1, 8], strides = [1, 1]} : vector<27x8xf32> to vector<1x8xf32>
      %241 = vector.shape_cast %240 : vector<1x8xf32> to vector<8xf32>
      %242 = vector.shape_cast %241 : vector<8xf32> to vector<1x1x8xf32>
      %243 = vector.broadcast %242 : vector<1x1x8xf32> to vector<8x8x8xf32>
      %244 = arith.mulf %239, %243 : vector<8x8x8xf32>
      %245 = arith.addf %238, %244 : vector<8x8x8xf32>
      %246 = vector.extract_strided_slice %156 {offsets = [1, 0, 0], sizes = [8, 8, 8], strides = [1, 1, 1]} : vector<10x10x8xf32> to vector<8x8x8xf32>
      %247 = vector.extract_strided_slice %70 {offsets = [12, 0], sizes = [1, 8], strides = [1, 1]} : vector<27x8xf32> to vector<1x8xf32>
      %248 = vector.shape_cast %247 : vector<1x8xf32> to vector<8xf32>
      %249 = vector.shape_cast %248 : vector<8xf32> to vector<1x1x8xf32>
      %250 = vector.broadcast %249 : vector<1x1x8xf32> to vector<8x8x8xf32>
      %251 = arith.mulf %246, %250 : vector<8x8x8xf32>
      %252 = arith.addf %245, %251 : vector<8x8x8xf32>
      %253 = vector.extract_strided_slice %156 {offsets = [1, 1, 0], sizes = [8, 8, 8], strides = [1, 1, 1]} : vector<10x10x8xf32> to vector<8x8x8xf32>
      %254 = vector.extract_strided_slice %70 {offsets = [13, 0], sizes = [1, 8], strides = [1, 1]} : vector<27x8xf32> to vector<1x8xf32>
      %255 = vector.shape_cast %254 : vector<1x8xf32> to vector<8xf32>
      %256 = vector.shape_cast %255 : vector<8xf32> to vector<1x1x8xf32>
      %257 = vector.broadcast %256 : vector<1x1x8xf32> to vector<8x8x8xf32>
      %258 = arith.mulf %253, %257 : vector<8x8x8xf32>
      %259 = arith.addf %252, %258 : vector<8x8x8xf32>
      %260 = vector.extract_strided_slice %156 {offsets = [1, 2, 0], sizes = [8, 8, 8], strides = [1, 1, 1]} : vector<10x10x8xf32> to vector<8x8x8xf32>
      %261 = vector.extract_strided_slice %70 {offsets = [14, 0], sizes = [1, 8], strides = [1, 1]} : vector<27x8xf32> to vector<1x8xf32>
      %262 = vector.shape_cast %261 : vector<1x8xf32> to vector<8xf32>
      %263 = vector.shape_cast %262 : vector<8xf32> to vector<1x1x8xf32>
      %264 = vector.broadcast %263 : vector<1x1x8xf32> to vector<8x8x8xf32>
      %265 = arith.mulf %260, %264 : vector<8x8x8xf32>
      %266 = arith.addf %259, %265 : vector<8x8x8xf32>
      %267 = vector.extract_strided_slice %156 {offsets = [2, 0, 0], sizes = [8, 8, 8], strides = [1, 1, 1]} : vector<10x10x8xf32> to vector<8x8x8xf32>
      %268 = vector.extract_strided_slice %70 {offsets = [15, 0], sizes = [1, 8], strides = [1, 1]} : vector<27x8xf32> to vector<1x8xf32>
      %269 = vector.shape_cast %268 : vector<1x8xf32> to vector<8xf32>
      %270 = vector.shape_cast %269 : vector<8xf32> to vector<1x1x8xf32>
      %271 = vector.broadcast %270 : vector<1x1x8xf32> to vector<8x8x8xf32>
      %272 = arith.mulf %267, %271 : vector<8x8x8xf32>
      %273 = arith.addf %266, %272 : vector<8x8x8xf32>
      %274 = vector.extract_strided_slice %156 {offsets = [2, 1, 0], sizes = [8, 8, 8], strides = [1, 1, 1]} : vector<10x10x8xf32> to vector<8x8x8xf32>
      %275 = vector.extract_strided_slice %70 {offsets = [16, 0], sizes = [1, 8], strides = [1, 1]} : vector<27x8xf32> to vector<1x8xf32>
      %276 = vector.shape_cast %275 : vector<1x8xf32> to vector<8xf32>
      %277 = vector.shape_cast %276 : vector<8xf32> to vector<1x1x8xf32>
      %278 = vector.broadcast %277 : vector<1x1x8xf32> to vector<8x8x8xf32>
      %279 = arith.mulf %274, %278 : vector<8x8x8xf32>
      %280 = arith.addf %273, %279 : vector<8x8x8xf32>
      %281 = vector.extract_strided_slice %156 {offsets = [2, 2, 0], sizes = [8, 8, 8], strides = [1, 1, 1]} : vector<10x10x8xf32> to vector<8x8x8xf32>
      %282 = vector.extract_strided_slice %70 {offsets = [17, 0], sizes = [1, 8], strides = [1, 1]} : vector<27x8xf32> to vector<1x8xf32>
      %283 = vector.shape_cast %282 : vector<1x8xf32> to vector<8xf32>
      %284 = vector.shape_cast %283 : vector<8xf32> to vector<1x1x8xf32>
      %285 = vector.broadcast %284 : vector<1x1x8xf32> to vector<8x8x8xf32>
      %286 = arith.mulf %281, %285 : vector<8x8x8xf32>
      %287 = arith.addf %280, %286 : vector<8x8x8xf32>
      %288 = vector.extract_strided_slice %160 {offsets = [0, 0, 0], sizes = [8, 8, 8], strides = [1, 1, 1]} : vector<10x10x8xf32> to vector<8x8x8xf32>
      %289 = vector.extract_strided_slice %70 {offsets = [18, 0], sizes = [1, 8], strides = [1, 1]} : vector<27x8xf32> to vector<1x8xf32>
      %290 = vector.shape_cast %289 : vector<1x8xf32> to vector<8xf32>
      %291 = vector.shape_cast %290 : vector<8xf32> to vector<1x1x8xf32>
      %292 = vector.broadcast %291 : vector<1x1x8xf32> to vector<8x8x8xf32>
      %293 = arith.mulf %288, %292 : vector<8x8x8xf32>
      %294 = arith.addf %287, %293 : vector<8x8x8xf32>
      %295 = vector.extract_strided_slice %160 {offsets = [0, 1, 0], sizes = [8, 8, 8], strides = [1, 1, 1]} : vector<10x10x8xf32> to vector<8x8x8xf32>
      %296 = vector.extract_strided_slice %70 {offsets = [19, 0], sizes = [1, 8], strides = [1, 1]} : vector<27x8xf32> to vector<1x8xf32>
      %297 = vector.shape_cast %296 : vector<1x8xf32> to vector<8xf32>
      %298 = vector.shape_cast %297 : vector<8xf32> to vector<1x1x8xf32>
      %299 = vector.broadcast %298 : vector<1x1x8xf32> to vector<8x8x8xf32>
      %300 = arith.mulf %295, %299 : vector<8x8x8xf32>
      %301 = arith.addf %294, %300 : vector<8x8x8xf32>
      %302 = vector.extract_strided_slice %160 {offsets = [0, 2, 0], sizes = [8, 8, 8], strides = [1, 1, 1]} : vector<10x10x8xf32> to vector<8x8x8xf32>
      %303 = vector.extract_strided_slice %70 {offsets = [20, 0], sizes = [1, 8], strides = [1, 1]} : vector<27x8xf32> to vector<1x8xf32>
      %304 = vector.shape_cast %303 : vector<1x8xf32> to vector<8xf32>
      %305 = vector.shape_cast %304 : vector<8xf32> to vector<1x1x8xf32>
      %306 = vector.broadcast %305 : vector<1x1x8xf32> to vector<8x8x8xf32>
      %307 = arith.mulf %302, %306 : vector<8x8x8xf32>
      %308 = arith.addf %301, %307 : vector<8x8x8xf32>
      %309 = vector.extract_strided_slice %160 {offsets = [1, 0, 0], sizes = [8, 8, 8], strides = [1, 1, 1]} : vector<10x10x8xf32> to vector<8x8x8xf32>
      %310 = vector.extract_strided_slice %70 {offsets = [21, 0], sizes = [1, 8], strides = [1, 1]} : vector<27x8xf32> to vector<1x8xf32>
      %311 = vector.shape_cast %310 : vector<1x8xf32> to vector<8xf32>
      %312 = vector.shape_cast %311 : vector<8xf32> to vector<1x1x8xf32>
      %313 = vector.broadcast %312 : vector<1x1x8xf32> to vector<8x8x8xf32>
      %314 = arith.mulf %309, %313 : vector<8x8x8xf32>
      %315 = arith.addf %308, %314 : vector<8x8x8xf32>
      %316 = vector.extract_strided_slice %160 {offsets = [1, 1, 0], sizes = [8, 8, 8], strides = [1, 1, 1]} : vector<10x10x8xf32> to vector<8x8x8xf32>
      %317 = vector.extract_strided_slice %70 {offsets = [22, 0], sizes = [1, 8], strides = [1, 1]} : vector<27x8xf32> to vector<1x8xf32>
      %318 = vector.shape_cast %317 : vector<1x8xf32> to vector<8xf32>
      %319 = vector.shape_cast %318 : vector<8xf32> to vector<1x1x8xf32>
      %320 = vector.broadcast %319 : vector<1x1x8xf32> to vector<8x8x8xf32>
      %321 = arith.mulf %316, %320 : vector<8x8x8xf32>
      %322 = arith.addf %315, %321 : vector<8x8x8xf32>
      %323 = vector.extract_strided_slice %160 {offsets = [1, 2, 0], sizes = [8, 8, 8], strides = [1, 1, 1]} : vector<10x10x8xf32> to vector<8x8x8xf32>
      %324 = vector.extract_strided_slice %70 {offsets = [23, 0], sizes = [1, 8], strides = [1, 1]} : vector<27x8xf32> to vector<1x8xf32>
      %325 = vector.shape_cast %324 : vector<1x8xf32> to vector<8xf32>
      %326 = vector.shape_cast %325 : vector<8xf32> to vector<1x1x8xf32>
      %327 = vector.broadcast %326 : vector<1x1x8xf32> to vector<8x8x8xf32>
      %328 = arith.mulf %323, %327 : vector<8x8x8xf32>
      %329 = arith.addf %322, %328 : vector<8x8x8xf32>
      %330 = vector.extract_strided_slice %160 {offsets = [2, 0, 0], sizes = [8, 8, 8], strides = [1, 1, 1]} : vector<10x10x8xf32> to vector<8x8x8xf32>
      %331 = vector.extract_strided_slice %70 {offsets = [24, 0], sizes = [1, 8], strides = [1, 1]} : vector<27x8xf32> to vector<1x8xf32>
      %332 = vector.shape_cast %331 : vector<1x8xf32> to vector<8xf32>
      %333 = vector.shape_cast %332 : vector<8xf32> to vector<1x1x8xf32>
      %334 = vector.broadcast %333 : vector<1x1x8xf32> to vector<8x8x8xf32>
      %335 = arith.mulf %330, %334 : vector<8x8x8xf32>
      %336 = arith.addf %329, %335 : vector<8x8x8xf32>
      %337 = vector.extract_strided_slice %160 {offsets = [2, 1, 0], sizes = [8, 8, 8], strides = [1, 1, 1]} : vector<10x10x8xf32> to vector<8x8x8xf32>
      %338 = vector.extract_strided_slice %70 {offsets = [25, 0], sizes = [1, 8], strides = [1, 1]} : vector<27x8xf32> to vector<1x8xf32>
      %339 = vector.shape_cast %338 : vector<1x8xf32> to vector<8xf32>
      %340 = vector.shape_cast %339 : vector<8xf32> to vector<1x1x8xf32>
      %341 = vector.broadcast %340 : vector<1x1x8xf32> to vector<8x8x8xf32>
      %342 = arith.mulf %337, %341 : vector<8x8x8xf32>
      %343 = arith.addf %336, %342 : vector<8x8x8xf32>
      %344 = vector.extract_strided_slice %160 {offsets = [2, 2, 0], sizes = [8, 8, 8], strides = [1, 1, 1]} : vector<10x10x8xf32> to vector<8x8x8xf32>
      %345 = vector.extract_strided_slice %70 {offsets = [26, 0], sizes = [1, 8], strides = [1, 1]} : vector<27x8xf32> to vector<1x8xf32>
      %346 = vector.shape_cast %345 : vector<1x8xf32> to vector<8xf32>
      %347 = vector.shape_cast %346 : vector<8xf32> to vector<1x1x8xf32>
      %348 = vector.broadcast %347 : vector<1x1x8xf32> to vector<8x8x8xf32>
      %349 = arith.mulf %344, %348 : vector<8x8x8xf32>
      %350 = arith.addf %343, %349 : vector<8x8x8xf32>
      %351 = vector.shape_cast %72 : vector<8xf32> to vector<1x1x8xf32>
      %352 = vector.broadcast %351 : vector<1x1x8xf32> to vector<8x8x8xf32>
      %353 = arith.mulf %350, %352 : vector<8x8x8xf32>
      %354 = vector.shape_cast %74 : vector<8xf32> to vector<1x1x8xf32>
      %355 = vector.broadcast %354 : vector<1x1x8xf32> to vector<8x8x8xf32>
      %356 = arith.addf %353, %355 : vector<8x8x8xf32>
      %cst_107 = arith.constant 0.000000e+00 : f32
      %357 = vector.broadcast %cst_107 : f32 to vector<8x8x8xf32>
      %358 = arith.maximumf %356, %357 : vector<8x8x8xf32>
      %359 = vector.extract_strided_slice %156 {offsets = [1, 1, 0], sizes = [8, 8, 8], strides = [1, 1, 1]} : vector<10x10x8xf32> to vector<8x8x8xf32>
      %360 = arith.addf %359, %358 : vector<8x8x8xf32>
      %361 = arith.index_cast %149 : i32 to index
      %c0_108 = arith.constant 0 : index
      %c0_109 = arith.constant 0 : index
      %c0_110 = arith.constant 0 : index
      %362 = vector.load %arg10[%361, %c0_108, %c0_109, %c0_110] : memref<4x8x8x8xf32, #tpu.memory_space<vmem>>, vector<1x8x8x8xf32>
      %363 = vector.shape_cast %362 : vector<1x8x8x8xf32> to vector<8x8x8xf32>
      %364 = vector.shape_cast %360 : vector<8x8x8xf32> to vector<1x8x8x8xf32>
      tpu.vector_store %arg10[%361, %c0_108, %c0_109, %c0_110], %364 {strides = array<i32>} : memref<4x8x8x8xf32, #tpu.memory_space<vmem>>, vector<1x8x8x8xf32>,
    }
    %c4_i32_53 = arith.constant 4 : i32
    %c0_54 = arith.constant 0 : index
    %c0_55 = arith.constant 0 : index
    %c0_56 = arith.constant 0 : index
    %c0_57 = arith.constant 0 : index
    %76 = vector.load %arg10[%c0_54, %c0_55, %c0_56, %c0_57] : memref<4x8x8x8xf32, #tpu.memory_space<vmem>>, vector<4x8x8x8xf32>
    %77 = vector.shape_cast %76 : vector<4x8x8x8xf32> to vector<256x8xf32>
    %78 = arith.truncf %77 : vector<256x8xf32> to vector<256x8xbf16>
    %c2 = arith.constant 2 : index
    %c0_58 = arith.constant 0 : index
    %c0_59 = arith.constant 0 : index
    %79 = vector.load %arg5[%c2, %c0_58, %c0_59] : memref<6x8x8xbf16, #tpu.memory_space<vmem>>, vector<1x8x8xbf16>
    %80 = vector.shape_cast %79 : vector<1x8x8xbf16> to vector<8x8xbf16>
    %cst_60 = arith.constant dense<0.000000e+00> : vector<256x8xf32>
    %81 = tpu.matmul %78, %80, %cst_60 {dimension_numbers = #tpu.dot_dimension_numbers<[1], [0], [0], [1], [0, 0, 1, 1], [], []>} : vector<256x8xbf16>, vector<8x8xbf16>, vector<256x8xf32> -> vector<256x8xf32>
    %82 = vector.extract_strided_slice %0 {offsets = [0, 4, 0], sizes = [1, 1, 8], strides = [1, 1, 1]} : vector<2x8x8xf32> to vector<1x1x8xf32>
    %83 = vector.shape_cast %82 : vector<1x1x8xf32> to vector<8xf32>
    %84 = vector.shape_cast %83 : vector<8xf32> to vector<1x8xf32>
    %85 = vector.broadcast %84 : vector<1x8xf32> to vector<256x8xf32>
    %86 = arith.mulf %81, %85 : vector<256x8xf32>
    %87 = vector.extract_strided_slice %0 {offsets = [1, 4, 0], sizes = [1, 1, 8], strides = [1, 1, 1]} : vector<2x8x8xf32> to vector<1x1x8xf32>
    %88 = vector.shape_cast %87 : vector<1x1x8xf32> to vector<8xf32>
    %89 = vector.shape_cast %88 : vector<8xf32> to vector<1x8xf32>
    %90 = vector.broadcast %89 : vector<1x8xf32> to vector<256x8xf32>
    %91 = arith.addf %86, %90 : vector<256x8xf32>
    %cst_61 = arith.constant 0.000000e+00 : f32
    %92 = vector.broadcast %cst_61 : f32 to vector<256x8xf32>
    %93 = arith.subf %92, %91 : vector<256x8xf32>
    %94 = math.exp %93 : vector<256x8xf32>
    %cst_62 = arith.constant 1.000000e+00 : f32
    %95 = vector.broadcast %cst_62 : f32 to vector<256x8xf32>
    %96 = arith.addf %95, %94 : vector<256x8xf32>
    %97 = tpu.reciprocal %96 {approx = true} : vector<256x8xf32> -> vector<256x8xf32>
    %98 = arith.mulf %91, %97 : vector<256x8xf32>
    %99 = vector.shape_cast %98 : vector<256x8xf32> to vector<4x8x8x8xf32>
    %c1_63 = arith.constant 1 : index
    %c1_64 = arith.constant 1 : index
    %c1_65 = arith.constant 1 : index
    %c0_66 = arith.constant 0 : index
    %100 = vector.load %arg9[%c1_63, %c1_64, %c1_65, %c0_66] : memref<6x10x10x8xf32, #tpu.memory_space<vmem>>, vector<4x8x8x8xf32>
    tpu.vector_store %arg9[%c1_63, %c1_64, %c1_65, %c0_66], %99 {strides = array<i32>} : memref<6x10x10x8xf32, #tpu.memory_space<vmem>>, vector<4x8x8x8xf32>,
    %c2_67 = arith.constant 2 : index
    %c0_68 = arith.constant 0 : index
    %c0_69 = arith.constant 0 : index
    %101 = vector.load %arg6[%c2_67, %c0_68, %c0_69] : memref<3x27x8xf32, #tpu.memory_space<vmem>>, vector<1x27x8xf32>
    %102 = vector.shape_cast %101 : vector<1x27x8xf32> to vector<27x8xf32>
    %103 = vector.extract_strided_slice %0 {offsets = [0, 5, 0], sizes = [1, 1, 8], strides = [1, 1, 1]} : vector<2x8x8xf32> to vector<1x1x8xf32>
    %104 = vector.shape_cast %103 : vector<1x1x8xf32> to vector<8xf32>
    %105 = vector.extract_strided_slice %0 {offsets = [1, 5, 0], sizes = [1, 1, 8], strides = [1, 1, 1]} : vector<2x8x8xf32> to vector<1x1x8xf32>
    %106 = vector.shape_cast %105 : vector<1x1x8xf32> to vector<8xf32>
    %c0_i32_70 = arith.constant 0 : i32
    %c4_i32_71 = arith.constant 4 : i32
    %107 = arith.addi %c0_i32_70, %c4_i32_71 : i32
    %c1_i32_72 = arith.constant 1 : i32
    scf.for %arg11 = %c0_i32_70 to %107 step %c1_i32_72  : i32 {
      %c1_i32_94 = arith.constant 1 : i32
      %148 = arith.muli %arg11, %c1_i32_94 : i32
      %c0_i32_95 = arith.constant 0 : i32
      %149 = arith.addi %c0_i32_95, %148 : i32
      %150 = arith.index_cast %149 : i32 to index
      %c0_96 = arith.constant 0 : index
      %c0_97 = arith.constant 0 : index
      %c0_98 = arith.constant 0 : index
      %151 = vector.load %arg9[%150, %c0_96, %c0_97, %c0_98] : memref<6x10x10x8xf32, #tpu.memory_space<vmem>>, vector<1x10x10x8xf32>
      %152 = vector.shape_cast %151 : vector<1x10x10x8xf32> to vector<10x10x8xf32>
      %c1_i32_99 = arith.constant 1 : i32
      %153 = arith.addi %149, %c1_i32_99 : i32
      %154 = arith.index_cast %153 : i32 to index
      %c0_100 = arith.constant 0 : index
      %c0_101 = arith.constant 0 : index
      %c0_102 = arith.constant 0 : index
      %155 = vector.load %arg9[%154, %c0_100, %c0_101, %c0_102] : memref<6x10x10x8xf32, #tpu.memory_space<vmem>>, vector<1x10x10x8xf32>
      %156 = vector.shape_cast %155 : vector<1x10x10x8xf32> to vector<10x10x8xf32>
      %c2_i32 = arith.constant 2 : i32
      %157 = arith.addi %149, %c2_i32 : i32
      %158 = arith.index_cast %157 : i32 to index
      %c0_103 = arith.constant 0 : index
      %c0_104 = arith.constant 0 : index
      %c0_105 = arith.constant 0 : index
      %159 = vector.load %arg9[%158, %c0_103, %c0_104, %c0_105] : memref<6x10x10x8xf32, #tpu.memory_space<vmem>>, vector<1x10x10x8xf32>
      %160 = vector.shape_cast %159 : vector<1x10x10x8xf32> to vector<10x10x8xf32>
      %cst_106 = arith.constant 0.000000e+00 : f32
      %161 = vector.broadcast %cst_106 : f32 to vector<8x8x8xf32>
      %162 = vector.extract_strided_slice %152 {offsets = [0, 0, 0], sizes = [8, 8, 8], strides = [1, 1, 1]} : vector<10x10x8xf32> to vector<8x8x8xf32>
      %163 = vector.extract_strided_slice %102 {offsets = [0, 0], sizes = [1, 8], strides = [1, 1]} : vector<27x8xf32> to vector<1x8xf32>
      %164 = vector.shape_cast %163 : vector<1x8xf32> to vector<8xf32>
      %165 = vector.shape_cast %164 : vector<8xf32> to vector<1x1x8xf32>
      %166 = vector.broadcast %165 : vector<1x1x8xf32> to vector<8x8x8xf32>
      %167 = arith.mulf %162, %166 : vector<8x8x8xf32>
      %168 = arith.addf %161, %167 : vector<8x8x8xf32>
      %169 = vector.extract_strided_slice %152 {offsets = [0, 1, 0], sizes = [8, 8, 8], strides = [1, 1, 1]} : vector<10x10x8xf32> to vector<8x8x8xf32>
      %170 = vector.extract_strided_slice %102 {offsets = [1, 0], sizes = [1, 8], strides = [1, 1]} : vector<27x8xf32> to vector<1x8xf32>
      %171 = vector.shape_cast %170 : vector<1x8xf32> to vector<8xf32>
      %172 = vector.shape_cast %171 : vector<8xf32> to vector<1x1x8xf32>
      %173 = vector.broadcast %172 : vector<1x1x8xf32> to vector<8x8x8xf32>
      %174 = arith.mulf %169, %173 : vector<8x8x8xf32>
      %175 = arith.addf %168, %174 : vector<8x8x8xf32>
      %176 = vector.extract_strided_slice %152 {offsets = [0, 2, 0], sizes = [8, 8, 8], strides = [1, 1, 1]} : vector<10x10x8xf32> to vector<8x8x8xf32>
      %177 = vector.extract_strided_slice %102 {offsets = [2, 0], sizes = [1, 8], strides = [1, 1]} : vector<27x8xf32> to vector<1x8xf32>
      %178 = vector.shape_cast %177 : vector<1x8xf32> to vector<8xf32>
      %179 = vector.shape_cast %178 : vector<8xf32> to vector<1x1x8xf32>
      %180 = vector.broadcast %179 : vector<1x1x8xf32> to vector<8x8x8xf32>
      %181 = arith.mulf %176, %180 : vector<8x8x8xf32>
      %182 = arith.addf %175, %181 : vector<8x8x8xf32>
      %183 = vector.extract_strided_slice %152 {offsets = [1, 0, 0], sizes = [8, 8, 8], strides = [1, 1, 1]} : vector<10x10x8xf32> to vector<8x8x8xf32>
      %184 = vector.extract_strided_slice %102 {offsets = [3, 0], sizes = [1, 8], strides = [1, 1]} : vector<27x8xf32> to vector<1x8xf32>
      %185 = vector.shape_cast %184 : vector<1x8xf32> to vector<8xf32>
      %186 = vector.shape_cast %185 : vector<8xf32> to vector<1x1x8xf32>
      %187 = vector.broadcast %186 : vector<1x1x8xf32> to vector<8x8x8xf32>
      %188 = arith.mulf %183, %187 : vector<8x8x8xf32>
      %189 = arith.addf %182, %188 : vector<8x8x8xf32>
      %190 = vector.extract_strided_slice %152 {offsets = [1, 1, 0], sizes = [8, 8, 8], strides = [1, 1, 1]} : vector<10x10x8xf32> to vector<8x8x8xf32>
      %191 = vector.extract_strided_slice %102 {offsets = [4, 0], sizes = [1, 8], strides = [1, 1]} : vector<27x8xf32> to vector<1x8xf32>
      %192 = vector.shape_cast %191 : vector<1x8xf32> to vector<8xf32>
      %193 = vector.shape_cast %192 : vector<8xf32> to vector<1x1x8xf32>
      %194 = vector.broadcast %193 : vector<1x1x8xf32> to vector<8x8x8xf32>
      %195 = arith.mulf %190, %194 : vector<8x8x8xf32>
      %196 = arith.addf %189, %195 : vector<8x8x8xf32>
      %197 = vector.extract_strided_slice %152 {offsets = [1, 2, 0], sizes = [8, 8, 8], strides = [1, 1, 1]} : vector<10x10x8xf32> to vector<8x8x8xf32>
      %198 = vector.extract_strided_slice %102 {offsets = [5, 0], sizes = [1, 8], strides = [1, 1]} : vector<27x8xf32> to vector<1x8xf32>
      %199 = vector.shape_cast %198 : vector<1x8xf32> to vector<8xf32>
      %200 = vector.shape_cast %199 : vector<8xf32> to vector<1x1x8xf32>
      %201 = vector.broadcast %200 : vector<1x1x8xf32> to vector<8x8x8xf32>
      %202 = arith.mulf %197, %201 : vector<8x8x8xf32>
      %203 = arith.addf %196, %202 : vector<8x8x8xf32>
      %204 = vector.extract_strided_slice %152 {offsets = [2, 0, 0], sizes = [8, 8, 8], strides = [1, 1, 1]} : vector<10x10x8xf32> to vector<8x8x8xf32>
      %205 = vector.extract_strided_slice %102 {offsets = [6, 0], sizes = [1, 8], strides = [1, 1]} : vector<27x8xf32> to vector<1x8xf32>
      %206 = vector.shape_cast %205 : vector<1x8xf32> to vector<8xf32>
      %207 = vector.shape_cast %206 : vector<8xf32> to vector<1x1x8xf32>
      %208 = vector.broadcast %207 : vector<1x1x8xf32> to vector<8x8x8xf32>
      %209 = arith.mulf %204, %208 : vector<8x8x8xf32>
      %210 = arith.addf %203, %209 : vector<8x8x8xf32>
      %211 = vector.extract_strided_slice %152 {offsets = [2, 1, 0], sizes = [8, 8, 8], strides = [1, 1, 1]} : vector<10x10x8xf32> to vector<8x8x8xf32>
      %212 = vector.extract_strided_slice %102 {offsets = [7, 0], sizes = [1, 8], strides = [1, 1]} : vector<27x8xf32> to vector<1x8xf32>
      %213 = vector.shape_cast %212 : vector<1x8xf32> to vector<8xf32>
      %214 = vector.shape_cast %213 : vector<8xf32> to vector<1x1x8xf32>
      %215 = vector.broadcast %214 : vector<1x1x8xf32> to vector<8x8x8xf32>
      %216 = arith.mulf %211, %215 : vector<8x8x8xf32>
      %217 = arith.addf %210, %216 : vector<8x8x8xf32>
      %218 = vector.extract_strided_slice %152 {offsets = [2, 2, 0], sizes = [8, 8, 8], strides = [1, 1, 1]} : vector<10x10x8xf32> to vector<8x8x8xf32>
      %219 = vector.extract_strided_slice %102 {offsets = [8, 0], sizes = [1, 8], strides = [1, 1]} : vector<27x8xf32> to vector<1x8xf32>
      %220 = vector.shape_cast %219 : vector<1x8xf32> to vector<8xf32>
      %221 = vector.shape_cast %220 : vector<8xf32> to vector<1x1x8xf32>
      %222 = vector.broadcast %221 : vector<1x1x8xf32> to vector<8x8x8xf32>
      %223 = arith.mulf %218, %222 : vector<8x8x8xf32>
      %224 = arith.addf %217, %223 : vector<8x8x8xf32>
      %225 = vector.extract_strided_slice %156 {offsets = [0, 0, 0], sizes = [8, 8, 8], strides = [1, 1, 1]} : vector<10x10x8xf32> to vector<8x8x8xf32>
      %226 = vector.extract_strided_slice %102 {offsets = [9, 0], sizes = [1, 8], strides = [1, 1]} : vector<27x8xf32> to vector<1x8xf32>
      %227 = vector.shape_cast %226 : vector<1x8xf32> to vector<8xf32>
      %228 = vector.shape_cast %227 : vector<8xf32> to vector<1x1x8xf32>
      %229 = vector.broadcast %228 : vector<1x1x8xf32> to vector<8x8x8xf32>
      %230 = arith.mulf %225, %229 : vector<8x8x8xf32>
      %231 = arith.addf %224, %230 : vector<8x8x8xf32>
      %232 = vector.extract_strided_slice %156 {offsets = [0, 1, 0], sizes = [8, 8, 8], strides = [1, 1, 1]} : vector<10x10x8xf32> to vector<8x8x8xf32>
      %233 = vector.extract_strided_slice %102 {offsets = [10, 0], sizes = [1, 8], strides = [1, 1]} : vector<27x8xf32> to vector<1x8xf32>
      %234 = vector.shape_cast %233 : vector<1x8xf32> to vector<8xf32>
      %235 = vector.shape_cast %234 : vector<8xf32> to vector<1x1x8xf32>
      %236 = vector.broadcast %235 : vector<1x1x8xf32> to vector<8x8x8xf32>
      %237 = arith.mulf %232, %236 : vector<8x8x8xf32>
      %238 = arith.addf %231, %237 : vector<8x8x8xf32>
      %239 = vector.extract_strided_slice %156 {offsets = [0, 2, 0], sizes = [8, 8, 8], strides = [1, 1, 1]} : vector<10x10x8xf32> to vector<8x8x8xf32>
      %240 = vector.extract_strided_slice %102 {offsets = [11, 0], sizes = [1, 8], strides = [1, 1]} : vector<27x8xf32> to vector<1x8xf32>
      %241 = vector.shape_cast %240 : vector<1x8xf32> to vector<8xf32>
      %242 = vector.shape_cast %241 : vector<8xf32> to vector<1x1x8xf32>
      %243 = vector.broadcast %242 : vector<1x1x8xf32> to vector<8x8x8xf32>
      %244 = arith.mulf %239, %243 : vector<8x8x8xf32>
      %245 = arith.addf %238, %244 : vector<8x8x8xf32>
      %246 = vector.extract_strided_slice %156 {offsets = [1, 0, 0], sizes = [8, 8, 8], strides = [1, 1, 1]} : vector<10x10x8xf32> to vector<8x8x8xf32>
      %247 = vector.extract_strided_slice %102 {offsets = [12, 0], sizes = [1, 8], strides = [1, 1]} : vector<27x8xf32> to vector<1x8xf32>
      %248 = vector.shape_cast %247 : vector<1x8xf32> to vector<8xf32>
      %249 = vector.shape_cast %248 : vector<8xf32> to vector<1x1x8xf32>
      %250 = vector.broadcast %249 : vector<1x1x8xf32> to vector<8x8x8xf32>
      %251 = arith.mulf %246, %250 : vector<8x8x8xf32>
      %252 = arith.addf %245, %251 : vector<8x8x8xf32>
      %253 = vector.extract_strided_slice %156 {offsets = [1, 1, 0], sizes = [8, 8, 8], strides = [1, 1, 1]} : vector<10x10x8xf32> to vector<8x8x8xf32>
      %254 = vector.extract_strided_slice %102 {offsets = [13, 0], sizes = [1, 8], strides = [1, 1]} : vector<27x8xf32> to vector<1x8xf32>
      %255 = vector.shape_cast %254 : vector<1x8xf32> to vector<8xf32>
      %256 = vector.shape_cast %255 : vector<8xf32> to vector<1x1x8xf32>
      %257 = vector.broadcast %256 : vector<1x1x8xf32> to vector<8x8x8xf32>
      %258 = arith.mulf %253, %257 : vector<8x8x8xf32>
      %259 = arith.addf %252, %258 : vector<8x8x8xf32>
      %260 = vector.extract_strided_slice %156 {offsets = [1, 2, 0], sizes = [8, 8, 8], strides = [1, 1, 1]} : vector<10x10x8xf32> to vector<8x8x8xf32>
      %261 = vector.extract_strided_slice %102 {offsets = [14, 0], sizes = [1, 8], strides = [1, 1]} : vector<27x8xf32> to vector<1x8xf32>
      %262 = vector.shape_cast %261 : vector<1x8xf32> to vector<8xf32>
      %263 = vector.shape_cast %262 : vector<8xf32> to vector<1x1x8xf32>
      %264 = vector.broadcast %263 : vector<1x1x8xf32> to vector<8x8x8xf32>
      %265 = arith.mulf %260, %264 : vector<8x8x8xf32>
      %266 = arith.addf %259, %265 : vector<8x8x8xf32>
      %267 = vector.extract_strided_slice %156 {offsets = [2, 0, 0], sizes = [8, 8, 8], strides = [1, 1, 1]} : vector<10x10x8xf32> to vector<8x8x8xf32>
      %268 = vector.extract_strided_slice %102 {offsets = [15, 0], sizes = [1, 8], strides = [1, 1]} : vector<27x8xf32> to vector<1x8xf32>
      %269 = vector.shape_cast %268 : vector<1x8xf32> to vector<8xf32>
      %270 = vector.shape_cast %269 : vector<8xf32> to vector<1x1x8xf32>
      %271 = vector.broadcast %270 : vector<1x1x8xf32> to vector<8x8x8xf32>
      %272 = arith.mulf %267, %271 : vector<8x8x8xf32>
      %273 = arith.addf %266, %272 : vector<8x8x8xf32>
      %274 = vector.extract_strided_slice %156 {offsets = [2, 1, 0], sizes = [8, 8, 8], strides = [1, 1, 1]} : vector<10x10x8xf32> to vector<8x8x8xf32>
      %275 = vector.extract_strided_slice %102 {offsets = [16, 0], sizes = [1, 8], strides = [1, 1]} : vector<27x8xf32> to vector<1x8xf32>
      %276 = vector.shape_cast %275 : vector<1x8xf32> to vector<8xf32>
      %277 = vector.shape_cast %276 : vector<8xf32> to vector<1x1x8xf32>
      %278 = vector.broadcast %277 : vector<1x1x8xf32> to vector<8x8x8xf32>
      %279 = arith.mulf %274, %278 : vector<8x8x8xf32>
      %280 = arith.addf %273, %279 : vector<8x8x8xf32>
      %281 = vector.extract_strided_slice %156 {offsets = [2, 2, 0], sizes = [8, 8, 8], strides = [1, 1, 1]} : vector<10x10x8xf32> to vector<8x8x8xf32>
      %282 = vector.extract_strided_slice %102 {offsets = [17, 0], sizes = [1, 8], strides = [1, 1]} : vector<27x8xf32> to vector<1x8xf32>
      %283 = vector.shape_cast %282 : vector<1x8xf32> to vector<8xf32>
      %284 = vector.shape_cast %283 : vector<8xf32> to vector<1x1x8xf32>
      %285 = vector.broadcast %284 : vector<1x1x8xf32> to vector<8x8x8xf32>
      %286 = arith.mulf %281, %285 : vector<8x8x8xf32>
      %287 = arith.addf %280, %286 : vector<8x8x8xf32>
      %288 = vector.extract_strided_slice %160 {offsets = [0, 0, 0], sizes = [8, 8, 8], strides = [1, 1, 1]} : vector<10x10x8xf32> to vector<8x8x8xf32>
      %289 = vector.extract_strided_slice %102 {offsets = [18, 0], sizes = [1, 8], strides = [1, 1]} : vector<27x8xf32> to vector<1x8xf32>
      %290 = vector.shape_cast %289 : vector<1x8xf32> to vector<8xf32>
      %291 = vector.shape_cast %290 : vector<8xf32> to vector<1x1x8xf32>
      %292 = vector.broadcast %291 : vector<1x1x8xf32> to vector<8x8x8xf32>
      %293 = arith.mulf %288, %292 : vector<8x8x8xf32>
      %294 = arith.addf %287, %293 : vector<8x8x8xf32>
      %295 = vector.extract_strided_slice %160 {offsets = [0, 1, 0], sizes = [8, 8, 8], strides = [1, 1, 1]} : vector<10x10x8xf32> to vector<8x8x8xf32>
      %296 = vector.extract_strided_slice %102 {offsets = [19, 0], sizes = [1, 8], strides = [1, 1]} : vector<27x8xf32> to vector<1x8xf32>
      %297 = vector.shape_cast %296 : vector<1x8xf32> to vector<8xf32>
      %298 = vector.shape_cast %297 : vector<8xf32> to vector<1x1x8xf32>
      %299 = vector.broadcast %298 : vector<1x1x8xf32> to vector<8x8x8xf32>
      %300 = arith.mulf %295, %299 : vector<8x8x8xf32>
      %301 = arith.addf %294, %300 : vector<8x8x8xf32>
      %302 = vector.extract_strided_slice %160 {offsets = [0, 2, 0], sizes = [8, 8, 8], strides = [1, 1, 1]} : vector<10x10x8xf32> to vector<8x8x8xf32>
      %303 = vector.extract_strided_slice %102 {offsets = [20, 0], sizes = [1, 8], strides = [1, 1]} : vector<27x8xf32> to vector<1x8xf32>
      %304 = vector.shape_cast %303 : vector<1x8xf32> to vector<8xf32>
      %305 = vector.shape_cast %304 : vector<8xf32> to vector<1x1x8xf32>
      %306 = vector.broadcast %305 : vector<1x1x8xf32> to vector<8x8x8xf32>
      %307 = arith.mulf %302, %306 : vector<8x8x8xf32>
      %308 = arith.addf %301, %307 : vector<8x8x8xf32>
      %309 = vector.extract_strided_slice %160 {offsets = [1, 0, 0], sizes = [8, 8, 8], strides = [1, 1, 1]} : vector<10x10x8xf32> to vector<8x8x8xf32>
      %310 = vector.extract_strided_slice %102 {offsets = [21, 0], sizes = [1, 8], strides = [1, 1]} : vector<27x8xf32> to vector<1x8xf32>
      %311 = vector.shape_cast %310 : vector<1x8xf32> to vector<8xf32>
      %312 = vector.shape_cast %311 : vector<8xf32> to vector<1x1x8xf32>
      %313 = vector.broadcast %312 : vector<1x1x8xf32> to vector<8x8x8xf32>
      %314 = arith.mulf %309, %313 : vector<8x8x8xf32>
      %315 = arith.addf %308, %314 : vector<8x8x8xf32>
      %316 = vector.extract_strided_slice %160 {offsets = [1, 1, 0], sizes = [8, 8, 8], strides = [1, 1, 1]} : vector<10x10x8xf32> to vector<8x8x8xf32>
      %317 = vector.extract_strided_slice %102 {offsets = [22, 0], sizes = [1, 8], strides = [1, 1]} : vector<27x8xf32> to vector<1x8xf32>
      %318 = vector.shape_cast %317 : vector<1x8xf32> to vector<8xf32>
      %319 = vector.shape_cast %318 : vector<8xf32> to vector<1x1x8xf32>
      %320 = vector.broadcast %319 : vector<1x1x8xf32> to vector<8x8x8xf32>
      %321 = arith.mulf %316, %320 : vector<8x8x8xf32>
      %322 = arith.addf %315, %321 : vector<8x8x8xf32>
      %323 = vector.extract_strided_slice %160 {offsets = [1, 2, 0], sizes = [8, 8, 8], strides = [1, 1, 1]} : vector<10x10x8xf32> to vector<8x8x8xf32>
      %324 = vector.extract_strided_slice %102 {offsets = [23, 0], sizes = [1, 8], strides = [1, 1]} : vector<27x8xf32> to vector<1x8xf32>
      %325 = vector.shape_cast %324 : vector<1x8xf32> to vector<8xf32>
      %326 = vector.shape_cast %325 : vector<8xf32> to vector<1x1x8xf32>
      %327 = vector.broadcast %326 : vector<1x1x8xf32> to vector<8x8x8xf32>
      %328 = arith.mulf %323, %327 : vector<8x8x8xf32>
      %329 = arith.addf %322, %328 : vector<8x8x8xf32>
      %330 = vector.extract_strided_slice %160 {offsets = [2, 0, 0], sizes = [8, 8, 8], strides = [1, 1, 1]} : vector<10x10x8xf32> to vector<8x8x8xf32>
      %331 = vector.extract_strided_slice %102 {offsets = [24, 0], sizes = [1, 8], strides = [1, 1]} : vector<27x8xf32> to vector<1x8xf32>
      %332 = vector.shape_cast %331 : vector<1x8xf32> to vector<8xf32>
      %333 = vector.shape_cast %332 : vector<8xf32> to vector<1x1x8xf32>
      %334 = vector.broadcast %333 : vector<1x1x8xf32> to vector<8x8x8xf32>
      %335 = arith.mulf %330, %334 : vector<8x8x8xf32>
      %336 = arith.addf %329, %335 : vector<8x8x8xf32>
      %337 = vector.extract_strided_slice %160 {offsets = [2, 1, 0], sizes = [8, 8, 8], strides = [1, 1, 1]} : vector<10x10x8xf32> to vector<8x8x8xf32>
      %338 = vector.extract_strided_slice %102 {offsets = [25, 0], sizes = [1, 8], strides = [1, 1]} : vector<27x8xf32> to vector<1x8xf32>
      %339 = vector.shape_cast %338 : vector<1x8xf32> to vector<8xf32>
      %340 = vector.shape_cast %339 : vector<8xf32> to vector<1x1x8xf32>
      %341 = vector.broadcast %340 : vector<1x1x8xf32> to vector<8x8x8xf32>
      %342 = arith.mulf %337, %341 : vector<8x8x8xf32>
      %343 = arith.addf %336, %342 : vector<8x8x8xf32>
      %344 = vector.extract_strided_slice %160 {offsets = [2, 2, 0], sizes = [8, 8, 8], strides = [1, 1, 1]} : vector<10x10x8xf32> to vector<8x8x8xf32>
      %345 = vector.extract_strided_slice %102 {offsets = [26, 0], sizes = [1, 8], strides = [1, 1]} : vector<27x8xf32> to vector<1x8xf32>
      %346 = vector.shape_cast %345 : vector<1x8xf32> to vector<8xf32>
      %347 = vector.shape_cast %346 : vector<8xf32> to vector<1x1x8xf32>
      %348 = vector.broadcast %347 : vector<1x1x8xf32> to vector<8x8x8xf32>
      %349 = arith.mulf %344, %348 : vector<8x8x8xf32>
      %350 = arith.addf %343, %349 : vector<8x8x8xf32>
      %351 = vector.shape_cast %104 : vector<8xf32> to vector<1x1x8xf32>
      %352 = vector.broadcast %351 : vector<1x1x8xf32> to vector<8x8x8xf32>
      %353 = arith.mulf %350, %352 : vector<8x8x8xf32>
      %354 = vector.shape_cast %106 : vector<8xf32> to vector<1x1x8xf32>
      %355 = vector.broadcast %354 : vector<1x1x8xf32> to vector<8x8x8xf32>
      %356 = arith.addf %353, %355 : vector<8x8x8xf32>
      %cst_107 = arith.constant 0.000000e+00 : f32
      %357 = vector.broadcast %cst_107 : f32 to vector<8x8x8xf32>
      %358 = arith.maximumf %356, %357 : vector<8x8x8xf32>
      %359 = vector.extract_strided_slice %156 {offsets = [1, 1, 0], sizes = [8, 8, 8], strides = [1, 1, 1]} : vector<10x10x8xf32> to vector<8x8x8xf32>
      %360 = arith.addf %359, %358 : vector<8x8x8xf32>
      %361 = arith.index_cast %149 : i32 to index
      %c0_108 = arith.constant 0 : index
      %c0_109 = arith.constant 0 : index
      %c0_110 = arith.constant 0 : index
      %362 = vector.load %arg10[%361, %c0_108, %c0_109, %c0_110] : memref<4x8x8x8xf32, #tpu.memory_space<vmem>>, vector<1x8x8x8xf32>
      %363 = vector.shape_cast %362 : vector<1x8x8x8xf32> to vector<8x8x8xf32>
      %364 = vector.shape_cast %360 : vector<8x8x8xf32> to vector<1x8x8x8xf32>
      tpu.vector_store %arg10[%361, %c0_108, %c0_109, %c0_110], %364 {strides = array<i32>} : memref<4x8x8x8xf32, #tpu.memory_space<vmem>>, vector<1x8x8x8xf32>,
    }
    %c4_i32_73 = arith.constant 4 : i32
    %c0_74 = arith.constant 0 : index
    %c0_75 = arith.constant 0 : index
    %c0_76 = arith.constant 0 : index
    %c0_77 = arith.constant 0 : index
    %108 = vector.load %arg10[%c0_74, %c0_75, %c0_76, %c0_77] : memref<4x8x8x8xf32, #tpu.memory_space<vmem>>, vector<4x8x8x8xf32>
    %109 = vector.shape_cast %108 : vector<4x8x8x8xf32> to vector<256x8xf32>
    %110 = arith.truncf %109 : vector<256x8xf32> to vector<256x8xbf16>
    %c3 = arith.constant 3 : index
    %c0_78 = arith.constant 0 : index
    %c0_79 = arith.constant 0 : index
    %111 = vector.load %arg5[%c3, %c0_78, %c0_79] : memref<6x8x8xbf16, #tpu.memory_space<vmem>>, vector<1x8x8xbf16>
    %112 = vector.shape_cast %111 : vector<1x8x8xbf16> to vector<8x8xbf16>
    %cst_80 = arith.constant dense<0.000000e+00> : vector<256x8xf32>
    %113 = tpu.matmul %110, %112, %cst_80 {dimension_numbers = #tpu.dot_dimension_numbers<[1], [0], [0], [1], [0, 0, 1, 1], [], []>} : vector<256x8xbf16>, vector<8x8xbf16>, vector<256x8xf32> -> vector<256x8xf32>
    %cst_81 = arith.constant 0.000000e+00 : f32
    %114 = vector.broadcast %cst_81 : f32 to vector<256x8xf32>
    %115 = arith.maximumf %113, %114 : vector<256x8xf32>
    %cst_82 = arith.constant 0.000000e+00 : f32
    %116 = vector.broadcast %cst_82 : f32 to vector<256x8xf32>
    %117 = arith.subf %116, %115 : vector<256x8xf32>
    %118 = math.exp %117 : vector<256x8xf32>
    %cst_83 = arith.constant 1.000000e+00 : f32
    %119 = vector.broadcast %cst_83 : f32 to vector<256x8xf32>
    %120 = arith.addf %119, %118 : vector<256x8xf32>
    %121 = tpu.reciprocal %120 {approx = true} : vector<256x8xf32> -> vector<256x8xf32>
    %122 = arith.mulf %15, %121 : vector<256x8xf32>
    %123 = arith.addf %15, %122 : vector<256x8xf32>
    %124 = arith.truncf %123 : vector<256x8xf32> to vector<256x8xbf16>
    %c4 = arith.constant 4 : index
    %c0_84 = arith.constant 0 : index
    %c0_85 = arith.constant 0 : index
    %125 = vector.load %arg5[%c4, %c0_84, %c0_85] : memref<6x8x8xbf16, #tpu.memory_space<vmem>>, vector<1x8x8xbf16>
    %126 = vector.shape_cast %125 : vector<1x8x8xbf16> to vector<8x8xbf16>
    %cst_86 = arith.constant dense<0.000000e+00> : vector<256x8xf32>
    %127 = tpu.matmul %124, %126, %cst_86 {dimension_numbers = #tpu.dot_dimension_numbers<[1], [0], [0], [1], [0, 0, 1, 1], [], []>} : vector<256x8xbf16>, vector<8x8xbf16>, vector<256x8xf32> -> vector<256x8xf32>
    %128 = arith.truncf %23 : vector<256x8xf32> to vector<256x8xbf16>
    %c5 = arith.constant 5 : index
    %c0_87 = arith.constant 0 : index
    %c0_88 = arith.constant 0 : index
    %129 = vector.load %arg5[%c5, %c0_87, %c0_88] : memref<6x8x8xbf16, #tpu.memory_space<vmem>>, vector<1x8x8xbf16>
    %130 = vector.shape_cast %129 : vector<1x8x8xbf16> to vector<8x8xbf16>
    %cst_89 = arith.constant dense<0.000000e+00> : vector<256x8xf32>
    %131 = tpu.matmul %128, %130, %cst_89 {dimension_numbers = #tpu.dot_dimension_numbers<[1], [0], [0], [1], [0, 0, 1, 1], [], []>} : vector<256x8xbf16>, vector<8x8xbf16>, vector<256x8xf32> -> vector<256x8xf32>
    %132 = arith.addf %127, %131 : vector<256x8xf32>
    %133 = vector.extract_strided_slice %0 {offsets = [0, 6, 0], sizes = [1, 1, 8], strides = [1, 1, 1]} : vector<2x8x8xf32> to vector<1x1x8xf32>
    %134 = vector.shape_cast %133 : vector<1x1x8xf32> to vector<8xf32>
    %135 = vector.shape_cast %134 : vector<8xf32> to vector<1x8xf32>
    %136 = vector.broadcast %135 : vector<1x8xf32> to vector<256x8xf32>
    %137 = arith.mulf %132, %136 : vector<256x8xf32>
    %138 = vector.extract_strided_slice %0 {offsets = [1, 6, 0], sizes = [1, 1, 8], strides = [1, 1, 1]} : vector<2x8x8xf32> to vector<1x1x8xf32>
    %139 = vector.shape_cast %138 : vector<1x1x8xf32> to vector<8xf32>
    %140 = vector.shape_cast %139 : vector<8xf32> to vector<1x8xf32>
    %141 = vector.broadcast %140 : vector<1x8xf32> to vector<256x8xf32>
    %142 = arith.addf %137, %141 : vector<256x8xf32>
    %cst_90 = arith.constant 0.000000e+00 : f32
    %143 = vector.broadcast %cst_90 : f32 to vector<256x8xf32>
    %144 = arith.maximumf %142, %143 : vector<256x8xf32>
    %c0_91 = arith.constant 0 : index
    %c0_92 = arith.constant 0 : index
    %c0_93 = arith.constant 0 : index
    %145 = vector.load %arg8[%c0_91, %c0_92, %c0_93] : memref<1x256x8xf32, #tpu.memory_space<vmem>>, vector<1x256x8xf32>
    %146 = vector.shape_cast %145 : vector<1x256x8xf32> to vector<256x8xf32>
    %147 = vector.shape_cast %144 : vector<256x8xf32> to vector<1x256x8xf32>
    tpu.vector_store %arg8[%c0_91, %c0_92, %c0_93], %147 {strides = array<i32>} : memref<1x256x8xf32, #tpu.memory_space<vmem>>, vector<1x256x8xf32>,
    return
  }
  func.func @transform_0(%arg0: i32) -> (i32, i32, i32) {
    %c0_i32 = arith.constant 0 : i32
    %c0_i32_0 = arith.constant 0 : i32
    %c0_i32_1 = arith.constant 0 : i32
    return %arg0, %c0_i32, %c0_i32_0 : i32, i32, i32
  }
  func.func @transform_1(%arg0: i32) -> (i32, i32, i32) {
    %c0_i32 = arith.constant 0 : i32
    %c0_i32_0 = arith.constant 0 : i32
    %c0_i32_1 = arith.constant 0 : i32
    return %arg0, %c0_i32, %c0_i32_0 : i32, i32, i32
  }
  func.func @transform_2(%arg0: i32) -> (i32, i32, i32) {
    %c0_i32 = arith.constant 0 : i32
    %c0_i32_0 = arith.constant 0 : i32
    %c0_i32_1 = arith.constant 0 : i32
    %c0_i32_2 = arith.constant 0 : i32
    return %c0_i32, %c0_i32_0, %c0_i32_1 : i32, i32, i32
  }
  func.func @transform_3(%arg0: i32) -> (i32, i32) {
    %c0_i32 = arith.constant 0 : i32
    %c0_i32_0 = arith.constant 0 : i32
    %c0_i32_1 = arith.constant 0 : i32
    return %c0_i32, %c0_i32_0 : i32, i32
  }
  func.func @transform_4(%arg0: i32) -> (i32, i32, i32) {
    %c0_i32 = arith.constant 0 : i32
    %c0_i32_0 = arith.constant 0 : i32
    %c0_i32_1 = arith.constant 0 : i32
    %c0_i32_2 = arith.constant 0 : i32
    return %c0_i32, %c0_i32_0, %c0_i32_1 : i32, i32, i32
  }
  func.func @transform_5(%arg0: i32) -> (i32, i32, i32) {
    %c0_i32 = arith.constant 0 : i32
    %c0_i32_0 = arith.constant 0 : i32
    %c0_i32_1 = arith.constant 0 : i32
    %c0_i32_2 = arith.constant 0 : i32
    return %c0_i32, %c0_i32_0, %c0_i32_1 : i32, i32, i32
  }
  func.func @transform_6(%arg0: i32) -> (i32, i32, i32) {
    %c0_i32 = arith.constant 0 : i32
    %c0_i32_0 = arith.constant 0 : i32
    %c0_i32_1 = arith.constant 0 : i32
    %c0_i32_2 = arith.constant 0 : i32
    return %c0_i32, %c0_i32_0, %c0_i32_1 : i32, i32, i32
  }
  func.func @transform_7(%arg0: i32) -> (i32, i32, i32) {
    %c0_i32 = arith.constant 0 : i32
    %c0_i32_0 = arith.constant 0 : i32
    %c0_i32_1 = arith.constant 0 : i32
    return %arg0, %c0_i32, %c0_i32_0 : i32, i32, i32
  }
}

</mosaic_0001>

<bundles_post_ra>
// kernel: _lambda_.1
= control target key start
LH: loop header
LB: loop body
LE: loop exit
PB: predicated region body
PF: predicated region fallthrough
CT: control target
= control target key end

     0   :  { %s9968_s24 = smov 0   ;;  %s14885_s0 = inlined_call_operand.vmem [shape: bf16[2,256,4], index: 0, kind: input, shape index: {}]   ;;  %s14886_s1 = inlined_call_operand.vmem [shape: bf16[2,256,4], index: 1, kind: input, shape index: {}]   ;;  %s14887_s2 = inlined_call_operand.vmem [shape: bf16[2,4,8], index: 2, kind: input, shape index: {}]   ;;  %s14888_s3 = inlined_call_operand.vmem [shape: f32[2,8], index: 3, kind: input, shape index: {}]   ;;  %s14889_s4 = inlined_call_operand.vmem [shape: bf16[6,8,8], index: 4, kind: input, shape index: {}]   ;;  %s14890_s5 = inlined_call_operand.vmem [shape: f32[3,27,8], index: 5, kind: input, shape index: {}]   ;;  %s14891_s6 = inlined_call_operand.vmem [shape: f32[2,8,8], index: 6, kind: input, shape index: {}]   ;;  %s14892_s7 = inlined_call_operand.vmem [shape: f32[2,256,8], index: 7, kind: output, shape index: {}]  }
   0x1 LB: > { %s8797_s25 = sadd.s32 4294967295, %s9913_s24   ;;  %p8801_p0 = scmp.ge.s32.totalorder %s9913_s24, 1  ;;  %s9913_s24 = sphi %s9968_s24, %s17_s24  }
   0x2   : > { %p247_p1 = scmp.lt.s32.totalorder %s9913_s24, 3 }
   0x4   : > { %p248_p2 = pnand %p8801_p0, %p247_p1 }
   0x6   : > { %251 = sbr.rel (%p248_p2) target bundleno = 2429 (0x97d), region = 48 }
   0xb   : > { %v489_v0 = vld [vmem:[%s14887_s2] sm:$0x3]  ;;  %vm623_vm0 = vcmask 1041408   ;;  %p284_p3 = scmp.lt.s32.totalorder %s8797_s25, 1  ;;  %vm1151_vm1 = vcmask 1043456   ;;  %vm574_vm2 = vcmask 31744   ;;  %v490_v39 = vlaneseq }
   0xc   : > { %9518 = vmatprep.subr.msk.bf16.mxu0 %vm623_vm0, %v489_v0  ;;  %v625_v1 = vsel %vm623_vm0, %v489_v0, 0  ;;  %v1102_v2 = vld [vmem:[%s14889_s4] sm:$0xf]  ;;  %vm303_vm3 = vcmask 64512   ;;  %vm305_vm4 = vcmask 58368   ;;  %v9927_v38 = vmov 0.0  }
   0xd   : > { %9247 = vmatpush3.bf16.msra.mxu0 %v625_v1  ;;  %s15332_s25 = smov (!%p284_p3, %s8797_s25), 1  ;;  %v1153_v5 = vsel %vm1151_vm1, %v1102_v2, 0  ;;  %v8840_v20 = vld [vmem:[%s14887_s2 + $0x2] sm:$0x3]  ;;  %331 = vst.msk [vmem:[#allocation2 + $0xd0] sm:$0xff] %vm303_vm3, %v9927_v38  ;;  %304 = vst.msk [vmem:[#allocation2] sm:$0xff] %vm303_vm3, %v9927_v38 }
   0xe   : > { %9520 = vmatprep.subr.msk.bf16.mxu0 %vm1151_vm1, %v1102_v2  ;;  %s9107_s30 = sshll.u32 %s15332_s25, 7  ;;  %s9109_s8 = sshll.u32 %s15332_s25, 8  ;;  %9519 = vmatprep.subr.msk.bf16.mxu1 %vm623_vm0, %v8840_v20  ;;  %v923_v21 = vsel %vm623_vm0, %v8840_v20, 0  ;;  %332 = vst.msk [vmem:[#allocation2 + $0xd8] sm:$0x3] %vm305_vm4, %v9927_v38  ;;  %v10318_v40 = vshrl.u32 %v490_v39, 7 }
   0xf   : > { %s9994_s11 = scalar_lea.vmem %s14885_s0, %s9107_s30  ;;  %s9999_s14 = scalar_lea.vmem %s14892_s7, %s9109_s8  ;;  %9281 = vmatpush3.bf16.msra.mxu1 %v923_v21  ;;  %306 = vst.msk [vmem:[#allocation2 + $0x8] sm:$0x3] %vm305_vm4, %v9927_v38  ;;  %308 = vst.msk [vmem:[#allocation2 + $0x18] sm:$0x3] %vm305_vm4, %v9927_v38  ;;  %v10326_v43 = vld [vmem:[%s14888_s3] sm:$0x3] }
  0x10   : > { %v9559_v3 = vld [vmem:[%s9994_s11] sm:$0xff]   ;;  %v9560_v4 = vld [vmem:[%s9994_s11 + $0x8] sm:$0xff]   ;;  %v9561_v6 = vld [vmem:[%s9994_s11 + $0x10] sm:$0xff]   ;;  %s10044_s19 = scalar_lea.vmem %s14886_s1, %s9107_s30  ;;  %307 = vst.msk [vmem:[#allocation2 + $0x10] sm:$0xff] %vm303_vm3, %v9927_v38  ;;  %v10321_v41 = vsub.s32 0, %v10318_v40  ;;  %s10713_s12 = smov 0  }
  0x11   : > { %9248 = vmatprep.mubr.msk.bf16.mxu0 %vm574_vm2, %v9559_v3  ;;  %v9562_v7 = vld [vmem:[%s9994_s11 + $0x18] sm:$0xff]   ;;  %v9563_v8 = vld [vmem:[%s9994_s11 + $0x20] sm:$0xff]   ;;  %v9564_v9 = vld [vmem:[%s9994_s11 + $0x28] sm:$0xff]   ;;  %309 = vst.msk [vmem:[#allocation2 + $0x20] sm:$0xff] %vm303_vm3, %v9927_v38 }
  0x12   : > { %9249 = vmatmul.mubr.msk.bf16.vlgmr.msra.gmra.mxu0 %vm574_vm2, %v9560_v4  ;;  %v9565_v10 = vld [vmem:[%s9994_s11 + $0x30] sm:$0xff]   ;;  %v9566_v11 = vld [vmem:[%s9994_s11 + $0x38] sm:$0xff]   ;;  %v9567_v12 = vld [vmem:[%s9994_s11 + $0x40] sm:$0xff]   ;;  %310 = vst.msk [vmem:[#allocation2 + $0x28] sm:$0x3] %vm305_vm4, %v9927_v38  ;;  %v10330_v45 = vrot.slane %v10326_v43, %v10321_v41 }
  0x13   : > { %9252 = vmatprep.mubr.msk.bf16.mxu0 %vm574_vm2, %v9561_v6  ;;  %9315 = vmatpush3.bf16.msra.mxu0 %v1153_v5  ;;  %v9568_v13 = vld [vmem:[%s9994_s11 + $0x48] sm:$0xff]   ;;  %v9569_v14 = vld [vmem:[%s9994_s11 + $0x50] sm:$0xff]   ;;  %v9570_v15 = vld [vmem:[%s9994_s11 + $0x58] sm:$0xff]   ;;  %311 = vst.msk [vmem:[#allocation2 + $0x30] sm:$0xff] %vm303_vm3, %v9927_v38 }
  0x14   : > { %v9571_v16 = vld [vmem:[%s9994_s11 + $0x60] sm:$0xff]   ;;  %v9572_v17 = vld [vmem:[%s9994_s11 + $0x68] sm:$0xff]   ;;  %v9573_v18 = vld [vmem:[%s9994_s11 + $0x70] sm:$0xff]   ;;  %312 = vst.msk [vmem:[#allocation2 + $0x38] sm:$0x3] %vm305_vm4, %v9927_v38 }
  0x15   : > { %v9574_v19 = vld [vmem:[%s9994_s11 + $0x78] sm:$0xff]   ;;  %v9575_v22 = vld [vmem:[%s10044_s19] sm:$0xff]   ;;  %v9576_v23 = vld [vmem:[%s10044_s19 + $0x8] sm:$0xff]   ;;  %313 = vst.msk [vmem:[#allocation2 + $0x40] sm:$0xff] %vm303_vm3, %v9927_v38 }
  0x16   : > { %9282 = vmatprep.mubr.msk.bf16.mxu1 %vm574_vm2, %v9575_v22  ;;  %v9577_v24 = vld [vmem:[%s10044_s19 + $0x10] sm:$0xff]   ;;  %v9578_v25 = vld [vmem:[%s10044_s19 + $0x18] sm:$0xff]   ;;  %v9579_v26 = vld [vmem:[%s10044_s19 + $0x20] sm:$0xff]   ;;  %314 = vst.msk [vmem:[#allocation2 + $0x48] sm:$0x3] %vm305_vm4, %v9927_v38 }
  0x17   : > { %9283 = vmatmul.mubr.msk.bf16.vlgmr.msra.gmra.mxu1 %vm574_vm2, %v9576_v23  ;;  %v9580_v27 = vld [vmem:[%s10044_s19 + $0x28] sm:$0xff]   ;;  %v9581_v28 = vld [vmem:[%s10044_s19 + $0x30] sm:$0xff]   ;;  %v9582_v29 = vld [vmem:[%s10044_s19 + $0x38] sm:$0xff]   ;;  %315 = vst.msk [vmem:[#allocation2 + $0x50] sm:$0xff] %vm303_vm3, %v9927_v38 }
  0x18   : > { %9286 = vmatprep.mubr.msk.bf16.mxu1 %vm574_vm2, %v9577_v24  ;;  %v9583_v30 = vld [vmem:[%s10044_s19 + $0x40] sm:$0xff]   ;;  %v9584_v31 = vld [vmem:[%s10044_s19 + $0x48] sm:$0xff]   ;;  %v9585_v32 = vld [vmem:[%s10044_s19 + $0x50] sm:$0xff]   ;;  %316 = vst.msk [vmem:[#allocation2 + $0x58] sm:$0x3] %vm305_vm4, %v9927_v38 }
  0x19   : > { %v9586_v33 = vld [vmem:[%s10044_s19 + $0x58] sm:$0xff]   ;;  %v9587_v34 = vld [vmem:[%s10044_s19 + $0x60] sm:$0xff]   ;;  %v9588_v35 = vld [vmem:[%s10044_s19 + $0x68] sm:$0xff]   ;;  %317 = vst.msk [vmem:[#allocation2 + $0x60] sm:$0xff] %vm303_vm3, %v9927_v38 }
  0x1a   : > { %9253 = vmatmul.mubr.msk.bf16.gmra.mxu0 %vm574_vm2, %v9562_v7  ;;  %v9589_v36 = vld [vmem:[%s10044_s19 + $0x70] sm:$0xff]   ;;  %v9590_v37 = vld [vmem:[%s10044_s19 + $0x78] sm:$0xff]   ;;  %318 = vst.msk [vmem:[#allocation2 + $0x68] sm:$0x3] %vm305_vm4, %v9927_v38  ;;  %320 = vst.msk [vmem:[#allocation2 + $0x78] sm:$0x3] %vm305_vm4, %v9927_v38 }
  0x1b   : > { %9256 = vmatprep.mubr.msk.bf16.mxu0 %vm574_vm2, %v9563_v8  ;;  %319 = vst.msk [vmem:[#allocation2 + $0x70] sm:$0xff] %vm303_vm3, %v9927_v38  ;;  %321 = vst.msk [vmem:[#allocation2 + $0x80] sm:$0xff] %vm303_vm3, %v9927_v38 }
  0x1c   : > { %322 = vst.msk [vmem:[#allocation2 + $0x88] sm:$0x3] %vm305_vm4, %v9927_v38  ;;  %324 = vst.msk [vmem:[#allocation2 + $0x98] sm:$0x3] %vm305_vm4, %v9927_v38 }
  0x1d   : > { %323 = vst.msk [vmem:[#allocation2 + $0x90] sm:$0xff] %vm303_vm3, %v9927_v38  ;;  %325 = vst.msk [vmem:[#allocation2 + $0xa0] sm:$0xff] %vm303_vm3, %v9927_v38 }
  0x1e   : > { %326 = vst.msk [vmem:[#allocation2 + $0xa8] sm:$0x3] %vm305_vm4, %v9927_v38  ;;  %328 = vst.msk [vmem:[#allocation2 + $0xb8] sm:$0x3] %vm305_vm4, %v9927_v38 }
  0x1f   : > { %9287 = vmatmul.mubr.msk.bf16.gmra.mxu1 %vm574_vm2, %v9578_v25  ;;  %327 = vst.msk [vmem:[#allocation2 + $0xb0] sm:$0xff] %vm303_vm3, %v9927_v38  ;;  %329 = vst.msk [vmem:[#allocation2 + $0xc0] sm:$0xff] %vm303_vm3, %v9927_v38 }
  0x20   : > { %9290 = vmatprep.mubr.msk.bf16.mxu1 %vm574_vm2, %v9579_v26  ;;  %330 = vst.msk [vmem:[#allocation2 + $0xc8] sm:$0x3] %vm305_vm4, %v9927_v38  ;;  %334 = vst.msk [vmem:[#allocation2 + $0xe8] sm:$0x3] %vm305_vm4, %v9927_v38 }
  0x21   : > { %333 = vst.msk [vmem:[#allocation2 + $0xe0] sm:$0xff] %vm303_vm3, %v9927_v38  ;;  %335 = vst.msk [vmem:[#allocation2 + $0xf0] sm:$0xff] %vm303_vm3, %v9927_v38 }
  0x22   : > { %9257 = vmatmul.mubr.msk.bf16.gmra.mxu0 %vm574_vm2, %v9564_v9  ;;  %336 = vst.msk [vmem:[#allocation2 + $0xf8] sm:$0x3] %vm305_vm4, %v9927_v38  ;;  %338 = vst.msk [vmem:[#allocation2 + $0x108] sm:$0x3] %vm305_vm4, %v9927_v38 }
  0x23   : > { %9260 = vmatprep.mubr.msk.bf16.mxu0 %vm574_vm2, %v9565_v10  ;;  %337 = vst.msk [vmem:[#allocation2 + $0x100] sm:$0xff] %vm303_vm3, %v9927_v38  ;;  %339 = vst.msk [vmem:[#allocation2 + $0x110] sm:$0xff] %vm303_vm3, %v9927_v38 }
  0x24   : > { %340 = vst.msk [vmem:[#allocation2 + $0x118] sm:$0x3] %vm305_vm4, %v9927_v38  ;;  %342 = vst.msk [vmem:[#allocation2 + $0x128] sm:$0x3] %vm305_vm4, %v9927_v38 }
  0x25   : > { %341 = vst.msk [vmem:[#allocation2 + $0x120] sm:$0xff] %vm303_vm3, %v9927_v38  ;;  %343 = vst.msk [vmem:[#allocation2 + $0x130] sm:$0xff] %vm303_vm3, %v9927_v38 }
  0x26   : > { %344 = vst.msk [vmem:[#allocation2 + $0x138] sm:$0x3] %vm305_vm4, %v9927_v38  ;;  %346 = vst.msk [vmem:[#allocation2 + $0x148] sm:$0x3] %vm305_vm4, %v9927_v38 }
  0x27   : > { %9291 = vmatmul.mubr.msk.bf16.gmra.mxu1 %vm574_vm2, %v9580_v27  ;;  %345 = vst.msk [vmem:[#allocation2 + $0x140] sm:$0xff] %vm303_vm3, %v9927_v38  ;;  %347 = vst.msk [vmem:[#allocation2 + $0x150] sm:$0xff] %vm303_vm3, %v9927_v38 }
  0x28   : > { %9294 = vmatprep.mubr.msk.bf16.mxu1 %vm574_vm2, %v9581_v28  ;;  %348 = vst.msk [vmem:[#allocation2 + $0x158] sm:$0x3] %vm305_vm4, %v9927_v38  ;;  %350 = vst.msk [vmem:[#allocation2 + $0x168] sm:$0x3] %vm305_vm4, %v9927_v38 }
  0x29   : > { %349 = vst.msk [vmem:[#allocation2 + $0x160] sm:$0xff] %vm303_vm3, %v9927_v38  ;;  %351 = vst.msk [vmem:[#allocation2 + $0x170] sm:$0xff] %vm303_vm3, %v9927_v38 }
  0x2a   : > { %9261 = vmatmul.mubr.msk.bf16.gmra.mxu0 %vm574_vm2, %v9566_v11  ;;  %352 = vst.msk [vmem:[#allocation2 + $0x178] sm:$0x3] %vm305_vm4, %v9927_v38  ;;  %354 = vst.msk [vmem:[#allocation2 + $0x188] sm:$0x3] %vm305_vm4, %v9927_v38 }
  0x2b   : > { %9264 = vmatprep.mubr.msk.bf16.mxu0 %vm574_vm2, %v9567_v12  ;;  %353 = vst.msk [vmem:[#allocation2 + $0x180] sm:$0xff] %vm303_vm3, %v9927_v38  ;;  %355 = vst.msk [vmem:[#allocation2 + $0x190] sm:$0xff] %vm303_vm3, %v9927_v38 }
  0x2c   : > { %356 = vst.msk [vmem:[#allocation2 + $0x198] sm:$0x3] %vm305_vm4, %v9927_v38  ;;  %358 = vst.msk [vmem:[#allocation2 + $0x1a8] sm:$0x3] %vm305_vm4, %v9927_v38 }
  0x2d   : > { %357 = vst.msk [vmem:[#allocation2 + $0x1a0] sm:$0xff] %vm303_vm3, %v9927_v38  ;;  %359 = vst.msk [vmem:[#allocation2 + $0x1b0] sm:$0xff] %vm303_vm3, %v9927_v38 }
  0x2e   : > { %360 = vst.msk [vmem:[#allocation2 + $0x1b8] sm:$0x3] %vm305_vm4, %v9927_v38  ;;  %362 = vst.msk [vmem:[#allocation2 + $0x1c8] sm:$0x3] %vm305_vm4, %v9927_v38 }
  0x2f   : > { %9295 = vmatmul.mubr.msk.bf16.gmra.mxu1 %vm574_vm2, %v9582_v29  ;;  %361 = vst.msk [vmem:[#allocation2 + $0x1c0] sm:$0xff] %vm303_vm3, %v9927_v38  ;;  %363 = vst.msk [vmem:[#allocation2 + $0x1d0] sm:$0xff] %vm303_vm3, %v9927_v38 }
  0x30   : > { %9298 = vmatprep.mubr.msk.bf16.mxu1 %vm574_vm2, %v9583_v30  ;;  %364 = vst.msk [vmem:[#allocation2 + $0x1d8] sm:$0x3] %vm305_vm4, %v9927_v38  ;;  %366 = vst.msk [vmem:[#allocation2 + $0x1e8] sm:$0x3] %vm305_vm4, %v9927_v38 }
  0x31   : > { %365 = vst.msk [vmem:[#allocation2 + $0x1e0] sm:$0xff] %vm303_vm3, %v9927_v38  ;;  %367 = vst.msk [vmem:[#allocation2 + $0x1f0] sm:$0xff] %vm303_vm3, %v9927_v38 }
  0x32   : > { %9265 = vmatmul.mubr.msk.bf16.gmra.mxu0 %vm574_vm2, %v9568_v13  ;;  %368 = vst.msk [vmem:[#allocation2 + $0x1f8] sm:$0x3] %vm305_vm4, %v9927_v38  ;;  %370 = vst.msk [vmem:[#allocation2 + $0x208] sm:$0x3] %vm305_vm4, %v9927_v38 }
  0x33   : > { %9268 = vmatprep.mubr.msk.bf16.mxu0 %vm574_vm2, %v9569_v14  ;;  %369 = vst.msk [vmem:[#allocation2 + $0x200] sm:$0xff] %vm303_vm3, %v9927_v38  ;;  %371 = vst.msk [vmem:[#allocation2 + $0x210] sm:$0xff] %vm303_vm3, %v9927_v38 }
  0x34   : > { %372 = vst.msk [vmem:[#allocation2 + $0x218] sm:$0x3] %vm305_vm4, %v9927_v38  ;;  %374 = vst.msk [vmem:[#allocation2 + $0x228] sm:$0x3] %vm305_vm4, %v9927_v38 }
  0x35   : > { %373 = vst.msk [vmem:[#allocation2 + $0x220] sm:$0xff] %vm303_vm3, %v9927_v38  ;;  %375 = vst.msk [vmem:[#allocation2 + $0x230] sm:$0xff] %vm303_vm3, %v9927_v38 }
  0x36   : > { %376 = vst.msk [vmem:[#allocation2 + $0x238] sm:$0x3] %vm305_vm4, %v9927_v38  ;;  %378 = vst.msk [vmem:[#allocation2 + $0x248] sm:$0x3] %vm305_vm4, %v9927_v38 }
  0x37   : > { %9299 = vmatmul.mubr.msk.bf16.gmra.mxu1 %vm574_vm2, %v9584_v31  ;;  %377 = vst.msk [vmem:[#allocation2 + $0x240] sm:$0xff] %vm303_vm3, %v9927_v38  ;;  %379 = vst.msk [vmem:[#allocation2 + $0x250] sm:$0xff] %vm303_vm3, %v9927_v38 }
  0x38   : > { %9302 = vmatprep.mubr.msk.bf16.mxu1 %vm574_vm2, %v9585_v32  ;;  %380 = vst.msk [vmem:[#allocation2 + $0x258] sm:$0x3] %vm305_vm4, %v9927_v38  ;;  %382 = vst.msk [vmem:[#allocation2 + $0x268] sm:$0x3] %vm305_vm4, %v9927_v38 }
  0x39   : > { %381 = vst.msk [vmem:[#allocation2 + $0x260] sm:$0xff] %vm303_vm3, %v9927_v38  ;;  %383 = vst.msk [vmem:[#allocation2 + $0x270] sm:$0xff] %vm303_vm3, %v9927_v38 }
  0x3a   : > { %9269 = vmatmul.mubr.msk.bf16.gmra.mxu0 %vm574_vm2, %v9570_v15  ;;  %384 = vst.msk [vmem:[#allocation2 + $0x278] sm:$0x3] %vm305_vm4, %v9927_v38  ;;  %386 = vst.msk [vmem:[#allocation2 + $0x288] sm:$0x3] %vm305_vm4, %v9927_v38 }
  0x3b   : > { %9272 = vmatprep.mubr.msk.bf16.mxu0 %vm574_vm2, %v9571_v16  ;;  %385 = vst.msk [vmem:[#allocation2 + $0x280] sm:$0xff] %vm303_vm3, %v9927_v38  ;;  %387 = vst.msk [vmem:[#allocation2 + $0x290] sm:$0xff] %vm303_vm3, %v9927_v38 }
  0x3c   : > { %388 = vst.msk [vmem:[#allocation2 + $0x298] sm:$0x3] %vm305_vm4, %v9927_v38  ;;  %390 = vst.msk [vmem:[#allocation2 + $0x2a8] sm:$0x3] %vm305_vm4, %v9927_v38 }
  0x3d   : > { %389 = vst.msk [vmem:[#allocation2 + $0x2a0] sm:$0xff] %vm303_vm3, %v9927_v38  ;;  %391 = vst.msk [vmem:[#allocation2 + $0x2b0] sm:$0xff] %vm303_vm3, %v9927_v38 }
  0x3e   : > { %392 = vst.msk [vmem:[#allocation2 + $0x2b8] sm:$0x3] %vm305_vm4, %v9927_v38  ;;  %394 = vst.msk [vmem:[#allocation2 + $0x2c8] sm:$0x3] %vm305_vm4, %v9927_v38 }
  0x3f   : > { %9303 = vmatmul.mubr.msk.bf16.gmra.mxu1 %vm574_vm2, %v9586_v33  ;;  %393 = vst.msk [vmem:[#allocation2 + $0x2c0] sm:$0xff] %vm303_vm3, %v9927_v38  ;;  %395 = vst.msk [vmem:[#allocation2 + $0x2d0] sm:$0xff] %vm303_vm3, %v9927_v38 }
  0x40   : > { %9306 = vmatprep.mubr.msk.bf16.mxu1 %vm574_vm2, %v9587_v34  ;;  %396 = vst.msk [vmem:[#allocation2 + $0x2d8] sm:$0x3] %vm305_vm4, %v9927_v38  ;;  %398 = vst.msk [vmem:[#allocation2 + $0x2e8] sm:$0x3] %vm305_vm4, %v9927_v38 }
  0x41   : > { %397 = vst.msk [vmem:[#allocation2 + $0x2e0] sm:$0xff] %vm303_vm3, %v9927_v38  ;;  %399 = vst.msk [vmem:[#allocation2 + $0x2f0] sm:$0xff] %vm303_vm3, %v9927_v38 }
  0x42   : > { %9273 = vmatmul.mubr.msk.bf16.gmra.mxu0 %vm574_vm2, %v9572_v17  ;;  %400 = vst.msk [vmem:[#allocation2 + $0x2f8] sm:$0x3] %vm305_vm4, %v9927_v38  ;;  %402 = vst.msk [vmem:[#allocation2 + $0x308] sm:$0x3] %vm305_vm4, %v9927_v38 }
  0x43   : > { %9276 = vmatprep.mubr.msk.bf16.mxu0 %vm574_vm2, %v9573_v18  ;;  %401 = vst.msk [vmem:[#allocation2 + $0x300] sm:$0xff] %vm303_vm3, %v9927_v38  ;;  %403 = vst.msk [vmem:[#allocation2 + $0x310] sm:$0xff] %vm303_vm3, %v9927_v38 }
  0x44   : > { %404 = vst.msk [vmem:[#allocation2 + $0x318] sm:$0x3] %vm305_vm4, %v9927_v38  ;;  %406 = vst.msk [vmem:[#allocation2 + $0x328] sm:$0x3] %vm305_vm4, %v9927_v38 }
  0x45   : > { %405 = vst.msk [vmem:[#allocation2 + $0x320] sm:$0xff] %vm303_vm3, %v9927_v38  ;;  %407 = vst.msk [vmem:[#allocation2 + $0x330] sm:$0xff] %vm303_vm3, %v9927_v38 }
  0x46   : > { %408 = vst.msk [vmem:[#allocation2 + $0x338] sm:$0x3] %vm305_vm4, %v9927_v38  ;;  %410 = vst.msk [vmem:[#allocation2 + $0x348] sm:$0x3] %vm305_vm4, %v9927_v38 }
  0x47   : > { %9307 = vmatmul.mubr.msk.bf16.gmra.mxu1 %vm574_vm2, %v9588_v35  ;;  %409 = vst.msk [vmem:[#allocation2 + $0x340] sm:$0xff] %vm303_vm3, %v9927_v38  ;;  %411 = vst.msk [vmem:[#allocation2 + $0x350] sm:$0xff] %vm303_vm3, %v9927_v38 }
  0x48   : > { %9310 = vmatprep.mubr.msk.bf16.mxu1 %vm574_vm2, %v9589_v36  ;;  %412 = vst.msk [vmem:[#allocation2 + $0x358] sm:$0x3] %vm305_vm4, %v9927_v38  ;;  %414 = vst.msk [vmem:[#allocation2 + $0x368] sm:$0x3] %vm305_vm4, %v9927_v38 }
  0x49   : > { %413 = vst.msk [vmem:[#allocation2 + $0x360] sm:$0xff] %vm303_vm3, %v9927_v38  ;;  %415 = vst.msk [vmem:[#allocation2 + $0x370] sm:$0xff] %vm303_vm3, %v9927_v38 }
  0x4a   : > { %9277 = vmatmul.mubr.msk.bf16.gmra.mxu0 %vm574_vm2, %v9574_v19  ;;  %416 = vst.msk [vmem:[#allocation2 + $0x378] sm:$0x3] %vm305_vm4, %v9927_v38  ;;  %418 = vst.msk [vmem:[#allocation2 + $0x388] sm:$0x3] %vm305_vm4, %v9927_v38 }
  0x4b   : > { %417 = vst.msk [vmem:[#allocation2 + $0x380] sm:$0xff] %vm303_vm3, %v9927_v38  ;;  %419 = vst.msk [vmem:[#allocation2 + $0x390] sm:$0xff] %vm303_vm3, %v9927_v38 }
  0x4c   : > { %420 = vst.msk [vmem:[#allocation2 + $0x398] sm:$0x3] %vm305_vm4, %v9927_v38  ;;  %422 = vst.msk [vmem:[#allocation2 + $0x3a8] sm:$0x3] %vm305_vm4, %v9927_v38 }
  0x4d   : > { %421 = vst.msk [vmem:[#allocation2 + $0x3a0] sm:$0xff] %vm303_vm3, %v9927_v38  ;;  %423 = vst.msk [vmem:[#allocation2 + $0x3b0] sm:$0xff] %vm303_vm3, %v9927_v38 }
  0x4e   : > { %424 = vst.msk [vmem:[#allocation2 + $0x3b8] sm:$0x3] %vm305_vm4, %v9927_v38  ;;  %15053 = vst [vmem:[#allocation4_spill] sm:$0xff] %v10318_v40 }
  0x4f   : > { %9311 = vmatmul.mubr.msk.bf16.gmra.mxu1 %vm574_vm2, %v9590_v37  ;;  %15054 = vst [vmem:[#allocation5_spill] sm:$0xff] %v10321_v41 }
  0xd2   : > { %v9250_v42 = vpop.f32.mrf.mxu0 }
  0xd3   : > { %v10342_v51 = vadd.f32 %v9250_v42, %v10330_v45 }
  0xd4   : > { %v661_v44 = vpop.f32.mrf.mxu0 }
  0xd5   : > { %v10336_v49 = vadd.f32 %v661_v44, %v10330_v45  ;;  %15058 = vst [vmem:[#allocation9_spill] sm:$0xff] %v10342_v51 }
  0xd6   : > { %v9251_v46 = vpop.f32.mrf.mxu0 }
  0xd7   : > { %v10333_v47 = vadd.f32 %v9251_v46, %v10330_v45  ;;  %15056 = vst [vmem:[#allocation7_spill] sm:$0xff] %v10336_v49 }
  0xd8   : > { %v664_v48 = vpop.f32.mrf.mxu0 }
  0xd9   : > { %15055 = vst [vmem:[#allocation6_spill] sm:$0xff] %v10333_v47  ;;  %v10339_v50 = vadd.f32 %v664_v48, %v10330_v45  ;;  %v1087_v54 = vpack.c.bf16 %v10333_v47, %v10342_v51 }
  0xda   : > { %v9254_v52 = vpop.f32.mrf.mxu0 }
  0xdb   : > { %15057 = vst [vmem:[#allocation8_spill] sm:$0xff] %v10339_v50  ;;  %v1086_v53 = vpack.c.bf16 %v10339_v50, %v10336_v49  ;;  %v10360_v61 = vadd.f32 %v9254_v52, %v10330_v45 }
  0xdc   : > { %v677_v55 = vpop.f32.mrf.mxu0 }
  0xdd   : > { %9316 = vmatprep.mubr.msk.bf16.mxu0 %vm303_vm3, %v1086_v53  ;;  %v10354_v59 = vadd.f32 %v677_v55, %v10330_v45  ;;  %15062 = vst [vmem:[#allocation13_spill] sm:$0xff] %v10360_v61 }
  0xde   : > { %v9255_v56 = vpop.f32.mrf.mxu0  ;;  %9317 = vmatmul.mubr.msk.bf16.vlgmr.msra.gmra.mxu0 %vm303_vm3, %v1087_v54 }
  0xdf   : > { %v10351_v57 = vadd.f32 %v9255_v56, %v10330_v45  ;;  %15060 = vst [vmem:[#allocation11_spill] sm:$0xff] %v10354_v59 }
  0xe0   : > { %v680_v58 = vpop.f32.mrf.mxu0 }
  0xe1   : > { %15059 = vst [vmem:[#allocation10_spill] sm:$0xff] %v10351_v57  ;;  %v10357_v60 = vadd.f32 %v680_v58, %v10330_v45  ;;  %v1089_v0 = vpack.c.bf16 %v10351_v57, %v10360_v61 }
  0xe2   : > { %v9258_v62 = vpop.f32.mrf.mxu0 }
  0xe3   : > { %15061 = vst [vmem:[#allocation12_spill] sm:$0xff] %v10357_v60  ;;  %v1088_v63 = vpack.c.bf16 %v10357_v60, %v10354_v59  ;;  %v10378_v7 = vadd.f32 %v9258_v62, %v10330_v45 }
  0xe4   : > { %v693_v1 = vpop.f32.mrf.mxu0 }
  0xe5   : > { %9320 = vmatprep.mubr.msk.bf16.mxu0 %vm303_vm3, %v1088_v63  ;;  %v10372_v5 = vadd.f32 %v693_v1, %v10330_v45  ;;  %15066 = vst [vmem:[#allocation17_spill] sm:$0xff] %v10378_v7 }
  0xe6   : > { %v9259_v2 = vpop.f32.mrf.mxu0  ;;  %9321 = vmatmul.mubr.msk.bf16.gmra.mxu0 %vm303_vm3, %v1089_v0 }
  0xe7   : > { %v10369_v3 = vadd.f32 %v9259_v2, %v10330_v45  ;;  %15064 = vst [vmem:[#allocation15_spill] sm:$0xff] %v10372_v5 }
  0xe8   : > { %v696_v4 = vpop.f32.mrf.mxu0 }
  0xe9   : > { %15063 = vst [vmem:[#allocation14_spill] sm:$0xff] %v10369_v3  ;;  %v10375_v6 = vadd.f32 %v696_v4, %v10330_v45  ;;  %v1091_v10 = vpack.c.bf16 %v10369_v3, %v10378_v7 }
  0xea   : > { %v9262_v8 = vpop.f32.mrf.mxu0 }
  0xeb   : > { %15065 = vst [vmem:[#allocation16_spill] sm:$0xff] %v10375_v6  ;;  %v1090_v9 = vpack.c.bf16 %v10375_v6, %v10372_v5  ;;  %v10396_v17 = vadd.f32 %v9262_v8, %v10330_v45 }
  0xec   : > { %v709_v11 = vpop.f32.mrf.mxu0 }
  0xed   : > { %9324 = vmatprep.mubr.msk.bf16.mxu0 %vm303_vm3, %v1090_v9  ;;  %v10390_v15 = vadd.f32 %v709_v11, %v10330_v45  ;;  %15070 = vst [vmem:[#allocation21_spill] sm:$0xff] %v10396_v17 }
  0xee   : > { %v9263_v12 = vpop.f32.mrf.mxu0  ;;  %9325 = vmatmul.mubr.msk.bf16.gmra.mxu0 %vm303_vm3, %v1091_v10 }
  0xef   : > { %v10387_v13 = vadd.f32 %v9263_v12, %v10330_v45  ;;  %15068 = vst [vmem:[#allocation19_spill] sm:$0xff] %v10390_v15  ;;  %v10477_v12 = vsub.s32 1, %v10318_v40 }
  0xf0   : > { %v712_v14 = vpop.f32.mrf.mxu0 }
  0xf1   : > { %15067 = vst [vmem:[#allocation18_spill] sm:$0xff] %v10387_v13  ;;  %v10393_v16 = vadd.f32 %v712_v14, %v10330_v45  ;;  %v1093_v20 = vpack.c.bf16 %v10387_v13, %v10396_v17  ;;  %15087 = vst [vmem:[#allocation38_spill] sm:$0xff] %v10477_v12  ;;  %v10481_v14 = vrot.slane %v10326_v43, %v10477_v12 }
  0xf2   : > { %v9266_v18 = vpop.f32.mrf.mxu0 }
  0xf3   : > { %15069 = vst [vmem:[#allocation20_spill] sm:$0xff] %v10393_v16  ;;  %v1092_v19 = vpack.c.bf16 %v10393_v16, %v10390_v15  ;;  %v10414_v27 = vadd.f32 %v9266_v18, %v10330_v45  ;;  %v9284_v18 = vpop.f32.mrf.mxu1 }
  0xf4   : > { %v725_v21 = vpop.f32.mrf.mxu0 }
  0xf5   : > { %9328 = vmatprep.mubr.msk.bf16.mxu0 %vm303_vm3, %v1092_v19  ;;  %v10408_v25 = vadd.f32 %v725_v21, %v10330_v45  ;;  %15074 = vst [vmem:[#allocation25_spill] sm:$0xff] %v10414_v27  ;;  %v959_v19 = vpop.f32.mrf.mxu1 }
  0xf6   : > { %v9267_v22 = vpop.f32.mrf.mxu0  ;;  %9329 = vmatmul.mubr.msk.bf16.gmra.mxu0 %vm303_vm3, %v1093_v20 }
  0xf7   : > { %v10405_v23 = vadd.f32 %v9267_v22, %v10330_v45  ;;  %15072 = vst [vmem:[#allocation23_spill] sm:$0xff] %v10408_v25  ;;  %v9285_v20 = vpop.f32.mrf.mxu1  ;;  %v10487_v22 = vadd.f32 %v959_v19, %v10481_v14 }
  0xf8   : > { %v728_v24 = vpop.f32.mrf.mxu0 }
  0xf9   : > { %15071 = vst [vmem:[#allocation22_spill] sm:$0xff] %v10405_v23  ;;  %v10411_v26 = vadd.f32 %v728_v24, %v10330_v45  ;;  %v1095_v30 = vpack.c.bf16 %v10405_v23, %v10414_v27  ;;  %v962_v21 = vpop.f32.mrf.mxu1  ;;  %15089 = vst [vmem:[#allocation40_spill] sm:$0xff] %v10487_v22  ;;  %v10490_v24 = vadd.f32 %v9285_v20, %v10481_v14 }
  0xfa   : > { %v9270_v28 = vpop.f32.mrf.mxu0 }
  0xfb   : > { %15073 = vst [vmem:[#allocation24_spill] sm:$0xff] %v10411_v26  ;;  %v1094_v29 = vpack.c.bf16 %v10411_v26, %v10408_v25  ;;  %v10432_v37 = vadd.f32 %v9270_v28, %v10330_v45  ;;  %15090 = vst [vmem:[#allocation41_spill] sm:$0xff] %v10490_v24  ;;  %v10493_v28 = vadd.f32 %v962_v21, %v10481_v14 }
  0xfc   : > { %v741_v31 = vpop.f32.mrf.mxu0 }
  0xfd   : > { %9332 = vmatprep.mubr.msk.bf16.mxu0 %vm303_vm3, %v1094_v29  ;;  %v10426_v35 = vadd.f32 %v741_v31, %v10330_v45  ;;  %15078 = vst [vmem:[#allocation29_spill] sm:$0xff] %v10432_v37  ;;  %15091 = vst [vmem:[#allocation42_spill] sm:$0xff] %v10493_v28  ;;  %v9288_v29 = vpop.f32.mrf.mxu1 }
  0xfe   : > { %v9271_v32 = vpop.f32.mrf.mxu0  ;;  %9333 = vmatmul.mubr.msk.bf16.gmra.mxu0 %vm303_vm3, %v1095_v30  ;;  %v10496_v31 = vadd.f32 %v9288_v29, %v10481_v14 }
  0xff   : > { %v10423_v33 = vadd.f32 %v9271_v32, %v10330_v45  ;;  %15076 = vst [vmem:[#allocation27_spill] sm:$0xff] %v10426_v35  ;;  %v975_v30 = vpop.f32.mrf.mxu1 }
 0x100   : > { %v744_v34 = vpop.f32.mrf.mxu0  ;;  %15092 = vst [vmem:[#allocation43_spill] sm:$0xff] %v10496_v31 }
 0x101   : > { %15075 = vst [vmem:[#allocation26_spill] sm:$0xff] %v10423_v33  ;;  %v10429_v36 = vadd.f32 %v744_v34, %v10330_v45  ;;  %v1097_v42 = vpack.c.bf16 %v10423_v33, %v10432_v37  ;;  %v9289_v43 = vpop.f32.mrf.mxu1  ;;  %v10499_v34 = vadd.f32 %v975_v30, %v10481_v14 }
 0x102   : > { %v9274_v38 = vpop.f32.mrf.mxu0 }
 0x103   : > { %15077 = vst [vmem:[#allocation28_spill] sm:$0xff] %v10429_v36  ;;  %v1096_v39 = vpack.c.bf16 %v10429_v36, %v10426_v35  ;;  %v10450_v55 = vadd.f32 %v9274_v38, %v10330_v45  ;;  %v978_v32 = vpop.f32.mrf.mxu1  ;;  %15093 = vst [vmem:[#allocation44_spill] sm:$0xff] %v10499_v34  ;;  %v10502_v38 = vadd.f32 %v9289_v43, %v10481_v14 }
 0x104   : > { %v757_v44 = vpop.f32.mrf.mxu0 }
 0x105   : > { %9336 = vmatprep.mubr.msk.bf16.mxu0 %vm303_vm3, %v1096_v39  ;;  %v10444_v53 = vadd.f32 %v757_v44, %v10330_v45  ;;  %15082 = vst [vmem:[#allocation33_spill] sm:$0xff] %v10450_v55  ;;  %15094 = vst [vmem:[#allocation45_spill] sm:$0xff] %v10502_v38  ;;  %v10505_v39 = vadd.f32 %v978_v32, %v10481_v14 }
 0x106   : > { %v9275_v46 = vpop.f32.mrf.mxu0  ;;  %9337 = vmatmul.mubr.msk.bf16.gmra.mxu0 %vm303_vm3, %v1097_v42  ;;  %v9292_v42 = vpop.f32.mrf.mxu1 }
 0x107   : > { %v10441_v48 = vadd.f32 %v9275_v46, %v10330_v45  ;;  %15080 = vst [vmem:[#allocation31_spill] sm:$0xff] %v10444_v53  ;;  %15095 = vst [vmem:[#allocation46_spill] sm:$0xff] %v10505_v39 }
 0x108   : > { %v760_v52 = vpop.f32.mrf.mxu0  ;;  %v991_v44 = vpop.f32.mrf.mxu1 }
 0x109   : > { %15079 = vst [vmem:[#allocation30_spill] sm:$0xff] %v10441_v48  ;;  %v10447_v54 = vadd.f32 %v760_v52, %v10330_v45  ;;  %v1099_v62 = vpack.c.bf16 %v10441_v48, %v10450_v55  ;;  %v10508_v52 = vadd.f32 %v9292_v42, %v10481_v14 }
 0x10a   : > { %v9278_v56 = vpop.f32.mrf.mxu0  ;;  %v9293_v46 = vpop.f32.mrf.mxu1 }
 0x10b   : > { %15081 = vst [vmem:[#allocation32_spill] sm:$0xff] %v10447_v54  ;;  %v1098_v58 = vpack.c.bf16 %v10447_v54, %v10444_v53  ;;  %v10468_v9 = vadd.f32 %v9278_v56, %v10330_v45  ;;  %15096 = vst [vmem:[#allocation47_spill] sm:$0xff] %v10508_v52 }
 0x10c   : > { %v773_v63 = vpop.f32.mrf.mxu0  ;;  %v994_v56 = vpop.f32.mrf.mxu1 }
 0x10d   : > { %9340 = vmatprep.mubr.msk.bf16.mxu0 %vm303_vm3, %v1098_v58  ;;  %v10462_v4 = vadd.f32 %v773_v63, %v10330_v45  ;;  %15086 = vst [vmem:[#allocation37_spill] sm:$0xff] %v10468_v9  ;;  %v10511_v58 = vadd.f32 %v991_v44, %v10481_v14  ;;  %v10517_v63 = vadd.f32 %v994_v56, %v10481_v14 }
 0x10e   : > { %v9279_v0 = vpop.f32.mrf.mxu0  ;;  %9341 = vmatmul.mubr.msk.bf16.gmra.mxu0 %vm303_vm3, %v1099_v62  ;;  %v10514_v62 = vadd.f32 %v9293_v46, %v10481_v14 }
 0x10f   : > { %v10459_v1 = vadd.f32 %v9279_v0, %v10330_v45  ;;  %15084 = vst [vmem:[#allocation35_spill] sm:$0xff] %v10462_v4  ;;  %15097 = vst [vmem:[#allocation48_spill] sm:$0xff] %v10511_v58  ;;  %v9296_v0 = vpop.f32.mrf.mxu1 }
 0x110   : > { %v776_v2 = vpop.f32.mrf.mxu0  ;;  %15098 = vst [vmem:[#allocation49_spill] sm:$0xff] %v10514_v62  ;;  %15099 = vst [vmem:[#allocation50_spill] sm:$0xff] %v10517_v63 }
 0x111   : > { %15083 = vst [vmem:[#allocation34_spill] sm:$0xff] %v10459_v1  ;;  %v10465_v8 = vadd.f32 %v776_v2, %v10330_v45  ;;  %v1101_v11 = vpack.c.bf16 %v10459_v1, %v10468_v9  ;;  %v10484_v45 = vadd.f32 %v9284_v18, %v10481_v14  ;;  %v1007_v2 = vpop.f32.mrf.mxu1 }
 0x112   : > { %v10523_v19 = vadd.f32 %v1007_v2, %v10481_v14 }
 0x113   : > { %15085 = vst [vmem:[#allocation36_spill] sm:$0xff] %v10465_v8  ;;  %v1100_v10 = vpack.c.bf16 %v10465_v8, %v10462_v4  ;;  %15088 = vst [vmem:[#allocation39_spill] sm:$0xff] %v10484_v45 }
 0x114   : > { %15101 = vst [vmem:[#allocation52_spill] sm:$0xff] %v10523_v19 }
 0x115   : > { %9344 = vmatprep.mubr.msk.bf16.mxu0 %vm303_vm3, %v1100_v10  ;;  %v9297_v10 = vpop.f32.mrf.mxu1 }
 0x116   : > { %9345 = vmatmul.mubr.msk.bf16.gmra.mxu0 %vm303_vm3, %v1101_v11  ;;  %v10520_v11 = vadd.f32 %v9296_v0, %v10481_v14  ;;  %v10526_v20 = vadd.f32 %v9297_v10, %v10481_v14 }
 0x117   : > { %v1010_v18 = vpop.f32.mrf.mxu1 }
 0x118   : > { %15100 = vst [vmem:[#allocation51_spill] sm:$0xff] %v10520_v11  ;;  %15102 = vst [vmem:[#allocation53_spill] sm:$0xff] %v10526_v20  ;;  %v10529_v21 = vadd.f32 %v1010_v18, %v10481_v14 }
 0x119   : > { %v9300_v29 = vpop.f32.mrf.mxu1 }
 0x11a   : > { %15103 = vst [vmem:[#allocation54_spill] sm:$0xff] %v10529_v21  ;;  %v10532_v32 = vadd.f32 %v9300_v29, %v10481_v14 }
 0x11b   : > { %v1023_v30 = vpop.f32.mrf.mxu1 }
 0x11c   : > { %15104 = vst [vmem:[#allocation55_spill] sm:$0xff] %v10532_v32  ;;  %v10535_v44 = vadd.f32 %v1023_v30, %v10481_v14 }
 0x11d   : > { %v9301_v43 = vpop.f32.mrf.mxu1 }
 0x11e   : > { %15105 = vst [vmem:[#allocation56_spill] sm:$0xff] %v10535_v44  ;;  %v10538_v46 = vadd.f32 %v9301_v43, %v10481_v14 }
 0x11f   : > { %v1026_v42 = vpop.f32.mrf.mxu1 }
 0x120   : > { %15106 = vst [vmem:[#allocation57_spill] sm:$0xff] %v10538_v46  ;;  %v10541_v56 = vadd.f32 %v1026_v42, %v10481_v14 }
 0x121   : > { %v9304_v0 = vpop.f32.mrf.mxu1 }
 0x122   : > { %15107 = vst [vmem:[#allocation58_spill] sm:$0xff] %v10541_v56  ;;  %v10544_v18 = vadd.f32 %v9304_v0, %v10481_v14 }
 0x123   : > { %v1039_v2 = vpop.f32.mrf.mxu1 }
 0x124   : > { %15108 = vst [vmem:[#allocation59_spill] sm:$0xff] %v10544_v18  ;;  %v10547_v29 = vadd.f32 %v1039_v2, %v10481_v14 }
 0x125   : > { %v9305_v10 = vpop.f32.mrf.mxu1 }
 0x126   : > { %15109 = vst [vmem:[#allocation60_spill] sm:$0xff] %v10547_v29  ;;  %v10550_v8 = vadd.f32 %v9305_v10, %v10481_v14 }
 0x127   : > { %v1042_v9 = vpop.f32.mrf.mxu1 }
 0x128   : > { %15110 = vst [vmem:[#allocation61_spill] sm:$0xff] %v10550_v8  ;;  %v10553_v30 = vadd.f32 %v1042_v9, %v10481_v14 }
 0x129   : > { %v9308_v43 = vpop.f32.mrf.mxu1 }
 0x12a   : > { %15111 = vst [vmem:[#allocation62_spill] sm:$0xff] %v10553_v30  ;;  %v10556_v4 = vadd.f32 %v9308_v43, %v10481_v14 }
 0x12b   : > { %v1055_v1 = vpop.f32.mrf.mxu1 }
 0x12c   : > { %15112 = vst [vmem:[#allocation63_spill] sm:$0xff] %v10556_v4  ;;  %v10559_v0 = vadd.f32 %v1055_v1, %v10481_v14 }
 0x12d   : > { %v9309_v42 = vpop.f32.mrf.mxu1 }
 0x12e   : > { %15113 = vst [vmem:[#allocation64_spill] sm:$0xff] %v10559_v0  ;;  %v10562_v54 = vadd.f32 %v9309_v42, %v10481_v14  ;;  %v10587_v42 = vld [vmem:[%s14890_s5 + $0x8] sm:$0xff] }
 0x12f   : > { %v1058_v55 = vpop.f32.mrf.mxu1  ;;  %15121 = vst [vmem:[#allocation72_spill] sm:$0xff] %v10587_v42 }
 0x130   : > { %15114 = vst [vmem:[#allocation65_spill] sm:$0xff] %v10562_v54  ;;  %v10565_v2 = vadd.f32 %v1058_v55, %v10481_v14  ;;  %v10582_v55 = vld [vmem:[%s14890_s5] sm:$0xff] }
 0x131   : > { %v9312_v10 = vpop.f32.mrf.mxu1  ;;  %15120 = vst [vmem:[#allocation71_spill] sm:$0xff] %v10582_v55 }
 0x132   : > { %15115 = vst [vmem:[#allocation66_spill] sm:$0xff] %v10565_v2  ;;  %v10568_v53 = vadd.f32 %v9312_v10, %v10481_v14  ;;  %v10607_v10 = vld [vmem:[%s14891_s6 + $0x8] sm:$0xff] }
 0x133   : > { %v1071_v48 = vpop.f32.mrf.mxu1  ;;  %15125 = vst [vmem:[#allocation76_spill] sm:$0xff] %v10607_v10  ;;  %v10615_v33 = vrot.slane %v10607_v10, %v10321_v41 }
 0x134   : > { %15116 = vst [vmem:[#allocation67_spill] sm:$0xff] %v10568_v53  ;;  %v10571_v43 = vadd.f32 %v1071_v48, %v10481_v14  ;;  %v10592_v48 = vld [vmem:[%s14890_s5 + $0x10] sm:$0xff] }
 0x135   : > { %v9313_v9 = vpop.f32.mrf.mxu1  ;;  %15122 = vst [vmem:[#allocation73_spill] sm:$0xff] %v10592_v48 }
 0x136   : > { %15117 = vst [vmem:[#allocation68_spill] sm:$0xff] %v10571_v43  ;;  %v10574_v36 = vadd.f32 %v9313_v9, %v10481_v14 }
 0x137   : > { %v1074_v37 = vpop.f32.mrf.mxu1 }
 0x138   : > { %15118 = vst [vmem:[#allocation69_spill] sm:$0xff] %v10574_v36  ;;  %v10577_v1 = vadd.f32 %v1074_v37, %v10481_v14  ;;  %v10597_v37 = vld [vmem:[%s14890_s5 + $0x18] sm:$0x7]  ;;  %v10602_v14 = vld [vmem:[%s14891_s6] sm:$0xff] }
 0x139   : > { %15123 = vst [vmem:[#allocation74_spill] sm:$0xff] %v10597_v37  ;;  %15124 = vst [vmem:[#allocation75_spill] sm:$0xff] %v10602_v14  ;;  %v10611_v9 = vrot.slane %v10602_v14, %v10321_v41 }
 0x13a   : > { %15119 = vst [vmem:[#allocation70_spill] sm:$0xff] %v10577_v1 }
 0x19e   : > { %v9318_v35 = vpop.f32.mrf.mxu0 }
 0x19f   : > { %v1322_v27 = vmul.f32 %v9318_v35, %v10611_v9 }
 0x1a0   : > { %v1189_v26 = vpop.f32.mrf.mxu0 }
 0x1a1   : > { %v1358_v23 = vadd.f32 %v10615_v33, %v1322_v27  ;;  %v1320_v25 = vmul.f32 %v10611_v9, %v1189_v26 }
 0x1a2   : > { %v9319_v17 = vpop.f32.mrf.mxu0 }
 0x1a3   : > { %v1390_v13 = vmax.f32 %v1358_v23, 0.0  ;;  %v1356_v16 = vadd.f32 %v10615_v33, %v1320_v25  ;;  %v1323_v15 = vmul.f32 %v9319_v17, %v10611_v9 }
 0x1a4   : > { %v1192_v3 = vpop.f32.mrf.mxu0 }
 0x1a5   : > { %1423 = vst.msk [vmem:[#allocation2 + $0xd1] sm:$0xff] %vm303_vm3, %v1390_v13  ;;  %v1388_v6 = vmax.f32 %v1356_v16, 0.0  ;;  %v1359_v7 = vadd.f32 %v10615_v33, %v1323_v15  ;;  %v1321_v5 = vmul.f32 %v10611_v9, %v1192_v3 }
 0x1a6   : > { %v9322_v35 = vpop.f32.mrf.mxu0 }
 0x1a7   : > { %1421 = vst.msk [vmem:[#allocation2 + $0xb1] sm:$0xff] %vm303_vm3, %v1388_v6  ;;  %v1391_v27 = vmax.f32 %v1359_v7, 0.0  ;;  %v1357_v26 = vadd.f32 %v10615_v33, %v1321_v5  ;;  %v1326_v23 = vmul.f32 %v9322_v35, %v10611_v9 }
 0x1a8   : > { %v1205_v57 = vpop.f32.mrf.mxu0 }
 0x1a9   : > { %1424 = vst.msk [vmem:[#allocation2 + $0xe1] sm:$0xff] %vm303_vm3, %v1391_v27  ;;  %v1389_v17 = vmax.f32 %v1357_v26, 0.0  ;;  %v1362_v25 = vadd.f32 %v10615_v33, %v1326_v23  ;;  %v1324_v13 = vmul.f32 %v10611_v9, %v1205_v57 }
 0x1aa   : > { %v9323_v16 = vpop.f32.mrf.mxu0 }
 0x1ab   : > { %1422 = vst.msk [vmem:[#allocation2 + $0xc1] sm:$0xff] %vm303_vm3, %v1389_v17  ;;  %v1394_v3 = vmax.f32 %v1362_v25, 0.0  ;;  %v1360_v15 = vadd.f32 %v10615_v33, %v1324_v13  ;;  %v1327_v6 = vmul.f32 %v9323_v16, %v10611_v9 }
 0x1ac   : > { %v1208_v7 = vpop.f32.mrf.mxu0 }
 0x1ad   : > { %1427 = vst.msk [vmem:[#allocation2 + $0x111] sm:$0xff] %vm303_vm3, %v1394_v3  ;;  %v1392_v5 = vmax.f32 %v1360_v15, 0.0  ;;  %v1363_v35 = vadd.f32 %v10615_v33, %v1327_v6  ;;  %v1325_v27 = vmul.f32 %v10611_v9, %v1208_v7 }
 0x1ae   : > { %v9326_v26 = vpop.f32.mrf.mxu0 }
 0x1af   : > { %1425 = vst.msk [vmem:[#allocation2 + $0xf1] sm:$0xff] %vm303_vm3, %v1392_v5  ;;  %v1395_v57 = vmax.f32 %v1363_v35, 0.0  ;;  %v1361_v23 = vadd.f32 %v10615_v33, %v1325_v27  ;;  %v1330_v17 = vmul.f32 %v9326_v26, %v10611_v9 }
 0x1b0   : > { %v1221_v25 = vpop.f32.mrf.mxu0 }
 0x1b1   : > { %1428 = vst.msk [vmem:[#allocation2 + $0x121] sm:$0xff] %vm303_vm3, %v1395_v57  ;;  %v1393_v13 = vmax.f32 %v1361_v23, 0.0  ;;  %v1366_v16 = vadd.f32 %v10615_v33, %v1330_v17  ;;  %v1328_v3 = vmul.f32 %v10611_v9, %v1221_v25 }
 0x1b2   : > { %v9327_v15 = vpop.f32.mrf.mxu0 }
 0x1b3   : > { %1426 = vst.msk [vmem:[#allocation2 + $0x101] sm:$0xff] %vm303_vm3, %v1393_v13  ;;  %v1398_v6 = vmax.f32 %v1366_v16, 0.0  ;;  %v1364_v7 = vadd.f32 %v10615_v33, %v1328_v3  ;;  %v1331_v5 = vmul.f32 %v9327_v15, %v10611_v9 }
 0x1b4   : > { %v1224_v35 = vpop.f32.mrf.mxu0 }
 0x1b5   : > { %1431 = vst.msk [vmem:[#allocation2 + $0x171] sm:$0xff] %vm303_vm3, %v1398_v6  ;;  %v1396_v27 = vmax.f32 %v1364_v7, 0.0  ;;  %v1367_v26 = vadd.f32 %v10615_v33, %v1331_v5  ;;  %v1329_v57 = vmul.f32 %v10611_v9, %v1224_v35 }
 0x1b6   : > { %v9330_v23 = vpop.f32.mrf.mxu0 }
 0x1b7   : > { %1429 = vst.msk [vmem:[#allocation2 + $0x151] sm:$0xff] %vm303_vm3, %v1396_v27  ;;  %v1399_v17 = vmax.f32 %v1367_v26, 0.0  ;;  %v1365_v25 = vadd.f32 %v10615_v33, %v1329_v57  ;;  %v1334_v13 = vmul.f32 %v9330_v23, %v10611_v9 }
 0x1b8   : > { %v1237_v16 = vpop.f32.mrf.mxu0 }
 0x1b9   : > { %1432 = vst.msk [vmem:[#allocation2 + $0x181] sm:$0xff] %vm303_vm3, %v1399_v17  ;;  %v1397_v3 = vmax.f32 %v1365_v25, 0.0  ;;  %v1370_v15 = vadd.f32 %v10615_v33, %v1334_v13  ;;  %v1332_v6 = vmul.f32 %v10611_v9, %v1237_v16 }
 0x1ba   : > { %v9331_v7 = vpop.f32.mrf.mxu0 }
 0x1bb   : > { %1430 = vst.msk [vmem:[#allocation2 + $0x161] sm:$0xff] %vm303_vm3, %v1397_v3  ;;  %v1402_v5 = vmax.f32 %v1370_v15, 0.0  ;;  %v1368_v35 = vadd.f32 %v10615_v33, %v1332_v6  ;;  %v1335_v27 = vmul.f32 %v9331_v7, %v10611_v9 }
 0x1bc   : > { %v1240_v26 = vpop.f32.mrf.mxu0 }
 0x1bd   : > { %1435 = vst.msk [vmem:[#allocation2 + $0x1b1] sm:$0xff] %vm303_vm3, %v1402_v5  ;;  %v1400_v57 = vmax.f32 %v1368_v35, 0.0  ;;  %v1371_v23 = vadd.f32 %v10615_v33, %v1335_v27  ;;  %v1333_v17 = vmul.f32 %v10611_v9, %v1240_v26 }
 0x1be   : > { %v9334_v25 = vpop.f32.mrf.mxu0 }
 0x1bf   : > { %1433 = vst.msk [vmem:[#allocation2 + $0x191] sm:$0xff] %vm303_vm3, %v1400_v57  ;;  %v1403_v13 = vmax.f32 %v1371_v23, 0.0  ;;  %v1369_v16 = vadd.f32 %v10615_v33, %v1333_v17  ;;  %v1338_v3 = vmul.f32 %v9334_v25, %v10611_v9 }
 0x1c0   : > { %v1253_v15 = vpop.f32.mrf.mxu0 }
 0x1c1   : > { %1436 = vst.msk [vmem:[#allocation2 + $0x1c1] sm:$0xff] %vm303_vm3, %v1403_v13  ;;  %v1401_v6 = vmax.f32 %v1369_v16, 0.0  ;;  %v1374_v7 = vadd.f32 %v10615_v33, %v1338_v3  ;;  %v1336_v5 = vmul.f32 %v10611_v9, %v1253_v15 }
 0x1c2   : > { %v9335_v35 = vpop.f32.mrf.mxu0 }
 0x1c3   : > { %1434 = vst.msk [vmem:[#allocation2 + $0x1a1] sm:$0xff] %vm303_vm3, %v1401_v6  ;;  %v1406_v27 = vmax.f32 %v1374_v7, 0.0  ;;  %v1372_v26 = vadd.f32 %v10615_v33, %v1336_v5  ;;  %v1339_v57 = vmul.f32 %v9335_v35, %v10611_v9 }
 0x1c4   : > { %v1256_v23 = vpop.f32.mrf.mxu0 }
 0x1c5   : > { %1439 = vst.msk [vmem:[#allocation2 + $0x211] sm:$0xff] %vm303_vm3, %v1406_v27  ;;  %v1404_v17 = vmax.f32 %v1372_v26, 0.0  ;;  %v1375_v25 = vadd.f32 %v10615_v33, %v1339_v57  ;;  %v1337_v13 = vmul.f32 %v10611_v9, %v1256_v23 }
 0x1c6   : > { %v9338_v16 = vpop.f32.mrf.mxu0 }
 0x1c7   : > { %1437 = vst.msk [vmem:[#allocation2 + $0x1f1] sm:$0xff] %vm303_vm3, %v1404_v17  ;;  %v1407_v3 = vmax.f32 %v1375_v25, 0.0  ;;  %v1373_v15 = vadd.f32 %v10615_v33, %v1337_v13  ;;  %v1342_v6 = vmul.f32 %v9338_v16, %v10611_v9 }
 0x1c8   : > { %v1269_v7 = vpop.f32.mrf.mxu0 }
 0x1c9   : > { %1440 = vst.msk [vmem:[#allocation2 + $0x221] sm:$0xff] %vm303_vm3, %v1407_v3  ;;  %v1405_v5 = vmax.f32 %v1373_v15, 0.0  ;;  %v1378_v35 = vadd.f32 %v10615_v33, %v1342_v6  ;;  %v1340_v27 = vmul.f32 %v10611_v9, %v1269_v7 }
 0x1ca   : > { %v9339_v26 = vpop.f32.mrf.mxu0 }
 0x1cb   : > { %1438 = vst.msk [vmem:[#allocation2 + $0x201] sm:$0xff] %vm303_vm3, %v1405_v5  ;;  %v1410_v57 = vmax.f32 %v1378_v35, 0.0  ;;  %v1376_v23 = vadd.f32 %v10615_v33, %v1340_v27  ;;  %v1343_v17 = vmul.f32 %v9339_v26, %v10611_v9 }
 0x1cc   : > { %v1272_v25 = vpop.f32.mrf.mxu0 }
 0x1cd   : > { %1443 = vst.msk [vmem:[#allocation2 + $0x251] sm:$0xff] %vm303_vm3, %v1410_v57  ;;  %v1408_v13 = vmax.f32 %v1376_v23, 0.0  ;;  %v1379_v16 = vadd.f32 %v10615_v33, %v1343_v17  ;;  %v1341_v3 = vmul.f32 %v10611_v9, %v1272_v25 }
 0x1ce   : > { %v9342_v15 = vpop.f32.mrf.mxu0 }
 0x1cf   : > { %1441 = vst.msk [vmem:[#allocation2 + $0x231] sm:$0xff] %vm303_vm3, %v1408_v13  ;;  %v1411_v6 = vmax.f32 %v1379_v16, 0.0  ;;  %v1377_v7 = vadd.f32 %v10615_v33, %v1341_v3  ;;  %v1346_v5 = vmul.f32 %v9342_v15, %v10611_v9 }
 0x1d0   : > { %v1285_v35 = vpop.f32.mrf.mxu0 }
 0x1d1   : > { %1444 = vst.msk [vmem:[#allocation2 + $0x261] sm:$0xff] %vm303_vm3, %v1411_v6  ;;  %v1409_v27 = vmax.f32 %v1377_v7, 0.0  ;;  %v1382_v26 = vadd.f32 %v10615_v33, %v1346_v5  ;;  %v1344_v57 = vmul.f32 %v10611_v9, %v1285_v35 }
 0x1d2   : > { %v9343_v23 = vpop.f32.mrf.mxu0 }
 0x1d3   : > { %1442 = vst.msk [vmem:[#allocation2 + $0x241] sm:$0xff] %vm303_vm3, %v1409_v27  ;;  %v1414_v17 = vmax.f32 %v1382_v26, 0.0  ;;  %v1380_v25 = vadd.f32 %v10615_v33, %v1344_v57  ;;  %v1347_v13 = vmul.f32 %v9343_v23, %v10611_v9 }
 0x1d4   : > { %v1288_v16 = vpop.f32.mrf.mxu0 }
 0x1d5   : > { %1447 = vst.msk [vmem:[#allocation2 + $0x2b1] sm:$0xff] %vm303_vm3, %v1414_v17  ;;  %v1412_v3 = vmax.f32 %v1380_v25, 0.0  ;;  %v1383_v15 = vadd.f32 %v10615_v33, %v1347_v13  ;;  %v1345_v6 = vmul.f32 %v10611_v9, %v1288_v16 }
 0x1d6   : > { %v9346_v7 = vpop.f32.mrf.mxu0 }
 0x1d7   : > { %1445 = vst.msk [vmem:[#allocation2 + $0x291] sm:$0xff] %vm303_vm3, %v1412_v3  ;;  %v1415_v5 = vmax.f32 %v1383_v15, 0.0  ;;  %v1381_v35 = vadd.f32 %v10615_v33, %v1345_v6  ;;  %v1350_v27 = vmul.f32 %v9346_v7, %v10611_v9 }
 0x1d8   : > { %v1301_v26 = vpop.f32.mrf.mxu0 }
 0x1d9   : > { %1448 = vst.msk [vmem:[#allocation2 + $0x2c1] sm:$0xff] %vm303_vm3, %v1415_v5  ;;  %v1413_v57 = vmax.f32 %v1381_v35, 0.0  ;;  %v1386_v23 = vadd.f32 %v10615_v33, %v1350_v27  ;;  %v1348_v17 = vmul.f32 %v10611_v9, %v1301_v26 }
 0x1da   : > { %v9347_v25 = vpop.f32.mrf.mxu0 }
 0x1db   : > { %1446 = vst.msk [vmem:[#allocation2 + $0x2a1] sm:$0xff] %vm303_vm3, %v1413_v57  ;;  %v1418_v13 = vmax.f32 %v1386_v23, 0.0  ;;  %v1384_v16 = vadd.f32 %v10615_v33, %v1348_v17  ;;  %v1351_v3 = vmul.f32 %v9347_v25, %v10611_v9 }
 0x1dc   : > { %v1304_v15 = vpop.f32.mrf.mxu0 }
 0x1dd   : > { %1451 = vst.msk [vmem:[#allocation2 + $0x2f1] sm:$0xff] %vm303_vm3, %v1418_v13  ;;  %v1416_v6 = vmax.f32 %v1384_v16, 0.0  ;;  %v1387_v7 = vadd.f32 %v10615_v33, %v1351_v3  ;;  %v1349_v5 = vmul.f32 %v10611_v9, %v1304_v15 }
 0x1df   : > { %1449 = vst.msk [vmem:[#allocation2 + $0x2d1] sm:$0xff] %vm303_vm3, %v1416_v6  ;;  %v1419_v35 = vmax.f32 %v1387_v7, 0.0  ;;  %v1385_v27 = vadd.f32 %v10615_v33, %v1349_v5 }
 0x1e1   : > { %1452 = vst.msk [vmem:[#allocation2 + $0x301] sm:$0xff] %vm303_vm3, %v1419_v35  ;;  %v1417_v26 = vmax.f32 %v1385_v27, 0.0 }
 0x1e3   : > { %1450 = vst.msk [vmem:[#allocation2 + $0x2e1] sm:$0xff] %vm303_vm3, %v1417_v26 }
 0x1e4 LB: >> { %v15126_v42 = vld [vmem:[#allocation72_spill] sm:$0xff]  ;;  %v15127_v41 = vld [vmem:[#allocation5_spill] sm:$0xff]  ;;  %v15128_v12 = vld [vmem:[#allocation38_spill] sm:$0xff]  ;;  %s1463_s13 = smul.u32 160, %s9917_s12  ;;  %vm1587_vm5 = vcmask 1046528   ;;  %vm1664_vm6 = vcmask 1045504   ;;  %s9917_s12 = sphi %s10713_s12, %s1462_s12  }
 0x1e5   : >> { %v15129_v55 = vld [vmem:[#allocation71_spill] sm:$0xff]  ;;  %v15130_v40 = vld [vmem:[#allocation4_spill] sm:$0xff]  ;;  %v10759_v5 = vrot.slane %v15126_v42, %v15127_v41  ;;  %v10771_v26 = vrot.slane %v15126_v42, %v15128_v12  ;;  %vm3155_vm7 = vcmask 64513   ;;  %vm3157_vm8 = vcmask 57344   ;;  %s8929_s16 = sshll.u32 %s9917_s12, 6  ;;  %s1462_s12 = sadd.s32 1, %s9917_s12  }
 0x1e6   : >> { %v10719_v9 = vsub.s32 2, %v15130_v40  ;;  %v1534_v57 = vrot.slane %v15129_v55, %v15127_v41  ;;  %v10724_v33 = vsub.s32 3, %v15130_v40  ;;  %v10727_v23 = vsub.s32 4, %v15130_v40  ;;  %s10777_s15 = scalar_lea.vmem [#allocation2], %s1463_s13  ;;  %s3154_s17 = scalar_lea.vmem [#allocation3], %s8929_s16 }
 0x1e7   : >> { %v10730_v17 = vsub.s32 5, %v15130_v40  ;;  %v1554_v25 = vrot.slane %v15129_v55, %v15128_v12  ;;  %v10740_v16 = vsub.s32 6, %v15130_v40  ;;  %v10743_v3 = vsub.s32 7, %v15130_v40  ;;  %15137 = vst [vmem:[#allocation83_spill] sm:$0xff] %v10759_v5  ;;  %15140 = vst [vmem:[#allocation86_spill] sm:$0xff] %v10771_v26  ;;  %p1459_p4 = scmp.ge.s32.totalorder %s1462_s12, 4  }
 0x1e8   : >> { %15131 = vst [vmem:[#allocation77_spill] sm:$0xff] %v10719_v9  ;;  %15132 = vst [vmem:[#allocation78_spill] sm:$0xff] %v10724_v33  ;;  %v10737_v13 = vrot.slane %v15129_v55, %v10719_v9  ;;  %v10747_v15 = vrot.slane %v15129_v55, %v10724_v33  ;;  %v10751_v6 = vrot.slane %v15129_v55, %v10727_v23  ;;  %s12007_s29 = smov (%p1459_p4), 0  }
 0x1e9   : >> { %15133 = vst [vmem:[#allocation79_spill] sm:$0xff] %v10727_v23  ;;  %15134 = vst [vmem:[#allocation80_spill] sm:$0xff] %v10730_v17  ;;  %v10755_v7 = vrot.slane %v15129_v55, %v10730_v17  ;;  %v10763_v35 = vrot.slane %v15129_v55, %v10740_v16  ;;  %v10767_v27 = vrot.slane %v15129_v55, %v10743_v3 }
 0x1ea   : >> { %15135 = vst [vmem:[#allocation81_spill] sm:$0xff] %v10740_v16  ;;  %15136 = vst [vmem:[#allocation82_spill] sm:$0xff] %v10743_v3  ;;  %v10775_v40 = vrot.slane %v15126_v42, %v10719_v9  ;;  %v1465_v55 = vld [vmem:[%s10777_s15] sm:$0xff]  ;;  %v1466_v60 = vld [vmem:[%s10777_s15 + $0x8] sm:$0x3]  ;;  %v10786_v59 = vrot.slane %v15126_v42, %v10724_v33  ;;  %v10790_v50 = vrot.slane %v15126_v42, %v10727_v23 }
 0x1eb   : >> { %15138 = vst [vmem:[#allocation84_spill] sm:$0xff] %v10763_v35  ;;  %15139 = vst [vmem:[#allocation85_spill] sm:$0xff] %v10767_v27  ;;  %v10782_v61 = vld [vmem:[%s10777_s15 + $0x10] sm:$0xff]  ;;  %v10794_v47 = vrot.slane %v15126_v42, %v10730_v17  ;;  %v10798_v49 = vrot.slane %v15126_v42, %v10740_v16  ;;  %v10801_v51 = vld [vmem:[%s10777_s15 + $0x18] sm:$0x3]  ;;  %v1535_v1 = vmul.f32 %v1534_v57, %v1465_v55 }
 0x1ec   : >> { %15141 = vst [vmem:[#allocation87_spill] sm:$0xff] %v10775_v40  ;;  %15142 = vst [vmem:[#allocation88_spill] sm:$0xff] %v10786_v59  ;;  %v10804_v36 = vld [vmem:[%s10777_s15 + $0x20] sm:$0xff]  ;;  %v10807_v53 = vld [vmem:[%s10777_s15 + $0x28] sm:$0x3]  ;;  %v1536_v43 = vmul.f32 %v1534_v57, %v10782_v61  ;;  %v1555_v54 = vmul.f32 %v1554_v25, %v1465_v55  ;;  %v1556_v4 = vmul.f32 %v1554_v25, %v1466_v60 }
 0x1ed   : >> { %15143 = vst [vmem:[#allocation89_spill] sm:$0xff] %v10790_v50  ;;  %15144 = vst [vmem:[#allocation90_spill] sm:$0xff] %v10794_v47  ;;  %v10811_v2 = vld [vmem:[%s10777_s15 + $0x30] sm:$0xff]  ;;  %v10814_v0 = vld [vmem:[%s10777_s15 + $0x38] sm:$0x3]  ;;  %v1537_v18 = vmul.f32 %v1534_v57, %v10804_v36  ;;  %v1557_v30 = vmul.f32 %v1554_v25, %v10782_v61  ;;  %v1558_v29 = vmul.f32 %v1554_v25, %v10801_v51 }
 0x1ee   : >> { %15145 = vst [vmem:[#allocation91_spill] sm:$0xff] %v10798_v49  ;;  %v10817_v8 = vld [vmem:[%s10777_s15 + $0x40] sm:$0xff]  ;;  %v1559_v46 = vmul.f32 %v1554_v25, %v10804_v36  ;;  %v10824_v32 = vld [vmem:[%s10777_s15 + $0x48] sm:$0x3]  ;;  %v10827_v56 = vld [vmem:[%s10777_s15 + $0x50] sm:$0xff]  ;;  %v1538_v20 = vmul.f32 %v1534_v57, %v10811_v2  ;;  %v1560_v21 = vmul.f32 %v1554_v25, %v10807_v53  ;;  %v1561_v19 = vmul.f32 %v1554_v25, %v10811_v2 }
 0x1ef   : >> { %v10830_v44 = vld [vmem:[%s10777_s15 + $0x58] sm:$0x3]  ;;  %v1539_v11 = vmul.f32 %v1534_v57, %v10817_v8  ;;  %v10837_v62 = vld [vmem:[%s10777_s15 + $0x60] sm:$0xff]  ;;  %v10840_v52 = vld [vmem:[%s10777_s15 + $0x68] sm:$0x3]  ;;  %v1540_v58 = vmul.f32 %v1534_v57, %v10827_v56  ;;  %v1562_v38 = vmul.f32 %v1554_v25, %v10814_v0  ;;  %v1563_v31 = vmul.f32 %v1554_v25, %v10817_v8 }
 0x1f0   : >> { %v10843_v63 = vld [vmem:[%s10777_s15 + $0x70] sm:$0xff]  ;;  %v1564_v39 = vmul.f32 %v1554_v25, %v10824_v32  ;;  %v10850_v34 = vld [vmem:[%s10777_s15 + $0x78] sm:$0x3]  ;;  %v1541_v24 = vmul.f32 %v1534_v57, %v10837_v62  ;;  %v1565_v28 = vmul.f32 %v1554_v25, %v10827_v56  ;;  %v1566_v22 = vmul.f32 %v1554_v25, %v10830_v44 }
 0x1f1   : >> { %v1542_v45 = vmul.f32 %v1534_v57, %v10843_v63  ;;  %v1567_v10 = vmul.f32 %v1554_v25, %v10837_v62  ;;  %v1568_v14 = vmul.f32 %v1554_v25, %v10840_v52  ;;  %v1569_v37 = vmul.f32 %v1554_v25, %v10843_v63 }
 0x1f2   : >> { %v1570_v16 = vmul.f32 %v1554_v25, %v10850_v34  ;;  %v1588_v17 = vrot.slane %v1555_v54, 1  ;;  %v1632_v23 = vmul.f32 %v10737_v13, %v1465_v55  ;;  %v1633_v33 = vmul.f32 %v10737_v13, %v1466_v60 }
 0x1f3   : >> { %v1634_v57 = vmul.f32 %v10737_v13, %v10782_v61  ;;  %v1589_v9 = vrot.slane %v1556_v4, 1  ;;  %v1591_v12 = vrot.slane %v1557_v30, 1  ;;  %v1635_v48 = vmul.f32 %v10737_v13, %v10801_v51 }
 0x1f4   : >> { %v1636_v41 = vmul.f32 %v10737_v13, %v10804_v36  ;;  %v1592_v42 = vrot.slane %v1558_v29, 1  ;;  %v1637_v25 = vmul.f32 %v10737_v13, %v10807_v53  ;;  %v1638_v54 = vmul.f32 %v10737_v13, %v10811_v2 }
 0x1f5   : >> { %v1639_v60 = vmul.f32 %v10737_v13, %v10814_v0  ;;  %v1590_v4 = vsel %vm1587_vm5, %v1588_v17, %v1589_v9  ;;  %v1594_v30 = vrot.slane %v1559_v46, 1  ;;  %v1595_v55 = vrot.slane %v1560_v21, 1 }
 0x1f6   : >> { %v1640_v3 = vmul.f32 %v10737_v13, %v10817_v8  ;;  %v1593_v49 = vsel %vm1587_vm5, %v1591_v12, %v1592_v42  ;;  %v1597_v29 = vrot.slane %v1561_v19, 1  ;;  %v1620_v47 = vadd.f32 %v1590_v4, %v1535_v1 }
 0x1f7   : >> { %v1641_v50 = vmul.f32 %v10737_v13, %v10824_v32  ;;  %v1596_v59 = vsel %vm1587_vm5, %v1594_v30, %v1595_v55  ;;  %v1598_v40 = vrot.slane %v1562_v38, 1  ;;  %v1600_v26 = vrot.slane %v1563_v31, 1 }
 0x1f8   : >> { %v1621_v5 = vadd.f32 %v1593_v49, %v1536_v43  ;;  %v1601_v27 = vrot.slane %v1564_v39, 1  ;;  %v1622_v35 = vadd.f32 %v1596_v59, %v1537_v18  ;;  %v1642_v21 = vmul.f32 %v10737_v13, %v10827_v56 }
 0x1f9   : >> { %v1643_v46 = vmul.f32 %v10737_v13, %v10830_v44  ;;  %v1599_v12 = vsel %vm1587_vm5, %v1597_v29, %v1598_v40  ;;  %v1603_v19 = vrot.slane %v1565_v28, 1  ;;  %v1604_v1 = vrot.slane %v1566_v22, 1 }
 0x1fa   : >> { %v1644_v42 = vmul.f32 %v10737_v13, %v10837_v62  ;;  %v1602_v9 = vsel %vm1587_vm5, %v1600_v26, %v1601_v27  ;;  %v1606_v38 = vrot.slane %v1567_v10, 1  ;;  %v1623_v31 = vadd.f32 %v1599_v12, %v1538_v20 }
 0x1fb   : >> { %v1645_v49 = vmul.f32 %v10737_v13, %v10840_v52  ;;  %v1605_v59 = vsel %vm1587_vm5, %v1603_v19, %v1604_v1  ;;  %v1607_v39 = vrot.slane %v1568_v14, 1  ;;  %v1609_v18 = vrot.slane %v1569_v37, 1 }
 0x1fc   : >> { %v1624_v43 = vadd.f32 %v1602_v9, %v1539_v11  ;;  %v1610_v17 = vrot.slane %v1570_v16, 1  ;;  %v1625_v4 = vadd.f32 %v1605_v59, %v1540_v58  ;;  %v1646_v40 = vmul.f32 %v10737_v13, %v10843_v63 }
 0x1fd   : >> { %v1647_v22 = vmul.f32 %v10737_v13, %v10850_v34  ;;  %v1608_v28 = vsel %vm1587_vm5, %v1606_v38, %v1607_v39  ;;  %v1665_v10 = vrot.slane %v1632_v23, 2  ;;  %v1666_v20 = vrot.slane %v1633_v33, 2 }
 0x1fe   : >> { %v1709_v27 = vmul.f32 %v10747_v15, %v10782_v61  ;;  %v1611_v26 = vsel %vm1587_vm5, %v1609_v18, %v1610_v17  ;;  %v1626_v14 = vadd.f32 %v1608_v28, %v1541_v24  ;;  %v1668_v37 = vrot.slane %v1634_v57, 2 }
 0x1ff   : >> { %v1710_v58 = vmul.f32 %v10747_v15, %v10804_v36  ;;  %v1627_v11 = vadd.f32 %v1611_v26, %v1542_v45  ;;  %v1667_v16 = vsel %vm1664_vm6, %v1665_v10, %v1666_v20  ;;  %v1669_v30 = vrot.slane %v1635_v48, 2 }
 0x200   : >> { %v1671_v55 = vrot.slane %v1636_v41, 2  ;;  %v1672_v13 = vrot.slane %v1637_v25, 2  ;;  %v1674_v29 = vrot.slane %v1638_v54, 2  ;;  %v1675_v23 = vrot.slane %v1639_v60, 2  ;;  %v10909_v54 = vld [vmem:[%s10777_s15 + $0x80] sm:$0xff] }
 0x201   : >> { %v1677_v33 = vrot.slane %v1640_v3, 2  ;;  %v1670_v12 = vsel %vm1664_vm6, %v1668_v37, %v1669_v30  ;;  %v1678_v19 = vrot.slane %v1641_v50, 2  ;;  %v1680_v1 = vrot.slane %v1642_v21, 2 }
 0x202   : >> { %v1681_v9 = vrot.slane %v1643_v46, 2  ;;  %v1673_v24 = vsel %vm1664_vm6, %v1671_v55, %v1672_v13  ;;  %v1676_v57 = vsel %vm1664_vm6, %v1674_v29, %v1675_v23  ;;  %v1683_v38 = vrot.slane %v1644_v42, 2 }
 0x203   : >> { %v1684_v45 = vrot.slane %v1645_v49, 2  ;;  %v1679_v59 = vsel %vm1664_vm6, %v1677_v33, %v1678_v19  ;;  %v1686_v48 = vrot.slane %v1646_v40, 2  ;;  %v1687_v25 = vrot.slane %v1647_v22, 2 }
 0x204   : >> { %v1682_v41 = vsel %vm1664_vm6, %v1680_v1, %v1681_v9  ;;  %v1697_v60 = vadd.f32 %v1667_v16, %v1620_v47  ;;  %v1698_v50 = vadd.f32 %v1670_v12, %v1621_v5  ;;  %v1699_v21 = vadd.f32 %v1673_v24, %v1622_v35 }
 0x205   : >> { %v1685_v3 = vsel %vm1664_vm6, %v1683_v38, %v1684_v45  ;;  %v1688_v46 = vsel %vm1664_vm6, %v1686_v48, %v1687_v25  ;;  %v1700_v39 = vadd.f32 %v1676_v57, %v1623_v31  ;;  %v1701_v18 = vadd.f32 %v1679_v59, %v1624_v43 }
 0x206   : >> { %v1702_v17 = vadd.f32 %v1682_v41, %v1625_v4  ;;  %v1703_v42 = vadd.f32 %v1685_v3, %v1626_v14  ;;  %v1704_v49 = vadd.f32 %v1688_v46, %v1627_v11  ;;  %v1711_v28 = vmul.f32 %v10747_v15, %v10811_v2  ;;  %v10926_v11 = vld [vmem:[%s10777_s15 + $0x88] sm:$0x3] }
 0x207   : >> { %v1712_v40 = vmul.f32 %v10747_v15, %v10817_v8  ;;  %v1713_v22 = vmul.f32 %v10747_v15, %v10827_v56  ;;  %v1714_v47 = vmul.f32 %v10747_v15, %v10837_v62  ;;  %v1715_v5 = vmul.f32 %v10747_v15, %v10843_v63 }
 0x208   : >> { %v1716_v35 = vmul.f32 %v10747_v15, %v10909_v54  ;;  %v1717_v31 = vadd.f32 %v1709_v27, %v1697_v60  ;;  %v1718_v43 = vadd.f32 %v1710_v58, %v1698_v50  ;;  %v1719_v4 = vadd.f32 %v1711_v28, %v1699_v21 }
 0x209   : >> { %v1720_v10 = vadd.f32 %v1712_v40, %v1700_v39  ;;  %v1721_v20 = vadd.f32 %v1713_v22, %v1701_v18  ;;  %v1722_v26 = vadd.f32 %v1714_v47, %v1702_v17  ;;  %v1723_v14 = vadd.f32 %v1715_v5, %v1703_v42 }
 0x20a   : >> { %v1724_v37 = vadd.f32 %v1716_v35, %v1704_v49  ;;  %v1729_v16 = vmul.f32 %v10751_v6, %v10782_v61  ;;  %v1730_v30 = vmul.f32 %v10751_v6, %v10801_v51  ;;  %v1731_v55 = vmul.f32 %v10751_v6, %v10804_v36 }
 0x20b   : >> { %v1732_v15 = vmul.f32 %v10751_v6, %v10807_v53  ;;  %v1733_v27 = vmul.f32 %v10751_v6, %v10811_v2  ;;  %v1734_v58 = vmul.f32 %v10751_v6, %v10814_v0  ;;  %v1735_v13 = vmul.f32 %v10751_v6, %v10817_v8 }
 0x20c   : >> { %v1736_v29 = vmul.f32 %v10751_v6, %v10824_v32  ;;  %v1737_v23 = vmul.f32 %v10751_v6, %v10827_v56  ;;  %v1738_v33 = vmul.f32 %v10751_v6, %v10830_v44  ;;  %v1739_v12 = vmul.f32 %v10751_v6, %v10837_v62 }
 0x20d   : >> { %v1740_v19 = vmul.f32 %v10751_v6, %v10840_v52  ;;  %v1741_v1 = vmul.f32 %v10751_v6, %v10843_v63  ;;  %v1742_v9 = vmul.f32 %v10751_v6, %v10850_v34  ;;  %v1743_v24 = vmul.f32 %v10751_v6, %v10909_v54 }
 0x20e   : >> { %v1744_v57 = vmul.f32 %v10751_v6, %v10926_v11  ;;  %v1761_v38 = vrot.slane %v1729_v16, 1  ;;  %v1762_v45 = vrot.slane %v1730_v30, 1  ;;  %v1764_v59 = vrot.slane %v1731_v55, 1 }
 0x20f   : >> { %v1765_v41 = vrot.slane %v1732_v15, 1  ;;  %v1767_v48 = vrot.slane %v1733_v27, 1  ;;  %v1768_v25 = vrot.slane %v1734_v58, 1  ;;  %v1770_v3 = vrot.slane %v1735_v13, 1 }
 0x210   : >> { %v1771_v60 = vrot.slane %v1736_v29, 1  ;;  %v1763_v50 = vsel %vm1587_vm5, %v1761_v38, %v1762_v45  ;;  %v1773_v46 = vrot.slane %v1737_v23, 1  ;;  %v1774_v39 = vrot.slane %v1738_v33, 1 }
 0x211   : >> { %v1766_v21 = vsel %vm1587_vm5, %v1764_v59, %v1765_v41  ;;  %v1769_v18 = vsel %vm1587_vm5, %v1767_v48, %v1768_v25  ;;  %v1776_v42 = vrot.slane %v1739_v12, 1  ;;  %v1777_v6 = vrot.slane %v1740_v19, 1 }
 0x212   : >> { %v1772_v17 = vsel %vm1587_vm5, %v1770_v3, %v1771_v60  ;;  %v1775_v49 = vsel %vm1587_vm5, %v1773_v46, %v1774_v39  ;;  %v1779_v28 = vrot.slane %v1741_v1, 1  ;;  %v1780_v40 = vrot.slane %v1742_v9, 1 }
 0x213   : >> { %v1782_v22 = vrot.slane %v1743_v24, 1  ;;  %v1778_v47 = vsel %vm1587_vm5, %v1776_v42, %v1777_v6  ;;  %v1783_v5 = vrot.slane %v1744_v57, 1  ;;  %v1793_v35 = vadd.f32 %v1763_v50, %v1717_v31 }
 0x214   : >> { %v1794_v16 = vadd.f32 %v1766_v21, %v1718_v43  ;;  %v1781_v30 = vsel %vm1587_vm5, %v1779_v28, %v1780_v40  ;;  %v1795_v55 = vadd.f32 %v1769_v18, %v1719_v4  ;;  %v1796_v15 = vadd.f32 %v1772_v17, %v1720_v10 }
 0x215   : >> { %v1797_v27 = vadd.f32 %v1775_v49, %v1721_v20  ;;  %v1784_v58 = vsel %vm1587_vm5, %v1782_v22, %v1783_v5  ;;  %v1798_v13 = vadd.f32 %v1778_v47, %v1722_v26  ;;  %v1799_v29 = vadd.f32 %v1781_v30, %v1723_v14  ;;  %v11007_v30 = vld [vmem:[%s10777_s15 + $0x90] sm:$0xff] }
 0x216   : >> { %v1805_v23 = vmul.f32 %v10755_v7, %v10782_v61  ;;  %v1800_v33 = vadd.f32 %v1784_v58, %v1724_v37  ;;  %v1806_v12 = vmul.f32 %v10755_v7, %v10801_v51  ;;  %v1807_v31 = vmul.f32 %v10755_v7, %v10804_v36 }
 0x217   : >> { %v1808_v43 = vmul.f32 %v10755_v7, %v10807_v53  ;;  %v1809_v4 = vmul.f32 %v10755_v7, %v10811_v2  ;;  %v1810_v10 = vmul.f32 %v10755_v7, %v10814_v0  ;;  %v1811_v20 = vmul.f32 %v10755_v7, %v10817_v8 }
 0x218   : >> { %v1812_v61 = vmul.f32 %v10755_v7, %v10824_v32  ;;  %v1813_v51 = vmul.f32 %v10755_v7, %v10827_v56  ;;  %v1814_v26 = vmul.f32 %v10755_v7, %v10830_v44  ;;  %v1815_v14 = vmul.f32 %v10755_v7, %v10837_v62 }
 0x219   : >> { %v1816_v37 = vmul.f32 %v10755_v7, %v10840_v52  ;;  %v1817_v19 = vmul.f32 %v10755_v7, %v10843_v63  ;;  %v1818_v1 = vmul.f32 %v10755_v7, %v10850_v34  ;;  %v1819_v9 = vmul.f32 %v10755_v7, %v10909_v54 }
 0x21a   : >> { %v1820_v24 = vmul.f32 %v10755_v7, %v10926_v11  ;;  %v1837_v57 = vrot.slane %v1805_v23, 2  ;;  %v1838_v38 = vrot.slane %v1806_v12, 2  ;;  %v1840_v45 = vrot.slane %v1807_v31, 2 }
 0x21b   : >> { %v1841_v59 = vrot.slane %v1808_v43, 2  ;;  %v1843_v41 = vrot.slane %v1809_v4, 2  ;;  %v1844_v48 = vrot.slane %v1810_v10, 2  ;;  %v1846_v25 = vrot.slane %v1811_v20, 2  ;;  %v15146_v20 = vld [vmem:[#allocation84_spill] sm:$0xff] }
 0x21c   : >> { %v1847_v3 = vrot.slane %v1812_v61, 2  ;;  %v1839_v60 = vsel %vm1664_vm6, %v1837_v57, %v1838_v38  ;;  %v1849_v21 = vrot.slane %v1813_v51, 2  ;;  %v1850_v46 = vrot.slane %v1814_v26, 2  ;;  %v11028_v57 = vld [vmem:[%s10777_s15 + $0x98] sm:$0x3]  ;;  %v15147_v38 = vld [vmem:[#allocation85_spill] sm:$0xff] }
 0x21d   : >> { %v1842_v50 = vsel %vm1664_vm6, %v1840_v45, %v1841_v59  ;;  %v1845_v39 = vsel %vm1664_vm6, %v1843_v41, %v1844_v48  ;;  %v1852_v7 = vrot.slane %v1815_v14, 2  ;;  %v1853_v17 = vrot.slane %v1816_v37, 2 }
 0x21e   : >> { %v1848_v18 = vsel %vm1664_vm6, %v1846_v25, %v1847_v3  ;;  %v1851_v42 = vsel %vm1664_vm6, %v1849_v21, %v1850_v46  ;;  %v1855_v6 = vrot.slane %v1817_v19, 2  ;;  %v1856_v49 = vrot.slane %v1818_v1, 2 }
 0x21f   : >> { %v1858_v28 = vrot.slane %v1819_v9, 2  ;;  %v1854_v40 = vsel %vm1664_vm6, %v1852_v7, %v1853_v17  ;;  %v1859_v22 = vrot.slane %v1820_v24, 2  ;;  %v1869_v47 = vadd.f32 %v1839_v60, %v1793_v35 }
 0x220   : >> { %v1870_v5 = vadd.f32 %v1842_v50, %v1794_v16  ;;  %v1857_v58 = vsel %vm1664_vm6, %v1855_v6, %v1856_v49  ;;  %v1871_v23 = vadd.f32 %v1845_v39, %v1795_v55  ;;  %v1872_v12 = vadd.f32 %v1848_v18, %v1796_v15 }
 0x221   : >> { %v1873_v31 = vadd.f32 %v1851_v42, %v1797_v27  ;;  %v1860_v43 = vsel %vm1664_vm6, %v1858_v28, %v1859_v22  ;;  %v1874_v4 = vadd.f32 %v1854_v40, %v1798_v13  ;;  %v1875_v10 = vadd.f32 %v1857_v58, %v1799_v29 }
 0x222   : >> { %v1881_v61 = vmul.f32 %v15146_v20, %v10804_v36  ;;  %v1876_v51 = vadd.f32 %v1860_v43, %v1800_v33  ;;  %v1882_v35 = vmul.f32 %v15146_v20, %v10811_v2  ;;  %v1883_v16 = vmul.f32 %v15146_v20, %v10817_v8 }
 0x223   : >> { %v1884_v55 = vmul.f32 %v15146_v20, %v10827_v56  ;;  %v1885_v15 = vmul.f32 %v15146_v20, %v10837_v62  ;;  %v1886_v27 = vmul.f32 %v15146_v20, %v10843_v63  ;;  %v1887_v13 = vmul.f32 %v15146_v20, %v10909_v54 }
 0x224   : >> { %v1888_v29 = vmul.f32 %v15146_v20, %v11007_v30  ;;  %v1889_v33 = vadd.f32 %v1881_v61, %v1869_v47  ;;  %v1890_v26 = vadd.f32 %v1882_v35, %v1870_v5  ;;  %v1891_v14 = vadd.f32 %v1883_v16, %v1871_v23 }
 0x225   : >> { %v1892_v37 = vadd.f32 %v1884_v55, %v1872_v12  ;;  %v1893_v19 = vadd.f32 %v1885_v15, %v1873_v31  ;;  %v1894_v1 = vadd.f32 %v1886_v27, %v1874_v4  ;;  %v1895_v9 = vadd.f32 %v1887_v13, %v1875_v10 }
 0x226   : >> { %v1896_v24 = vadd.f32 %v1888_v29, %v1876_v51  ;;  %v1901_v45 = vmul.f32 %v15147_v38, %v10804_v36  ;;  %v1902_v59 = vmul.f32 %v15147_v38, %v10807_v53  ;;  %v1903_v41 = vmul.f32 %v15147_v38, %v10811_v2 }
 0x227   : >> { %v1904_v48 = vmul.f32 %v15147_v38, %v10814_v0  ;;  %v1905_v25 = vmul.f32 %v15147_v38, %v10817_v8  ;;  %v1906_v3 = vmul.f32 %v15147_v38, %v10824_v32  ;;  %v1907_v60 = vmul.f32 %v15147_v38, %v10827_v56 }
 0x228   : >> { %v1908_v50 = vmul.f32 %v15147_v38, %v10830_v44  ;;  %v1909_v21 = vmul.f32 %v15147_v38, %v10837_v62  ;;  %v1910_v46 = vmul.f32 %v15147_v38, %v10840_v52  ;;  %v1911_v39 = vmul.f32 %v15147_v38, %v10843_v63 }
 0x229   : >> { %v1912_v18 = vmul.f32 %v15147_v38, %v10850_v34  ;;  %v1913_v7 = vmul.f32 %v15147_v38, %v10909_v54  ;;  %v1914_v17 = vmul.f32 %v15147_v38, %v10926_v11  ;;  %v1915_v42 = vmul.f32 %v15147_v38, %v11007_v30 }
 0x22a   : >> { %v1916_v6 = vmul.f32 %v15147_v38, %v11028_v57  ;;  %v1933_v49 = vrot.slane %v1901_v45, 1  ;;  %v1934_v28 = vrot.slane %v1902_v59, 1  ;;  %v1936_v40 = vrot.slane %v1903_v41, 1 }
 0x22b   : >> { %v1937_v22 = vrot.slane %v1904_v48, 1  ;;  %v1939_v47 = vrot.slane %v1905_v25, 1  ;;  %v1940_v5 = vrot.slane %v1906_v3, 1  ;;  %v1942_v58 = vrot.slane %v1907_v60, 1 }
 0x22c   : >> { %v1943_v23 = vrot.slane %v1908_v50, 1  ;;  %v1935_v12 = vsel %vm1587_vm5, %v1933_v49, %v1934_v28  ;;  %v1945_v43 = vrot.slane %v1909_v21, 1  ;;  %v1946_v4 = vrot.slane %v1910_v46, 1  ;;  %v15148_v50 = vld [vmem:[#allocation83_spill] sm:$0xff]  ;;  %v11107_v28 = vld [vmem:[%s10777_s15 + $0xa0] sm:$0xff] }
 0x22d   : >> { %v1938_v31 = vsel %vm1587_vm5, %v1936_v40, %v1937_v22  ;;  %v1941_v10 = vsel %vm1587_vm5, %v1939_v47, %v1940_v5  ;;  %v1948_v61 = vrot.slane %v1911_v39, 1  ;;  %v1949_v51 = vrot.slane %v1912_v18, 1  ;;  %v11110_v40 = vld [vmem:[%s10777_s15 + $0xb0] sm:$0xff] }
 0x22e   : >> { %v1944_v20 = vsel %vm1587_vm5, %v1942_v58, %v1943_v23  ;;  %v1947_v35 = vsel %vm1587_vm5, %v1945_v43, %v1946_v4  ;;  %v1951_v16 = vrot.slane %v1913_v7, 1  ;;  %v1952_v55 = vrot.slane %v1914_v17, 1  ;;  %v11114_v23 = vld [vmem:[%s10777_s15 + $0xc0] sm:$0xff] }
 0x22f   : >> { %v1954_v15 = vrot.slane %v1915_v42, 1  ;;  %v1950_v27 = vsel %vm1587_vm5, %v1948_v61, %v1949_v51  ;;  %v1955_v13 = vrot.slane %v1916_v6, 1  ;;  %v1965_v29 = vadd.f32 %v1935_v12, %v1889_v33  ;;  %v11117_v12 = vld [vmem:[%s10777_s15 + $0xd0] sm:$0xff]  ;;  %v11127_v51 = vld [vmem:[%s10777_s15 + $0x100] sm:$0xff] }
 0x230   : >> { %v1966_v38 = vadd.f32 %v1938_v31, %v1890_v26  ;;  %v1953_v45 = vsel %vm1587_vm5, %v1951_v16, %v1952_v55  ;;  %v1967_v59 = vadd.f32 %v1941_v10, %v1891_v14  ;;  %v1968_v41 = vadd.f32 %v1944_v20, %v1892_v37  ;;  %v11120_v31 = vld [vmem:[%s10777_s15 + $0xe0] sm:$0xff]  ;;  %v11124_v61 = vld [vmem:[%s10777_s15 + $0xf0] sm:$0xff] }
 0x231   : >> { %v1969_v48 = vadd.f32 %v1947_v35, %v1893_v19  ;;  %v1956_v25 = vsel %vm1587_vm5, %v1954_v15, %v1955_v13  ;;  %v1970_v3 = vadd.f32 %v1950_v27, %v1894_v1  ;;  %v1971_v60 = vadd.f32 %v1953_v45, %v1895_v9  ;;  %v11130_v35 = vld [vmem:[%s10777_s15 + $0x110] sm:$0xff] }
 0x232   : >> { %v1977_v21 = vmul.f32 %v15148_v50, %v10804_v36  ;;  %v1972_v46 = vadd.f32 %v1956_v25, %v1896_v24  ;;  %v1978_v39 = vmul.f32 %v15148_v50, %v10807_v53  ;;  %v1979_v33 = vmul.f32 %v15148_v50, %v10811_v2 }
 0x233   : >> { %v1980_v26 = vmul.f32 %v15148_v50, %v10814_v0  ;;  %v1981_v14 = vmul.f32 %v15148_v50, %v10817_v8  ;;  %v1982_v37 = vmul.f32 %v15148_v50, %v10824_v32  ;;  %v1983_v19 = vmul.f32 %v15148_v50, %v10827_v56 }
 0x234   : >> { %v1984_v36 = vmul.f32 %v15148_v50, %v10830_v44  ;;  %v1985_v53 = vmul.f32 %v15148_v50, %v10837_v62  ;;  %v1986_v2 = vmul.f32 %v15148_v50, %v10840_v52  ;;  %v1987_v0 = vmul.f32 %v15148_v50, %v10843_v63 }
 0x235   : >> { %v1988_v8 = vmul.f32 %v15148_v50, %v10850_v34  ;;  %v1989_v32 = vmul.f32 %v15148_v50, %v10909_v54  ;;  %v1990_v56 = vmul.f32 %v15148_v50, %v10926_v11  ;;  %v1991_v44 = vmul.f32 %v15148_v50, %v11007_v30 }
 0x236   : >> { %v1992_v62 = vmul.f32 %v15148_v50, %v11028_v57  ;;  %v2009_v1 = vrot.slane %v1977_v21, 2  ;;  %v2010_v52 = vrot.slane %v1978_v39, 2  ;;  %v2012_v63 = vrot.slane %v1979_v33, 2  ;;  %v11146_v39 = vld [vmem:[%s10777_s15 + $0xb8] sm:$0x3] }
 0x237   : >> { %v2013_v9 = vrot.slane %v1980_v26, 2  ;;  %v2015_v24 = vrot.slane %v1981_v14, 2  ;;  %v2016_v34 = vrot.slane %v1982_v37, 2  ;;  %v2018_v18 = vrot.slane %v1983_v19, 2  ;;  %v11157_v26 = vld [vmem:[%s10777_s15 + $0xc8] sm:$0x3] }
 0x238   : >> { %v2019_v54 = vrot.slane %v1984_v36, 2  ;;  %v2011_v11 = vsel %vm1664_vm6, %v2009_v1, %v2010_v52  ;;  %v2021_v7 = vrot.slane %v1985_v53, 2  ;;  %v2022_v17 = vrot.slane %v1986_v2, 2  ;;  %v11160_v14 = vld [vmem:[%s10777_s15 + $0xd8] sm:$0x3] }
 0x239   : >> { %v2014_v30 = vsel %vm1664_vm6, %v2012_v63, %v2013_v9  ;;  %v2017_v57 = vsel %vm1664_vm6, %v2015_v24, %v2016_v34  ;;  %v2024_v6 = vrot.slane %v1987_v0, 2  ;;  %v2025_v49 = vrot.slane %v1988_v8, 2  ;;  %v11163_v2 = vld [vmem:[%s10777_s15 + $0xe8] sm:$0x3]  ;;  %v11166_v0 = vld [vmem:[%s10777_s15 + $0xf8] sm:$0x3] }
 0x23a   : >> { %v2020_v42 = vsel %vm1664_vm6, %v2018_v18, %v2019_v54  ;;  %v2023_v22 = vsel %vm1664_vm6, %v2021_v7, %v2022_v17  ;;  %v2027_v47 = vrot.slane %v1989_v32, 2  ;;  %v2028_v5 = vrot.slane %v1990_v56, 2  ;;  %v11172_v1 = vld [vmem:[%s10777_s15 + $0x118] sm:$0x3] }
 0x23b   : >> { %v2030_v58 = vrot.slane %v1991_v44, 2  ;;  %v2026_v43 = vsel %vm1664_vm6, %v2024_v6, %v2025_v49  ;;  %v2031_v4 = vrot.slane %v1992_v62, 2  ;;  %v2041_v10 = vadd.f32 %v2011_v11, %v1965_v29  ;;  %v11169_v62 = vld [vmem:[%s10777_s15 + $0x108] sm:$0x3]  ;;  %v15150_v52 = vld [vmem:[#allocation87_spill] sm:$0xff] }
 0x23c   : >> { %v2042_v20 = vadd.f32 %v2014_v30, %v1966_v38  ;;  %v2029_v16 = vsel %vm1664_vm6, %v2027_v47, %v2028_v5  ;;  %v2043_v55 = vadd.f32 %v2017_v57, %v1967_v59  ;;  %v2044_v15 = vadd.f32 %v2020_v42, %v1968_v41  ;;  %v15149_v38 = vld [vmem:[#allocation86_spill] sm:$0xff] }
 0x23d   : >> { %v2045_v27 = vadd.f32 %v2023_v22, %v1969_v48  ;;  %v2032_v13 = vsel %vm1664_vm6, %v2030_v58, %v2031_v4  ;;  %v2046_v45 = vadd.f32 %v2026_v43, %v1970_v3  ;;  %v2047_v29 = vadd.f32 %v2029_v16, %v1971_v60  ;;  %v11143_v48 = vld [vmem:[%s10777_s15 + $0xa8] sm:$0x3] }
 0x23e   : >> { %v2053_v25 = vmul.f32 %v11107_v28, %v15149_v38  ;;  %v2048_v50 = vadd.f32 %v2032_v13, %v1972_v46  ;;  %v2054_v21 = vmul.f32 %v11110_v40, %v15149_v38  ;;  %v2055_v59 = vmul.f32 %v11114_v23, %v15149_v38 }
 0x23f   : >> { %v2056_v41 = vmul.f32 %v11117_v12, %v15149_v38  ;;  %v2057_v3 = vmul.f32 %v11120_v31, %v15149_v38  ;;  %v2058_v60 = vmul.f32 %v11124_v61, %v15149_v38  ;;  %v2059_v46 = vmul.f32 %v11127_v51, %v15149_v38 }
 0x240   : >> { %v2060_v33 = vmul.f32 %v11130_v35, %v15149_v38  ;;  %v2061_v37 = vadd.f32 %v2053_v25, %v2041_v10  ;;  %v2062_v19 = vadd.f32 %v2054_v21, %v2042_v20  ;;  %v2063_v36 = vadd.f32 %v2055_v59, %v2043_v55 }
 0x241   : >> { %v2064_v53 = vadd.f32 %v2056_v41, %v2044_v15  ;;  %v2065_v8 = vadd.f32 %v2057_v3, %v2045_v27  ;;  %v2066_v32 = vadd.f32 %v2058_v60, %v2046_v45  ;;  %v2067_v56 = vadd.f32 %v2059_v46, %v2047_v29 }
 0x242   : >> { %v2068_v44 = vadd.f32 %v2060_v33, %v2048_v50  ;;  %v2073_v63 = vmul.f32 %v11107_v28, %v15150_v52  ;;  %v2074_v9 = vmul.f32 %v11143_v48, %v15150_v52  ;;  %v2075_v24 = vmul.f32 %v11110_v40, %v15150_v52 }
 0x243   : >> { %v2076_v34 = vmul.f32 %v11146_v39, %v15150_v52  ;;  %v2077_v18 = vmul.f32 %v11114_v23, %v15150_v52  ;;  %v2078_v54 = vmul.f32 %v11157_v26, %v15150_v52  ;;  %v2079_v11 = vmul.f32 %v11117_v12, %v15150_v52 }
 0x244   : >> { %v2080_v30 = vmul.f32 %v11160_v14, %v15150_v52  ;;  %v2081_v7 = vmul.f32 %v11120_v31, %v15150_v52  ;;  %v2082_v17 = vmul.f32 %v11163_v2, %v15150_v52  ;;  %v2083_v57 = vmul.f32 %v11124_v61, %v15150_v52 }
 0x245   : >> { %v2084_v42 = vmul.f32 %v11166_v0, %v15150_v52  ;;  %v2085_v6 = vmul.f32 %v11127_v51, %v15150_v52  ;;  %v2086_v49 = vmul.f32 %v11169_v62, %v15150_v52  ;;  %v2087_v22 = vmul.f32 %v11130_v35, %v15150_v52 }
 0x246   : >> { %v2088_v47 = vmul.f32 %v11172_v1, %v15150_v52  ;;  %v2105_v5 = vrot.slane %v2073_v63, 1  ;;  %v2106_v58 = vrot.slane %v2074_v9, 1  ;;  %v2108_v43 = vrot.slane %v2075_v24, 1 }
 0x247   : >> { %v2109_v4 = vrot.slane %v2076_v34, 1  ;;  %v2111_v10 = vrot.slane %v2077_v18, 1  ;;  %v2112_v20 = vrot.slane %v2078_v54, 1  ;;  %v2114_v16 = vrot.slane %v2079_v11, 1 }
 0x248   : >> { %v2115_v55 = vrot.slane %v2080_v30, 1  ;;  %v2107_v15 = vsel %vm1587_vm5, %v2105_v5, %v2106_v58  ;;  %v2117_v13 = vrot.slane %v2081_v7, 1  ;;  %v2118_v45 = vrot.slane %v2082_v17, 1  ;;  %v15151_v30 = vld [vmem:[#allocation88_spill] sm:$0xff] }
 0x249   : >> { %v2110_v27 = vsel %vm1587_vm5, %v2108_v43, %v2109_v4  ;;  %v2113_v29 = vsel %vm1587_vm5, %v2111_v10, %v2112_v20  ;;  %v2120_v25 = vrot.slane %v2083_v57, 1  ;;  %v2121_v50 = vrot.slane %v2084_v42, 1 }
 0x24a   : >> { %v2116_v38 = vsel %vm1587_vm5, %v2114_v16, %v2115_v55  ;;  %v2119_v21 = vsel %vm1587_vm5, %v2117_v13, %v2118_v45  ;;  %v2123_v59 = vrot.slane %v2085_v6, 1  ;;  %v2124_v41 = vrot.slane %v2086_v49, 1 }
 0x24b   : >> { %v2126_v3 = vrot.slane %v2087_v22, 1  ;;  %v2122_v60 = vsel %vm1587_vm5, %v2120_v25, %v2121_v50  ;;  %v2127_v46 = vrot.slane %v2088_v47, 1  ;;  %v2137_v33 = vadd.f32 %v2107_v15, %v2061_v37 }
 0x24c   : >> { %v2138_v52 = vadd.f32 %v2110_v27, %v2062_v19  ;;  %v2125_v63 = vsel %vm1587_vm5, %v2123_v59, %v2124_v41  ;;  %v2139_v9 = vadd.f32 %v2113_v29, %v2063_v36  ;;  %v2140_v24 = vadd.f32 %v2116_v38, %v2064_v53 }
 0x24d   : >> { %v2141_v34 = vadd.f32 %v2119_v21, %v2065_v8  ;;  %v2128_v18 = vsel %vm1587_vm5, %v2126_v3, %v2127_v46  ;;  %v2142_v54 = vadd.f32 %v2122_v60, %v2066_v32  ;;  %v2143_v11 = vadd.f32 %v2125_v63, %v2067_v56 }
 0x24e   : >> { %v2149_v7 = vmul.f32 %v11107_v28, %v15151_v30  ;;  %v2144_v17 = vadd.f32 %v2128_v18, %v2068_v44  ;;  %v2150_v57 = vmul.f32 %v11143_v48, %v15151_v30  ;;  %v2151_v37 = vmul.f32 %v11110_v40, %v15151_v30  ;;  %v11253_v18 = vld [vmem:[%s10777_s15 + $0x120] sm:$0xff] }
 0x24f   : >> { %v2152_v19 = vmul.f32 %v11146_v39, %v15151_v30  ;;  %v2153_v36 = vmul.f32 %v11114_v23, %v15151_v30  ;;  %v2154_v53 = vmul.f32 %v11157_v26, %v15151_v30  ;;  %v2155_v8 = vmul.f32 %v11117_v12, %v15151_v30 }
 0x250   : >> { %v2156_v28 = vmul.f32 %v11160_v14, %v15151_v30  ;;  %v2157_v48 = vmul.f32 %v11120_v31, %v15151_v30  ;;  %v2158_v32 = vmul.f32 %v11163_v2, %v15151_v30  ;;  %v2159_v56 = vmul.f32 %v11124_v61, %v15151_v30 }
 0x251   : >> { %v2160_v44 = vmul.f32 %v11166_v0, %v15151_v30  ;;  %v2161_v42 = vmul.f32 %v11127_v51, %v15151_v30  ;;  %v2162_v6 = vmul.f32 %v11169_v62, %v15151_v30  ;;  %v2163_v49 = vmul.f32 %v11130_v35, %v15151_v30 }
 0x252   : >> { %v2164_v22 = vmul.f32 %v11172_v1, %v15151_v30  ;;  %v2181_v47 = vrot.slane %v2149_v7, 2  ;;  %v2182_v5 = vrot.slane %v2150_v57, 2  ;;  %v2184_v58 = vrot.slane %v2151_v37, 2 }
 0x253   : >> { %v2185_v43 = vrot.slane %v2152_v19, 2  ;;  %v2187_v4 = vrot.slane %v2153_v36, 2  ;;  %v2188_v10 = vrot.slane %v2154_v53, 2  ;;  %v2190_v20 = vrot.slane %v2155_v8, 2  ;;  %v15152_v8 = vld [vmem:[#allocation89_spill] sm:$0xff] }
 0x254   : >> { %v2191_v16 = vrot.slane %v2156_v28, 2  ;;  %v2183_v55 = vsel %vm1664_vm6, %v2181_v47, %v2182_v5  ;;  %v2193_v27 = vrot.slane %v2157_v48, 2  ;;  %v2194_v13 = vrot.slane %v2158_v32, 2  ;;  %v11274_v47 = vld [vmem:[%s10777_s15 + $0x128] sm:$0x3]  ;;  %v15153_v5 = vld [vmem:[#allocation90_spill] sm:$0xff] }
 0x255   : >> { %v2186_v15 = vsel %vm1664_vm6, %v2184_v58, %v2185_v43  ;;  %v2189_v45 = vsel %vm1664_vm6, %v2187_v4, %v2188_v10  ;;  %v2196_v38 = vrot.slane %v2159_v56, 2  ;;  %v2197_v25 = vrot.slane %v2160_v44, 2 }
 0x256   : >> { %v2192_v29 = vsel %vm1664_vm6, %v2190_v20, %v2191_v16  ;;  %v2195_v50 = vsel %vm1664_vm6, %v2193_v27, %v2194_v13  ;;  %v2199_v21 = vrot.slane %v2161_v42, 2  ;;  %v2200_v59 = vrot.slane %v2162_v6, 2 }
 0x257   : >> { %v2202_v41 = vrot.slane %v2163_v49, 2  ;;  %v2198_v3 = vsel %vm1664_vm6, %v2196_v38, %v2197_v25  ;;  %v2203_v60 = vrot.slane %v2164_v22, 2  ;;  %v2213_v46 = vadd.f32 %v2183_v55, %v2137_v33 }
 0x258   : >> { %v2214_v63 = vadd.f32 %v2186_v15, %v2138_v52  ;;  %v2201_v30 = vsel %vm1664_vm6, %v2199_v21, %v2200_v59  ;;  %v2215_v7 = vadd.f32 %v2189_v45, %v2139_v9  ;;  %v2216_v57 = vadd.f32 %v2192_v29, %v2140_v24 }
 0x259   : >> { %v2217_v37 = vadd.f32 %v2195_v50, %v2141_v34  ;;  %v2204_v19 = vsel %vm1664_vm6, %v2202_v41, %v2203_v60  ;;  %v2218_v36 = vadd.f32 %v2198_v3, %v2142_v54  ;;  %v2219_v53 = vadd.f32 %v2201_v30, %v2143_v11 }
 0x25a   : >> { %v2225_v28 = vmul.f32 %v11110_v40, %v15152_v8  ;;  %v2220_v48 = vadd.f32 %v2204_v19, %v2144_v17  ;;  %v2226_v33 = vmul.f32 %v11114_v23, %v15152_v8  ;;  %v2227_v52 = vmul.f32 %v11117_v12, %v15152_v8 }
 0x25b   : >> { %v2228_v9 = vmul.f32 %v11120_v31, %v15152_v8  ;;  %v2229_v24 = vmul.f32 %v11124_v61, %v15152_v8  ;;  %v2230_v34 = vmul.f32 %v11127_v51, %v15152_v8  ;;  %v2231_v54 = vmul.f32 %v11130_v35, %v15152_v8 }
 0x25c   : >> { %v2232_v11 = vmul.f32 %v11253_v18, %v15152_v8  ;;  %v2233_v17 = vadd.f32 %v2225_v28, %v2213_v46  ;;  %v2234_v32 = vadd.f32 %v2226_v33, %v2214_v63  ;;  %v2235_v56 = vadd.f32 %v2227_v52, %v2215_v7 }
 0x25d   : >> { %v2236_v44 = vadd.f32 %v2228_v9, %v2216_v57  ;;  %v2237_v42 = vadd.f32 %v2229_v24, %v2217_v37  ;;  %v2238_v6 = vadd.f32 %v2230_v34, %v2218_v36  ;;  %v2239_v49 = vadd.f32 %v2231_v54, %v2219_v53 }
 0x25e   : >> { %v2240_v22 = vadd.f32 %v2232_v11, %v2220_v48  ;;  %v2245_v58 = vmul.f32 %v11110_v40, %v15153_v5  ;;  %v2246_v43 = vmul.f32 %v11146_v39, %v15153_v5  ;;  %v2247_v4 = vmul.f32 %v11114_v23, %v15153_v5 }
 0x25f   : >> { %v2248_v10 = vmul.f32 %v11157_v26, %v15153_v5  ;;  %v2249_v20 = vmul.f32 %v11117_v12, %v15153_v5  ;;  %v2250_v16 = vmul.f32 %v11160_v14, %v15153_v5  ;;  %v2251_v55 = vmul.f32 %v11120_v31, %v15153_v5 }
 0x260   : >> { %v2252_v15 = vmul.f32 %v11163_v2, %v15153_v5  ;;  %v2253_v27 = vmul.f32 %v11124_v61, %v15153_v5  ;;  %v2254_v13 = vmul.f32 %v11166_v0, %v15153_v5  ;;  %v2255_v45 = vmul.f32 %v11127_v51, %v15153_v5 }
 0x261   : >> { %v2256_v29 = vmul.f32 %v11169_v62, %v15153_v5  ;;  %v2257_v38 = vmul.f32 %v11130_v35, %v15153_v5  ;;  %v2258_v25 = vmul.f32 %v11172_v1, %v15153_v5  ;;  %v2259_v50 = vmul.f32 %v11253_v18, %v15153_v5 }
 0x262   : >> { %v2260_v21 = vmul.f32 %v11274_v47, %v15153_v5  ;;  %v2277_v59 = vrot.slane %v2245_v58, 1  ;;  %v2278_v41 = vrot.slane %v2246_v43, 1  ;;  %v2280_v3 = vrot.slane %v2247_v4, 1 }
 0x263   : >> { %v2281_v60 = vrot.slane %v2248_v10, 1  ;;  %v2283_v46 = vrot.slane %v2249_v20, 1  ;;  %v2284_v63 = vrot.slane %v2250_v16, 1  ;;  %v2286_v30 = vrot.slane %v2251_v55, 1 }
 0x264   : >> { %v2287_v7 = vrot.slane %v2252_v15, 1  ;;  %v2279_v57 = vsel %vm1587_vm5, %v2277_v59, %v2278_v41  ;;  %v2289_v19 = vrot.slane %v2253_v27, 1  ;;  %v2290_v36 = vrot.slane %v2254_v13, 1  ;;  %v15154_v15 = vld [vmem:[#allocation91_spill] sm:$0xff] }
 0x265   : >> { %v2282_v37 = vsel %vm1587_vm5, %v2280_v3, %v2281_v60  ;;  %v2285_v53 = vsel %vm1587_vm5, %v2283_v46, %v2284_v63  ;;  %v2292_v28 = vrot.slane %v2255_v45, 1  ;;  %v2293_v48 = vrot.slane %v2256_v29, 1 }
 0x266   : >> { %v2288_v8 = vsel %vm1587_vm5, %v2286_v30, %v2287_v7  ;;  %v2291_v33 = vsel %vm1587_vm5, %v2289_v19, %v2290_v36  ;;  %v2295_v52 = vrot.slane %v2257_v38, 1  ;;  %v2296_v9 = vrot.slane %v2258_v25, 1 }
 0x267   : >> { %v2298_v24 = vrot.slane %v2259_v50, 1  ;;  %v2294_v34 = vsel %vm1587_vm5, %v2292_v28, %v2293_v48  ;;  %v2299_v54 = vrot.slane %v2260_v21, 1  ;;  %v2309_v11 = vadd.f32 %v2279_v57, %v2233_v17 }
 0x268   : >> { %v2310_v5 = vadd.f32 %v2282_v37, %v2234_v32  ;;  %v2297_v58 = vsel %vm1587_vm5, %v2295_v52, %v2296_v9  ;;  %v2311_v43 = vadd.f32 %v2285_v53, %v2235_v56  ;;  %v2312_v4 = vadd.f32 %v2288_v8, %v2236_v44 }
 0x269   : >> { %v2313_v10 = vadd.f32 %v2291_v33, %v2237_v42  ;;  %v2300_v20 = vsel %vm1587_vm5, %v2298_v24, %v2299_v54  ;;  %v2314_v16 = vadd.f32 %v2294_v34, %v2238_v6  ;;  %v2315_v55 = vadd.f32 %v2297_v58, %v2239_v49 }
 0x26a   : >> { %v2321_v27 = vmul.f32 %v11110_v40, %v15154_v15  ;;  %v2316_v13 = vadd.f32 %v2300_v20, %v2240_v22  ;;  %v2322_v45 = vmul.f32 %v11146_v39, %v15154_v15  ;;  %v2323_v17 = vmul.f32 %v11114_v23, %v15154_v15 }
 0x26b   : >> { %v2324_v32 = vmul.f32 %v11157_v26, %v15154_v15  ;;  %v2325_v56 = vmul.f32 %v11117_v12, %v15154_v15  ;;  %v2326_v44 = vmul.f32 %v11160_v14, %v15154_v15  ;;  %v2327_v42 = vmul.f32 %v11120_v31, %v15154_v15 }
 0x26c   : >> { %v2328_v40 = vmul.f32 %v11163_v2, %v15154_v15  ;;  %v2329_v39 = vmul.f32 %v11124_v61, %v15154_v15  ;;  %v2330_v6 = vmul.f32 %v11166_v0, %v15154_v15  ;;  %v2331_v49 = vmul.f32 %v11127_v51, %v15154_v15 }
 0x26d   : >> { %v2332_v22 = vmul.f32 %v11169_v62, %v15154_v15  ;;  %v2333_v29 = vmul.f32 %v11130_v35, %v15154_v15  ;;  %v2334_v38 = vmul.f32 %v11172_v1, %v15154_v15  ;;  %v2335_v25 = vmul.f32 %v11253_v18, %v15154_v15 }
 0x26e   : >> { %v2336_v50 = vmul.f32 %v11274_v47, %v15154_v15  ;;  %v2353_v21 = vrot.slane %v2321_v27, 2  ;;  %v2354_v59 = vrot.slane %v2322_v45, 2  ;;  %v2356_v41 = vrot.slane %v2323_v17, 2  ;;  %v11356_v17 = vld [vmem:[%s10777_s15 + $0x130] sm:$0xff] }
 0x26f   : >> { %v2357_v3 = vrot.slane %v2324_v32, 2  ;;  %v2359_v60 = vrot.slane %v2325_v56, 2  ;;  %v2360_v46 = vrot.slane %v2326_v44, 2  ;;  %v2362_v63 = vrot.slane %v2327_v42, 2  ;;  %v15155_v42 = vld [vmem:[#allocation82_spill] sm:$0xff] }
 0x270   : >> { %v2363_v30 = vrot.slane %v2328_v40, 2  ;;  %v2355_v7 = vsel %vm1664_vm6, %v2353_v21, %v2354_v59  ;;  %v2365_v37 = vrot.slane %v2329_v39, 2  ;;  %v2366_v19 = vrot.slane %v2330_v6, 2  ;;  %v15156_v40 = vld [vmem:[#allocation72_spill] sm:$0xff] }
 0x271   : >> { %v2358_v57 = vsel %vm1664_vm6, %v2356_v41, %v2357_v3  ;;  %v2361_v36 = vsel %vm1664_vm6, %v2359_v60, %v2360_v46  ;;  %v2368_v8 = vrot.slane %v2331_v49, 2  ;;  %v2369_v28 = vrot.slane %v2332_v22, 2  ;;  %v15157_v49 = vld [vmem:[#allocation5_spill] sm:$0xff] }
 0x272   : >> { %v2364_v53 = vsel %vm1664_vm6, %v2362_v63, %v2363_v30  ;;  %v2367_v48 = vsel %vm1664_vm6, %v2365_v37, %v2366_v19  ;;  %v2371_v33 = vrot.slane %v2333_v29, 2  ;;  %v2372_v52 = vrot.slane %v2334_v38, 2  ;;  %v15158_v22 = vld [vmem:[#allocation73_spill] sm:$0xff] }
 0x273   : >> { %v2374_v9 = vrot.slane %v2335_v25, 2  ;;  %v2370_v24 = vsel %vm1664_vm6, %v2368_v8, %v2369_v28  ;;  %v2375_v34 = vrot.slane %v2336_v50, 2  ;;  %v2385_v54 = vadd.f32 %v2355_v7, %v2309_v11  ;;  %v15159_v11 = vld [vmem:[#allocation38_spill] sm:$0xff] }
 0x274   : >> { %v2386_v58 = vadd.f32 %v2358_v57, %v2310_v5  ;;  %v2373_v20 = vsel %vm1664_vm6, %v2371_v33, %v2372_v52  ;;  %v2387_v15 = vadd.f32 %v2361_v36, %v2311_v43  ;;  %v2388_v27 = vadd.f32 %v2364_v53, %v2312_v4  ;;  %v15160_v43 = vld [vmem:[#allocation77_spill] sm:$0xff]  ;;  %v11380_v57 = vld [vmem:[%s10777_s15 + $0x138] sm:$0x3] }
 0x275   : >> { %v2389_v45 = vadd.f32 %v2367_v48, %v2313_v10  ;;  %v2376_v32 = vsel %vm1664_vm6, %v2374_v9, %v2375_v34  ;;  %v2390_v56 = vadd.f32 %v2370_v24, %v2314_v16  ;;  %v2391_v44 = vadd.f32 %v2373_v20, %v2315_v55 }
 0x276   : >> { %v2396_v39 = vrot.slane %v15156_v40, %v15155_v42  ;;  %v2392_v6 = vadd.f32 %v2376_v32, %v2316_v13  ;;  %v2416_v29 = vrot.slane %v15158_v22, %v15157_v49  ;;  %v11365_v5 = vrot.slane %v15158_v22, %v15159_v11 }
 0x277   : >> { %v11369_v4 = vrot.slane %v15158_v22, %v15160_v43 }
 0x278   : >> { %v2397_v10 = vmul.f32 %v11114_v23, %v2396_v39  ;;  %v2398_v16 = vmul.f32 %v11117_v12, %v2396_v39  ;;  %v2399_v55 = vmul.f32 %v11120_v31, %v2396_v39  ;;  %v2400_v13 = vmul.f32 %v11124_v61, %v2396_v39 }
 0x279   : >> { %v2401_v38 = vmul.f32 %v11127_v51, %v2396_v39  ;;  %v2402_v25 = vmul.f32 %v11130_v35, %v2396_v39  ;;  %v2403_v50 = vmul.f32 %v11253_v18, %v2396_v39  ;;  %v2404_v21 = vmul.f32 %v11356_v17, %v2396_v39 }
 0x27a   : >> { %v2405_v59 = vadd.f32 %v2397_v10, %v2385_v54  ;;  %v2406_v41 = vadd.f32 %v2398_v16, %v2386_v58  ;;  %v2407_v3 = vadd.f32 %v2399_v55, %v2387_v15  ;;  %v2408_v60 = vadd.f32 %v2400_v13, %v2388_v27 }
 0x27b   : >> { %v2409_v46 = vadd.f32 %v2401_v38, %v2389_v45  ;;  %v2410_v63 = vadd.f32 %v2402_v25, %v2390_v56  ;;  %v2411_v30 = vadd.f32 %v2403_v50, %v2391_v44  ;;  %v2412_v7 = vadd.f32 %v2404_v21, %v2392_v6 }
 0x27c   : >> { %v2417_v37 = vmul.f32 %v11114_v23, %v2416_v29  ;;  %v2418_v19 = vmul.f32 %v11157_v26, %v2416_v29  ;;  %v2419_v36 = vmul.f32 %v11117_v12, %v2416_v29  ;;  %v2420_v53 = vmul.f32 %v11160_v14, %v2416_v29 }
 0x27d   : >> { %v2421_v8 = vmul.f32 %v11120_v31, %v2416_v29  ;;  %v2422_v28 = vmul.f32 %v11163_v2, %v2416_v29  ;;  %v2423_v48 = vmul.f32 %v11124_v61, %v2416_v29  ;;  %v2424_v33 = vmul.f32 %v11166_v0, %v2416_v29 }
 0x27e   : >> { %v2425_v52 = vmul.f32 %v11127_v51, %v2416_v29  ;;  %v2426_v9 = vmul.f32 %v11169_v62, %v2416_v29  ;;  %v2427_v24 = vmul.f32 %v11130_v35, %v2416_v29  ;;  %v2428_v34 = vmul.f32 %v11172_v1, %v2416_v29 }
 0x27f   : >> { %v2429_v54 = vmul.f32 %v11253_v18, %v2416_v29  ;;  %v2430_v58 = vmul.f32 %v11274_v47, %v2416_v29  ;;  %v2431_v20 = vmul.f32 %v11356_v17, %v2416_v29  ;;  %v2432_v15 = vmul.f32 %v11380_v57, %v2416_v29 }
 0x280   : >> { %v2449_v27 = vrot.slane %v2417_v37, 1  ;;  %v2450_v45 = vrot.slane %v2418_v19, 1  ;;  %v2452_v32 = vrot.slane %v2419_v36, 1  ;;  %v2453_v56 = vrot.slane %v2420_v53, 1 }
 0x281   : >> { %v2455_v44 = vrot.slane %v2421_v8, 1  ;;  %v2456_v40 = vrot.slane %v2422_v28, 1  ;;  %v2458_v39 = vrot.slane %v2423_v48, 1  ;;  %v2459_v6 = vrot.slane %v2424_v33, 1 }
 0x282   : >> { %v2451_v10 = vsel %vm1587_vm5, %v2449_v27, %v2450_v45  ;;  %v2454_v16 = vsel %vm1587_vm5, %v2452_v32, %v2453_v56  ;;  %v2461_v55 = vrot.slane %v2425_v52, 1  ;;  %v2462_v13 = vrot.slane %v2426_v9, 1 }
 0x283   : >> { %v2457_v38 = vsel %vm1587_vm5, %v2455_v44, %v2456_v40  ;;  %v2460_v25 = vsel %vm1587_vm5, %v2458_v39, %v2459_v6  ;;  %v2464_v50 = vrot.slane %v2427_v24, 1  ;;  %v2465_v29 = vrot.slane %v2428_v34, 1  ;;  %v11443_v39 = vld [vmem:[%s10777_s15 + $0x140] sm:$0xff]  ;;  %v11446_v6 = vld [vmem:[%s10777_s15 + $0x150] sm:$0xff] }
 0x284   : >> { %v2463_v21 = vsel %vm1587_vm5, %v2461_v55, %v2462_v13  ;;  %v2467_v37 = vrot.slane %v2429_v54, 1  ;;  %v2468_v19 = vrot.slane %v2430_v58, 1  ;;  %v2470_v36 = vrot.slane %v2431_v20, 1 }
 0x285   : >> { %v2466_v53 = vsel %vm1587_vm5, %v2464_v50, %v2465_v29  ;;  %v2471_v8 = vrot.slane %v2432_v15, 1  ;;  %v2481_v28 = vadd.f32 %v2451_v10, %v2405_v59  ;;  %v2482_v48 = vadd.f32 %v2454_v16, %v2406_v41  ;;  %v11456_v50 = vld [vmem:[%s10777_s15 + $0x180] sm:$0xff] }
 0x286   : >> { %v2469_v33 = vsel %vm1587_vm5, %v2467_v37, %v2468_v19  ;;  %v2483_v52 = vadd.f32 %v2457_v38, %v2407_v3  ;;  %v2484_v9 = vadd.f32 %v2460_v25, %v2408_v60  ;;  %v2485_v27 = vadd.f32 %v2463_v21, %v2409_v46  ;;  %v11450_v38 = vld [vmem:[%s10777_s15 + $0x160] sm:$0xff]  ;;  %v11453_v25 = vld [vmem:[%s10777_s15 + $0x170] sm:$0xff] }
 0x287   : >> { %v2472_v45 = vsel %vm1587_vm5, %v2470_v36, %v2471_v8  ;;  %v2486_v32 = vadd.f32 %v2466_v53, %v2410_v63  ;;  %v2487_v24 = vadd.f32 %v2469_v33, %v2411_v30  ;;  %v2493_v34 = vmul.f32 %v11114_v23, %v11365_v5  ;;  %v11460_v36 = vld [vmem:[%s10777_s15 + $0x190] sm:$0xff]  ;;  %v11463_v53 = vld [vmem:[%s10777_s15 + $0x1a0] sm:$0xff] }
 0x288   : >> { %v2488_v54 = vadd.f32 %v2472_v45, %v2412_v7  ;;  %v2494_v58 = vmul.f32 %v11157_v26, %v11365_v5  ;;  %v2495_v59 = vmul.f32 %v11117_v12, %v11365_v5  ;;  %v2496_v41 = vmul.f32 %v11160_v14, %v11365_v5  ;;  %v11466_v8 = vld [vmem:[%s10777_s15 + $0x1b0] sm:$0xff] }
 0x289   : >> { %v2497_v3 = vmul.f32 %v11120_v31, %v11365_v5  ;;  %v2498_v60 = vmul.f32 %v11163_v2, %v11365_v5  ;;  %v2499_v46 = vmul.f32 %v11124_v61, %v11365_v5  ;;  %v2500_v23 = vmul.f32 %v11166_v0, %v11365_v5 }
 0x28a   : >> { %v2501_v26 = vmul.f32 %v11127_v51, %v11365_v5  ;;  %v2502_v12 = vmul.f32 %v11169_v62, %v11365_v5  ;;  %v2503_v14 = vmul.f32 %v11130_v35, %v11365_v5  ;;  %v2504_v31 = vmul.f32 %v11172_v1, %v11365_v5 }
 0x28b   : >> { %v2505_v2 = vmul.f32 %v11253_v18, %v11365_v5  ;;  %v2506_v61 = vmul.f32 %v11274_v47, %v11365_v5  ;;  %v2507_v0 = vmul.f32 %v11356_v17, %v11365_v5  ;;  %v2508_v51 = vmul.f32 %v11380_v57, %v11365_v5 }
 0x28c   : >> { %v2525_v63 = vrot.slane %v2493_v34, 2  ;;  %v2526_v62 = vrot.slane %v2494_v58, 2  ;;  %v2528_v35 = vrot.slane %v2495_v59, 2  ;;  %v2529_v30 = vrot.slane %v2496_v41, 2 }
 0x28d   : >> { %v2531_v7 = vrot.slane %v2497_v3, 2  ;;  %v2532_v1 = vrot.slane %v2498_v60, 2  ;;  %v2534_v20 = vrot.slane %v2499_v46, 2  ;;  %v2535_v18 = vrot.slane %v2500_v23, 2 }
 0x28e   : >> { %v2527_v47 = vsel %vm1664_vm6, %v2525_v63, %v2526_v62  ;;  %v2530_v17 = vsel %vm1664_vm6, %v2528_v35, %v2529_v30  ;;  %v2537_v15 = vrot.slane %v2501_v26, 2  ;;  %v2538_v56 = vrot.slane %v2502_v12, 2  ;;  %v11504_v63 = vld [vmem:[%s10777_s15 + $0x178] sm:$0x3]  ;;  %v15161_v62 = vld [vmem:[#allocation78_spill] sm:$0xff] }
 0x28f   : >> { %v2533_v5 = vsel %vm1664_vm6, %v2531_v7, %v2532_v1  ;;  %v2536_v57 = vsel %vm1664_vm6, %v2534_v20, %v2535_v18  ;;  %v2540_v44 = vrot.slane %v2503_v14, 2  ;;  %v2541_v40 = vrot.slane %v2504_v31, 2  ;;  %v11491_v14 = vld [vmem:[%s10777_s15 + $0x148] sm:$0x3]  ;;  %v11494_v31 = vld [vmem:[%s10777_s15 + $0x158] sm:$0x3] }
 0x290   : >> { %v2539_v10 = vsel %vm1664_vm6, %v2537_v15, %v2538_v56  ;;  %v2543_v16 = vrot.slane %v2505_v2, 2  ;;  %v2544_v55 = vrot.slane %v2506_v61, 2  ;;  %v2546_v13 = vrot.slane %v2507_v0, 2  ;;  %v15162_v30 = vld [vmem:[#allocation79_spill] sm:$0xff]  ;;  %v15163_v1 = vld [vmem:[#allocation80_spill] sm:$0xff]  ;;  %v15164_v18 = vld [vmem:[#allocation81_spill] sm:$0xff] }
 0x291   : >> { %v2542_v29 = vsel %vm1664_vm6, %v2540_v44, %v2541_v40  ;;  %v2547_v21 = vrot.slane %v2508_v51, 2  ;;  %v2557_v37 = vadd.f32 %v2527_v47, %v2481_v28  ;;  %v2558_v19 = vadd.f32 %v2530_v17, %v2482_v48  ;;  %v11521_v17 = vld [vmem:[%s10777_s15 + $0x188] sm:$0x3]  ;;  %v11524_v15 = vld [vmem:[%s10777_s15 + $0x198] sm:$0x3] }
 0x292   : >> { %v2545_v33 = vsel %vm1664_vm6, %v2543_v16, %v2544_v55  ;;  %v2559_v45 = vadd.f32 %v2533_v5, %v2483_v52  ;;  %v2560_v34 = vadd.f32 %v2536_v57, %v2484_v9  ;;  %v2561_v58 = vadd.f32 %v2539_v10, %v2485_v27  ;;  %v15165_v5 = vld [vmem:[#allocation74_spill] sm:$0xff]  ;;  %v11543_v10 = vld [vmem:[%s10777_s15 + $0x1a8] sm:$0x3]  ;;  %v11546_v16 = vld [vmem:[%s10777_s15 + $0x1b8] sm:$0x3] }
 0x293   : >> { %v2548_v59 = vsel %vm1664_vm6, %v2546_v13, %v2547_v21  ;;  %v2562_v41 = vadd.f32 %v2542_v29, %v2486_v32  ;;  %v2563_v3 = vadd.f32 %v2545_v33, %v2487_v24  ;;  %v2569_v28 = vmul.f32 %v11443_v39, %v11369_v4 }
 0x294   : >> { %v2564_v48 = vadd.f32 %v2548_v59, %v2488_v54  ;;  %v2570_v60 = vmul.f32 %v11446_v6, %v11369_v4  ;;  %v2571_v46 = vmul.f32 %v11450_v38, %v11369_v4  ;;  %v2572_v52 = vmul.f32 %v11453_v25, %v11369_v4 }
 0x295   : >> { %v2573_v9 = vmul.f32 %v11456_v50, %v11369_v4  ;;  %v2574_v27 = vmul.f32 %v11460_v36, %v11369_v4  ;;  %v2575_v32 = vmul.f32 %v11463_v53, %v11369_v4  ;;  %v2576_v24 = vmul.f32 %v11466_v8, %v11369_v4  ;;  %v11501_v4 = vld [vmem:[%s10777_s15 + $0x168] sm:$0x3] }
 0x296   : >> { %v2577_v54 = vadd.f32 %v2569_v28, %v2557_v37  ;;  %v2578_v23 = vadd.f32 %v2570_v60, %v2558_v19  ;;  %v11486_v26 = vadd.f32 %v2571_v46, %v2559_v45  ;;  %v11488_v12 = vadd.f32 %v2572_v52, %v2560_v34 }
 0x297   : >> { %v2581_v2 = vadd.f32 %v2573_v9, %v2561_v58  ;;  %v11496_v61 = vadd.f32 %v2574_v27, %v2562_v41  ;;  %v2583_v0 = vadd.f32 %v2575_v32, %v2563_v3  ;;  %v11498_v51 = vadd.f32 %v2576_v24, %v2564_v48 }
 0x298   : >> { %v2588_v35 = vrot.slane %v15158_v22, %v15161_v62  ;;  %v11510_v7 = vrot.slane %v15158_v22, %v15162_v30  ;;  %v11514_v20 = vrot.slane %v15158_v22, %v15163_v1  ;;  %v11518_v47 = vrot.slane %v15158_v22, %v15164_v18 }
 0x299   : >> { %v11528_v56 = vrot.slane %v15158_v22, %v15155_v42  ;;  %v11532_v57 = vrot.slane %v15165_v5, %v15157_v49  ;;  %v11536_v44 = vrot.slane %v15165_v5, %v15159_v11  ;;  %v11540_v40 = vrot.slane %v15165_v5, %v15160_v43 }
 0x29a   : >> { %v2589_v55 = vmul.f32 %v11443_v39, %v2588_v35  ;;  %v2590_v42 = vmul.f32 %v11491_v14, %v2588_v35  ;;  %v2591_v13 = vmul.f32 %v11446_v6, %v2588_v35  ;;  %v2592_v49 = vmul.f32 %v11494_v31, %v2588_v35 }
 0x29b   : >> { %v2593_v29 = vmul.f32 %v11450_v38, %v2588_v35  ;;  %v2594_v21 = vmul.f32 %v11501_v4, %v2588_v35  ;;  %v2595_v37 = vmul.f32 %v11453_v25, %v2588_v35  ;;  %v2596_v43 = vmul.f32 %v11504_v63, %v2588_v35 }
 0x29c   : >> { %v2597_v19 = vmul.f32 %v11456_v50, %v2588_v35  ;;  %v2598_v33 = vmul.f32 %v11521_v17, %v2588_v35  ;;  %v2599_v45 = vmul.f32 %v11460_v36, %v2588_v35  ;;  %v2600_v34 = vmul.f32 %v11524_v15, %v2588_v35 }
 0x29d   : >> { %v2601_v58 = vmul.f32 %v11463_v53, %v2588_v35  ;;  %v2602_v59 = vmul.f32 %v11543_v10, %v2588_v35  ;;  %v2603_v41 = vmul.f32 %v11466_v8, %v2588_v35  ;;  %v2604_v3 = vmul.f32 %v11546_v16, %v2588_v35 }
 0x29e   : >> { %v2621_v28 = vrot.slane %v2589_v55, 1  ;;  %v2622_v48 = vrot.slane %v2590_v42, 1  ;;  %v2624_v60 = vrot.slane %v2591_v13, 1  ;;  %v2625_v46 = vrot.slane %v2592_v49, 1 }
 0x29f   : >> { %v2627_v52 = vrot.slane %v2593_v29, 1  ;;  %v2628_v9 = vrot.slane %v2594_v21, 1  ;;  %v2630_v27 = vrot.slane %v2595_v37, 1  ;;  %v2631_v32 = vrot.slane %v2596_v43, 1 }
 0x2a0   : >> { %v2623_v24 = vsel %vm1587_vm5, %v2621_v28, %v2622_v48  ;;  %v2626_v62 = vsel %vm1587_vm5, %v2624_v60, %v2625_v46  ;;  %v2633_v30 = vrot.slane %v2597_v19, 1  ;;  %v2634_v1 = vrot.slane %v2598_v33, 1 }
 0x2a1   : >> { %v2629_v18 = vsel %vm1587_vm5, %v2627_v52, %v2628_v9  ;;  %v2632_v5 = vsel %vm1587_vm5, %v2630_v27, %v2631_v32  ;;  %v2636_v22 = vrot.slane %v2599_v45, 1  ;;  %v2637_v35 = vrot.slane %v2600_v34, 1 }
 0x2a2   : >> { %v2635_v55 = vsel %vm1587_vm5, %v2633_v30, %v2634_v1  ;;  %v2639_v42 = vrot.slane %v2601_v58, 1  ;;  %v2640_v13 = vrot.slane %v2602_v59, 1  ;;  %v2642_v49 = vrot.slane %v2603_v41, 1 }
 0x2a3   : >> { %v2638_v29 = vsel %vm1587_vm5, %v2636_v22, %v2637_v35  ;;  %v2643_v21 = vrot.slane %v2604_v3, 1  ;;  %v2653_v37 = vadd.f32 %v2623_v24, %v2577_v54  ;;  %v2654_v43 = vadd.f32 %v2626_v62, %v2578_v23 }
 0x2a4   : >> { %v2641_v28 = vsel %vm1587_vm5, %v2639_v42, %v2640_v13  ;;  %v2655_v19 = vadd.f32 %v2629_v18, %v11486_v26  ;;  %v2656_v33 = vadd.f32 %v2632_v5, %v11488_v12  ;;  %v2657_v48 = vadd.f32 %v2635_v55, %v2581_v2 }
 0x2a5   : >> { %v2644_v45 = vsel %vm1587_vm5, %v2642_v49, %v2643_v21  ;;  %v2658_v34 = vadd.f32 %v2638_v29, %v11496_v61  ;;  %v2659_v60 = vadd.f32 %v2641_v28, %v2583_v0  ;;  %v2665_v58 = vmul.f32 %v11443_v39, %v11510_v7 }
 0x2a6   : >> { %v2660_v22 = vadd.f32 %v2644_v45, %v11498_v51  ;;  %v2666_v54 = vmul.f32 %v11491_v14, %v11510_v7  ;;  %v2667_v23 = vmul.f32 %v11446_v6, %v11510_v7  ;;  %v2668_v26 = vmul.f32 %v11494_v31, %v11510_v7 }
 0x2a7   : >> { %v2669_v12 = vmul.f32 %v11450_v38, %v11510_v7  ;;  %v2670_v2 = vmul.f32 %v11501_v4, %v11510_v7  ;;  %v2671_v39 = vmul.f32 %v11453_v25, %v11510_v7  ;;  %v2672_v61 = vmul.f32 %v11504_v63, %v11510_v7 }
 0x2a8   : >> { %v2673_v14 = vmul.f32 %v11456_v50, %v11510_v7  ;;  %v2674_v0 = vmul.f32 %v11521_v17, %v11510_v7  ;;  %v2675_v51 = vmul.f32 %v11460_v36, %v11510_v7  ;;  %v2676_v5 = vmul.f32 %v11524_v15, %v11510_v7 }
 0x2a9   : >> { %v2677_v59 = vmul.f32 %v11463_v53, %v11510_v7  ;;  %v2678_v41 = vmul.f32 %v11543_v10, %v11510_v7  ;;  %v2679_v3 = vmul.f32 %v11466_v8, %v11510_v7  ;;  %v2680_v46 = vmul.f32 %v11546_v16, %v11510_v7 }
 0x2aa   : >> { %v2697_v52 = vrot.slane %v2665_v58, 2  ;;  %v2698_v9 = vrot.slane %v2666_v54, 2  ;;  %v2700_v27 = vrot.slane %v2667_v23, 2  ;;  %v2701_v32 = vrot.slane %v2668_v26, 2 }
 0x2ab   : >> { %v2703_v24 = vrot.slane %v2669_v12, 2  ;;  %v2704_v62 = vrot.slane %v2670_v2, 2  ;;  %v2706_v30 = vrot.slane %v2671_v39, 2  ;;  %v2707_v1 = vrot.slane %v2672_v61, 2  ;;  %v11615_v2 = vld [vmem:[%s10777_s15 + $0x1c0] sm:$0xff] }
 0x2ac   : >> { %v2699_v18 = vsel %vm1664_vm6, %v2697_v52, %v2698_v9  ;;  %v2702_v35 = vsel %vm1664_vm6, %v2700_v27, %v2701_v32  ;;  %v2709_v55 = vrot.slane %v2673_v14, 2  ;;  %v2710_v42 = vrot.slane %v2674_v0, 2 }
 0x2ad   : >> { %v2705_v13 = vsel %vm1664_vm6, %v2703_v24, %v2704_v62  ;;  %v2708_v49 = vsel %vm1664_vm6, %v2706_v30, %v2707_v1  ;;  %v2712_v7 = vrot.slane %v2675_v51, 2  ;;  %v2713_v29 = vrot.slane %v2676_v5, 2  ;;  %v11636_v30 = vld [vmem:[%s10777_s15 + $0x1c8] sm:$0x3] }
 0x2ae   : >> { %v2711_v21 = vsel %vm1664_vm6, %v2709_v55, %v2710_v42  ;;  %v2715_v28 = vrot.slane %v2677_v59, 2  ;;  %v2716_v45 = vrot.slane %v2678_v41, 2  ;;  %v2718_v58 = vrot.slane %v2679_v3, 2 }
 0x2af   : >> { %v2714_v54 = vsel %vm1664_vm6, %v2712_v7, %v2713_v29  ;;  %v2719_v23 = vrot.slane %v2680_v46, 2  ;;  %v2729_v26 = vadd.f32 %v2699_v18, %v2653_v37  ;;  %v2730_v12 = vadd.f32 %v2702_v35, %v2654_v43 }
 0x2b0   : >> { %v2717_v39 = vsel %vm1664_vm6, %v2715_v28, %v2716_v45  ;;  %v2731_v61 = vadd.f32 %v2705_v13, %v2655_v19  ;;  %v2732_v14 = vadd.f32 %v2708_v49, %v2656_v33  ;;  %v2733_v0 = vadd.f32 %v2711_v21, %v2657_v48 }
 0x2b1   : >> { %v2720_v51 = vsel %vm1664_vm6, %v2718_v58, %v2719_v23  ;;  %v2734_v5 = vadd.f32 %v2714_v54, %v2658_v34  ;;  %v2735_v52 = vadd.f32 %v2717_v39, %v2659_v60  ;;  %v2741_v59 = vmul.f32 %v11446_v6, %v11514_v20 }
 0x2b2   : >> { %v2736_v41 = vadd.f32 %v2720_v51, %v2660_v22  ;;  %v2742_v37 = vmul.f32 %v11450_v38, %v11514_v20  ;;  %v2743_v43 = vmul.f32 %v11453_v25, %v11514_v20  ;;  %v2744_v19 = vmul.f32 %v11456_v50, %v11514_v20 }
 0x2b3   : >> { %v2745_v33 = vmul.f32 %v11460_v36, %v11514_v20  ;;  %v2746_v48 = vmul.f32 %v11463_v53, %v11514_v20  ;;  %v2747_v34 = vmul.f32 %v11466_v8, %v11514_v20  ;;  %v2748_v60 = vmul.f32 %v11615_v2, %v11514_v20 }
 0x2b4   : >> { %v2749_v22 = vadd.f32 %v2741_v59, %v2729_v26  ;;  %v2750_v3 = vadd.f32 %v2742_v37, %v2730_v12  ;;  %v2751_v46 = vadd.f32 %v2743_v43, %v2731_v61  ;;  %v2752_v9 = vadd.f32 %v2744_v19, %v2732_v14 }
 0x2b5   : >> { %v2753_v27 = vadd.f32 %v2745_v33, %v2733_v0  ;;  %v2754_v32 = vadd.f32 %v2746_v48, %v2734_v5  ;;  %v2755_v24 = vadd.f32 %v2747_v34, %v2735_v52  ;;  %v2756_v62 = vadd.f32 %v2748_v60, %v2736_v41 }
 0x2b6   : >> { %v2761_v1 = vmul.f32 %v11446_v6, %v11518_v47  ;;  %v2762_v18 = vmul.f32 %v11494_v31, %v11518_v47  ;;  %v2763_v35 = vmul.f32 %v11450_v38, %v11518_v47  ;;  %v2764_v20 = vmul.f32 %v11501_v4, %v11518_v47 }
 0x2b7   : >> { %v2765_v55 = vmul.f32 %v11453_v25, %v11518_v47  ;;  %v2766_v42 = vmul.f32 %v11504_v63, %v11518_v47  ;;  %v2767_v13 = vmul.f32 %v11456_v50, %v11518_v47  ;;  %v2768_v49 = vmul.f32 %v11521_v17, %v11518_v47 }
 0x2b8   : >> { %v2769_v7 = vmul.f32 %v11460_v36, %v11518_v47  ;;  %v2770_v29 = vmul.f32 %v11524_v15, %v11518_v47  ;;  %v2771_v21 = vmul.f32 %v11463_v53, %v11518_v47  ;;  %v2772_v28 = vmul.f32 %v11543_v10, %v11518_v47 }
 0x2b9   : >> { %v2773_v45 = vmul.f32 %v11466_v8, %v11518_v47  ;;  %v2774_v58 = vmul.f32 %v11546_v16, %v11518_v47  ;;  %v2775_v54 = vmul.f32 %v11615_v2, %v11518_v47  ;;  %v2776_v23 = vmul.f32 %v11636_v30, %v11518_v47 }
 0x2ba   : >> { %v2793_v26 = vrot.slane %v2761_v1, 1  ;;  %v2794_v12 = vrot.slane %v2762_v18, 1  ;;  %v2796_v39 = vrot.slane %v2763_v35, 1  ;;  %v2797_v61 = vrot.slane %v2764_v20, 1 }
 0x2bb   : >> { %v2799_v14 = vrot.slane %v2765_v55, 1  ;;  %v2800_v0 = vrot.slane %v2766_v42, 1  ;;  %v2802_v51 = vrot.slane %v2767_v13, 1  ;;  %v2803_v5 = vrot.slane %v2768_v49, 1 }
 0x2bc   : >> { %v2795_v52 = vsel %vm1587_vm5, %v2793_v26, %v2794_v12  ;;  %v2798_v59 = vsel %vm1587_vm5, %v2796_v39, %v2797_v61  ;;  %v2805_v41 = vrot.slane %v2769_v7, 1  ;;  %v2806_v37 = vrot.slane %v2770_v29, 1 }
 0x2bd   : >> { %v2801_v43 = vsel %vm1587_vm5, %v2799_v14, %v2800_v0  ;;  %v2804_v19 = vsel %vm1587_vm5, %v2802_v51, %v2803_v5  ;;  %v2808_v33 = vrot.slane %v2771_v21, 1  ;;  %v2809_v47 = vrot.slane %v2772_v28, 1 }
 0x2be   : >> { %v2807_v48 = vsel %vm1587_vm5, %v2805_v41, %v2806_v37  ;;  %v2811_v34 = vrot.slane %v2773_v45, 1  ;;  %v2812_v60 = vrot.slane %v2774_v58, 1  ;;  %v2814_v1 = vrot.slane %v2775_v54, 1 }
 0x2bf   : >> { %v2810_v18 = vsel %vm1587_vm5, %v2808_v33, %v2809_v47  ;;  %v2815_v35 = vrot.slane %v2776_v23, 1  ;;  %v2825_v20 = vadd.f32 %v2795_v52, %v2749_v22  ;;  %v2826_v55 = vadd.f32 %v2798_v59, %v2750_v3 }
 0x2c0   : >> { %v2813_v42 = vsel %vm1587_vm5, %v2811_v34, %v2812_v60  ;;  %v2827_v13 = vadd.f32 %v2801_v43, %v2751_v46  ;;  %v2828_v49 = vadd.f32 %v2804_v19, %v2752_v9  ;;  %v2829_v7 = vadd.f32 %v2807_v48, %v2753_v27 }
 0x2c1   : >> { %v2816_v29 = vsel %vm1587_vm5, %v2814_v1, %v2815_v35  ;;  %v2830_v26 = vadd.f32 %v2810_v18, %v2754_v32  ;;  %v2831_v21 = vadd.f32 %v2813_v42, %v2755_v24  ;;  %v2837_v28 = vmul.f32 %v11446_v6, %v11528_v56 }
 0x2c2   : >> { %v2832_v45 = vadd.f32 %v2816_v29, %v2756_v62  ;;  %v2838_v58 = vmul.f32 %v11494_v31, %v11528_v56  ;;  %v2839_v22 = vmul.f32 %v11450_v38, %v11528_v56  ;;  %v2840_v3 = vmul.f32 %v11501_v4, %v11528_v56 }
 0x2c3   : >> { %v2841_v46 = vmul.f32 %v11453_v25, %v11528_v56  ;;  %v2842_v9 = vmul.f32 %v11504_v63, %v11528_v56  ;;  %v2843_v27 = vmul.f32 %v11456_v50, %v11528_v56  ;;  %v2844_v6 = vmul.f32 %v11521_v17, %v11528_v56 }
 0x2c4   : >> { %v2845_v31 = vmul.f32 %v11460_v36, %v11528_v56  ;;  %v2846_v32 = vmul.f32 %v11524_v15, %v11528_v56  ;;  %v2847_v24 = vmul.f32 %v11463_v53, %v11528_v56  ;;  %v2848_v62 = vmul.f32 %v11543_v10, %v11528_v56 }
 0x2c5   : >> { %v2849_v54 = vmul.f32 %v11466_v8, %v11528_v56  ;;  %v2850_v23 = vmul.f32 %v11546_v16, %v11528_v56  ;;  %v2851_v12 = vmul.f32 %v11615_v2, %v11528_v56  ;;  %v2852_v39 = vmul.f32 %v11636_v30, %v11528_v56 }
 0x2c6   : >> { %v2869_v61 = vrot.slane %v2837_v28, 2  ;;  %v2870_v14 = vrot.slane %v2838_v58, 2  ;;  %v2872_v0 = vrot.slane %v2839_v22, 2  ;;  %v2873_v51 = vrot.slane %v2840_v3, 2  ;;  %v11717_v22 = vld [vmem:[%s10777_s15 + $0x1d0] sm:$0xff] }
 0x2c7   : >> { %v2875_v5 = vrot.slane %v2841_v46, 2  ;;  %v2876_v52 = vrot.slane %v2842_v9, 2  ;;  %v2878_v59 = vrot.slane %v2843_v27, 2  ;;  %v2879_v41 = vrot.slane %v2844_v6, 2 }
 0x2c8   : >> { %v2871_v37 = vsel %vm1664_vm6, %v2869_v61, %v2870_v14  ;;  %v2874_v43 = vsel %vm1664_vm6, %v2872_v0, %v2873_v51  ;;  %v2881_v19 = vrot.slane %v2845_v31, 2  ;;  %v2882_v33 = vrot.slane %v2846_v32, 2  ;;  %v11738_v51 = vld [vmem:[%s10777_s15 + $0x1d8] sm:$0x3] }
 0x2c9   : >> { %v2877_v47 = vsel %vm1664_vm6, %v2875_v5, %v2876_v52  ;;  %v2880_v48 = vsel %vm1664_vm6, %v2878_v59, %v2879_v41  ;;  %v2884_v56 = vrot.slane %v2847_v24, 2  ;;  %v2885_v34 = vrot.slane %v2848_v62, 2 }
 0x2ca   : >> { %v2883_v60 = vsel %vm1664_vm6, %v2881_v19, %v2882_v33  ;;  %v2887_v1 = vrot.slane %v2849_v54, 2  ;;  %v2888_v18 = vrot.slane %v2850_v23, 2  ;;  %v2890_v35 = vrot.slane %v2851_v12, 2 }
 0x2cb   : >> { %v2886_v42 = vsel %vm1664_vm6, %v2884_v56, %v2885_v34  ;;  %v2891_v29 = vrot.slane %v2852_v39, 2  ;;  %v2901_v28 = vadd.f32 %v2871_v37, %v2825_v20  ;;  %v2902_v58 = vadd.f32 %v2874_v43, %v2826_v55 }
 0x2cc   : >> { %v2889_v3 = vsel %vm1664_vm6, %v2887_v1, %v2888_v18  ;;  %v2903_v46 = vadd.f32 %v2877_v47, %v2827_v13  ;;  %v2904_v9 = vadd.f32 %v2880_v48, %v2828_v49  ;;  %v2905_v27 = vadd.f32 %v2883_v60, %v2829_v7 }
 0x2cd   : >> { %v2892_v6 = vsel %vm1664_vm6, %v2890_v35, %v2891_v29  ;;  %v2906_v31 = vadd.f32 %v2886_v42, %v2830_v26  ;;  %v2907_v32 = vadd.f32 %v2889_v3, %v2831_v21  ;;  %v2913_v24 = vmul.f32 %v11450_v38, %v11532_v57 }
 0x2ce   : >> { %v2908_v62 = vadd.f32 %v2892_v6, %v2832_v45  ;;  %v2914_v20 = vmul.f32 %v11453_v25, %v11532_v57  ;;  %v2915_v55 = vmul.f32 %v11456_v50, %v11532_v57  ;;  %v2916_v13 = vmul.f32 %v11460_v36, %v11532_v57 }
 0x2cf   : >> { %v2917_v49 = vmul.f32 %v11463_v53, %v11532_v57  ;;  %v2918_v7 = vmul.f32 %v11466_v8, %v11532_v57  ;;  %v2919_v26 = vmul.f32 %v11615_v2, %v11532_v57  ;;  %v2920_v21 = vmul.f32 %v11717_v22, %v11532_v57 }
 0x2d0   : >> { %v2921_v45 = vadd.f32 %v2913_v24, %v2901_v28  ;;  %v2922_v54 = vadd.f32 %v2914_v20, %v2902_v58  ;;  %v2923_v23 = vadd.f32 %v2915_v55, %v2903_v46  ;;  %v2924_v12 = vadd.f32 %v2916_v13, %v2904_v9 }
 0x2d1   : >> { %v2925_v39 = vadd.f32 %v2917_v49, %v2905_v27  ;;  %v2926_v61 = vadd.f32 %v2918_v7, %v2906_v31  ;;  %v2927_v14 = vadd.f32 %v2919_v26, %v2907_v32  ;;  %v2928_v0 = vadd.f32 %v2920_v21, %v2908_v62 }
 0x2d2   : >> { %v2933_v5 = vmul.f32 %v11450_v38, %v11536_v44  ;;  %v2934_v52 = vmul.f32 %v11501_v4, %v11536_v44  ;;  %v2935_v59 = vmul.f32 %v11453_v25, %v11536_v44  ;;  %v2936_v57 = vmul.f32 %v11504_v63, %v11536_v44 }
 0x2d3   : >> { %v2937_v41 = vmul.f32 %v11456_v50, %v11536_v44  ;;  %v2938_v37 = vmul.f32 %v11521_v17, %v11536_v44  ;;  %v2939_v43 = vmul.f32 %v11460_v36, %v11536_v44  ;;  %v2940_v19 = vmul.f32 %v11524_v15, %v11536_v44 }
 0x2d4   : >> { %v2941_v33 = vmul.f32 %v11463_v53, %v11536_v44  ;;  %v2942_v47 = vmul.f32 %v11543_v10, %v11536_v44  ;;  %v2943_v48 = vmul.f32 %v11466_v8, %v11536_v44  ;;  %v2944_v56 = vmul.f32 %v11546_v16, %v11536_v44 }
 0x2d5   : >> { %v2945_v34 = vmul.f32 %v11615_v2, %v11536_v44  ;;  %v2946_v60 = vmul.f32 %v11636_v30, %v11536_v44  ;;  %v2947_v1 = vmul.f32 %v11717_v22, %v11536_v44  ;;  %v2948_v18 = vmul.f32 %v11738_v51, %v11536_v44 }
 0x2d6   : >> { %v2965_v35 = vrot.slane %v2933_v5, 1  ;;  %v2966_v42 = vrot.slane %v2934_v52, 1  ;;  %v2968_v29 = vrot.slane %v2935_v59, 1  ;;  %v2969_v28 = vrot.slane %v2936_v57, 1 }
 0x2d7   : >> { %v2971_v58 = vrot.slane %v2937_v41, 1  ;;  %v2972_v3 = vrot.slane %v2938_v37, 1  ;;  %v2974_v46 = vrot.slane %v2939_v43, 1  ;;  %v2975_v9 = vrot.slane %v2940_v19, 1 }
 0x2d8   : >> { %v2967_v27 = vsel %vm1587_vm5, %v2965_v35, %v2966_v42  ;;  %v2970_v6 = vsel %vm1587_vm5, %v2968_v29, %v2969_v28  ;;  %v2977_v31 = vrot.slane %v2941_v33, 1  ;;  %v2978_v32 = vrot.slane %v2942_v47, 1 }
 0x2d9   : >> { %v2973_v24 = vsel %vm1587_vm5, %v2971_v58, %v2972_v3  ;;  %v2976_v62 = vsel %vm1587_vm5, %v2974_v46, %v2975_v9  ;;  %v2980_v20 = vrot.slane %v2943_v48, 1  ;;  %v2981_v44 = vrot.slane %v2944_v56, 1 }
 0x2da   : >> { %v2979_v55 = vsel %vm1587_vm5, %v2977_v31, %v2978_v32  ;;  %v2983_v13 = vrot.slane %v2945_v34, 1  ;;  %v2984_v49 = vrot.slane %v2946_v60, 1  ;;  %v2986_v7 = vrot.slane %v2947_v1, 1 }
 0x2db   : >> { %v2982_v26 = vsel %vm1587_vm5, %v2980_v20, %v2981_v44  ;;  %v2987_v21 = vrot.slane %v2948_v18, 1  ;;  %v2997_v5 = vadd.f32 %v2967_v27, %v2921_v45  ;;  %v2998_v52 = vadd.f32 %v2970_v6, %v2922_v54 }
 0x2dc   : >> { %v2985_v59 = vsel %vm1587_vm5, %v2983_v13, %v2984_v49  ;;  %v2999_v57 = vadd.f32 %v2973_v24, %v2923_v23  ;;  %v3000_v41 = vadd.f32 %v2976_v62, %v2924_v12  ;;  %v3001_v37 = vadd.f32 %v2979_v55, %v2925_v39  ;;  %v15166_v55 = vld [vmem:[#allocation75_spill] sm:$0xff] }
 0x2dd   : >> { %v2988_v43 = vsel %vm1587_vm5, %v2986_v7, %v2987_v21  ;;  %v3002_v19 = vadd.f32 %v2982_v26, %v2926_v61  ;;  %v3003_v33 = vadd.f32 %v2985_v59, %v2927_v14  ;;  %v3009_v47 = vmul.f32 %v11450_v38, %v11540_v40  ;;  %v15167_v7 = vld [vmem:[#allocation76_spill] sm:$0xff] }
 0x2de   : >> { %v3004_v48 = vadd.f32 %v2988_v43, %v2928_v0  ;;  %v3010_v56 = vmul.f32 %v11501_v4, %v11540_v40  ;;  %v3011_v45 = vmul.f32 %v11453_v25, %v11540_v40  ;;  %v3012_v54 = vmul.f32 %v11504_v63, %v11540_v40 }
 0x2df   : >> { %v3013_v23 = vmul.f32 %v11456_v50, %v11540_v40  ;;  %v3014_v12 = vmul.f32 %v11521_v17, %v11540_v40  ;;  %v3015_v39 = vmul.f32 %v11460_v36, %v11540_v40  ;;  %v3016_v38 = vmul.f32 %v11524_v15, %v11540_v40 }
 0x2e0   : >> { %v3017_v4 = vmul.f32 %v11463_v53, %v11540_v40  ;;  %v3018_v25 = vmul.f32 %v11543_v10, %v11540_v40  ;;  %v3019_v63 = vmul.f32 %v11466_v8, %v11540_v40  ;;  %v3020_v50 = vmul.f32 %v11546_v16, %v11540_v40 }
 0x2e1   : >> { %v3021_v17 = vmul.f32 %v11615_v2, %v11540_v40  ;;  %v3022_v36 = vmul.f32 %v11636_v30, %v11540_v40  ;;  %v3023_v15 = vmul.f32 %v11717_v22, %v11540_v40  ;;  %v3024_v53 = vmul.f32 %v11738_v51, %v11540_v40 }
 0x2e2   : >> { %v3041_v61 = vrot.slane %v3009_v47, 2  ;;  %v3042_v10 = vrot.slane %v3010_v56, 2  ;;  %v3044_v14 = vrot.slane %v3011_v45, 2  ;;  %v3045_v0 = vrot.slane %v3012_v54, 2 }
 0x2e3   : >> { %v3047_v8 = vrot.slane %v3013_v23, 2  ;;  %v3048_v34 = vrot.slane %v3014_v12, 2  ;;  %v3050_v60 = vrot.slane %v3015_v39, 2  ;;  %v3051_v16 = vrot.slane %v3016_v38, 2 }
 0x2e4   : >> { %v3043_v1 = vsel %vm1664_vm6, %v3041_v61, %v3042_v10  ;;  %v3046_v2 = vsel %vm1664_vm6, %v3044_v14, %v3045_v0  ;;  %v3053_v18 = vrot.slane %v3017_v4, 2  ;;  %v3054_v30 = vrot.slane %v3018_v25, 2 }
 0x2e5   : >> { %v3049_v35 = vsel %vm1664_vm6, %v3047_v8, %v3048_v34  ;;  %v3052_v22 = vsel %vm1664_vm6, %v3050_v60, %v3051_v16  ;;  %v3056_v42 = vrot.slane %v3019_v63, 2  ;;  %v3057_v40 = vrot.slane %v3020_v50, 2  ;;  %v9591_v8 = vld [vmem:[%s10777_s15 + $0xb0] sm:$0xff]  ;;  %v9592_v60 = vld [vmem:[%s10777_s15 + $0xb8] sm:$0x3] }
 0x2e6   : >> { %v3055_v51 = vsel %vm1664_vm6, %v3053_v18, %v3054_v30  ;;  %v3059_v29 = vrot.slane %v3021_v17, 2  ;;  %v3060_v28 = vrot.slane %v3022_v36, 2  ;;  %v3062_v58 = vrot.slane %v3023_v15, 2  ;;  %v9594_v18 = vld [vmem:[%s10777_s15 + $0xc8] sm:$0x3] }
 0x2e7   : >> { %v3058_v3 = vsel %vm1664_vm6, %v3056_v42, %v3057_v40  ;;  %v3063_v46 = vrot.slane %v3024_v53, 2  ;;  %v3073_v9 = vadd.f32 %v3043_v1, %v2997_v5  ;;  %v3074_v27 = vadd.f32 %v3046_v2, %v2998_v52  ;;  %v9593_v1 = vld [vmem:[%s10777_s15 + $0xc0] sm:$0xff]  ;;  %v9596_v42 = vld [vmem:[%s10777_s15 + $0xd8] sm:$0x3] }
 0x2e8   : >> { %v3061_v6 = vsel %vm1664_vm6, %v3059_v29, %v3060_v28  ;;  %v3075_v31 = vadd.f32 %v3049_v35, %v2999_v57  ;;  %v3076_v32 = vadd.f32 %v3052_v22, %v3000_v41  ;;  %v3077_v24 = vadd.f32 %v3055_v51, %v3001_v37  ;;  %v9595_v35 = vld [vmem:[%s10777_s15 + $0xd0] sm:$0xff]  ;;  %v9597_v51 = vld [vmem:[%s10777_s15 + $0xe0] sm:$0xff]  ;;  %v9598_v28 = vld [vmem:[%s10777_s15 + $0xe8] sm:$0x3] }
 0x2e9   : >> { %v3064_v62 = vsel %vm1664_vm6, %v3062_v58, %v3063_v46  ;;  %v3078_v20 = vadd.f32 %v3058_v3, %v3002_v19  ;;  %v3079_v44 = vadd.f32 %v3061_v6, %v3003_v33  ;;  %v3084_v13 = vrot.slane %v15166_v55, %v15159_v11  ;;  %v9599_v3 = vld [vmem:[%s10777_s15 + $0xf0] sm:$0xff]  ;;  %v9601_v6 = vld [vmem:[%s10777_s15 + $0x100] sm:$0xff] }
 0x2ea   : >> { %v3080_v49 = vadd.f32 %v3064_v62, %v3004_v48  ;;  %v3096_v26 = vrot.slane %v15167_v7, %v15159_v11  ;;  %v9603_v62 = vld [vmem:[%s10777_s15 + $0x110] sm:$0xff]  ;;  %v9606_v7 = vld [vmem:[%s10777_s15 + $0x128] sm:$0x3] }
 0x2eb   : >> { %v3085_v21 = vmul.f32 %v3084_v13, %v3073_v9  ;;  %v3086_v5 = vmul.f32 %v3084_v13, %v3074_v27  ;;  %v3087_v52 = vmul.f32 %v3084_v13, %v3075_v31  ;;  %v3088_v59 = vmul.f32 %v3084_v13, %v3076_v32  ;;  %v9600_v9 = vld [vmem:[%s10777_s15 + $0xf8] sm:$0x3]  ;;  %v9602_v32 = vld [vmem:[%s10777_s15 + $0x108] sm:$0x3] }
 0x2ec   : >> { %v3089_v57 = vmul.f32 %v3084_v13, %v3077_v24  ;;  %v3090_v41 = vmul.f32 %v3084_v13, %v3078_v20  ;;  %v3091_v37 = vmul.f32 %v3084_v13, %v3079_v44  ;;  %v3092_v43 = vmul.f32 %v3084_v13, %v3080_v49  ;;  %v9604_v44 = vld [vmem:[%s10777_s15 + $0x118] sm:$0x3]  ;;  %v9605_v13 = vld [vmem:[%s10777_s15 + $0x120] sm:$0xff] }
 0x2ed   : >> { %v3097_v19 = vadd.f32 %v3096_v26, %v3085_v21  ;;  %v3098_v33 = vadd.f32 %v3096_v26, %v3086_v5  ;;  %v3099_v47 = vadd.f32 %v3096_v26, %v3087_v52  ;;  %v3100_v56 = vadd.f32 %v3096_v26, %v3088_v59  ;;  %v8930_v21 = vld [vmem:[%s14889_s4 + $0x4] sm:$0xf] (%p1459_p4) }
 0x2ee   : >> { %v3101_v45 = vadd.f32 %v3096_v26, %v3089_v57  ;;  %v3102_v48 = vadd.f32 %v3096_v26, %v3090_v41  ;;  %v3103_v54 = vadd.f32 %v3096_v26, %v3091_v37  ;;  %v3104_v23 = vadd.f32 %v3096_v26, %v3092_v43  ;;  %9521 = vmatprep.subr.msk.bf16.mxu1 (%p1459_p4), %vm1151_vm1, %v8930_v21 }
 0x2ef   : >> { %v3105_v11 = vmax.f32 %v3097_v19, 0.0  ;;  %v3106_v12 = vmax.f32 %v3098_v33, 0.0  ;;  %v3107_v39 = vmax.f32 %v3099_v47, 0.0  ;;  %v3108_v38 = vmax.f32 %v3100_v56, 0.0 }
 0x2f0   : >> { %v3109_v4 = vmax.f32 %v3101_v45, 0.0  ;;  %v3110_v25 = vmax.f32 %v3102_v48, 0.0  ;;  %v3111_v63 = vmax.f32 %v3103_v54, 0.0  ;;  %v3112_v50 = vmax.f32 %v3104_v23, 0.0 }
 0x2f1   : >> { %v3121_v17 = vrot.slane %v3105_v11, 7  ;;  %v3122_v36 = vrot.slane %v3106_v12, 7  ;;  %v3123_v15 = vrot.slane %v3107_v39, 7  ;;  %v3124_v53 = vrot.slane %v3108_v38, 7 }
 0x2f2   : >> { %v3125_v61 = vrot.slane %v3109_v4, 7  ;;  %v3126_v10 = vrot.slane %v3110_v25, 7  ;;  %v3127_v14 = vrot.slane %v3111_v63, 7  ;;  %v3128_v0 = vrot.slane %v3112_v50, 7 }
 0x2f3   : >> { %v3137_v34 = vadd.f32 %v9591_v8, %v3121_v17  ;;  %v3138_v16 = vadd.f32 %v9592_v60, %v3121_v17  ;;  %v3139_v2 = vadd.f32 %v9593_v1, %v3122_v36  ;;  %v3140_v30 = vadd.f32 %v9594_v18, %v3122_v36 }
 0x2f4   : >> { %v3141_v22 = vadd.f32 %v9595_v35, %v3123_v15  ;;  %v3142_v40 = vadd.f32 %v9596_v42, %v3123_v15  ;;  %v3143_v29 = vadd.f32 %v9597_v51, %v3124_v53  ;;  %v3144_v58 = vadd.f32 %v9598_v28, %v3124_v53 }
 0x2f5   : >> { %v3145_v46 = vadd.f32 %v9599_v3, %v3125_v61  ;;  %v3146_v27 = vadd.f32 %v9600_v9, %v3125_v61  ;;  %v3147_v31 = vadd.f32 %v9601_v6, %v3126_v10  ;;  %v3148_v24 = vadd.f32 %v9602_v32, %v3126_v10  ;;  %3156 = vst.msk [vmem:[%s3154_s17 - $0x1] sm:$0xfe] %vm3155_vm7, %v3137_v34  ;;  %v11886_v9 = vld [vmem:[%s14890_s5 + $0x20] sm:$0xff] (%p1459_p4)  ;;  %v11896_v6 = vld [vmem:[%s14890_s5 + $0x30] sm:$0xff] (%p1459_p4)  ;;  %v15172_v32 = vld [vmem:[#allocation77_spill] sm:$0xff] (%p1459_p4) }
 0x2f6   : >> { %3159 = vst.msk [vmem:[%s3154_s17 + $0x7] sm:$0xfe] %vm3155_vm7, %v3139_v2  ;;  %v3149_v20 = vadd.f32 %v9603_v62, %v3127_v14  ;;  %v3150_v55 = vadd.f32 %v9604_v44, %v3127_v14  ;;  %v3151_v49 = vadd.f32 %v9605_v13, %v3128_v0  ;;  %v3152_v26 = vadd.f32 %v9606_v7, %v3128_v0 }
 0x2f7   : >> { %3158 = vst.msk [vmem:[%s3154_s17 + $0x7] sm:$0x1] %vm3157_vm8, %v3138_v16  ;;  %3160 = vst.msk [vmem:[%s3154_s17 + $0xf] sm:$0x1] %vm3157_vm8, %v3140_v30  ;;  %v3272_v59 = vsel (%p1459_p4), %vm1151_vm1, %v8930_v21, 0 }
 0x2f8   : >> { %3161 = vst.msk [vmem:[%s3154_s17 + $0xf] sm:$0xfe] %vm3155_vm7, %v3141_v22  ;;  %3163 = vst.msk [vmem:[%s3154_s17 + $0x17] sm:$0xfe] %vm3155_vm7, %v3143_v29  ;;  %9349 = vmatpush3.bf16.msra.mxu1 (%p1459_p4), %v3272_v59 }
 0x2f9   : >> { %3162 = vst.msk [vmem:[%s3154_s17 + $0x17] sm:$0x1] %vm3157_vm8, %v3142_v40  ;;  %3164 = vst.msk [vmem:[%s3154_s17 + $0x1f] sm:$0x1] %vm3157_vm8, %v3144_v58  ;;  %1461 = sbr.rel (!%p1459_p4) target bundleno = 484 (0x1e4), region = 123 }
 0x2fa   : >> { %3165 = vst.msk [vmem:[%s3154_s17 + $0x1f] sm:$0xfe] %vm3155_vm7, %v3145_v46  ;;  %3167 = vst.msk [vmem:[%s3154_s17 + $0x27] sm:$0xfe] %vm3155_vm7, %v3147_v31  ;;  %v11901_v31 = vld [vmem:[%s14890_s5 + $0x38] sm:$0x7] (%p1459_p4) }
 0x2fb   : >> { %3166 = vst.msk [vmem:[%s3154_s17 + $0x27] sm:$0x1] %vm3157_vm8, %v3146_v27  ;;  %3168 = vst.msk [vmem:[%s3154_s17 + $0x2f] sm:$0x1] %vm3157_vm8, %v3148_v24  ;;  %v11891_v27 = vld [vmem:[%s14890_s5 + $0x28] sm:$0xff] (%p1459_p4)  ;;  %v15173_v24 = vld [vmem:[#allocation75_spill] sm:$0xff] (%p1459_p4) }
 0x2fc   : >> { %3169 = vst.msk [vmem:[%s3154_s17 + $0x2f] sm:$0xfe] %vm3155_vm7, %v3149_v20  ;;  %3171 = vst.msk [vmem:[%s3154_s17 + $0x37] sm:$0xfe] %vm3155_vm7, %v3151_v49  ;;  %v11905_v62 = vrot.slane (%p1459_p4), %v15173_v24, %v15172_v32  ;;  %v15174_v20 = vld [vmem:[#allocation76_spill] sm:$0xff] (%p1459_p4) }
 0x2fd   : >> { %3170 = vst.msk [vmem:[%s3154_s17 + $0x37] sm:$0x1] %vm3157_vm8, %v3150_v55  ;;  %3172 = vst.msk [vmem:[%s3154_s17 + $0x3f] sm:$0x1] %vm3157_vm8, %v3152_v26  ;;  %v11909_v44 = vrot.slane (%p1459_p4), %v15174_v20, %v15172_v32 }
 0x2fe   : > { %15168 = vst [vmem:[#allocation4_spill] sm:$0xff] %v11886_v9  ;;  %15169 = vst [vmem:[#allocation71_spill] sm:$0xff] %v11891_v27 }
 0x2ff   : > { %15170 = vst [vmem:[#allocation72_spill] sm:$0xff] %v11896_v6  ;;  %15171 = vst [vmem:[#allocation73_spill] sm:$0xff] %v11901_v31 }
 0x304   : > { %v3173_v5 = vld [vmem:[#allocation3] sm:$0xff]  ;;  %v3174_v52 = vld [vmem:[#allocation3 + $0x8] sm:$0xff]  ;;  %v3175_v41 = vld [vmem:[#allocation3 + $0x10] sm:$0xff] }
 0x305   : > { %v3205_v57 = vpack.c.bf16 %v3174_v52, %v3173_v5  ;;  %v3176_v37 = vld [vmem:[#allocation3 + $0x18] sm:$0xff]  ;;  %v3177_v43 = vld [vmem:[#allocation3 + $0x20] sm:$0xff]  ;;  %v3178_v33 = vld [vmem:[#allocation3 + $0x28] sm:$0xff] }
 0x306   : > { %v3206_v19 = vpack.c.bf16 %v3176_v37, %v3175_v41  ;;  %v3207_v47 = vpack.c.bf16 %v3178_v33, %v3177_v43  ;;  %v3179_v56 = vld [vmem:[#allocation3 + $0x30] sm:$0xff]  ;;  %v3180_v45 = vld [vmem:[#allocation3 + $0x38] sm:$0xff]  ;;  %v3181_v48 = vld [vmem:[#allocation3 + $0x40] sm:$0xff] }
 0x307   : > { %9350 = vmatprep.mubr.msk.bf16.mxu1 %vm303_vm3, %v3205_v57  ;;  %v3182_v54 = vld [vmem:[#allocation3 + $0x48] sm:$0xff]  ;;  %v3208_v23 = vpack.c.bf16 %v3180_v45, %v3179_v56  ;;  %v3183_v12 = vld [vmem:[#allocation3 + $0x50] sm:$0xff]  ;;  %v3184_v39 = vld [vmem:[#allocation3 + $0x58] sm:$0xff] }
 0x308   : > { %9351 = vmatmul.mubr.msk.bf16.vlgmr.msra.gmra.mxu1 %vm303_vm3, %v3206_v19  ;;  %v3209_v11 = vpack.c.bf16 %v3182_v54, %v3181_v48  ;;  %v3185_v38 = vld [vmem:[#allocation3 + $0x60] sm:$0xff]  ;;  %v3186_v4 = vld [vmem:[#allocation3 + $0x68] sm:$0xff]  ;;  %v3210_v25 = vpack.c.bf16 %v3184_v39, %v3183_v12  ;;  %v3187_v50 = vld [vmem:[#allocation3 + $0x70] sm:$0xff] }
 0x309   : > { %9354 = vmatprep.mubr.msk.bf16.mxu1 %vm303_vm3, %v3207_v47  ;;  %v3211_v63 = vpack.c.bf16 %v3186_v4, %v3185_v38  ;;  %v3188_v17 = vld [vmem:[#allocation3 + $0x78] sm:$0xff]  ;;  %v3189_v36 = vld [vmem:[#allocation3 + $0x80] sm:$0xff]  ;;  %v3190_v15 = vld [vmem:[#allocation3 + $0x88] sm:$0xff] }
 0x30a   : > { %v3212_v53 = vpack.c.bf16 %v3188_v17, %v3187_v50  ;;  %v3213_v61 = vpack.c.bf16 %v3190_v15, %v3189_v36  ;;  %v3191_v10 = vld [vmem:[#allocation3 + $0x90] sm:$0xff]  ;;  %v3192_v14 = vld [vmem:[#allocation3 + $0x98] sm:$0xff]  ;;  %v3193_v0 = vld [vmem:[#allocation3 + $0xa0] sm:$0xff] }
 0x30b   : > { %v3194_v8 = vld [vmem:[#allocation3 + $0xa8] sm:$0xff]  ;;  %v3214_v34 = vpack.c.bf16 %v3192_v14, %v3191_v10  ;;  %v3195_v16 = vld [vmem:[#allocation3 + $0xb0] sm:$0xff]  ;;  %v3196_v1 = vld [vmem:[#allocation3 + $0xb8] sm:$0xff] }
 0x30c   : > { %v3215_v60 = vpack.c.bf16 %v3194_v8, %v3193_v0  ;;  %v3197_v2 = vld [vmem:[#allocation3 + $0xc0] sm:$0xff]  ;;  %v3198_v18 = vld [vmem:[#allocation3 + $0xc8] sm:$0xff]  ;;  %v3216_v30 = vpack.c.bf16 %v3196_v1, %v3195_v16  ;;  %v3199_v22 = vld [vmem:[#allocation3 + $0xd0] sm:$0xff] }
 0x30d   : > { %v3217_v35 = vpack.c.bf16 %v3198_v18, %v3197_v2  ;;  %v3200_v42 = vld [vmem:[#allocation3 + $0xd8] sm:$0xff]  ;;  %v3201_v40 = vld [vmem:[#allocation3 + $0xe0] sm:$0xff]  ;;  %v3202_v51 = vld [vmem:[#allocation3 + $0xe8] sm:$0xff] }
 0x30e   : > { %v3218_v29 = vpack.c.bf16 %v3200_v42, %v3199_v22  ;;  %v3219_v28 = vpack.c.bf16 %v3202_v51, %v3201_v40  ;;  %v3203_v58 = vld [vmem:[#allocation3 + $0xf0] sm:$0xff]  ;;  %v3204_v3 = vld [vmem:[#allocation3 + $0xf8] sm:$0xff] }
 0x30f   : > { %v3220_v46 = vpack.c.bf16 %v3204_v3, %v3203_v58 }
 0x310   : > { %9355 = vmatmul.mubr.msk.bf16.gmra.mxu1 %vm303_vm3, %v3208_v23 }
 0x311   : > { %9358 = vmatprep.mubr.msk.bf16.mxu1 %vm303_vm3, %v3209_v11 }
 0x318   : > { %9359 = vmatmul.mubr.msk.bf16.gmra.mxu1 %vm303_vm3, %v3210_v25 }
 0x319   : > { %9362 = vmatprep.mubr.msk.bf16.mxu1 %vm303_vm3, %v3211_v63 }
 0x320   : > { %9363 = vmatmul.mubr.msk.bf16.gmra.mxu1 %vm303_vm3, %v3212_v53 }
 0x321   : > { %9366 = vmatprep.mubr.msk.bf16.mxu1 %vm303_vm3, %v3213_v61 }
 0x328   : > { %9367 = vmatmul.mubr.msk.bf16.gmra.mxu1 %vm303_vm3, %v3214_v34 }
 0x329   : > { %9370 = vmatprep.mubr.msk.bf16.mxu1 %vm303_vm3, %v3215_v60 }
 0x330   : > { %9371 = vmatmul.mubr.msk.bf16.gmra.mxu1 %vm303_vm3, %v3216_v30 }
 0x331   : > { %9374 = vmatprep.mubr.msk.bf16.mxu1 %vm303_vm3, %v3217_v35 }
 0x338   : > { %9375 = vmatmul.mubr.msk.bf16.gmra.mxu1 %vm303_vm3, %v3218_v29 }
 0x339   : > { %9378 = vmatprep.mubr.msk.bf16.mxu1 %vm303_vm3, %v3219_v28 }
 0x340   : > { %9379 = vmatmul.mubr.msk.bf16.gmra.mxu1 %vm303_vm3, %v3220_v46 }
 0x3c8   : > { %v9352_v55 = vpop.f32.mrf.mxu1 }
 0x3c9   : > { %v3441_v13 = vmul.f32 %v9352_v55, %v11905_v62 }
 0x3ca   : > { %v3308_v49 = vpop.f32.mrf.mxu1 }
 0x3cb   : > { %v3477_v7 = vadd.f32 %v11909_v44, %v3441_v13  ;;  %v3439_v26 = vmul.f32 %v11905_v62, %v3308_v49 }
 0x3cc   : > { %v9353_v21 = vpop.f32.mrf.mxu1 }
 0x3cd   : > { %v3509_v5 = vmax.f32 %v3477_v7, 0.0  ;;  %v3475_v52 = vadd.f32 %v11909_v44, %v3439_v26  ;;  %v3442_v59 = vmul.f32 %v9353_v21, %v11905_v62 }
 0x3ce   : > { %v3311_v57 = vpop.f32.mrf.mxu1 }
 0x3cf   : > { %3541 = vst.msk [vmem:[#allocation2 + $0xd1] sm:$0xff] %vm303_vm3, %v3509_v5  ;;  %v3507_v41 = vmax.f32 %v3475_v52, 0.0  ;;  %v3478_v37 = vadd.f32 %v11909_v44, %v3442_v59  ;;  %v3440_v43 = vmul.f32 %v11905_v62, %v3311_v57 }
 0x3d0   : > { %v9356_v19 = vpop.f32.mrf.mxu1 }
 0x3d1   : > { %3539 = vst.msk [vmem:[#allocation2 + $0xb1] sm:$0xff] %vm303_vm3, %v3507_v41  ;;  %v3510_v33 = vmax.f32 %v3478_v37, 0.0  ;;  %v3476_v47 = vadd.f32 %v11909_v44, %v3440_v43  ;;  %v3445_v56 = vmul.f32 %v9356_v19, %v11905_v62 }
 0x3d2   : > { %v3324_v45 = vpop.f32.mrf.mxu1 }
 0x3d3   : > { %3542 = vst.msk [vmem:[#allocation2 + $0xe1] sm:$0xff] %vm303_vm3, %v3510_v33  ;;  %v3508_v48 = vmax.f32 %v3476_v47, 0.0  ;;  %v3481_v54 = vadd.f32 %v11909_v44, %v3445_v56  ;;  %v3443_v23 = vmul.f32 %v11905_v62, %v3324_v45 }
 0x3d4   : > { %v9357_v11 = vpop.f32.mrf.mxu1 }
 0x3d5   : > { %3540 = vst.msk [vmem:[#allocation2 + $0xc1] sm:$0xff] %vm303_vm3, %v3508_v48  ;;  %v3513_v12 = vmax.f32 %v3481_v54, 0.0  ;;  %v3479_v39 = vadd.f32 %v11909_v44, %v3443_v23  ;;  %v3446_v38 = vmul.f32 %v9357_v11, %v11905_v62 }
 0x3d6   : > { %v3327_v4 = vpop.f32.mrf.mxu1 }
 0x3d7   : > { %3545 = vst.msk [vmem:[#allocation2 + $0x111] sm:$0xff] %vm303_vm3, %v3513_v12  ;;  %v3511_v25 = vmax.f32 %v3479_v39, 0.0  ;;  %v3482_v63 = vadd.f32 %v11909_v44, %v3446_v38  ;;  %v3444_v50 = vmul.f32 %v11905_v62, %v3327_v4 }
 0x3d8   : > { %v9360_v17 = vpop.f32.mrf.mxu1 }
 0x3d9   : > { %3543 = vst.msk [vmem:[#allocation2 + $0xf1] sm:$0xff] %vm303_vm3, %v3511_v25  ;;  %v3514_v36 = vmax.f32 %v3482_v63, 0.0  ;;  %v3480_v15 = vadd.f32 %v11909_v44, %v3444_v50  ;;  %v3449_v53 = vmul.f32 %v9360_v17, %v11905_v62 }
 0x3da   : > { %v3340_v61 = vpop.f32.mrf.mxu1 }
 0x3db   : > { %3546 = vst.msk [vmem:[#allocation2 + $0x121] sm:$0xff] %vm303_vm3, %v3514_v36  ;;  %v3512_v10 = vmax.f32 %v3480_v15, 0.0  ;;  %v3485_v14 = vadd.f32 %v11909_v44, %v3449_v53  ;;  %v3447_v0 = vmul.f32 %v11905_v62, %v3340_v61 }
 0x3dc   : > { %v9361_v8 = vpop.f32.mrf.mxu1 }
 0x3dd   : > { %3544 = vst.msk [vmem:[#allocation2 + $0x101] sm:$0xff] %vm303_vm3, %v3512_v10  ;;  %v3517_v34 = vmax.f32 %v3485_v14, 0.0  ;;  %v3483_v60 = vadd.f32 %v11909_v44, %v3447_v0  ;;  %v3450_v16 = vmul.f32 %v9361_v8, %v11905_v62 }
 0x3de   : > { %v3343_v1 = vpop.f32.mrf.mxu1 }
 0x3df   : > { %3549 = vst.msk [vmem:[#allocation2 + $0x171] sm:$0xff] %vm303_vm3, %v3517_v34  ;;  %v3515_v2 = vmax.f32 %v3483_v60, 0.0  ;;  %v3486_v18 = vadd.f32 %v11909_v44, %v3450_v16  ;;  %v3448_v30 = vmul.f32 %v11905_v62, %v3343_v1 }
 0x3e0   : > { %v9364_v35 = vpop.f32.mrf.mxu1 }
 0x3e1   : > { %3547 = vst.msk [vmem:[#allocation2 + $0x151] sm:$0xff] %vm303_vm3, %v3515_v2  ;;  %v3518_v22 = vmax.f32 %v3486_v18, 0.0  ;;  %v3484_v42 = vadd.f32 %v11909_v44, %v3448_v30  ;;  %v3453_v40 = vmul.f32 %v9364_v35, %v11905_v62 }
 0x3e2   : > { %v3356_v51 = vpop.f32.mrf.mxu1 }
 0x3e3   : > { %3550 = vst.msk [vmem:[#allocation2 + $0x181] sm:$0xff] %vm303_vm3, %v3518_v22  ;;  %v3516_v29 = vmax.f32 %v3484_v42, 0.0  ;;  %v3489_v28 = vadd.f32 %v11909_v44, %v3453_v40  ;;  %v3451_v58 = vmul.f32 %v11905_v62, %v3356_v51 }
 0x3e4   : > { %v9365_v3 = vpop.f32.mrf.mxu1 }
 0x3e5   : > { %3548 = vst.msk [vmem:[#allocation2 + $0x161] sm:$0xff] %vm303_vm3, %v3516_v29  ;;  %v3521_v46 = vmax.f32 %v3489_v28, 0.0  ;;  %v3487_v32 = vadd.f32 %v11909_v44, %v3451_v58  ;;  %v3454_v24 = vmul.f32 %v9365_v3, %v11905_v62 }
 0x3e6   : > { %v3359_v20 = vpop.f32.mrf.mxu1 }
 0x3e7   : > { %3553 = vst.msk [vmem:[#allocation2 + $0x1b1] sm:$0xff] %vm303_vm3, %v3521_v46  ;;  %v3519_v55 = vmax.f32 %v3487_v32, 0.0  ;;  %v3490_v13 = vadd.f32 %v11909_v44, %v3454_v24  ;;  %v3452_v49 = vmul.f32 %v11905_v62, %v3359_v20 }
 0x3e8   : > { %v9368_v7 = vpop.f32.mrf.mxu1 }
 0x3e9   : > { %3551 = vst.msk [vmem:[#allocation2 + $0x191] sm:$0xff] %vm303_vm3, %v3519_v55  ;;  %v3522_v26 = vmax.f32 %v3490_v13, 0.0  ;;  %v3488_v21 = vadd.f32 %v11909_v44, %v3452_v49  ;;  %v3457_v5 = vmul.f32 %v9368_v7, %v11905_v62 }
 0x3ea   : > { %v3372_v52 = vpop.f32.mrf.mxu1 }
 0x3eb   : > { %3554 = vst.msk [vmem:[#allocation2 + $0x1c1] sm:$0xff] %vm303_vm3, %v3522_v26  ;;  %v3520_v59 = vmax.f32 %v3488_v21, 0.0  ;;  %v3493_v57 = vadd.f32 %v11909_v44, %v3457_v5  ;;  %v3455_v41 = vmul.f32 %v11905_v62, %v3372_v52 }
 0x3ec   : > { %v9369_v37 = vpop.f32.mrf.mxu1 }
 0x3ed   : > { %3552 = vst.msk [vmem:[#allocation2 + $0x1a1] sm:$0xff] %vm303_vm3, %v3520_v59  ;;  %v3525_v43 = vmax.f32 %v3493_v57, 0.0  ;;  %v3491_v19 = vadd.f32 %v11909_v44, %v3455_v41  ;;  %v3458_v33 = vmul.f32 %v9369_v37, %v11905_v62 }
 0x3ee   : > { %v3375_v47 = vpop.f32.mrf.mxu1 }
 0x3ef   : > { %3557 = vst.msk [vmem:[#allocation2 + $0x211] sm:$0xff] %vm303_vm3, %v3525_v43  ;;  %v3523_v56 = vmax.f32 %v3491_v19, 0.0  ;;  %v3494_v45 = vadd.f32 %v11909_v44, %v3458_v33  ;;  %v3456_v48 = vmul.f32 %v11905_v62, %v3375_v47 }
 0x3f0   : > { %v9372_v54 = vpop.f32.mrf.mxu1 }
 0x3f1   : > { %3555 = vst.msk [vmem:[#allocation2 + $0x1f1] sm:$0xff] %vm303_vm3, %v3523_v56  ;;  %v3526_v23 = vmax.f32 %v3494_v45, 0.0  ;;  %v3492_v11 = vadd.f32 %v11909_v44, %v3456_v48  ;;  %v3461_v12 = vmul.f32 %v9372_v54, %v11905_v62 }
 0x3f2   : > { %v3388_v39 = vpop.f32.mrf.mxu1 }
 0x3f3   : > { %3558 = vst.msk [vmem:[#allocation2 + $0x221] sm:$0xff] %vm303_vm3, %v3526_v23  ;;  %v3524_v38 = vmax.f32 %v3492_v11, 0.0  ;;  %v3497_v4 = vadd.f32 %v11909_v44, %v3461_v12  ;;  %v3459_v25 = vmul.f32 %v11905_v62, %v3388_v39 }
 0x3f4   : > { %v9373_v63 = vpop.f32.mrf.mxu1 }
 0x3f5   : > { %3556 = vst.msk [vmem:[#allocation2 + $0x201] sm:$0xff] %vm303_vm3, %v3524_v38  ;;  %v3529_v50 = vmax.f32 %v3497_v4, 0.0  ;;  %v3495_v17 = vadd.f32 %v11909_v44, %v3459_v25  ;;  %v3462_v36 = vmul.f32 %v9373_v63, %v11905_v62 }
 0x3f6   : > { %v3391_v15 = vpop.f32.mrf.mxu1 }
 0x3f7   : > { %3561 = vst.msk [vmem:[#allocation2 + $0x251] sm:$0xff] %vm303_vm3, %v3529_v50  ;;  %v3527_v53 = vmax.f32 %v3495_v17, 0.0  ;;  %v3498_v61 = vadd.f32 %v11909_v44, %v3462_v36  ;;  %v3460_v10 = vmul.f32 %v11905_v62, %v3391_v15 }
 0x3f8   : > { %v9376_v14 = vpop.f32.mrf.mxu1 }
 0x3f9   : > { %3559 = vst.msk [vmem:[#allocation2 + $0x231] sm:$0xff] %vm303_vm3, %v3527_v53  ;;  %v3530_v0 = vmax.f32 %v3498_v61, 0.0  ;;  %v3496_v8 = vadd.f32 %v11909_v44, %v3460_v10  ;;  %v3465_v34 = vmul.f32 %v9376_v14, %v11905_v62 }
 0x3fa   : > { %v3404_v60 = vpop.f32.mrf.mxu1 }
 0x3fb   : > { %3562 = vst.msk [vmem:[#allocation2 + $0x261] sm:$0xff] %vm303_vm3, %v3530_v0  ;;  %v3528_v16 = vmax.f32 %v3496_v8, 0.0  ;;  %v3501_v1 = vadd.f32 %v11909_v44, %v3465_v34  ;;  %v3463_v2 = vmul.f32 %v11905_v62, %v3404_v60 }
 0x3fc   : > { %v9377_v18 = vpop.f32.mrf.mxu1 }
 0x3fd   : > { %3560 = vst.msk [vmem:[#allocation2 + $0x241] sm:$0xff] %vm303_vm3, %v3528_v16  ;;  %v3533_v30 = vmax.f32 %v3501_v1, 0.0  ;;  %v3499_v35 = vadd.f32 %v11909_v44, %v3463_v2  ;;  %v3466_v22 = vmul.f32 %v9377_v18, %v11905_v62 }
 0x3fe   : > { %v3407_v42 = vpop.f32.mrf.mxu1 }
 0x3ff   : > { %3565 = vst.msk [vmem:[#allocation2 + $0x2b1] sm:$0xff] %vm303_vm3, %v3533_v30  ;;  %v3531_v40 = vmax.f32 %v3499_v35, 0.0  ;;  %v3502_v51 = vadd.f32 %v11909_v44, %v3466_v22  ;;  %v3464_v29 = vmul.f32 %v11905_v62, %v3407_v42 }
 0x400   : > { %v9380_v28 = vpop.f32.mrf.mxu1 }
 0x401   : > { %3563 = vst.msk [vmem:[#allocation2 + $0x291] sm:$0xff] %vm303_vm3, %v3531_v40  ;;  %v3534_v58 = vmax.f32 %v3502_v51, 0.0  ;;  %v3500_v3 = vadd.f32 %v11909_v44, %v3464_v29  ;;  %v3469_v46 = vmul.f32 %v9380_v28, %v11905_v62 }
 0x402   : > { %v3420_v32 = vpop.f32.mrf.mxu1 }
 0x403   : > { %3566 = vst.msk [vmem:[#allocation2 + $0x2c1] sm:$0xff] %vm303_vm3, %v3534_v58  ;;  %v3532_v24 = vmax.f32 %v3500_v3, 0.0  ;;  %v3505_v20 = vadd.f32 %v11909_v44, %v3469_v46  ;;  %v3467_v55 = vmul.f32 %v11905_v62, %v3420_v32 }
 0x404   : > { %v9381_v13 = vpop.f32.mrf.mxu1 }
 0x405   : > { %3564 = vst.msk [vmem:[#allocation2 + $0x2a1] sm:$0xff] %vm303_vm3, %v3532_v24  ;;  %v3537_v49 = vmax.f32 %v3505_v20, 0.0  ;;  %v3503_v7 = vadd.f32 %v11909_v44, %v3467_v55  ;;  %v3470_v26 = vmul.f32 %v9381_v13, %v11905_v62 }
 0x406   : > { %v3423_v21 = vpop.f32.mrf.mxu1 }
 0x407   : > { %3569 = vst.msk [vmem:[#allocation2 + $0x2f1] sm:$0xff] %vm303_vm3, %v3537_v49  ;;  %v3535_v5 = vmax.f32 %v3503_v7, 0.0  ;;  %v3506_v52 = vadd.f32 %v11909_v44, %v3470_v26  ;;  %v3468_v59 = vmul.f32 %v11905_v62, %v3423_v21 }
 0x409   : > { %3567 = vst.msk [vmem:[#allocation2 + $0x2d1] sm:$0xff] %vm303_vm3, %v3535_v5  ;;  %v3538_v57 = vmax.f32 %v3506_v52, 0.0  ;;  %v3504_v41 = vadd.f32 %v11909_v44, %v3468_v59 }
 0x40b   : > { %3570 = vst.msk [vmem:[#allocation2 + $0x301] sm:$0xff] %vm303_vm3, %v3538_v57  ;;  %v3536_v37 = vmax.f32 %v3504_v41, 0.0 }
 0x40d   : > { %3568 = vst.msk [vmem:[#allocation2 + $0x2e1] sm:$0xff] %vm303_vm3, %v3536_v37 }
 0x40e LB: >> { %v15175_v27 = vld [vmem:[#allocation71_spill] sm:$0xff]  ;;  %v15176_v9 = vld [vmem:[#allocation4_spill] sm:$0xff]  ;;  %s3582_s30 = smul.u32 160, %s9921_s29  ;;  %v15177_v62 = vld [vmem:[#allocation5_spill] sm:$0xff]  ;;  %s8991_s9 = sshll.u32 %s9921_s29, 6  ;;  %s9921_s29 = sphi %s12007_s29, %s3581_s29  }
 0x40f   : >> { %v3653_v43 = vrot.slane %v15176_v9, %v15177_v62  ;;  %v15178_v19 = vld [vmem:[#allocation38_spill] sm:$0xff]  ;;  %v15179_v33 = vld [vmem:[#allocation77_spill] sm:$0xff]  ;;  %v15181_v48 = vld [vmem:[#allocation79_spill] sm:$0xff]  ;;  %v12043_v25 = vrot.slane %v15175_v27, %v15177_v62  ;;  %s5273_s10 = scalar_lea.vmem [#allocation3], %s8991_s9  ;;  %s3581_s29 = sadd.s32 1, %s9921_s29  }
 0x410   : >> { %v3673_v44 = vrot.slane %v15176_v9, %v15178_v19  ;;  %v12019_v47 = vrot.slane %v15176_v9, %v15179_v33  ;;  %v15180_v56 = vld [vmem:[#allocation78_spill] sm:$0xff]  ;;  %v12027_v54 = vrot.slane %v15176_v9, %v15181_v48  ;;  %v15182_v23 = vld [vmem:[#allocation80_spill] sm:$0xff]  ;;  %v15183_v12 = vld [vmem:[#allocation81_spill] sm:$0xff]  ;;  %v12047_v63 = vrot.slane %v15175_v27, %v15178_v19  ;;  %s12053_s8 = scalar_lea.vmem [#allocation2], %s3582_s30  ;;  %p3578_p5 = scmp.ge.s32.totalorder %s3581_s29, 4  }
 0x411   : >> { %v12023_v45 = vrot.slane %v15176_v9, %v15180_v56  ;;  %v12031_v11 = vrot.slane %v15176_v9, %v15182_v23  ;;  %v12035_v39 = vrot.slane %v15176_v9, %v15183_v12  ;;  %v15185_v38 = vld [vmem:[#allocation82_spill] sm:$0xff]  ;;  %15187 = vst [vmem:[#allocation94_spill] sm:$0xff] %v12043_v25  ;;  %v12051_v50 = vrot.slane %v15175_v27, %v15179_v33  ;;  %s13411_s22 = smov (%p3578_p5), 0  }
 0x412   : >> { %v12039_v4 = vrot.slane %v15176_v9, %v15185_v38  ;;  %15188 = vst [vmem:[#allocation95_spill] sm:$0xff] %v12047_v63  ;;  %v12062_v53 = vrot.slane %v15175_v27, %v15180_v56  ;;  %v12066_v61 = vrot.slane %v15175_v27, %v15181_v48  ;;  %v12070_v10 = vrot.slane %v15175_v27, %v15182_v23 }
 0x413   : >> { %15184 = vst [vmem:[#allocation92_spill] sm:$0xff] %v12035_v39  ;;  %15189 = vst [vmem:[#allocation96_spill] sm:$0xff] %v12051_v50  ;;  %v12074_v14 = vrot.slane %v15175_v27, %v15183_v12 }
 0x414   : >> { %15186 = vst [vmem:[#allocation93_spill] sm:$0xff] %v12039_v4  ;;  %v3584_v17 = vld [vmem:[%s12053_s8] sm:$0xff]  ;;  %v3585_v36 = vld [vmem:[%s12053_s8 + $0x8] sm:$0x3]  ;;  %v12058_v15 = vld [vmem:[%s12053_s8 + $0x10] sm:$0xff] }
 0x415   : >> { %15190 = vst [vmem:[#allocation97_spill] sm:$0xff] %v12062_v53  ;;  %15191 = vst [vmem:[#allocation98_spill] sm:$0xff] %v12066_v61  ;;  %v12077_v0 = vld [vmem:[%s12053_s8 + $0x18] sm:$0x3]  ;;  %v12080_v8 = vld [vmem:[%s12053_s8 + $0x20] sm:$0xff]  ;;  %v3654_v60 = vmul.f32 %v3653_v43, %v3584_v17  ;;  %v3655_v16 = vmul.f32 %v3653_v43, %v12058_v15  ;;  %v3674_v1 = vmul.f32 %v3673_v44, %v3584_v17 }
 0x416   : >> { %15192 = vst [vmem:[#allocation99_spill] sm:$0xff] %v12070_v10  ;;  %15193 = vst [vmem:[#allocation100_spill] sm:$0xff] %v12074_v14  ;;  %v12083_v34 = vld [vmem:[%s12053_s8 + $0x28] sm:$0x3]  ;;  %v3675_v2 = vmul.f32 %v3673_v44, %v3585_v36  ;;  %v12087_v18 = vld [vmem:[%s12053_s8 + $0x30] sm:$0xff]  ;;  %v3656_v22 = vmul.f32 %v3653_v43, %v12080_v8  ;;  %v3676_v42 = vmul.f32 %v3673_v44, %v12058_v15 }
 0x417   : >> { %v12090_v30 = vld [vmem:[%s12053_s8 + $0x38] sm:$0x3]  ;;  %v12093_v35 = vld [vmem:[%s12053_s8 + $0x40] sm:$0xff]  ;;  %v3677_v40 = vmul.f32 %v3673_v44, %v12077_v0  ;;  %v3678_v51 = vmul.f32 %v3673_v44, %v12080_v8  ;;  %v12100_v29 = vld [vmem:[%s12053_s8 + $0x48] sm:$0x3]  ;;  %v3657_v3 = vmul.f32 %v3653_v43, %v12087_v18  ;;  %v3679_v32 = vmul.f32 %v3673_v44, %v12083_v34 }
 0x418   : >> { %v12103_v28 = vld [vmem:[%s12053_s8 + $0x50] sm:$0xff]  ;;  %v12106_v58 = vld [vmem:[%s12053_s8 + $0x58] sm:$0x3]  ;;  %v3658_v46 = vmul.f32 %v3653_v43, %v12093_v35  ;;  %v3680_v24 = vmul.f32 %v3673_v44, %v12087_v18  ;;  %v12113_v20 = vld [vmem:[%s12053_s8 + $0x60] sm:$0xff]  ;;  %v3681_v7 = vmul.f32 %v3673_v44, %v12090_v30  ;;  %v3682_v26 = vmul.f32 %v3673_v44, %v12093_v35 }
 0x419   : >> { %v12116_v55 = vld [vmem:[%s12053_s8 + $0x68] sm:$0x3]  ;;  %v12119_v13 = vld [vmem:[%s12053_s8 + $0x70] sm:$0xff]  ;;  %v3659_v49 = vmul.f32 %v3653_v43, %v12103_v28  ;;  %v3683_v21 = vmul.f32 %v3673_v44, %v12100_v29  ;;  %v12126_v5 = vld [vmem:[%s12053_s8 + $0x78] sm:$0x3]  ;;  %v3660_v52 = vmul.f32 %v3653_v43, %v12113_v20  ;;  %v3684_v57 = vmul.f32 %v3673_v44, %v12103_v28 }
 0x41a   : >> { %v3661_v59 = vmul.f32 %v3653_v43, %v12119_v13  ;;  %v3685_v41 = vmul.f32 %v3673_v44, %v12106_v58  ;;  %v3686_v37 = vmul.f32 %v3673_v44, %v12113_v20  ;;  %v3687_v9 = vmul.f32 %v3673_v44, %v12116_v55 }
 0x41b   : >> { %v3688_v31 = vmul.f32 %v3673_v44, %v12119_v13  ;;  %v3689_v12 = vmul.f32 %v3673_v44, %v12126_v5  ;;  %v3707_v23 = vrot.slane %v3674_v1, 1  ;;  %v3751_v48 = vmul.f32 %v12019_v47, %v3584_v17 }
 0x41c   : >> { %v3752_v56 = vmul.f32 %v12019_v47, %v3585_v36  ;;  %v3753_v43 = vmul.f32 %v12019_v47, %v12058_v15  ;;  %v3708_v33 = vrot.slane %v3675_v2, 1  ;;  %v3710_v19 = vrot.slane %v3676_v42, 1 }
 0x41d   : >> { %v3754_v6 = vmul.f32 %v12019_v47, %v12077_v0  ;;  %v3755_v62 = vmul.f32 %v12019_v47, %v12080_v8  ;;  %v3711_v27 = vrot.slane %v3677_v40, 1  ;;  %v3756_v44 = vmul.f32 %v12019_v47, %v12083_v34 }
 0x41e   : >> { %v3757_v17 = vmul.f32 %v12019_v47, %v12087_v18  ;;  %v3758_v36 = vmul.f32 %v12019_v47, %v12090_v30  ;;  %v3709_v1 = vsel %vm1587_vm5, %v3707_v23, %v3708_v33  ;;  %v3713_v2 = vrot.slane %v3678_v51, 1 }
 0x41f   : >> { %v3714_v42 = vrot.slane %v3679_v32, 1  ;;  %v3759_v38 = vmul.f32 %v12019_v47, %v12093_v35  ;;  %v3712_v14 = vsel %vm1587_vm5, %v3710_v19, %v3711_v27  ;;  %v3716_v10 = vrot.slane %v3680_v24, 1 }
 0x420   : >> { %v3739_v40 = vadd.f32 %v3709_v1, %v3654_v60  ;;  %v3760_v61 = vmul.f32 %v12019_v47, %v12100_v29  ;;  %v3717_v50 = vrot.slane %v3681_v7, 1  ;;  %v3719_v63 = vrot.slane %v3682_v26, 1 }
 0x421   : >> { %v3715_v53 = vsel %vm1587_vm5, %v3713_v2, %v3714_v42  ;;  %v3740_v25 = vadd.f32 %v3712_v14, %v3655_v16  ;;  %v3720_v4 = vrot.slane %v3683_v21, 1  ;;  %v3761_v33 = vmul.f32 %v12019_v47, %v12103_v28 }
 0x422   : >> { %v3741_v39 = vadd.f32 %v3715_v53, %v3656_v22  ;;  %v3762_v23 = vmul.f32 %v12019_v47, %v12106_v58  ;;  %v3718_v27 = vsel %vm1587_vm5, %v3716_v10, %v3717_v50  ;;  %v3722_v19 = vrot.slane %v3684_v57, 1 }
 0x423   : >> { %v3723_v60 = vrot.slane %v3685_v41, 1  ;;  %v3763_v51 = vmul.f32 %v12019_v47, %v12113_v20  ;;  %v3721_v32 = vsel %vm1587_vm5, %v3719_v63, %v3720_v4  ;;  %v3725_v24 = vrot.slane %v3686_v37, 1 }
 0x424   : >> { %v3742_v7 = vadd.f32 %v3718_v27, %v3657_v3  ;;  %v3764_v53 = vmul.f32 %v12019_v47, %v12116_v55  ;;  %v3726_v16 = vrot.slane %v3687_v9, 1  ;;  %v3728_v22 = vrot.slane %v3688_v31, 1 }
 0x425   : >> { %v3724_v14 = vsel %vm1587_vm5, %v3722_v19, %v3723_v60  ;;  %v3743_v26 = vadd.f32 %v3721_v32, %v3658_v46  ;;  %v3729_v21 = vrot.slane %v3689_v12, 1  ;;  %v3765_v50 = vmul.f32 %v12019_v47, %v12119_v13 }
 0x426   : >> { %v3744_v1 = vadd.f32 %v3724_v14, %v3659_v49  ;;  %v3766_v10 = vmul.f32 %v12019_v47, %v12126_v5  ;;  %v3727_v4 = vsel %vm1587_vm5, %v3725_v24, %v3726_v16  ;;  %v3784_v63 = vrot.slane %v3751_v48, 2 }
 0x427   : >> { %v3785_v3 = vrot.slane %v3752_v56, 2  ;;  %v3828_v57 = vmul.f32 %v12023_v45, %v12058_v15  ;;  %v3730_v41 = vsel %vm1587_vm5, %v3728_v22, %v3729_v21  ;;  %v3745_v9 = vadd.f32 %v3727_v4, %v3660_v52 }
 0x428   : >> { %v3787_v31 = vrot.slane %v3753_v43, 2  ;;  %v3829_v12 = vmul.f32 %v12023_v45, %v12080_v8  ;;  %v3746_v46 = vadd.f32 %v3730_v41, %v3661_v59  ;;  %v3788_v37 = vrot.slane %v3754_v6, 2 }
 0x429   : >> { %v3786_v49 = vsel %vm1664_vm6, %v3784_v63, %v3785_v3  ;;  %v3790_v2 = vrot.slane %v3755_v62, 2  ;;  %v3791_v47 = vrot.slane %v3756_v44, 2  ;;  %v3793_v42 = vrot.slane %v3757_v17, 2  ;;  %v12185_v17 = vld [vmem:[%s12053_s8 + $0x80] sm:$0xff] }
 0x42a   : >> { %v3794_v48 = vrot.slane %v3758_v36, 2  ;;  %v3796_v56 = vrot.slane %v3759_v38, 2  ;;  %v3789_v27 = vsel %vm1664_vm6, %v3787_v31, %v3788_v37  ;;  %v3797_v19 = vrot.slane %v3760_v61, 2 }
 0x42b   : >> { %v3799_v60 = vrot.slane %v3761_v33, 2  ;;  %v3800_v32 = vrot.slane %v3762_v23, 2  ;;  %v3792_v52 = vsel %vm1664_vm6, %v3790_v2, %v3791_v47  ;;  %v3802_v24 = vrot.slane %v3763_v51, 2 }
 0x42c   : >> { %v3795_v43 = vsel %vm1664_vm6, %v3793_v42, %v3794_v48  ;;  %v3803_v59 = vrot.slane %v3764_v53, 2  ;;  %v3798_v14 = vsel %vm1664_vm6, %v3796_v56, %v3797_v19  ;;  %v3805_v62 = vrot.slane %v3765_v50, 2 }
 0x42d   : >> { %v3801_v6 = vsel %vm1664_vm6, %v3799_v60, %v3800_v32  ;;  %v3806_v44 = vrot.slane %v3766_v10, 2  ;;  %v3816_v36 = vadd.f32 %v3786_v49, %v3739_v40  ;;  %v3817_v61 = vadd.f32 %v3789_v27, %v3740_v25 }
 0x42e   : >> { %v3804_v38 = vsel %vm1664_vm6, %v3802_v24, %v3803_v59  ;;  %v3818_v33 = vadd.f32 %v3792_v52, %v3741_v39  ;;  %v3819_v16 = vadd.f32 %v3795_v43, %v3742_v7  ;;  %v3820_v22 = vadd.f32 %v3798_v14, %v3743_v26 }
 0x42f   : >> { %v3807_v23 = vsel %vm1664_vm6, %v3805_v62, %v3806_v44  ;;  %v3821_v21 = vadd.f32 %v3801_v6, %v3744_v1  ;;  %v3822_v51 = vadd.f32 %v3804_v38, %v3745_v9  ;;  %v3830_v4 = vmul.f32 %v12023_v45, %v12087_v18 }
 0x430   : >> { %v3823_v53 = vadd.f32 %v3807_v23, %v3746_v46  ;;  %v3831_v50 = vmul.f32 %v12023_v45, %v12093_v35  ;;  %v3832_v10 = vmul.f32 %v12023_v45, %v12103_v28  ;;  %v3833_v39 = vmul.f32 %v12023_v45, %v12113_v20  ;;  %v12202_v46 = vld [vmem:[%s12053_s8 + $0x88] sm:$0x3] }
 0x431   : >> { %v3834_v25 = vmul.f32 %v12023_v45, %v12119_v13  ;;  %v3835_v40 = vmul.f32 %v12023_v45, %v12185_v17  ;;  %v3836_v7 = vadd.f32 %v3828_v57, %v3816_v36  ;;  %v3837_v26 = vadd.f32 %v3829_v12, %v3817_v61 }
 0x432   : >> { %v3838_v1 = vadd.f32 %v3830_v4, %v3818_v33  ;;  %v3839_v63 = vadd.f32 %v3831_v50, %v3819_v16  ;;  %v3840_v3 = vadd.f32 %v3832_v10, %v3820_v22  ;;  %v3841_v41 = vadd.f32 %v3833_v39, %v3821_v21 }
 0x433   : >> { %v3842_v9 = vadd.f32 %v3834_v25, %v3822_v51  ;;  %v3843_v31 = vadd.f32 %v3835_v40, %v3823_v53  ;;  %v3848_v49 = vmul.f32 %v12027_v54, %v12058_v15  ;;  %v3849_v37 = vmul.f32 %v12027_v54, %v12077_v0 }
 0x434   : >> { %v3850_v2 = vmul.f32 %v12027_v54, %v12080_v8  ;;  %v3851_v45 = vmul.f32 %v12027_v54, %v12083_v34  ;;  %v3852_v57 = vmul.f32 %v12027_v54, %v12087_v18  ;;  %v3853_v12 = vmul.f32 %v12027_v54, %v12090_v30 }
 0x435   : >> { %v3854_v47 = vmul.f32 %v12027_v54, %v12093_v35  ;;  %v3855_v42 = vmul.f32 %v12027_v54, %v12100_v29  ;;  %v3856_v48 = vmul.f32 %v12027_v54, %v12103_v28  ;;  %v3857_v56 = vmul.f32 %v12027_v54, %v12106_v58 }
 0x436   : >> { %v3858_v27 = vmul.f32 %v12027_v54, %v12113_v20  ;;  %v3859_v19 = vmul.f32 %v12027_v54, %v12116_v55  ;;  %v3860_v60 = vmul.f32 %v12027_v54, %v12119_v13  ;;  %v3861_v32 = vmul.f32 %v12027_v54, %v12126_v5 }
 0x437   : >> { %v3862_v52 = vmul.f32 %v12027_v54, %v12185_v17  ;;  %v3863_v43 = vmul.f32 %v12027_v54, %v12202_v46  ;;  %v3880_v24 = vrot.slane %v3848_v49, 1  ;;  %v3881_v59 = vrot.slane %v3849_v37, 1 }
 0x438   : >> { %v3883_v14 = vrot.slane %v3850_v2, 1  ;;  %v3884_v6 = vrot.slane %v3851_v45, 1  ;;  %v3886_v62 = vrot.slane %v3852_v57, 1  ;;  %v3887_v44 = vrot.slane %v3853_v12, 1 }
 0x439   : >> { %v3889_v38 = vrot.slane %v3854_v47, 1  ;;  %v3890_v36 = vrot.slane %v3855_v42, 1  ;;  %v3882_v61 = vsel %vm1587_vm5, %v3880_v24, %v3881_v59  ;;  %v3892_v23 = vrot.slane %v3856_v48, 1 }
 0x43a   : >> { %v3885_v33 = vsel %vm1587_vm5, %v3883_v14, %v3884_v6  ;;  %v3893_v16 = vrot.slane %v3857_v56, 1  ;;  %v3888_v22 = vsel %vm1587_vm5, %v3886_v62, %v3887_v44  ;;  %v3895_v51 = vrot.slane %v3858_v27, 1 }
 0x43b   : >> { %v3891_v21 = vsel %vm1587_vm5, %v3889_v38, %v3890_v36  ;;  %v3896_v54 = vrot.slane %v3859_v19, 1  ;;  %v3898_v4 = vrot.slane %v3860_v60, 1  ;;  %v3899_v50 = vrot.slane %v3861_v32, 1 }
 0x43c   : >> { %v3894_v53 = vsel %vm1587_vm5, %v3892_v23, %v3893_v16  ;;  %v3901_v10 = vrot.slane %v3862_v52, 1  ;;  %v3902_v25 = vrot.slane %v3863_v43, 1  ;;  %v3912_v40 = vadd.f32 %v3882_v61, %v3836_v7 }
 0x43d   : >> { %v3897_v39 = vsel %vm1587_vm5, %v3895_v51, %v3896_v54  ;;  %v3913_v49 = vadd.f32 %v3885_v33, %v3837_v26  ;;  %v3900_v37 = vsel %vm1587_vm5, %v3898_v4, %v3899_v50  ;;  %v3914_v2 = vadd.f32 %v3888_v22, %v3838_v1 }
 0x43e   : >> { %v3915_v45 = vadd.f32 %v3891_v21, %v3839_v63  ;;  %v3916_v57 = vadd.f32 %v3894_v53, %v3840_v3  ;;  %v3903_v12 = vsel %vm1587_vm5, %v3901_v10, %v3902_v25  ;;  %v3917_v47 = vadd.f32 %v3897_v39, %v3841_v41 }
 0x43f   : >> { %v3918_v42 = vadd.f32 %v3900_v37, %v3842_v9  ;;  %v3924_v48 = vmul.f32 %v12031_v11, %v12058_v15  ;;  %v3919_v56 = vadd.f32 %v3903_v12, %v3843_v31  ;;  %v3925_v27 = vmul.f32 %v12031_v11, %v12077_v0  ;;  %v12283_v37 = vld [vmem:[%s12053_s8 + $0x90] sm:$0xff] }
 0x440   : >> { %v3926_v7 = vmul.f32 %v12031_v11, %v12080_v8  ;;  %v3927_v26 = vmul.f32 %v12031_v11, %v12083_v34  ;;  %v3928_v1 = vmul.f32 %v12031_v11, %v12087_v18  ;;  %v3929_v63 = vmul.f32 %v12031_v11, %v12090_v30 }
 0x441   : >> { %v3930_v3 = vmul.f32 %v12031_v11, %v12093_v35  ;;  %v3931_v15 = vmul.f32 %v12031_v11, %v12100_v29  ;;  %v3932_v0 = vmul.f32 %v12031_v11, %v12103_v28  ;;  %v3933_v41 = vmul.f32 %v12031_v11, %v12106_v58 }
 0x442   : >> { %v3934_v9 = vmul.f32 %v12031_v11, %v12113_v20  ;;  %v3935_v31 = vmul.f32 %v12031_v11, %v12116_v55  ;;  %v3936_v19 = vmul.f32 %v12031_v11, %v12119_v13  ;;  %v3937_v60 = vmul.f32 %v12031_v11, %v12126_v5 }
 0x443   : >> { %v3938_v32 = vmul.f32 %v12031_v11, %v12185_v17  ;;  %v3939_v52 = vmul.f32 %v12031_v11, %v12202_v46  ;;  %v3956_v43 = vrot.slane %v3924_v48, 2  ;;  %v3957_v24 = vrot.slane %v3925_v27, 2 }
 0x444   : >> { %v3959_v59 = vrot.slane %v3926_v7, 2  ;;  %v3960_v14 = vrot.slane %v3927_v26, 2  ;;  %v3962_v6 = vrot.slane %v3928_v1, 2  ;;  %v3963_v62 = vrot.slane %v3929_v63, 2 }
 0x445   : >> { %v3965_v44 = vrot.slane %v3930_v3, 2  ;;  %v3966_v38 = vrot.slane %v3931_v15, 2  ;;  %v3958_v36 = vsel %vm1664_vm6, %v3956_v43, %v3957_v24  ;;  %v3968_v33 = vrot.slane %v3932_v0, 2  ;;  %v15194_v3 = vld [vmem:[#allocation92_spill] sm:$0xff]  ;;  %v15195_v24 = vld [vmem:[#allocation93_spill] sm:$0xff] }
 0x446   : >> { %v3961_v61 = vsel %vm1664_vm6, %v3959_v59, %v3960_v14  ;;  %v3969_v23 = vrot.slane %v3933_v41, 2  ;;  %v3964_v16 = vsel %vm1664_vm6, %v3962_v6, %v3963_v62  ;;  %v3971_v11 = vrot.slane %v3934_v9, 2  ;;  %v12304_v43 = vld [vmem:[%s12053_s8 + $0x98] sm:$0x3] }
 0x447   : >> { %v3967_v22 = vsel %vm1664_vm6, %v3965_v44, %v3966_v38  ;;  %v3972_v21 = vrot.slane %v3935_v31, 2  ;;  %v3974_v54 = vrot.slane %v3936_v19, 2  ;;  %v3975_v53 = vrot.slane %v3937_v60, 2 }
 0x448   : >> { %v3970_v51 = vsel %vm1664_vm6, %v3968_v33, %v3969_v23  ;;  %v3977_v4 = vrot.slane %v3938_v32, 2  ;;  %v3978_v10 = vrot.slane %v3939_v52, 2  ;;  %v3988_v39 = vadd.f32 %v3958_v36, %v3912_v40 }
 0x449   : >> { %v3973_v50 = vsel %vm1664_vm6, %v3971_v11, %v3972_v21  ;;  %v3989_v25 = vadd.f32 %v3961_v61, %v3913_v49  ;;  %v3976_v12 = vsel %vm1664_vm6, %v3974_v54, %v3975_v53  ;;  %v3990_v48 = vadd.f32 %v3964_v16, %v3914_v2 }
 0x44a   : >> { %v3991_v27 = vadd.f32 %v3967_v22, %v3915_v45  ;;  %v3992_v7 = vadd.f32 %v3970_v51, %v3916_v57  ;;  %v3979_v26 = vsel %vm1664_vm6, %v3977_v4, %v3978_v10  ;;  %v3993_v1 = vadd.f32 %v3973_v50, %v3917_v47 }
 0x44b   : >> { %v3994_v63 = vadd.f32 %v3976_v12, %v3918_v42  ;;  %v4000_v15 = vmul.f32 %v15194_v3, %v12080_v8  ;;  %v3995_v0 = vadd.f32 %v3979_v26, %v3919_v56  ;;  %v4001_v40 = vmul.f32 %v15194_v3, %v12087_v18 }
 0x44c   : >> { %v4002_v49 = vmul.f32 %v15194_v3, %v12093_v35  ;;  %v4003_v2 = vmul.f32 %v15194_v3, %v12103_v28  ;;  %v4004_v45 = vmul.f32 %v15194_v3, %v12113_v20  ;;  %v4005_v57 = vmul.f32 %v15194_v3, %v12119_v13 }
 0x44d   : >> { %v4006_v47 = vmul.f32 %v15194_v3, %v12185_v17  ;;  %v4007_v42 = vmul.f32 %v15194_v3, %v12283_v37  ;;  %v4008_v56 = vadd.f32 %v4000_v15, %v3988_v39  ;;  %v4009_v41 = vadd.f32 %v4001_v40, %v3989_v25 }
 0x44e   : >> { %v4010_v9 = vadd.f32 %v4002_v49, %v3990_v48  ;;  %v4011_v31 = vadd.f32 %v4003_v2, %v3991_v27  ;;  %v4012_v19 = vadd.f32 %v4004_v45, %v3992_v7  ;;  %v4013_v60 = vadd.f32 %v4005_v57, %v3993_v1 }
 0x44f   : >> { %v4014_v32 = vadd.f32 %v4006_v47, %v3994_v63  ;;  %v4015_v52 = vadd.f32 %v4007_v42, %v3995_v0  ;;  %v4020_v59 = vmul.f32 %v15195_v24, %v12080_v8  ;;  %v4021_v14 = vmul.f32 %v15195_v24, %v12083_v34 }
 0x450   : >> { %v4022_v6 = vmul.f32 %v15195_v24, %v12087_v18  ;;  %v4023_v62 = vmul.f32 %v15195_v24, %v12090_v30  ;;  %v4024_v44 = vmul.f32 %v15195_v24, %v12093_v35  ;;  %v4025_v38 = vmul.f32 %v15195_v24, %v12100_v29 }
 0x451   : >> { %v4026_v36 = vmul.f32 %v15195_v24, %v12103_v28  ;;  %v4027_v61 = vmul.f32 %v15195_v24, %v12106_v58  ;;  %v4028_v33 = vmul.f32 %v15195_v24, %v12113_v20  ;;  %v4029_v23 = vmul.f32 %v15195_v24, %v12116_v55 }
 0x452   : >> { %v4030_v16 = vmul.f32 %v15195_v24, %v12119_v13  ;;  %v4031_v22 = vmul.f32 %v15195_v24, %v12126_v5  ;;  %v4032_v11 = vmul.f32 %v15195_v24, %v12185_v17  ;;  %v4033_v21 = vmul.f32 %v15195_v24, %v12202_v46 }
 0x453   : >> { %v4034_v51 = vmul.f32 %v15195_v24, %v12283_v37  ;;  %v4035_v54 = vmul.f32 %v15195_v24, %v12304_v43  ;;  %v4052_v53 = vrot.slane %v4020_v59, 1  ;;  %v4053_v4 = vrot.slane %v4021_v14, 1 }
 0x454   : >> { %v4055_v50 = vrot.slane %v4022_v6, 1  ;;  %v4056_v10 = vrot.slane %v4023_v62, 1  ;;  %v4058_v39 = vrot.slane %v4024_v44, 1  ;;  %v4059_v25 = vrot.slane %v4025_v38, 1 }
 0x455   : >> { %v4061_v12 = vrot.slane %v4026_v36, 1  ;;  %v4062_v48 = vrot.slane %v4027_v61, 1  ;;  %v4054_v27 = vsel %vm1587_vm5, %v4052_v53, %v4053_v4  ;;  %v4064_v26 = vrot.slane %v4028_v33, 1  ;;  %v15196_v61 = vld [vmem:[#allocation94_spill] sm:$0xff]  ;;  %v12383_v4 = vld [vmem:[%s12053_s8 + $0xa0] sm:$0xff] }
 0x456   : >> { %v4057_v7 = vsel %vm1587_vm5, %v4055_v50, %v4056_v10  ;;  %v4065_v1 = vrot.slane %v4029_v23, 1  ;;  %v4060_v63 = vsel %vm1587_vm5, %v4058_v39, %v4059_v25  ;;  %v4067_v15 = vrot.slane %v4030_v16, 1  ;;  %v12386_v50 = vld [vmem:[%s12053_s8 + $0xb0] sm:$0xff] }
 0x457   : >> { %v4063_v3 = vsel %vm1587_vm5, %v4061_v12, %v4062_v48  ;;  %v4068_v0 = vrot.slane %v4031_v22, 1  ;;  %v4070_v49 = vrot.slane %v4032_v11, 1  ;;  %v4071_v2 = vrot.slane %v4033_v21, 1  ;;  %v12390_v48 = vld [vmem:[%s12053_s8 + $0xc0] sm:$0xff] }
 0x458   : >> { %v4066_v40 = vsel %vm1587_vm5, %v4064_v26, %v4065_v1  ;;  %v4073_v45 = vrot.slane %v4034_v51, 1  ;;  %v4074_v47 = vrot.slane %v4035_v54, 1  ;;  %v4084_v42 = vadd.f32 %v4054_v27, %v4008_v56  ;;  %v12393_v27 = vld [vmem:[%s12053_s8 + $0xd0] sm:$0xff] }
 0x459   : >> { %v4069_v57 = vsel %vm1587_vm5, %v4067_v15, %v4068_v0  ;;  %v4085_v24 = vadd.f32 %v4057_v7, %v4009_v41  ;;  %v4072_v59 = vsel %vm1587_vm5, %v4070_v49, %v4071_v2  ;;  %v4086_v14 = vadd.f32 %v4060_v63, %v4010_v9  ;;  %v12396_v7 = vld [vmem:[%s12053_s8 + $0xe0] sm:$0xff]  ;;  %v12400_v15 = vld [vmem:[%s12053_s8 + $0xf0] sm:$0xff] }
 0x45a   : >> { %v4087_v6 = vadd.f32 %v4063_v3, %v4011_v31  ;;  %v4088_v62 = vadd.f32 %v4066_v40, %v4012_v19  ;;  %v4075_v44 = vsel %vm1587_vm5, %v4073_v45, %v4074_v47  ;;  %v4089_v38 = vadd.f32 %v4069_v57, %v4013_v60  ;;  %v12403_v0 = vld [vmem:[%s12053_s8 + $0x100] sm:$0xff]  ;;  %v12406_v40 = vld [vmem:[%s12053_s8 + $0x110] sm:$0xff] }
 0x45b   : >> { %v4090_v36 = vadd.f32 %v4072_v59, %v4014_v32  ;;  %v4096_v33 = vmul.f32 %v15196_v61, %v12080_v8  ;;  %v4091_v23 = vadd.f32 %v4075_v44, %v4015_v52  ;;  %v4097_v16 = vmul.f32 %v15196_v61, %v12083_v34 }
 0x45c   : >> { %v4098_v56 = vmul.f32 %v15196_v61, %v12087_v18  ;;  %v4099_v41 = vmul.f32 %v15196_v61, %v12090_v30  ;;  %v4100_v9 = vmul.f32 %v15196_v61, %v12093_v35  ;;  %v4101_v31 = vmul.f32 %v15196_v61, %v12100_v29 }
 0x45d   : >> { %v4102_v19 = vmul.f32 %v15196_v61, %v12103_v28  ;;  %v4103_v8 = vmul.f32 %v15196_v61, %v12106_v58  ;;  %v4104_v34 = vmul.f32 %v15196_v61, %v12113_v20  ;;  %v4105_v18 = vmul.f32 %v15196_v61, %v12116_v55 }
 0x45e   : >> { %v4106_v30 = vmul.f32 %v15196_v61, %v12119_v13  ;;  %v4107_v35 = vmul.f32 %v15196_v61, %v12126_v5  ;;  %v4108_v29 = vmul.f32 %v15196_v61, %v12185_v17  ;;  %v4109_v28 = vmul.f32 %v15196_v61, %v12202_v46 }
 0x45f   : >> { %v4110_v58 = vmul.f32 %v15196_v61, %v12283_v37  ;;  %v4111_v20 = vmul.f32 %v15196_v61, %v12304_v43  ;;  %v4128_v60 = vrot.slane %v4096_v33, 2  ;;  %v4129_v55 = vrot.slane %v4097_v16, 2  ;;  %v12422_v16 = vld [vmem:[%s12053_s8 + $0xb8] sm:$0x3] }
 0x460   : >> { %v4131_v13 = vrot.slane %v4098_v56, 2  ;;  %v4132_v32 = vrot.slane %v4099_v41, 2  ;;  %v4134_v52 = vrot.slane %v4100_v9, 2  ;;  %v4135_v5 = vrot.slane %v4101_v31, 2  ;;  %v12433_v41 = vld [vmem:[%s12053_s8 + $0xc8] sm:$0x3] }
 0x461   : >> { %v4137_v22 = vrot.slane %v4102_v19, 2  ;;  %v4138_v17 = vrot.slane %v4103_v8, 2  ;;  %v4130_v46 = vsel %vm1664_vm6, %v4128_v60, %v4129_v55  ;;  %v4140_v11 = vrot.slane %v4104_v34, 2  ;;  %v12436_v9 = vld [vmem:[%s12053_s8 + $0xd8] sm:$0x3] }
 0x462   : >> { %v4133_v37 = vsel %vm1664_vm6, %v4131_v13, %v4132_v32  ;;  %v4141_v21 = vrot.slane %v4105_v18, 2  ;;  %v4136_v43 = vsel %vm1664_vm6, %v4134_v52, %v4135_v5  ;;  %v4143_v54 = vrot.slane %v4106_v30, 2  ;;  %v12439_v18 = vld [vmem:[%s12053_s8 + $0xe8] sm:$0x3]  ;;  %v12442_v30 = vld [vmem:[%s12053_s8 + $0xf8] sm:$0x3] }
 0x463   : >> { %v4139_v51 = vsel %vm1664_vm6, %v4137_v22, %v4138_v17  ;;  %v4144_v53 = vrot.slane %v4107_v35, 2  ;;  %v4146_v39 = vrot.slane %v4108_v29, 2  ;;  %v4147_v25 = vrot.slane %v4109_v28, 2  ;;  %v12448_v60 = vld [vmem:[%s12053_s8 + $0x118] sm:$0x3] }
 0x464   : >> { %v4142_v10 = vsel %vm1664_vm6, %v4140_v11, %v4141_v21  ;;  %v4149_v12 = vrot.slane %v4110_v58, 2  ;;  %v4150_v1 = vrot.slane %v4111_v20, 2  ;;  %v4160_v63 = vadd.f32 %v4130_v46, %v4084_v42  ;;  %v12445_v20 = vld [vmem:[%s12053_s8 + $0x108] sm:$0x3]  ;;  %v15198_v55 = vld [vmem:[#allocation96_spill] sm:$0xff] }
 0x465   : >> { %v4145_v26 = vsel %vm1664_vm6, %v4143_v54, %v4144_v53  ;;  %v4161_v3 = vadd.f32 %v4133_v37, %v4085_v24  ;;  %v4148_v49 = vsel %vm1664_vm6, %v4146_v39, %v4147_v25  ;;  %v4162_v2 = vadd.f32 %v4136_v43, %v4086_v14  ;;  %v15197_v24 = vld [vmem:[#allocation95_spill] sm:$0xff] }
 0x466   : >> { %v4163_v45 = vadd.f32 %v4139_v51, %v4087_v6  ;;  %v4164_v57 = vadd.f32 %v4142_v10, %v4088_v62  ;;  %v4151_v47 = vsel %vm1664_vm6, %v4149_v12, %v4150_v1  ;;  %v4165_v59 = vadd.f32 %v4145_v26, %v4089_v38  ;;  %v12419_v62 = vld [vmem:[%s12053_s8 + $0xa8] sm:$0x3] }
 0x467   : >> { %v4166_v42 = vadd.f32 %v4148_v49, %v4090_v36  ;;  %v4172_v44 = vmul.f32 %v12383_v4, %v15197_v24  ;;  %v4167_v61 = vadd.f32 %v4151_v47, %v4091_v23  ;;  %v4173_v33 = vmul.f32 %v12386_v50, %v15197_v24 }
 0x468   : >> { %v4174_v14 = vmul.f32 %v12390_v48, %v15197_v24  ;;  %v4175_v6 = vmul.f32 %v12393_v27, %v15197_v24  ;;  %v4176_v38 = vmul.f32 %v12396_v7, %v15197_v24  ;;  %v4177_v36 = vmul.f32 %v12400_v15, %v15197_v24 }
 0x469   : >> { %v4178_v23 = vmul.f32 %v12403_v0, %v15197_v24  ;;  %v4179_v56 = vmul.f32 %v12406_v40, %v15197_v24  ;;  %v4180_v31 = vadd.f32 %v4172_v44, %v4160_v63  ;;  %v4181_v19 = vadd.f32 %v4173_v33, %v4161_v3 }
 0x46a   : >> { %v4182_v8 = vadd.f32 %v4174_v14, %v4162_v2  ;;  %v4183_v34 = vadd.f32 %v4175_v6, %v4163_v45  ;;  %v4184_v35 = vadd.f32 %v4176_v38, %v4164_v57  ;;  %v4185_v29 = vadd.f32 %v4177_v36, %v4165_v59 }
 0x46b   : >> { %v4186_v28 = vadd.f32 %v4178_v23, %v4166_v42  ;;  %v4187_v58 = vadd.f32 %v4179_v56, %v4167_v61  ;;  %v4192_v13 = vmul.f32 %v12383_v4, %v15198_v55  ;;  %v4193_v32 = vmul.f32 %v12419_v62, %v15198_v55 }
 0x46c   : >> { %v4194_v52 = vmul.f32 %v12386_v50, %v15198_v55  ;;  %v4195_v5 = vmul.f32 %v12422_v16, %v15198_v55  ;;  %v4196_v22 = vmul.f32 %v12390_v48, %v15198_v55  ;;  %v4197_v17 = vmul.f32 %v12433_v41, %v15198_v55 }
 0x46d   : >> { %v4198_v46 = vmul.f32 %v12393_v27, %v15198_v55  ;;  %v4199_v37 = vmul.f32 %v12436_v9, %v15198_v55  ;;  %v4200_v11 = vmul.f32 %v12396_v7, %v15198_v55  ;;  %v4201_v21 = vmul.f32 %v12439_v18, %v15198_v55 }
 0x46e   : >> { %v4202_v43 = vmul.f32 %v12400_v15, %v15198_v55  ;;  %v4203_v51 = vmul.f32 %v12442_v30, %v15198_v55  ;;  %v4204_v54 = vmul.f32 %v12403_v0, %v15198_v55  ;;  %v4205_v53 = vmul.f32 %v12445_v20, %v15198_v55 }
 0x46f   : >> { %v4206_v10 = vmul.f32 %v12406_v40, %v15198_v55  ;;  %v4207_v39 = vmul.f32 %v12448_v60, %v15198_v55  ;;  %v4224_v25 = vrot.slane %v4192_v13, 1  ;;  %v4225_v12 = vrot.slane %v4193_v32, 1 }
 0x470   : >> { %v4227_v26 = vrot.slane %v4194_v52, 1  ;;  %v4228_v1 = vrot.slane %v4195_v5, 1  ;;  %v4230_v63 = vrot.slane %v4196_v22, 1  ;;  %v4231_v3 = vrot.slane %v4197_v17, 1 }
 0x471   : >> { %v4233_v49 = vrot.slane %v4198_v46, 1  ;;  %v4234_v2 = vrot.slane %v4199_v37, 1  ;;  %v4226_v45 = vsel %vm1587_vm5, %v4224_v25, %v4225_v12  ;;  %v4236_v47 = vrot.slane %v4200_v11, 1  ;;  %v15199_v37 = vld [vmem:[#allocation97_spill] sm:$0xff] }
 0x472   : >> { %v4229_v57 = vsel %vm1587_vm5, %v4227_v26, %v4228_v1  ;;  %v4237_v59 = vrot.slane %v4201_v21, 1  ;;  %v4232_v42 = vsel %vm1587_vm5, %v4230_v63, %v4231_v3  ;;  %v4239_v44 = vrot.slane %v4202_v43, 1 }
 0x473   : >> { %v4235_v24 = vsel %vm1587_vm5, %v4233_v49, %v4234_v2  ;;  %v4240_v61 = vrot.slane %v4203_v51, 1  ;;  %v4242_v14 = vrot.slane %v4204_v54, 1  ;;  %v4243_v6 = vrot.slane %v4205_v53, 1 }
 0x474   : >> { %v4238_v33 = vsel %vm1587_vm5, %v4236_v47, %v4237_v59  ;;  %v4245_v38 = vrot.slane %v4206_v10, 1  ;;  %v4246_v23 = vrot.slane %v4207_v39, 1  ;;  %v4256_v56 = vadd.f32 %v4226_v45, %v4180_v31 }
 0x475   : >> { %v4241_v36 = vsel %vm1587_vm5, %v4239_v44, %v4240_v61  ;;  %v4257_v55 = vadd.f32 %v4229_v57, %v4181_v19  ;;  %v4244_v13 = vsel %vm1587_vm5, %v4242_v14, %v4243_v6  ;;  %v4258_v32 = vadd.f32 %v4232_v42, %v4182_v8 }
 0x476   : >> { %v4259_v52 = vadd.f32 %v4235_v24, %v4183_v34  ;;  %v4260_v5 = vadd.f32 %v4238_v33, %v4184_v35  ;;  %v4247_v22 = vsel %vm1587_vm5, %v4245_v38, %v4246_v23  ;;  %v4261_v17 = vadd.f32 %v4241_v36, %v4185_v29 }
 0x477   : >> { %v4262_v46 = vadd.f32 %v4244_v13, %v4186_v28  ;;  %v4268_v11 = vmul.f32 %v12383_v4, %v15199_v37  ;;  %v4263_v21 = vadd.f32 %v4247_v22, %v4187_v58  ;;  %v4269_v43 = vmul.f32 %v12419_v62, %v15199_v37  ;;  %v12529_v22 = vld [vmem:[%s12053_s8 + $0x120] sm:$0xff] }
 0x478   : >> { %v4270_v31 = vmul.f32 %v12386_v50, %v15199_v37  ;;  %v4271_v19 = vmul.f32 %v12422_v16, %v15199_v37  ;;  %v4272_v8 = vmul.f32 %v12390_v48, %v15199_v37  ;;  %v4273_v34 = vmul.f32 %v12433_v41, %v15199_v37 }
 0x479   : >> { %v4274_v35 = vmul.f32 %v12393_v27, %v15199_v37  ;;  %v4275_v4 = vmul.f32 %v12436_v9, %v15199_v37  ;;  %v4276_v62 = vmul.f32 %v12396_v7, %v15199_v37  ;;  %v4277_v29 = vmul.f32 %v12439_v18, %v15199_v37 }
 0x47a   : >> { %v4278_v28 = vmul.f32 %v12400_v15, %v15199_v37  ;;  %v4279_v58 = vmul.f32 %v12442_v30, %v15199_v37  ;;  %v4280_v51 = vmul.f32 %v12403_v0, %v15199_v37  ;;  %v4281_v54 = vmul.f32 %v12445_v20, %v15199_v37 }
 0x47b   : >> { %v4282_v53 = vmul.f32 %v12406_v40, %v15199_v37  ;;  %v4283_v10 = vmul.f32 %v12448_v60, %v15199_v37  ;;  %v4300_v39 = vrot.slane %v4268_v11, 2  ;;  %v4301_v25 = vrot.slane %v4269_v43, 2 }
 0x47c   : >> { %v4303_v12 = vrot.slane %v4270_v31, 2  ;;  %v4304_v26 = vrot.slane %v4271_v19, 2  ;;  %v4306_v1 = vrot.slane %v4272_v8, 2  ;;  %v4307_v63 = vrot.slane %v4273_v34, 2 }
 0x47d   : >> { %v4309_v3 = vrot.slane %v4274_v35, 2  ;;  %v4310_v49 = vrot.slane %v4275_v4, 2  ;;  %v4302_v2 = vsel %vm1664_vm6, %v4300_v39, %v4301_v25  ;;  %v4312_v57 = vrot.slane %v4276_v62, 2  ;;  %v15200_v35 = vld [vmem:[#allocation98_spill] sm:$0xff]  ;;  %v15201_v25 = vld [vmem:[#allocation99_spill] sm:$0xff] }
 0x47e   : >> { %v4305_v45 = vsel %vm1664_vm6, %v4303_v12, %v4304_v26  ;;  %v4313_v47 = vrot.slane %v4277_v29, 2  ;;  %v4308_v59 = vsel %vm1664_vm6, %v4306_v1, %v4307_v63  ;;  %v4315_v24 = vrot.slane %v4278_v28, 2  ;;  %v12550_v39 = vld [vmem:[%s12053_s8 + $0x128] sm:$0x3] }
 0x47f   : >> { %v4311_v42 = vsel %vm1664_vm6, %v4309_v3, %v4310_v49  ;;  %v4316_v44 = vrot.slane %v4279_v58, 2  ;;  %v4318_v33 = vrot.slane %v4280_v51, 2  ;;  %v4319_v14 = vrot.slane %v4281_v54, 2 }
 0x480   : >> { %v4314_v61 = vsel %vm1664_vm6, %v4312_v57, %v4313_v47  ;;  %v4321_v6 = vrot.slane %v4282_v53, 2  ;;  %v4322_v36 = vrot.slane %v4283_v10, 2  ;;  %v4332_v23 = vadd.f32 %v4302_v2, %v4256_v56 }
 0x481   : >> { %v4317_v38 = vsel %vm1664_vm6, %v4315_v24, %v4316_v44  ;;  %v4333_v13 = vadd.f32 %v4305_v45, %v4257_v55  ;;  %v4320_v37 = vsel %vm1664_vm6, %v4318_v33, %v4319_v14  ;;  %v4334_v11 = vadd.f32 %v4308_v59, %v4258_v32 }
 0x482   : >> { %v4335_v43 = vadd.f32 %v4311_v42, %v4259_v52  ;;  %v4336_v31 = vadd.f32 %v4314_v61, %v4260_v5  ;;  %v4323_v19 = vsel %vm1664_vm6, %v4321_v6, %v4322_v36  ;;  %v4337_v8 = vadd.f32 %v4317_v38, %v4261_v17 }
 0x483   : >> { %v4338_v34 = vadd.f32 %v4320_v37, %v4262_v46  ;;  %v4344_v4 = vmul.f32 %v12386_v50, %v15200_v35  ;;  %v4339_v62 = vadd.f32 %v4323_v19, %v4263_v21  ;;  %v4345_v56 = vmul.f32 %v12390_v48, %v15200_v35 }
 0x484   : >> { %v4346_v55 = vmul.f32 %v12393_v27, %v15200_v35  ;;  %v4347_v32 = vmul.f32 %v12396_v7, %v15200_v35  ;;  %v4348_v52 = vmul.f32 %v12400_v15, %v15200_v35  ;;  %v4349_v5 = vmul.f32 %v12403_v0, %v15200_v35 }
 0x485   : >> { %v4350_v17 = vmul.f32 %v12406_v40, %v15200_v35  ;;  %v4351_v46 = vmul.f32 %v12529_v22, %v15200_v35  ;;  %v4352_v21 = vadd.f32 %v4344_v4, %v4332_v23  ;;  %v4353_v29 = vadd.f32 %v4345_v56, %v4333_v13 }
 0x486   : >> { %v4354_v28 = vadd.f32 %v4346_v55, %v4334_v11  ;;  %v4355_v58 = vadd.f32 %v4347_v32, %v4335_v43  ;;  %v4356_v51 = vadd.f32 %v4348_v52, %v4336_v31  ;;  %v4357_v54 = vadd.f32 %v4349_v5, %v4337_v8 }
 0x487   : >> { %v4358_v53 = vadd.f32 %v4350_v17, %v4338_v34  ;;  %v4359_v10 = vadd.f32 %v4351_v46, %v4339_v62  ;;  %v4364_v12 = vmul.f32 %v12386_v50, %v15201_v25  ;;  %v4365_v26 = vmul.f32 %v12422_v16, %v15201_v25 }
 0x488   : >> { %v4366_v1 = vmul.f32 %v12390_v48, %v15201_v25  ;;  %v4367_v63 = vmul.f32 %v12433_v41, %v15201_v25  ;;  %v4368_v3 = vmul.f32 %v12393_v27, %v15201_v25  ;;  %v4369_v49 = vmul.f32 %v12436_v9, %v15201_v25 }
 0x489   : >> { %v4370_v2 = vmul.f32 %v12396_v7, %v15201_v25  ;;  %v4371_v45 = vmul.f32 %v12439_v18, %v15201_v25  ;;  %v4372_v57 = vmul.f32 %v12400_v15, %v15201_v25  ;;  %v4373_v47 = vmul.f32 %v12442_v30, %v15201_v25 }
 0x48a   : >> { %v4374_v59 = vmul.f32 %v12403_v0, %v15201_v25  ;;  %v4375_v42 = vmul.f32 %v12445_v20, %v15201_v25  ;;  %v4376_v24 = vmul.f32 %v12406_v40, %v15201_v25  ;;  %v4377_v44 = vmul.f32 %v12448_v60, %v15201_v25 }
 0x48b   : >> { %v4378_v61 = vmul.f32 %v12529_v22, %v15201_v25  ;;  %v4379_v33 = vmul.f32 %v12550_v39, %v15201_v25  ;;  %v4396_v14 = vrot.slane %v4364_v12, 1  ;;  %v4397_v6 = vrot.slane %v4365_v26, 1 }
 0x48c   : >> { %v4399_v38 = vrot.slane %v4366_v1, 1  ;;  %v4400_v36 = vrot.slane %v4367_v63, 1  ;;  %v4402_v23 = vrot.slane %v4368_v3, 1  ;;  %v4403_v13 = vrot.slane %v4369_v49, 1 }
 0x48d   : >> { %v4405_v37 = vrot.slane %v4370_v2, 1  ;;  %v4406_v11 = vrot.slane %v4371_v45, 1  ;;  %v4398_v43 = vsel %vm1587_vm5, %v4396_v14, %v4397_v6  ;;  %v4408_v19 = vrot.slane %v4372_v57, 1  ;;  %v15202_v45 = vld [vmem:[#allocation100_spill] sm:$0xff] }
 0x48e   : >> { %v4401_v31 = vsel %vm1587_vm5, %v4399_v38, %v4400_v36  ;;  %v4409_v8 = vrot.slane %v4373_v47, 1  ;;  %v4404_v34 = vsel %vm1587_vm5, %v4402_v23, %v4403_v13  ;;  %v4411_v4 = vrot.slane %v4374_v59, 1 }
 0x48f   : >> { %v4407_v35 = vsel %vm1587_vm5, %v4405_v37, %v4406_v11  ;;  %v4412_v62 = vrot.slane %v4375_v42, 1  ;;  %v4414_v55 = vrot.slane %v4376_v24, 1  ;;  %v4415_v32 = vrot.slane %v4377_v44, 1 }
 0x490   : >> { %v4410_v56 = vsel %vm1587_vm5, %v4408_v19, %v4409_v8  ;;  %v4417_v52 = vrot.slane %v4378_v61, 1  ;;  %v4418_v17 = vrot.slane %v4379_v33, 1  ;;  %v4428_v46 = vadd.f32 %v4398_v43, %v4352_v21 }
 0x491   : >> { %v4413_v5 = vsel %vm1587_vm5, %v4411_v4, %v4412_v62  ;;  %v4429_v25 = vadd.f32 %v4401_v31, %v4353_v29  ;;  %v4416_v12 = vsel %vm1587_vm5, %v4414_v55, %v4415_v32  ;;  %v4430_v26 = vadd.f32 %v4404_v34, %v4354_v28 }
 0x492   : >> { %v4431_v1 = vadd.f32 %v4407_v35, %v4355_v58  ;;  %v4432_v63 = vadd.f32 %v4410_v56, %v4356_v51  ;;  %v4419_v3 = vsel %vm1587_vm5, %v4417_v52, %v4418_v17  ;;  %v4433_v49 = vadd.f32 %v4413_v5, %v4357_v54 }
 0x493   : >> { %v4434_v2 = vadd.f32 %v4416_v12, %v4358_v53  ;;  %v4440_v57 = vmul.f32 %v12386_v50, %v15202_v45  ;;  %v4435_v47 = vadd.f32 %v4419_v3, %v4359_v10  ;;  %v4441_v59 = vmul.f32 %v12422_v16, %v15202_v45 }
 0x494   : >> { %v4442_v21 = vmul.f32 %v12390_v48, %v15202_v45  ;;  %v4443_v29 = vmul.f32 %v12433_v41, %v15202_v45  ;;  %v4444_v28 = vmul.f32 %v12393_v27, %v15202_v45  ;;  %v4445_v58 = vmul.f32 %v12436_v9, %v15202_v45 }
 0x495   : >> { %v4446_v51 = vmul.f32 %v12396_v7, %v15202_v45  ;;  %v4447_v50 = vmul.f32 %v12439_v18, %v15202_v45  ;;  %v4448_v16 = vmul.f32 %v12400_v15, %v15202_v45  ;;  %v4449_v54 = vmul.f32 %v12442_v30, %v15202_v45 }
 0x496   : >> { %v4450_v53 = vmul.f32 %v12403_v0, %v15202_v45  ;;  %v4451_v10 = vmul.f32 %v12445_v20, %v15202_v45  ;;  %v4452_v42 = vmul.f32 %v12406_v40, %v15202_v45  ;;  %v4453_v24 = vmul.f32 %v12448_v60, %v15202_v45 }
 0x497   : >> { %v4454_v44 = vmul.f32 %v12529_v22, %v15202_v45  ;;  %v4455_v61 = vmul.f32 %v12550_v39, %v15202_v45  ;;  %v4472_v33 = vrot.slane %v4440_v57, 2  ;;  %v4473_v14 = vrot.slane %v4441_v59, 2 }
 0x498   : >> { %v4475_v6 = vrot.slane %v4442_v21, 2  ;;  %v4476_v38 = vrot.slane %v4443_v29, 2  ;;  %v4478_v36 = vrot.slane %v4444_v28, 2  ;;  %v4479_v23 = vrot.slane %v4445_v58, 2  ;;  %v12632_v21 = vld [vmem:[%s12053_s8 + $0x130] sm:$0xff] }
 0x499   : >> { %v4481_v13 = vrot.slane %v4446_v51, 2  ;;  %v4482_v37 = vrot.slane %v4447_v50, 2  ;;  %v4474_v11 = vsel %vm1664_vm6, %v4472_v33, %v4473_v14  ;;  %v4484_v31 = vrot.slane %v4448_v16, 2  ;;  %v15203_v51 = vld [vmem:[#allocation82_spill] sm:$0xff]  ;;  %v15204_v50 = vld [vmem:[#allocation71_spill] sm:$0xff] }
 0x49a   : >> { %v4477_v43 = vsel %vm1664_vm6, %v4475_v6, %v4476_v38  ;;  %v4485_v19 = vrot.slane %v4449_v54, 2  ;;  %v4480_v8 = vsel %vm1664_vm6, %v4478_v36, %v4479_v23  ;;  %v4487_v35 = vrot.slane %v4450_v53, 2  ;;  %v15205_v53 = vld [vmem:[#allocation5_spill] sm:$0xff] }
 0x49b   : >> { %v4483_v34 = vsel %vm1664_vm6, %v4481_v13, %v4482_v37  ;;  %v4488_v4 = vrot.slane %v4451_v10, 2  ;;  %v4490_v56 = vrot.slane %v4452_v42, 2  ;;  %v4491_v55 = vrot.slane %v4453_v24, 2  ;;  %v15206_v10 = vld [vmem:[#allocation72_spill] sm:$0xff] }
 0x49c   : >> { %v4486_v62 = vsel %vm1664_vm6, %v4484_v31, %v4485_v19  ;;  %v4493_v32 = vrot.slane %v4454_v44, 2  ;;  %v4494_v5 = vrot.slane %v4455_v61, 2  ;;  %v4504_v17 = vadd.f32 %v4474_v11, %v4428_v46  ;;  %v15207_v46 = vld [vmem:[#allocation38_spill] sm:$0xff] }
 0x49d   : >> { %v4489_v52 = vsel %vm1664_vm6, %v4487_v35, %v4488_v4  ;;  %v4505_v12 = vadd.f32 %v4477_v43, %v4429_v25  ;;  %v4492_v3 = vsel %vm1664_vm6, %v4490_v56, %v4491_v55  ;;  %v4506_v45 = vadd.f32 %v4480_v8, %v4430_v26  ;;  %v15208_v26 = vld [vmem:[#allocation77_spill] sm:$0xff]  ;;  %v12656_v43 = vld [vmem:[%s12053_s8 + $0x138] sm:$0x3] }
 0x49e   : >> { %v4507_v57 = vadd.f32 %v4483_v34, %v4431_v1  ;;  %v4508_v59 = vadd.f32 %v4486_v62, %v4432_v63  ;;  %v4495_v29 = vsel %vm1664_vm6, %v4493_v32, %v4494_v5  ;;  %v4509_v28 = vadd.f32 %v4489_v52, %v4433_v49 }
 0x49f   : >> { %v4510_v58 = vadd.f32 %v4492_v3, %v4434_v2  ;;  %v4515_v16 = vrot.slane %v15204_v50, %v15203_v51  ;;  %v4511_v54 = vadd.f32 %v4495_v29, %v4435_v47  ;;  %v4535_v42 = vrot.slane %v15206_v10, %v15205_v53 }
 0x4a0   : >> { %v12641_v25 = vrot.slane %v15206_v10, %v15207_v46  ;;  %v12645_v1 = vrot.slane %v15206_v10, %v15208_v26 }
 0x4a1   : >> { %v4516_v63 = vmul.f32 %v12390_v48, %v4515_v16  ;;  %v4517_v49 = vmul.f32 %v12393_v27, %v4515_v16  ;;  %v4518_v2 = vmul.f32 %v12396_v7, %v4515_v16  ;;  %v4519_v47 = vmul.f32 %v12400_v15, %v4515_v16 }
 0x4a2   : >> { %v4520_v24 = vmul.f32 %v12403_v0, %v4515_v16  ;;  %v4521_v44 = vmul.f32 %v12406_v40, %v4515_v16  ;;  %v4522_v61 = vmul.f32 %v12529_v22, %v4515_v16  ;;  %v4523_v33 = vmul.f32 %v12632_v21, %v4515_v16 }
 0x4a3   : >> { %v4524_v14 = vadd.f32 %v4516_v63, %v4504_v17  ;;  %v4525_v6 = vadd.f32 %v4517_v49, %v4505_v12  ;;  %v4526_v38 = vadd.f32 %v4518_v2, %v4506_v45  ;;  %v4527_v36 = vadd.f32 %v4519_v47, %v4507_v57 }
 0x4a4   : >> { %v4528_v23 = vadd.f32 %v4520_v24, %v4508_v59  ;;  %v4529_v13 = vadd.f32 %v4521_v44, %v4509_v28  ;;  %v4530_v37 = vadd.f32 %v4522_v61, %v4510_v58  ;;  %v4531_v11 = vadd.f32 %v4523_v33, %v4511_v54 }
 0x4a5   : >> { %v4536_v31 = vmul.f32 %v12390_v48, %v4535_v42  ;;  %v4537_v19 = vmul.f32 %v12433_v41, %v4535_v42  ;;  %v4538_v8 = vmul.f32 %v12393_v27, %v4535_v42  ;;  %v4539_v34 = vmul.f32 %v12436_v9, %v4535_v42 }
 0x4a6   : >> { %v4540_v35 = vmul.f32 %v12396_v7, %v4535_v42  ;;  %v4541_v4 = vmul.f32 %v12439_v18, %v4535_v42  ;;  %v4542_v62 = vmul.f32 %v12400_v15, %v4535_v42  ;;  %v4543_v56 = vmul.f32 %v12442_v30, %v4535_v42 }
 0x4a7   : >> { %v4544_v55 = vmul.f32 %v12403_v0, %v4535_v42  ;;  %v4545_v32 = vmul.f32 %v12445_v20, %v4535_v42  ;;  %v4546_v52 = vmul.f32 %v12406_v40, %v4535_v42  ;;  %v4547_v5 = vmul.f32 %v12448_v60, %v4535_v42 }
 0x4a8   : >> { %v4548_v17 = vmul.f32 %v12529_v22, %v4535_v42  ;;  %v4549_v12 = vmul.f32 %v12550_v39, %v4535_v42  ;;  %v4550_v3 = vmul.f32 %v12632_v21, %v4535_v42  ;;  %v4551_v45 = vmul.f32 %v12656_v43, %v4535_v42 }
 0x4a9   : >> { %v4568_v57 = vrot.slane %v4536_v31, 1  ;;  %v4569_v59 = vrot.slane %v4537_v19, 1  ;;  %v4571_v29 = vrot.slane %v4538_v8, 1  ;;  %v4572_v28 = vrot.slane %v4539_v34, 1 }
 0x4aa   : >> { %v4574_v58 = vrot.slane %v4540_v35, 1  ;;  %v4575_v50 = vrot.slane %v4541_v4, 1  ;;  %v4577_v16 = vrot.slane %v4542_v62, 1  ;;  %v4578_v54 = vrot.slane %v4543_v56, 1 }
 0x4ab   : >> { %v4570_v63 = vsel %vm1587_vm5, %v4568_v57, %v4569_v59  ;;  %v4573_v49 = vsel %vm1587_vm5, %v4571_v29, %v4572_v28  ;;  %v4580_v2 = vrot.slane %v4544_v55, 1  ;;  %v4581_v47 = vrot.slane %v4545_v32, 1 }
 0x4ac   : >> { %v4576_v24 = vsel %vm1587_vm5, %v4574_v58, %v4575_v50  ;;  %v4579_v44 = vsel %vm1587_vm5, %v4577_v16, %v4578_v54  ;;  %v4583_v61 = vrot.slane %v4546_v52, 1  ;;  %v4584_v42 = vrot.slane %v4547_v5, 1  ;;  %v12719_v16 = vld [vmem:[%s12053_s8 + $0x140] sm:$0xff]  ;;  %v12722_v54 = vld [vmem:[%s12053_s8 + $0x150] sm:$0xff] }
 0x4ad   : >> { %v4582_v33 = vsel %vm1587_vm5, %v4580_v2, %v4581_v47  ;;  %v4586_v31 = vrot.slane %v4548_v17, 1  ;;  %v4587_v19 = vrot.slane %v4549_v12, 1  ;;  %v4589_v8 = vrot.slane %v4550_v3, 1 }
 0x4ae   : >> { %v4585_v34 = vsel %vm1587_vm5, %v4583_v61, %v4584_v42  ;;  %v4590_v35 = vrot.slane %v4551_v45, 1  ;;  %v4600_v4 = vadd.f32 %v4570_v63, %v4524_v14  ;;  %v4601_v62 = vadd.f32 %v4573_v49, %v4525_v6  ;;  %v12732_v61 = vld [vmem:[%s12053_s8 + $0x180] sm:$0xff] }
 0x4af   : >> { %v4588_v56 = vsel %vm1587_vm5, %v4586_v31, %v4587_v19  ;;  %v4602_v55 = vadd.f32 %v4576_v24, %v4526_v38  ;;  %v4603_v32 = vadd.f32 %v4579_v44, %v4527_v36  ;;  %v4604_v57 = vadd.f32 %v4582_v33, %v4528_v23  ;;  %v12726_v24 = vld [vmem:[%s12053_s8 + $0x160] sm:$0xff]  ;;  %v12729_v44 = vld [vmem:[%s12053_s8 + $0x170] sm:$0xff] }
 0x4b0   : >> { %v4591_v59 = vsel %vm1587_vm5, %v4589_v8, %v4590_v35  ;;  %v4605_v29 = vadd.f32 %v4585_v34, %v4529_v13  ;;  %v4606_v52 = vadd.f32 %v4588_v56, %v4530_v37  ;;  %v4612_v5 = vmul.f32 %v12390_v48, %v12641_v25  ;;  %v12736_v8 = vld [vmem:[%s12053_s8 + $0x190] sm:$0xff]  ;;  %v12739_v34 = vld [vmem:[%s12053_s8 + $0x1a0] sm:$0xff] }
 0x4b1   : >> { %v4607_v17 = vadd.f32 %v4591_v59, %v4531_v11  ;;  %v4613_v12 = vmul.f32 %v12433_v41, %v12641_v25  ;;  %v4614_v14 = vmul.f32 %v12393_v27, %v12641_v25  ;;  %v4615_v6 = vmul.f32 %v12436_v9, %v12641_v25  ;;  %v12742_v35 = vld [vmem:[%s12053_s8 + $0x1b0] sm:$0xff] }
 0x4b2   : >> { %v4616_v38 = vmul.f32 %v12396_v7, %v12641_v25  ;;  %v4617_v36 = vmul.f32 %v12439_v18, %v12641_v25  ;;  %v4618_v23 = vmul.f32 %v12400_v15, %v12641_v25  ;;  %v4619_v48 = vmul.f32 %v12442_v30, %v12641_v25 }
 0x4b3   : >> { %v4620_v41 = vmul.f32 %v12403_v0, %v12641_v25  ;;  %v4621_v27 = vmul.f32 %v12445_v20, %v12641_v25  ;;  %v4622_v9 = vmul.f32 %v12406_v40, %v12641_v25  ;;  %v4623_v7 = vmul.f32 %v12448_v60, %v12641_v25 }
 0x4b4   : >> { %v4624_v18 = vmul.f32 %v12529_v22, %v12641_v25  ;;  %v4625_v15 = vmul.f32 %v12550_v39, %v12641_v25  ;;  %v4626_v30 = vmul.f32 %v12632_v21, %v12641_v25  ;;  %v4627_v0 = vmul.f32 %v12656_v43, %v12641_v25 }
 0x4b5   : >> { %v4644_v13 = vrot.slane %v4612_v5, 2  ;;  %v4645_v20 = vrot.slane %v4613_v12, 2  ;;  %v4647_v40 = vrot.slane %v4614_v14, 2  ;;  %v4648_v37 = vrot.slane %v4615_v6, 2 }
 0x4b6   : >> { %v4650_v11 = vrot.slane %v4616_v38, 2  ;;  %v4651_v60 = vrot.slane %v4617_v36, 2  ;;  %v4653_v3 = vrot.slane %v4618_v23, 2  ;;  %v4654_v22 = vrot.slane %v4619_v48, 2 }
 0x4b7   : >> { %v4646_v39 = vsel %vm1664_vm6, %v4644_v13, %v4645_v20  ;;  %v4649_v21 = vsel %vm1664_vm6, %v4647_v40, %v4648_v37  ;;  %v4656_v45 = vrot.slane %v4620_v41, 2  ;;  %v4657_v28 = vrot.slane %v4621_v27, 2  ;;  %v12780_v13 = vld [vmem:[%s12053_s8 + $0x178] sm:$0x3]  ;;  %v15209_v20 = vld [vmem:[#allocation78_spill] sm:$0xff] }
 0x4b8   : >> { %v4652_v25 = vsel %vm1664_vm6, %v4650_v11, %v4651_v60  ;;  %v4655_v43 = vsel %vm1664_vm6, %v4653_v3, %v4654_v22  ;;  %v4659_v58 = vrot.slane %v4622_v9, 2  ;;  %v4660_v50 = vrot.slane %v4623_v7, 2  ;;  %v12767_v9 = vld [vmem:[%s12053_s8 + $0x148] sm:$0x3]  ;;  %v12770_v7 = vld [vmem:[%s12053_s8 + $0x158] sm:$0x3] }
 0x4b9   : >> { %v4658_v63 = vsel %vm1664_vm6, %v4656_v45, %v4657_v28  ;;  %v4662_v49 = vrot.slane %v4624_v18, 2  ;;  %v4663_v2 = vrot.slane %v4625_v15, 2  ;;  %v4665_v47 = vrot.slane %v4626_v30, 2  ;;  %v15210_v37 = vld [vmem:[#allocation79_spill] sm:$0xff]  ;;  %v15211_v60 = vld [vmem:[#allocation80_spill] sm:$0xff]  ;;  %v15212_v22 = vld [vmem:[#allocation81_spill] sm:$0xff] }
 0x4ba   : >> { %v4661_v42 = vsel %vm1664_vm6, %v4659_v58, %v4660_v50  ;;  %v4666_v33 = vrot.slane %v4627_v0, 2  ;;  %v4676_v31 = vadd.f32 %v4646_v39, %v4600_v4  ;;  %v4677_v19 = vadd.f32 %v4649_v21, %v4601_v62  ;;  %v12797_v21 = vld [vmem:[%s12053_s8 + $0x188] sm:$0x3]  ;;  %v12800_v45 = vld [vmem:[%s12053_s8 + $0x198] sm:$0x3] }
 0x4bb   : >> { %v4664_v56 = vsel %vm1664_vm6, %v4662_v49, %v4663_v2  ;;  %v4678_v59 = vadd.f32 %v4652_v25, %v4602_v55  ;;  %v4679_v5 = vadd.f32 %v4655_v43, %v4603_v32  ;;  %v4680_v12 = vadd.f32 %v4658_v63, %v4604_v57  ;;  %v15213_v25 = vld [vmem:[#allocation73_spill] sm:$0xff]  ;;  %v12822_v49 = vld [vmem:[%s12053_s8 + $0x1b8] sm:$0x3] }
 0x4bc   : >> { %v4667_v14 = vsel %vm1664_vm6, %v4665_v47, %v4666_v33  ;;  %v4681_v6 = vadd.f32 %v4661_v42, %v4605_v29  ;;  %v4682_v38 = vadd.f32 %v4664_v56, %v4606_v52  ;;  %v4688_v4 = vmul.f32 %v12719_v16, %v12645_v1  ;;  %v12819_v63 = vld [vmem:[%s12053_s8 + $0x1a8] sm:$0x3] }
 0x4bd   : >> { %v4683_v62 = vadd.f32 %v4667_v14, %v4607_v17  ;;  %v4689_v36 = vmul.f32 %v12722_v54, %v12645_v1  ;;  %v4690_v23 = vmul.f32 %v12726_v24, %v12645_v1  ;;  %v4691_v55 = vmul.f32 %v12729_v44, %v12645_v1 }
 0x4be   : >> { %v4692_v32 = vmul.f32 %v12732_v61, %v12645_v1  ;;  %v4693_v57 = vmul.f32 %v12736_v8, %v12645_v1  ;;  %v4694_v29 = vmul.f32 %v12739_v34, %v12645_v1  ;;  %v4695_v52 = vmul.f32 %v12742_v35, %v12645_v1  ;;  %v12777_v1 = vld [vmem:[%s12053_s8 + $0x168] sm:$0x3] }
 0x4bf   : >> { %v4696_v17 = vadd.f32 %v4688_v4, %v4676_v31  ;;  %v4697_v48 = vadd.f32 %v4689_v36, %v4677_v19  ;;  %v12762_v41 = vadd.f32 %v4690_v23, %v4678_v59  ;;  %v12764_v27 = vadd.f32 %v4691_v55, %v4679_v5 }
 0x4c0   : >> { %v4700_v18 = vadd.f32 %v4692_v32, %v4680_v12  ;;  %v12772_v15 = vadd.f32 %v4693_v57, %v4681_v6  ;;  %v4702_v30 = vadd.f32 %v4694_v29, %v4682_v38  ;;  %v12774_v0 = vadd.f32 %v4695_v52, %v4683_v62 }
 0x4c1   : >> { %v4707_v40 = vrot.slane %v15206_v10, %v15209_v20  ;;  %v12786_v11 = vrot.slane %v15206_v10, %v15210_v37  ;;  %v12790_v3 = vrot.slane %v15206_v10, %v15211_v60  ;;  %v12794_v39 = vrot.slane %v15206_v10, %v15212_v22 }
 0x4c2   : >> { %v12804_v28 = vrot.slane %v15206_v10, %v15203_v51  ;;  %v12808_v43 = vrot.slane %v15213_v25, %v15205_v53  ;;  %v12812_v58 = vrot.slane %v15213_v25, %v15207_v46  ;;  %v12816_v50 = vrot.slane %v15213_v25, %v15208_v26 }
 0x4c3   : >> { %v4708_v2 = vmul.f32 %v12719_v16, %v4707_v40  ;;  %v4709_v51 = vmul.f32 %v12767_v9, %v4707_v40  ;;  %v4710_v47 = vmul.f32 %v12722_v54, %v4707_v40  ;;  %v4711_v53 = vmul.f32 %v12770_v7, %v4707_v40 }
 0x4c4   : >> { %v4712_v42 = vmul.f32 %v12726_v24, %v4707_v40  ;;  %v4713_v46 = vmul.f32 %v12777_v1, %v4707_v40  ;;  %v4714_v33 = vmul.f32 %v12729_v44, %v4707_v40  ;;  %v4715_v26 = vmul.f32 %v12780_v13, %v4707_v40 }
 0x4c5   : >> { %v4716_v31 = vmul.f32 %v12732_v61, %v4707_v40  ;;  %v4717_v19 = vmul.f32 %v12797_v21, %v4707_v40  ;;  %v4718_v56 = vmul.f32 %v12736_v8, %v4707_v40  ;;  %v4719_v59 = vmul.f32 %v12800_v45, %v4707_v40 }
 0x4c6   : >> { %v4720_v5 = vmul.f32 %v12739_v34, %v4707_v40  ;;  %v4721_v12 = vmul.f32 %v12819_v63, %v4707_v40  ;;  %v4722_v14 = vmul.f32 %v12742_v35, %v4707_v40  ;;  %v4723_v6 = vmul.f32 %v12822_v49, %v4707_v40 }
 0x4c7   : >> { %v4740_v38 = vrot.slane %v4708_v2, 1  ;;  %v4741_v4 = vrot.slane %v4709_v51, 1  ;;  %v4743_v62 = vrot.slane %v4710_v47, 1  ;;  %v4744_v36 = vrot.slane %v4711_v53, 1 }
 0x4c8   : >> { %v4746_v23 = vrot.slane %v4712_v42, 1  ;;  %v4747_v55 = vrot.slane %v4713_v46, 1  ;;  %v4749_v32 = vrot.slane %v4714_v33, 1  ;;  %v4750_v57 = vrot.slane %v4715_v26, 1 }
 0x4c9   : >> { %v4742_v29 = vsel %vm1587_vm5, %v4740_v38, %v4741_v4  ;;  %v4745_v52 = vsel %vm1587_vm5, %v4743_v62, %v4744_v36  ;;  %v4752_v37 = vrot.slane %v4716_v31, 1  ;;  %v4753_v60 = vrot.slane %v4717_v19, 1 }
 0x4ca   : >> { %v4748_v22 = vsel %vm1587_vm5, %v4746_v23, %v4747_v55  ;;  %v4751_v10 = vsel %vm1587_vm5, %v4749_v32, %v4750_v57  ;;  %v4755_v25 = vrot.slane %v4718_v56, 1  ;;  %v4756_v40 = vrot.slane %v4719_v59, 1 }
 0x4cb   : >> { %v4754_v2 = vsel %vm1587_vm5, %v4752_v37, %v4753_v60  ;;  %v4758_v51 = vrot.slane %v4720_v5, 1  ;;  %v4759_v47 = vrot.slane %v4721_v12, 1  ;;  %v4761_v53 = vrot.slane %v4722_v14, 1 }
 0x4cc   : >> { %v4757_v42 = vsel %vm1587_vm5, %v4755_v25, %v4756_v40  ;;  %v4762_v46 = vrot.slane %v4723_v6, 1  ;;  %v4772_v33 = vadd.f32 %v4742_v29, %v4696_v17  ;;  %v4773_v26 = vadd.f32 %v4745_v52, %v4697_v48 }
 0x4cd   : >> { %v4760_v38 = vsel %vm1587_vm5, %v4758_v51, %v4759_v47  ;;  %v4774_v31 = vadd.f32 %v4748_v22, %v12762_v41  ;;  %v4775_v19 = vadd.f32 %v4751_v10, %v12764_v27  ;;  %v4776_v4 = vadd.f32 %v4754_v2, %v4700_v18 }
 0x4ce   : >> { %v4763_v56 = vsel %vm1587_vm5, %v4761_v53, %v4762_v46  ;;  %v4777_v59 = vadd.f32 %v4757_v42, %v12772_v15  ;;  %v4778_v62 = vadd.f32 %v4760_v38, %v4702_v30  ;;  %v4784_v5 = vmul.f32 %v12719_v16, %v12786_v11 }
 0x4cf   : >> { %v4779_v25 = vadd.f32 %v4763_v56, %v12774_v0  ;;  %v4785_v17 = vmul.f32 %v12767_v9, %v12786_v11  ;;  %v4786_v48 = vmul.f32 %v12722_v54, %v12786_v11  ;;  %v4787_v10 = vmul.f32 %v12770_v7, %v12786_v11 }
 0x4d0   : >> { %v4788_v41 = vmul.f32 %v12726_v24, %v12786_v11  ;;  %v4789_v27 = vmul.f32 %v12777_v1, %v12786_v11  ;;  %v4790_v16 = vmul.f32 %v12729_v44, %v12786_v11  ;;  %v4791_v18 = vmul.f32 %v12780_v13, %v12786_v11 }
 0x4d1   : >> { %v4792_v9 = vmul.f32 %v12732_v61, %v12786_v11  ;;  %v4793_v15 = vmul.f32 %v12797_v21, %v12786_v11  ;;  %v4794_v30 = vmul.f32 %v12736_v8, %v12786_v11  ;;  %v4795_v0 = vmul.f32 %v12800_v45, %v12786_v11 }
 0x4d2   : >> { %v4796_v12 = vmul.f32 %v12739_v34, %v12786_v11  ;;  %v4797_v14 = vmul.f32 %v12819_v63, %v12786_v11  ;;  %v4798_v6 = vmul.f32 %v12742_v35, %v12786_v11  ;;  %v4799_v36 = vmul.f32 %v12822_v49, %v12786_v11 }
 0x4d3   : >> { %v4816_v23 = vrot.slane %v4784_v5, 2  ;;  %v4817_v55 = vrot.slane %v4785_v17, 2  ;;  %v4819_v32 = vrot.slane %v4786_v48, 2  ;;  %v4820_v57 = vrot.slane %v4787_v10, 2 }
 0x4d4   : >> { %v4822_v29 = vrot.slane %v4788_v41, 2  ;;  %v4823_v52 = vrot.slane %v4789_v27, 2  ;;  %v4825_v37 = vrot.slane %v4790_v16, 2  ;;  %v4826_v60 = vrot.slane %v4791_v18, 2  ;;  %v12891_v27 = vld [vmem:[%s12053_s8 + $0x1c0] sm:$0xff] }
 0x4d5   : >> { %v4818_v22 = vsel %vm1664_vm6, %v4816_v23, %v4817_v55  ;;  %v4821_v40 = vsel %vm1664_vm6, %v4819_v32, %v4820_v57  ;;  %v4828_v2 = vrot.slane %v4792_v9, 2  ;;  %v4829_v51 = vrot.slane %v4793_v15, 2 }
 0x4d6   : >> { %v4824_v47 = vsel %vm1664_vm6, %v4822_v29, %v4823_v52  ;;  %v4827_v53 = vsel %vm1664_vm6, %v4825_v37, %v4826_v60  ;;  %v4831_v11 = vrot.slane %v4794_v30, 2  ;;  %v4832_v42 = vrot.slane %v4795_v0, 2  ;;  %v12912_v37 = vld [vmem:[%s12053_s8 + $0x1c8] sm:$0x3] }
 0x4d7   : >> { %v4830_v46 = vsel %vm1664_vm6, %v4828_v2, %v4829_v51  ;;  %v4834_v38 = vrot.slane %v4796_v12, 2  ;;  %v4835_v56 = vrot.slane %v4797_v14, 2  ;;  %v4837_v5 = vrot.slane %v4798_v6, 2 }
 0x4d8   : >> { %v4833_v17 = vsel %vm1664_vm6, %v4831_v11, %v4832_v42  ;;  %v4838_v48 = vrot.slane %v4799_v36, 2  ;;  %v4848_v10 = vadd.f32 %v4818_v22, %v4772_v33  ;;  %v4849_v41 = vadd.f32 %v4821_v40, %v4773_v26 }
 0x4d9   : >> { %v4836_v16 = vsel %vm1664_vm6, %v4834_v38, %v4835_v56  ;;  %v4850_v18 = vadd.f32 %v4824_v47, %v4774_v31  ;;  %v4851_v9 = vadd.f32 %v4827_v53, %v4775_v19  ;;  %v4852_v15 = vadd.f32 %v4830_v46, %v4776_v4 }
 0x4da   : >> { %v4839_v30 = vsel %vm1664_vm6, %v4837_v5, %v4838_v48  ;;  %v4853_v0 = vadd.f32 %v4833_v17, %v4777_v59  ;;  %v4854_v23 = vadd.f32 %v4836_v16, %v4778_v62  ;;  %v4860_v12 = vmul.f32 %v12722_v54, %v12790_v3 }
 0x4db   : >> { %v4855_v14 = vadd.f32 %v4839_v30, %v4779_v25  ;;  %v4861_v33 = vmul.f32 %v12726_v24, %v12790_v3  ;;  %v4862_v26 = vmul.f32 %v12729_v44, %v12790_v3  ;;  %v4863_v31 = vmul.f32 %v12732_v61, %v12790_v3 }
 0x4dc   : >> { %v4864_v19 = vmul.f32 %v12736_v8, %v12790_v3  ;;  %v4865_v4 = vmul.f32 %v12739_v34, %v12790_v3  ;;  %v4866_v59 = vmul.f32 %v12742_v35, %v12790_v3  ;;  %v4867_v62 = vmul.f32 %v12891_v27, %v12790_v3 }
 0x4dd   : >> { %v4868_v25 = vadd.f32 %v4860_v12, %v4848_v10  ;;  %v4869_v6 = vadd.f32 %v4861_v33, %v4849_v41  ;;  %v4870_v36 = vadd.f32 %v4862_v26, %v4850_v18  ;;  %v4871_v55 = vadd.f32 %v4863_v31, %v4851_v9 }
 0x4de   : >> { %v4872_v32 = vadd.f32 %v4864_v19, %v4852_v15  ;;  %v4873_v57 = vadd.f32 %v4865_v4, %v4853_v0  ;;  %v4874_v29 = vadd.f32 %v4866_v59, %v4854_v23  ;;  %v4875_v52 = vadd.f32 %v4867_v62, %v4855_v14 }
 0x4df   : >> { %v4880_v60 = vmul.f32 %v12722_v54, %v12794_v39  ;;  %v4881_v22 = vmul.f32 %v12770_v7, %v12794_v39  ;;  %v4882_v40 = vmul.f32 %v12726_v24, %v12794_v39  ;;  %v4883_v3 = vmul.f32 %v12777_v1, %v12794_v39 }
 0x4e0   : >> { %v4884_v2 = vmul.f32 %v12729_v44, %v12794_v39  ;;  %v4885_v51 = vmul.f32 %v12780_v13, %v12794_v39  ;;  %v4886_v47 = vmul.f32 %v12732_v61, %v12794_v39  ;;  %v4887_v53 = vmul.f32 %v12797_v21, %v12794_v39 }
 0x4e1   : >> { %v4888_v11 = vmul.f32 %v12736_v8, %v12794_v39  ;;  %v4889_v42 = vmul.f32 %v12800_v45, %v12794_v39  ;;  %v4890_v46 = vmul.f32 %v12739_v34, %v12794_v39  ;;  %v4891_v38 = vmul.f32 %v12819_v63, %v12794_v39 }
 0x4e2   : >> { %v4892_v56 = vmul.f32 %v12742_v35, %v12794_v39  ;;  %v4893_v5 = vmul.f32 %v12822_v49, %v12794_v39  ;;  %v4894_v17 = vmul.f32 %v12891_v27, %v12794_v39  ;;  %v4895_v48 = vmul.f32 %v12912_v37, %v12794_v39 }
 0x4e3   : >> { %v4912_v10 = vrot.slane %v4880_v60, 1  ;;  %v4913_v41 = vrot.slane %v4881_v22, 1  ;;  %v4915_v16 = vrot.slane %v4882_v40, 1  ;;  %v4916_v18 = vrot.slane %v4883_v3, 1 }
 0x4e4   : >> { %v4918_v9 = vrot.slane %v4884_v2, 1  ;;  %v4919_v15 = vrot.slane %v4885_v51, 1  ;;  %v4921_v30 = vrot.slane %v4886_v47, 1  ;;  %v4922_v0 = vrot.slane %v4887_v53, 1 }
 0x4e5   : >> { %v4914_v23 = vsel %vm1587_vm5, %v4912_v10, %v4913_v41  ;;  %v4917_v12 = vsel %vm1587_vm5, %v4915_v16, %v4916_v18  ;;  %v4924_v14 = vrot.slane %v4888_v11, 1  ;;  %v4925_v33 = vrot.slane %v4889_v42, 1 }
 0x4e6   : >> { %v4920_v26 = vsel %vm1587_vm5, %v4918_v9, %v4919_v15  ;;  %v4923_v31 = vsel %vm1587_vm5, %v4921_v30, %v4922_v0  ;;  %v4927_v19 = vrot.slane %v4890_v46, 1  ;;  %v4928_v39 = vrot.slane %v4891_v38, 1 }
 0x4e7   : >> { %v4926_v4 = vsel %vm1587_vm5, %v4924_v14, %v4925_v33  ;;  %v4930_v59 = vrot.slane %v4892_v56, 1  ;;  %v4931_v62 = vrot.slane %v4893_v5, 1  ;;  %v4933_v60 = vrot.slane %v4894_v17, 1 }
 0x4e8   : >> { %v4929_v22 = vsel %vm1587_vm5, %v4927_v19, %v4928_v39  ;;  %v4934_v40 = vrot.slane %v4895_v48, 1  ;;  %v4944_v3 = vadd.f32 %v4914_v23, %v4868_v25  ;;  %v4945_v2 = vadd.f32 %v4917_v12, %v4869_v6 }
 0x4e9   : >> { %v4932_v51 = vsel %vm1587_vm5, %v4930_v59, %v4931_v62  ;;  %v4946_v47 = vadd.f32 %v4920_v26, %v4870_v36  ;;  %v4947_v53 = vadd.f32 %v4923_v31, %v4871_v55  ;;  %v4948_v11 = vadd.f32 %v4926_v4, %v4872_v32 }
 0x4ea   : >> { %v4935_v42 = vsel %vm1587_vm5, %v4933_v60, %v4934_v40  ;;  %v4949_v10 = vadd.f32 %v4929_v22, %v4873_v57  ;;  %v4950_v46 = vadd.f32 %v4932_v51, %v4874_v29  ;;  %v4956_v38 = vmul.f32 %v12722_v54, %v12804_v28 }
 0x4eb   : >> { %v4951_v56 = vadd.f32 %v4935_v42, %v4875_v52  ;;  %v4957_v5 = vmul.f32 %v12770_v7, %v12804_v28  ;;  %v4958_v25 = vmul.f32 %v12726_v24, %v12804_v28  ;;  %v4959_v6 = vmul.f32 %v12777_v1, %v12804_v28 }
 0x4ec   : >> { %v4960_v36 = vmul.f32 %v12729_v44, %v12804_v28  ;;  %v4961_v55 = vmul.f32 %v12780_v13, %v12804_v28  ;;  %v4962_v32 = vmul.f32 %v12732_v61, %v12804_v28  ;;  %v4963_v54 = vmul.f32 %v12797_v21, %v12804_v28 }
 0x4ed   : >> { %v4964_v7 = vmul.f32 %v12736_v8, %v12804_v28  ;;  %v4965_v57 = vmul.f32 %v12800_v45, %v12804_v28  ;;  %v4966_v29 = vmul.f32 %v12739_v34, %v12804_v28  ;;  %v4967_v52 = vmul.f32 %v12819_v63, %v12804_v28 }
 0x4ee   : >> { %v4968_v17 = vmul.f32 %v12742_v35, %v12804_v28  ;;  %v4969_v48 = vmul.f32 %v12822_v49, %v12804_v28  ;;  %v4970_v41 = vmul.f32 %v12891_v27, %v12804_v28  ;;  %v4971_v16 = vmul.f32 %v12912_v37, %v12804_v28 }
 0x4ef   : >> { %v4988_v18 = vrot.slane %v4956_v38, 2  ;;  %v4989_v9 = vrot.slane %v4957_v5, 2  ;;  %v4991_v15 = vrot.slane %v4958_v25, 2  ;;  %v4992_v30 = vrot.slane %v4959_v6, 2  ;;  %v12993_v25 = vld [vmem:[%s12053_s8 + $0x1d0] sm:$0xff] }
 0x4f0   : >> { %v4994_v0 = vrot.slane %v4960_v36, 2  ;;  %v4995_v23 = vrot.slane %v4961_v55, 2  ;;  %v4997_v12 = vrot.slane %v4962_v32, 2  ;;  %v4998_v14 = vrot.slane %v4963_v54, 2 }
 0x4f1   : >> { %v4990_v33 = vsel %vm1664_vm6, %v4988_v18, %v4989_v9  ;;  %v4993_v26 = vsel %vm1664_vm6, %v4991_v15, %v4992_v30  ;;  %v5000_v31 = vrot.slane %v4964_v7, 2  ;;  %v5001_v19 = vrot.slane %v4965_v57, 2  ;;  %v13014_v30 = vld [vmem:[%s12053_s8 + $0x1d8] sm:$0x3] }
 0x4f2   : >> { %v4996_v39 = vsel %vm1664_vm6, %v4994_v0, %v4995_v23  ;;  %v4999_v4 = vsel %vm1664_vm6, %v4997_v12, %v4998_v14  ;;  %v5003_v28 = vrot.slane %v4966_v29, 2  ;;  %v5004_v59 = vrot.slane %v4967_v52, 2 }
 0x4f3   : >> { %v5002_v62 = vsel %vm1664_vm6, %v5000_v31, %v5001_v19  ;;  %v5006_v60 = vrot.slane %v4968_v17, 2  ;;  %v5007_v22 = vrot.slane %v4969_v48, 2  ;;  %v5009_v40 = vrot.slane %v4970_v41, 2 }
 0x4f4   : >> { %v5005_v51 = vsel %vm1664_vm6, %v5003_v28, %v5004_v59  ;;  %v5010_v42 = vrot.slane %v4971_v16, 2  ;;  %v5020_v38 = vadd.f32 %v4990_v33, %v4944_v3  ;;  %v5021_v5 = vadd.f32 %v4993_v26, %v4945_v2 }
 0x4f5   : >> { %v5008_v6 = vsel %vm1664_vm6, %v5006_v60, %v5007_v22  ;;  %v5022_v36 = vadd.f32 %v4996_v39, %v4946_v47  ;;  %v5023_v55 = vadd.f32 %v4999_v4, %v4947_v53  ;;  %v5024_v32 = vadd.f32 %v5002_v62, %v4948_v11 }
 0x4f6   : >> { %v5011_v54 = vsel %vm1664_vm6, %v5009_v40, %v5010_v42  ;;  %v5025_v7 = vadd.f32 %v5005_v51, %v4949_v10  ;;  %v5026_v57 = vadd.f32 %v5008_v6, %v4950_v46  ;;  %v5032_v29 = vmul.f32 %v12726_v24, %v12808_v43 }
 0x4f7   : >> { %v5027_v52 = vadd.f32 %v5011_v54, %v4951_v56  ;;  %v5033_v3 = vmul.f32 %v12729_v44, %v12808_v43  ;;  %v5034_v2 = vmul.f32 %v12732_v61, %v12808_v43  ;;  %v5035_v47 = vmul.f32 %v12736_v8, %v12808_v43 }
 0x4f8   : >> { %v5036_v53 = vmul.f32 %v12739_v34, %v12808_v43  ;;  %v5037_v11 = vmul.f32 %v12742_v35, %v12808_v43  ;;  %v5038_v10 = vmul.f32 %v12891_v27, %v12808_v43  ;;  %v5039_v46 = vmul.f32 %v12993_v25, %v12808_v43 }
 0x4f9   : >> { %v5040_v56 = vadd.f32 %v5032_v29, %v5020_v38  ;;  %v5041_v17 = vadd.f32 %v5033_v3, %v5021_v5  ;;  %v5042_v48 = vadd.f32 %v5034_v2, %v5022_v36  ;;  %v5043_v41 = vadd.f32 %v5035_v47, %v5023_v55 }
 0x4fa   : >> { %v5044_v16 = vadd.f32 %v5036_v53, %v5024_v32  ;;  %v5045_v18 = vadd.f32 %v5037_v11, %v5025_v7  ;;  %v5046_v9 = vadd.f32 %v5038_v10, %v5026_v57  ;;  %v5047_v15 = vadd.f32 %v5039_v46, %v5027_v52 }
 0x4fb   : >> { %v5052_v0 = vmul.f32 %v12726_v24, %v12812_v58  ;;  %v5053_v23 = vmul.f32 %v12777_v1, %v12812_v58  ;;  %v5054_v12 = vmul.f32 %v12729_v44, %v12812_v58  ;;  %v5055_v43 = vmul.f32 %v12780_v13, %v12812_v58 }
 0x4fc   : >> { %v5056_v14 = vmul.f32 %v12732_v61, %v12812_v58  ;;  %v5057_v33 = vmul.f32 %v12797_v21, %v12812_v58  ;;  %v5058_v26 = vmul.f32 %v12736_v8, %v12812_v58  ;;  %v5059_v31 = vmul.f32 %v12800_v45, %v12812_v58 }
 0x4fd   : >> { %v5060_v19 = vmul.f32 %v12739_v34, %v12812_v58  ;;  %v5061_v39 = vmul.f32 %v12819_v63, %v12812_v58  ;;  %v5062_v4 = vmul.f32 %v12742_v35, %v12812_v58  ;;  %v5063_v28 = vmul.f32 %v12822_v49, %v12812_v58 }
 0x4fe   : >> { %v5064_v59 = vmul.f32 %v12891_v27, %v12812_v58  ;;  %v5065_v62 = vmul.f32 %v12912_v37, %v12812_v58  ;;  %v5066_v60 = vmul.f32 %v12993_v25, %v12812_v58  ;;  %v5067_v22 = vmul.f32 %v13014_v30, %v12812_v58 }
 0x4ff   : >> { %v5084_v40 = vrot.slane %v5052_v0, 1  ;;  %v5085_v51 = vrot.slane %v5053_v23, 1  ;;  %v5087_v42 = vrot.slane %v5054_v12, 1  ;;  %v5088_v38 = vrot.slane %v5055_v43, 1 }
 0x500   : >> { %v5090_v5 = vrot.slane %v5056_v14, 1  ;;  %v5091_v6 = vrot.slane %v5057_v33, 1  ;;  %v5093_v36 = vrot.slane %v5058_v26, 1  ;;  %v5094_v55 = vrot.slane %v5059_v31, 1 }
 0x501   : >> { %v5086_v32 = vsel %vm1587_vm5, %v5084_v40, %v5085_v51  ;;  %v5089_v54 = vsel %vm1587_vm5, %v5087_v42, %v5088_v38  ;;  %v5096_v7 = vrot.slane %v5060_v19, 1  ;;  %v5097_v57 = vrot.slane %v5061_v39, 1 }
 0x502   : >> { %v5092_v29 = vsel %vm1587_vm5, %v5090_v5, %v5091_v6  ;;  %v5095_v52 = vsel %vm1587_vm5, %v5093_v36, %v5094_v55  ;;  %v5099_v3 = vrot.slane %v5062_v4, 1  ;;  %v5100_v58 = vrot.slane %v5063_v28, 1 }
 0x503   : >> { %v5098_v2 = vsel %vm1587_vm5, %v5096_v7, %v5097_v57  ;;  %v5102_v47 = vrot.slane %v5064_v59, 1  ;;  %v5103_v53 = vrot.slane %v5065_v62, 1  ;;  %v5105_v11 = vrot.slane %v5066_v60, 1 }
 0x504   : >> { %v5101_v10 = vsel %vm1587_vm5, %v5099_v3, %v5100_v58  ;;  %v5106_v46 = vrot.slane %v5067_v22, 1  ;;  %v5116_v0 = vadd.f32 %v5086_v32, %v5040_v56  ;;  %v5117_v23 = vadd.f32 %v5089_v54, %v5041_v17 }
 0x505   : >> { %v5104_v12 = vsel %vm1587_vm5, %v5102_v47, %v5103_v53  ;;  %v5118_v43 = vadd.f32 %v5092_v29, %v5042_v48  ;;  %v5119_v14 = vadd.f32 %v5095_v52, %v5043_v41  ;;  %v5120_v33 = vadd.f32 %v5098_v2, %v5044_v16  ;;  %v15214_v2 = vld [vmem:[#allocation75_spill] sm:$0xff] }
 0x506   : >> { %v5107_v26 = vsel %vm1587_vm5, %v5105_v11, %v5106_v46  ;;  %v5121_v31 = vadd.f32 %v5101_v10, %v5045_v18  ;;  %v5122_v19 = vadd.f32 %v5104_v12, %v5046_v9  ;;  %v5128_v39 = vmul.f32 %v12726_v24, %v12816_v50  ;;  %v15215_v11 = vld [vmem:[#allocation76_spill] sm:$0xff] }
 0x507   : >> { %v5123_v4 = vadd.f32 %v5107_v26, %v5047_v15  ;;  %v5129_v28 = vmul.f32 %v12777_v1, %v12816_v50  ;;  %v5130_v56 = vmul.f32 %v12729_v44, %v12816_v50  ;;  %v5131_v17 = vmul.f32 %v12780_v13, %v12816_v50 }
 0x508   : >> { %v5132_v48 = vmul.f32 %v12732_v61, %v12816_v50  ;;  %v5133_v41 = vmul.f32 %v12797_v21, %v12816_v50  ;;  %v5134_v16 = vmul.f32 %v12736_v8, %v12816_v50  ;;  %v5135_v24 = vmul.f32 %v12800_v45, %v12816_v50 }
 0x509   : >> { %v5136_v1 = vmul.f32 %v12739_v34, %v12816_v50  ;;  %v5137_v44 = vmul.f32 %v12819_v63, %v12816_v50  ;;  %v5138_v13 = vmul.f32 %v12742_v35, %v12816_v50  ;;  %v5139_v61 = vmul.f32 %v12822_v49, %v12816_v50 }
 0x50a   : >> { %v5140_v21 = vmul.f32 %v12891_v27, %v12816_v50  ;;  %v5141_v8 = vmul.f32 %v12912_v37, %v12816_v50  ;;  %v5142_v45 = vmul.f32 %v12993_v25, %v12816_v50  ;;  %v5143_v34 = vmul.f32 %v13014_v30, %v12816_v50 }
 0x50b   : >> { %v5160_v18 = vrot.slane %v5128_v39, 2  ;;  %v5161_v63 = vrot.slane %v5129_v28, 2  ;;  %v5163_v9 = vrot.slane %v5130_v56, 2  ;;  %v5164_v15 = vrot.slane %v5131_v17, 2 }
 0x50c   : >> { %v5166_v35 = vrot.slane %v5132_v48, 2  ;;  %v5167_v59 = vrot.slane %v5133_v41, 2  ;;  %v5169_v62 = vrot.slane %v5134_v16, 2  ;;  %v5170_v49 = vrot.slane %v5135_v24, 2 }
 0x50d   : >> { %v5162_v60 = vsel %vm1664_vm6, %v5160_v18, %v5161_v63  ;;  %v5165_v27 = vsel %vm1664_vm6, %v5163_v9, %v5164_v15  ;;  %v5172_v22 = vrot.slane %v5136_v1, 2  ;;  %v5173_v37 = vrot.slane %v5137_v44, 2 }
 0x50e   : >> { %v5168_v40 = vsel %vm1664_vm6, %v5166_v35, %v5167_v59  ;;  %v5171_v25 = vsel %vm1664_vm6, %v5169_v62, %v5170_v49  ;;  %v5175_v51 = vrot.slane %v5138_v13, 2  ;;  %v5176_v50 = vrot.slane %v5139_v61, 2  ;;  %v9607_v35 = vld [vmem:[%s12053_s8 + $0xb0] sm:$0xff]  ;;  %v9608_v62 = vld [vmem:[%s12053_s8 + $0xb8] sm:$0x3] }
 0x50f   : >> { %v5174_v30 = vsel %vm1664_vm6, %v5172_v22, %v5173_v37  ;;  %v5178_v42 = vrot.slane %v5140_v21, 2  ;;  %v5179_v38 = vrot.slane %v5141_v8, 2  ;;  %v5181_v5 = vrot.slane %v5142_v45, 2  ;;  %v9610_v22 = vld [vmem:[%s12053_s8 + $0xc8] sm:$0x3] }
 0x510   : >> { %v5177_v6 = vsel %vm1664_vm6, %v5175_v51, %v5176_v50  ;;  %v5182_v36 = vrot.slane %v5143_v34, 2  ;;  %v5192_v55 = vadd.f32 %v5162_v60, %v5116_v0  ;;  %v5193_v32 = vadd.f32 %v5165_v27, %v5117_v23  ;;  %v9609_v60 = vld [vmem:[%s12053_s8 + $0xc0] sm:$0xff]  ;;  %v9612_v51 = vld [vmem:[%s12053_s8 + $0xd8] sm:$0x3] }
 0x511   : >> { %v5180_v54 = vsel %vm1664_vm6, %v5178_v42, %v5179_v38  ;;  %v5194_v7 = vadd.f32 %v5168_v40, %v5118_v43  ;;  %v5195_v57 = vadd.f32 %v5171_v25, %v5119_v14  ;;  %v5196_v29 = vadd.f32 %v5174_v30, %v5120_v33  ;;  %v9611_v40 = vld [vmem:[%s12053_s8 + $0xd0] sm:$0xff]  ;;  %v9613_v30 = vld [vmem:[%s12053_s8 + $0xe0] sm:$0xff]  ;;  %v9614_v38 = vld [vmem:[%s12053_s8 + $0xe8] sm:$0x3] }
 0x512   : >> { %v5183_v52 = vsel %vm1664_vm6, %v5181_v5, %v5182_v36  ;;  %v5197_v3 = vadd.f32 %v5177_v6, %v5121_v31  ;;  %v5198_v58 = vadd.f32 %v5180_v54, %v5122_v19  ;;  %v5203_v47 = vrot.slane %v15214_v2, %v15209_v20  ;;  %v9615_v6 = vld [vmem:[%s12053_s8 + $0xf0] sm:$0xff]  ;;  %v9617_v54 = vld [vmem:[%s12053_s8 + $0x100] sm:$0xff] }
 0x513   : >> { %v5199_v53 = vadd.f32 %v5183_v52, %v5123_v4  ;;  %v5215_v10 = vrot.slane %v15215_v11, %v15209_v20  ;;  %v9619_v52 = vld [vmem:[%s12053_s8 + $0x110] sm:$0xff]  ;;  %v9622_v11 = vld [vmem:[%s12053_s8 + $0x128] sm:$0x3] }
 0x514   : >> { %v5204_v46 = vmul.f32 %v5203_v47, %v5192_v55  ;;  %v5205_v12 = vmul.f32 %v5203_v47, %v5193_v32  ;;  %v5206_v0 = vmul.f32 %v5203_v47, %v5194_v7  ;;  %v5207_v23 = vmul.f32 %v5203_v47, %v5195_v57  ;;  %v9616_v55 = vld [vmem:[%s12053_s8 + $0xf8] sm:$0x3]  ;;  %v9618_v57 = vld [vmem:[%s12053_s8 + $0x108] sm:$0x3] }
 0x515   : >> { %v5208_v26 = vmul.f32 %v5203_v47, %v5196_v29  ;;  %v5209_v43 = vmul.f32 %v5203_v47, %v5197_v3  ;;  %v5210_v14 = vmul.f32 %v5203_v47, %v5198_v58  ;;  %v5211_v33 = vmul.f32 %v5203_v47, %v5199_v53  ;;  %v9620_v58 = vld [vmem:[%s12053_s8 + $0x118] sm:$0x3]  ;;  %v9621_v47 = vld [vmem:[%s12053_s8 + $0x120] sm:$0xff] }
 0x516   : >> { %v5216_v39 = vadd.f32 %v5215_v10, %v5204_v46  ;;  %v5217_v28 = vadd.f32 %v5215_v10, %v5205_v12  ;;  %v5218_v31 = vadd.f32 %v5215_v10, %v5206_v0  ;;  %v5219_v19 = vadd.f32 %v5215_v10, %v5207_v23  ;;  %v8992_v46 = vld [vmem:[%s14889_s4 + $0x8] sm:$0xf] (%p3578_p5) }
 0x517   : >> { %v5220_v56 = vadd.f32 %v5215_v10, %v5208_v26  ;;  %v5221_v17 = vadd.f32 %v5215_v10, %v5209_v43  ;;  %v5222_v48 = vadd.f32 %v5215_v10, %v5210_v14  ;;  %v5223_v4 = vadd.f32 %v5215_v10, %v5211_v33  ;;  %9522 = vmatprep.subr.msk.bf16.mxu0 (%p3578_p5), %vm1151_vm1, %v8992_v46 }
 0x518   : >> { %v5224_v41 = vmax.f32 %v5216_v39, 0.0  ;;  %v5225_v16 = vmax.f32 %v5217_v28, 0.0  ;;  %v5226_v20 = vmax.f32 %v5218_v31, 0.0  ;;  %v5227_v24 = vmax.f32 %v5219_v19, 0.0 }
 0x519   : >> { %v5228_v1 = vmax.f32 %v5220_v56, 0.0  ;;  %v5229_v44 = vmax.f32 %v5221_v17, 0.0  ;;  %v5230_v13 = vmax.f32 %v5222_v48, 0.0  ;;  %v5231_v61 = vmax.f32 %v5223_v4, 0.0 }
 0x51a   : >> { %v5240_v21 = vrot.slane %v5224_v41, 7  ;;  %v5241_v8 = vrot.slane %v5225_v16, 7  ;;  %v5242_v45 = vrot.slane %v5226_v20, 7  ;;  %v5243_v34 = vrot.slane %v5227_v24, 7 }
 0x51b   : >> { %v5244_v18 = vrot.slane %v5228_v1, 7  ;;  %v5245_v63 = vrot.slane %v5229_v44, 7  ;;  %v5246_v9 = vrot.slane %v5230_v13, 7  ;;  %v5247_v15 = vrot.slane %v5231_v61, 7 }
 0x51c   : >> { %v5256_v59 = vadd.f32 %v9607_v35, %v5240_v21  ;;  %v5257_v49 = vadd.f32 %v9608_v62, %v5240_v21  ;;  %v5258_v27 = vadd.f32 %v9609_v60, %v5241_v8  ;;  %v5259_v37 = vadd.f32 %v9610_v22, %v5241_v8 }
 0x51d   : >> { %v5260_v25 = vadd.f32 %v9611_v40, %v5242_v45  ;;  %v5261_v50 = vadd.f32 %v9612_v51, %v5242_v45  ;;  %v5262_v42 = vadd.f32 %v9613_v30, %v5243_v34  ;;  %v5263_v5 = vadd.f32 %v9614_v38, %v5243_v34 }
 0x51e   : >> { %v5264_v36 = vadd.f32 %v9615_v6, %v5244_v18  ;;  %v5265_v32 = vadd.f32 %v9616_v55, %v5244_v18  ;;  %v5266_v7 = vadd.f32 %v9617_v54, %v5245_v63  ;;  %v5267_v29 = vadd.f32 %v9618_v57, %v5245_v63  ;;  %5275 = vst.msk [vmem:[%s5273_s10 - $0x1] sm:$0xfe] %vm3155_vm7, %v5256_v59  ;;  %v13162_v55 = vld [vmem:[%s14890_s5 + $0x40] sm:$0xff] (%p3578_p5)  ;;  %v13172_v54 = vld [vmem:[%s14890_s5 + $0x50] sm:$0xff] (%p3578_p5)  ;;  %v15220_v57 = vld [vmem:[#allocation79_spill] sm:$0xff] (%p3578_p5) }
 0x51f   : >> { %5277 = vst.msk [vmem:[%s5273_s10 + $0x7] sm:$0x1] %vm3157_vm8, %v5257_v49  ;;  %5279 = vst.msk [vmem:[%s5273_s10 + $0xf] sm:$0x1] %vm3157_vm8, %v5259_v37  ;;  %v5268_v3 = vadd.f32 %v9619_v52, %v5246_v9  ;;  %v5269_v2 = vadd.f32 %v9620_v58, %v5246_v9  ;;  %v5270_v53 = vadd.f32 %v9621_v47, %v5247_v15  ;;  %v5391_v23 = vsel (%p3578_p5), %vm1151_vm1, %v8992_v46, 0 }
 0x520   : >> { %5278 = vst.msk [vmem:[%s5273_s10 + $0x7] sm:$0xfe] %vm3155_vm7, %v5258_v27  ;;  %v5271_v10 = vadd.f32 %v9622_v11, %v5247_v15  ;;  %5280 = vst.msk [vmem:[%s5273_s10 + $0xf] sm:$0xfe] %vm3155_vm7, %v5260_v25  ;;  %9383 = vmatpush3.bf16.msra.mxu0 (%p3578_p5), %v5391_v23 }
 0x521   : >> { %5281 = vst.msk [vmem:[%s5273_s10 + $0x17] sm:$0x1] %vm3157_vm8, %v5261_v50  ;;  %5283 = vst.msk [vmem:[%s5273_s10 + $0x1f] sm:$0x1] %vm3157_vm8, %v5263_v5 }
 0x522   : >> { %5282 = vst.msk [vmem:[%s5273_s10 + $0x17] sm:$0xfe] %vm3155_vm7, %v5262_v42  ;;  %5284 = vst.msk [vmem:[%s5273_s10 + $0x1f] sm:$0xfe] %vm3155_vm7, %v5264_v36  ;;  %3580 = sbr.rel (!%p3578_p5) target bundleno = 1038 (0x40e), region = 134 }
 0x523   : >> { %5285 = vst.msk [vmem:[%s5273_s10 + $0x27] sm:$0x1] %vm3157_vm8, %v5265_v32  ;;  %5287 = vst.msk [vmem:[%s5273_s10 + $0x2f] sm:$0x1] %vm3157_vm8, %v5267_v29  ;;  %v13167_v32 = vld [vmem:[%s14890_s5 + $0x48] sm:$0xff] (%p3578_p5)  ;;  %v15221_v29 = vld [vmem:[#allocation75_spill] sm:$0xff] (%p3578_p5) }
 0x524   : >> { %5286 = vst.msk [vmem:[%s5273_s10 + $0x27] sm:$0xfe] %vm3155_vm7, %v5266_v7  ;;  %5288 = vst.msk [vmem:[%s5273_s10 + $0x2f] sm:$0xfe] %vm3155_vm7, %v5268_v3  ;;  %v13177_v7 = vld [vmem:[%s14890_s5 + $0x58] sm:$0x7] (%p3578_p5)  ;;  %v13181_v52 = vrot.slane (%p3578_p5), %v15221_v29, %v15220_v57 }
 0x525   : >> { %5289 = vst.msk [vmem:[%s5273_s10 + $0x37] sm:$0x1] %vm3157_vm8, %v5269_v2  ;;  %5291 = vst.msk [vmem:[%s5273_s10 + $0x3f] sm:$0x1] %vm3157_vm8, %v5271_v10  ;;  %v15222_v3 = vld [vmem:[#allocation76_spill] sm:$0xff] (%p3578_p5) }
 0x526   : >> { %5290 = vst.msk [vmem:[%s5273_s10 + $0x37] sm:$0xfe] %vm3155_vm7, %v5270_v53  ;;  %15216 = vst [vmem:[#allocation74_spill] sm:$0xff] (%p3578_p5), %v13162_v55  ;;  %v13185_v58 = vrot.slane (%p3578_p5), %v15222_v3, %v15220_v57 }
 0x527   : > { %15217 = vst [vmem:[#allocation4_spill] sm:$0xff] %v13167_v32  ;;  %15218 = vst [vmem:[#allocation71_spill] sm:$0xff] %v13172_v54 }
 0x528   : > { %15219 = vst [vmem:[#allocation72_spill] sm:$0xff] %v13177_v7 }
 0x52d   : > { %v5292_v12 = vld [vmem:[#allocation3] sm:$0xff]  ;;  %v5293_v0 = vld [vmem:[#allocation3 + $0x8] sm:$0xff]  ;;  %v5294_v43 = vld [vmem:[#allocation3 + $0x10] sm:$0xff] }
 0x52e   : > { %v5324_v26 = vpack.c.bf16 %v5293_v0, %v5292_v12  ;;  %v5295_v14 = vld [vmem:[#allocation3 + $0x18] sm:$0xff]  ;;  %v5296_v33 = vld [vmem:[#allocation3 + $0x20] sm:$0xff]  ;;  %v5297_v28 = vld [vmem:[#allocation3 + $0x28] sm:$0xff] }
 0x52f   : > { %v5325_v39 = vpack.c.bf16 %v5295_v14, %v5294_v43  ;;  %v5326_v31 = vpack.c.bf16 %v5297_v28, %v5296_v33  ;;  %v5298_v19 = vld [vmem:[#allocation3 + $0x30] sm:$0xff]  ;;  %v5299_v56 = vld [vmem:[#allocation3 + $0x38] sm:$0xff]  ;;  %v5300_v17 = vld [vmem:[#allocation3 + $0x40] sm:$0xff] }
 0x530   : > { %9384 = vmatprep.mubr.msk.bf16.mxu0 %vm303_vm3, %v5324_v26  ;;  %v5301_v48 = vld [vmem:[#allocation3 + $0x48] sm:$0xff]  ;;  %v5327_v4 = vpack.c.bf16 %v5299_v56, %v5298_v19  ;;  %v5302_v16 = vld [vmem:[#allocation3 + $0x50] sm:$0xff]  ;;  %v5303_v20 = vld [vmem:[#allocation3 + $0x58] sm:$0xff] }
 0x531   : > { %9385 = vmatmul.mubr.msk.bf16.vlgmr.msra.gmra.mxu0 %vm303_vm3, %v5325_v39  ;;  %v5328_v41 = vpack.c.bf16 %v5301_v48, %v5300_v17  ;;  %v5304_v24 = vld [vmem:[#allocation3 + $0x60] sm:$0xff]  ;;  %v5305_v1 = vld [vmem:[#allocation3 + $0x68] sm:$0xff]  ;;  %v5329_v44 = vpack.c.bf16 %v5303_v20, %v5302_v16  ;;  %v5306_v61 = vld [vmem:[#allocation3 + $0x70] sm:$0xff] }
 0x532   : > { %9388 = vmatprep.mubr.msk.bf16.mxu0 %vm303_vm3, %v5326_v31  ;;  %v5330_v13 = vpack.c.bf16 %v5305_v1, %v5304_v24  ;;  %v5307_v21 = vld [vmem:[#allocation3 + $0x78] sm:$0xff]  ;;  %v5308_v8 = vld [vmem:[#allocation3 + $0x80] sm:$0xff]  ;;  %v5309_v45 = vld [vmem:[#allocation3 + $0x88] sm:$0xff] }
 0x533   : > { %v5331_v34 = vpack.c.bf16 %v5307_v21, %v5306_v61  ;;  %v5332_v18 = vpack.c.bf16 %v5309_v45, %v5308_v8  ;;  %v5310_v63 = vld [vmem:[#allocation3 + $0x90] sm:$0xff]  ;;  %v5311_v9 = vld [vmem:[#allocation3 + $0x98] sm:$0xff]  ;;  %v5312_v15 = vld [vmem:[#allocation3 + $0xa0] sm:$0xff] }
 0x534   : > { %v5313_v35 = vld [vmem:[#allocation3 + $0xa8] sm:$0xff]  ;;  %v5333_v59 = vpack.c.bf16 %v5311_v9, %v5310_v63  ;;  %v5314_v49 = vld [vmem:[#allocation3 + $0xb0] sm:$0xff]  ;;  %v5315_v60 = vld [vmem:[#allocation3 + $0xb8] sm:$0xff] }
 0x535   : > { %v5334_v62 = vpack.c.bf16 %v5313_v35, %v5312_v15  ;;  %v5316_v27 = vld [vmem:[#allocation3 + $0xc0] sm:$0xff]  ;;  %v5317_v22 = vld [vmem:[#allocation3 + $0xc8] sm:$0xff]  ;;  %v5335_v37 = vpack.c.bf16 %v5315_v60, %v5314_v49  ;;  %v5318_v25 = vld [vmem:[#allocation3 + $0xd0] sm:$0xff] }
 0x536   : > { %v5336_v40 = vpack.c.bf16 %v5317_v22, %v5316_v27  ;;  %v5319_v51 = vld [vmem:[#allocation3 + $0xd8] sm:$0xff]  ;;  %v5320_v50 = vld [vmem:[#allocation3 + $0xe0] sm:$0xff]  ;;  %v5321_v30 = vld [vmem:[#allocation3 + $0xe8] sm:$0xff] }
 0x537   : > { %v5337_v42 = vpack.c.bf16 %v5319_v51, %v5318_v25  ;;  %v5338_v38 = vpack.c.bf16 %v5321_v30, %v5320_v50  ;;  %v5322_v5 = vld [vmem:[#allocation3 + $0xf0] sm:$0xff]  ;;  %v5323_v6 = vld [vmem:[#allocation3 + $0xf8] sm:$0xff] }
 0x538   : > { %v5339_v36 = vpack.c.bf16 %v5323_v6, %v5322_v5 }
 0x539   : > { %9389 = vmatmul.mubr.msk.bf16.gmra.mxu0 %vm303_vm3, %v5327_v4 }
 0x53a   : > { %9392 = vmatprep.mubr.msk.bf16.mxu0 %vm303_vm3, %v5328_v41 }
 0x541   : > { %9393 = vmatmul.mubr.msk.bf16.gmra.mxu0 %vm303_vm3, %v5329_v44 }
 0x542   : > { %9396 = vmatprep.mubr.msk.bf16.mxu0 %vm303_vm3, %v5330_v13 }
 0x549   : > { %9397 = vmatmul.mubr.msk.bf16.gmra.mxu0 %vm303_vm3, %v5331_v34 }
 0x54a   : > { %9400 = vmatprep.mubr.msk.bf16.mxu0 %vm303_vm3, %v5332_v18 }
 0x551   : > { %9401 = vmatmul.mubr.msk.bf16.gmra.mxu0 %vm303_vm3, %v5333_v59 }
 0x552   : > { %9404 = vmatprep.mubr.msk.bf16.mxu0 %vm303_vm3, %v5334_v62 }
 0x559   : > { %9405 = vmatmul.mubr.msk.bf16.gmra.mxu0 %vm303_vm3, %v5335_v37 }
 0x55a   : > { %9408 = vmatprep.mubr.msk.bf16.mxu0 %vm303_vm3, %v5336_v40 }
 0x561   : > { %9409 = vmatmul.mubr.msk.bf16.gmra.mxu0 %vm303_vm3, %v5337_v42 }
 0x562   : > { %9412 = vmatprep.mubr.msk.bf16.mxu0 %vm303_vm3, %v5338_v38 }
 0x569   : > { %9413 = vmatmul.mubr.msk.bf16.gmra.mxu0 %vm303_vm3, %v5339_v36 }
 0x5f1   : > { %v9386_v2 = vpop.f32.mrf.mxu0 }
 0x5f2   : > { %v5560_v47 = vmul.f32 %v9386_v2, %v13181_v52 }
 0x5f3   : > { %v5427_v53 = vpop.f32.mrf.mxu0 }
 0x5f4   : > { %v13189_v11 = vadd.f32 %v13185_v58, %v5560_v47  ;;  %v5558_v10 = vmul.f32 %v13181_v52, %v5427_v53 }
 0x5f5   : > { %v9387_v46 = vpop.f32.mrf.mxu0 }
 0x5f6   : > { %v5628_v12 = vsub.f32 0.0, %v13189_v11  ;;  %v13194_v0 = vadd.f32 %v13185_v58, %v5558_v10  ;;  %v5561_v23 = vmul.f32 %v9387_v46, %v13181_v52 }
 0x5f7   : > { %v5430_v26 = vpop.f32.mrf.mxu0 }
 0x5f8   : > { %v5662_v43 = vmul.f32 1.442695, %v5628_v12  ;;  %v5626_v14 = vsub.f32 0.0, %v13194_v0  ;;  %v13199_v33 = vadd.f32 %v13185_v58, %v5561_v23  ;;  %v5559_v39 = vmul.f32 %v13181_v52, %v5430_v26 }
 0x5f9   : > { %v9390_v28 = vpop.f32.mrf.mxu0 }
 0x5fa   : > { %9623 = vpow2.f32 %v5662_v43  ;;  %v5658_v31 = vmul.f32 1.442695, %v5626_v14  ;;  %v5629_v19 = vsub.f32 0.0, %v13199_v33  ;;  %v13204_v56 = vadd.f32 %v13185_v58, %v5559_v39 }
 0x5fb   : > { %v5564_v17 = vmul.f32 %v9390_v28, %v13181_v52  ;;  %v5443_v48 = vpop.f32.mrf.mxu0 }
 0x5fc   : > { %9625 = vpow2.f32 %v5658_v31  ;;  %v5664_v4 = vmul.f32 1.442695, %v5629_v19  ;;  %v5627_v41 = vsub.f32 0.0, %v13204_v56  ;;  %v5562_v16 = vmul.f32 %v13181_v52, %v5443_v48 }
 0x5fd   : > { %v13210_v20 = vadd.f32 %v13185_v58, %v5564_v17  ;;  %v9391_v24 = vpop.f32.mrf.mxu0 }
 0x5fe   : > { %9627 = vpow2.f32 %v5664_v4  ;;  %v5660_v1 = vmul.f32 1.442695, %v5627_v41  ;;  %v13213_v44 = vadd.f32 %v13185_v58, %v5562_v16  ;;  %v5565_v13 = vmul.f32 %v9391_v24, %v13181_v52 }
 0x5ff   : > { %v5632_v61 = vsub.f32 0.0, %v13210_v20  ;;  %v5446_v21 = vpop.f32.mrf.mxu0 }
 0x600   : > { %9629 = vpow2.f32 %v5660_v1  ;;  %v5630_v8 = vsub.f32 0.0, %v13213_v44  ;;  %v13219_v45 = vadd.f32 %v13185_v58, %v5565_v13  ;;  %v5563_v34 = vmul.f32 %v13181_v52, %v5446_v21 }
 0x601   : > { %v5670_v18 = vmul.f32 1.442695, %v5632_v61  ;;  %v9394_v63 = vpop.f32.mrf.mxu0 }
 0x602   : > { %v5666_v9 = vmul.f32 1.442695, %v5630_v8  ;;  %v5633_v15 = vsub.f32 0.0, %v13219_v45  ;;  %v13224_v35 = vadd.f32 %v13185_v58, %v5563_v34  ;;  %v5568_v59 = vmul.f32 %v9394_v63, %v13181_v52 }
 0x603   : > { %9631 = vpow2.f32 %v5670_v18  ;;  %v5459_v62 = vpop.f32.mrf.mxu0 }
 0x604   : > { %9633 = vpow2.f32 %v5666_v9  ;;  %v5672_v49 = vmul.f32 1.442695, %v5633_v15  ;;  %v5631_v60 = vsub.f32 0.0, %v13224_v35  ;;  %v13229_v27 = vadd.f32 %v13185_v58, %v5568_v59 }
 0x605   : > { %v5566_v22 = vmul.f32 %v13181_v52, %v5459_v62  ;;  %v9395_v37 = vpop.f32.mrf.mxu0 }
 0x606   : > { %9635 = vpow2.f32 %v5672_v49  ;;  %v5668_v40 = vmul.f32 1.442695, %v5631_v60  ;;  %v5636_v25 = vsub.f32 0.0, %v13229_v27  ;;  %v5569_v51 = vmul.f32 %v9395_v37, %v13181_v52 }
 0x607   : > { %v9624_v50 = vpop.eup %9623  ;;  %v13235_v30 = vadd.f32 %v13185_v58, %v5566_v22  ;;  %v5462_v42 = vpop.f32.mrf.mxu0 }
 0x608   : > { %v5724_v38 = vadd.f32 1.0, %v9624_v50  ;;  %9637 = vpow2.f32 %v5668_v40  ;;  %v5678_v5 = vmul.f32 1.442695, %v5636_v25  ;;  %v13238_v6 = vadd.f32 %v13185_v58, %v5569_v51 }
 0x609   : > { %v9626_v36 = vpop.eup %9625  ;;  %v5634_v57 = vsub.f32 0.0, %v13235_v30  ;;  %v5567_v29 = vmul.f32 %v13181_v52, %v5462_v42  ;;  %v9398_v3 = vpop.f32.mrf.mxu0 }
 0x60a   : > { %9639 = vrcp.f32 %v5724_v38  ;;  %v5722_v2 = vadd.f32 1.0, %v9626_v36  ;;  %v5637_v47 = vsub.f32 0.0, %v13238_v6  ;;  %v5572_v53 = vmul.f32 %v9398_v3, %v13181_v52 }
 0x60b   : > { %v9628_v10 = vpop.eup %9627  ;;  %9641 = vpow2.f32 %v5678_v5  ;;  %v5674_v46 = vmul.f32 1.442695, %v5634_v57  ;;  %v13245_v12 = vadd.f32 %v13185_v58, %v5567_v29  ;;  %v5475_v23 = vpop.f32.mrf.mxu0 }
 0x60c   : > { %9643 = vrcp.f32 %v5722_v2  ;;  %v5725_v26 = vadd.f32 1.0, %v9628_v10  ;;  %v5680_v43 = vmul.f32 1.442695, %v5637_v47  ;;  %v13248_v14 = vadd.f32 %v13185_v58, %v5572_v53 }
 0x60d   : > { %v9630_v39 = vpop.eup %9629  ;;  %9645 = vpow2.f32 %v5674_v46  ;;  %v5635_v28 = vsub.f32 0.0, %v13245_v12  ;;  %v5570_v31 = vmul.f32 %v13181_v52, %v5475_v23  ;;  %v9399_v19 = vpop.f32.mrf.mxu0 }
 0x60e   : > { %9647 = vrcp.f32 %v5725_v26  ;;  %v5723_v17 = vadd.f32 1.0, %v9630_v39  ;;  %v5640_v48 = vsub.f32 0.0, %v13248_v14  ;;  %v5573_v4 = vmul.f32 %v9399_v19, %v13181_v52 }
 0x60f   : > { %9649 = vpow2.f32 %v5680_v43  ;;  %v5676_v41 = vmul.f32 1.442695, %v5635_v28  ;;  %v13255_v16 = vadd.f32 %v13185_v58, %v5570_v31  ;;  %v5478_v24 = vpop.f32.mrf.mxu0 }
 0x610   : > { %v9632_v1 = vpop.eup %9631  ;;  %9651 = vrcp.f32 %v5723_v17  ;;  %v5686_v13 = vmul.f32 1.442695, %v5640_v48  ;;  %v13258_v61 = vadd.f32 %v13185_v58, %v5573_v4  ;;  %v5571_v21 = vmul.f32 %v13181_v52, %v5478_v24 }
 0x611   : > { %v9634_v8 = vpop.eup %9633  ;;  %v5728_v34 = vadd.f32 1.0, %v9632_v1  ;;  %9653 = vpow2.f32 %v5676_v41  ;;  %v5638_v18 = vsub.f32 0.0, %v13255_v16  ;;  %v9402_v63 = vpop.f32.mrf.mxu0 }
 0x612   : > { %v5726_v9 = vadd.f32 1.0, %v9634_v8  ;;  %9655 = vpow2.f32 %v5686_v13  ;;  %v5641_v15 = vsub.f32 0.0, %v13258_v61  ;;  %v13264_v59 = vadd.f32 %v13185_v58, %v5571_v21 }
 0x613   : > { %v9636_v62 = vpop.eup %9635  ;;  %9657 = vrcp.f32 %v5728_v34  ;;  %v5682_v49 = vmul.f32 1.442695, %v5638_v18  ;;  %v5576_v60 = vmul.f32 %v9402_v63, %v13181_v52  ;;  %v5491_v22 = vpop.f32.mrf.mxu0 }
 0x614   : > { %9659 = vrcp.f32 %v5726_v9  ;;  %v5729_v37 = vadd.f32 1.0, %v9636_v62  ;;  %v5688_v40 = vmul.f32 1.442695, %v5641_v15  ;;  %v5639_v25 = vsub.f32 0.0, %v13264_v59 }
 0x615   : > { %v9638_v51 = vpop.eup %9637  ;;  %9661 = vpow2.f32 %v5682_v49  ;;  %v13269_v50 = vadd.f32 %v13185_v58, %v5576_v60  ;;  %v5574_v42 = vmul.f32 %v13181_v52, %v5491_v22  ;;  %v9403_v38 = vpop.f32.mrf.mxu0 }
 0x616   : > { %9663 = vrcp.f32 %v5729_v37  ;;  %v5727_v5 = vadd.f32 1.0, %v9638_v51  ;;  %v5684_v36 = vmul.f32 1.442695, %v5639_v25  ;;  %v5577_v57 = vmul.f32 %v9403_v38, %v13181_v52 }
 0x617   : > { %v9640_v29 = vpop.eup %9639  ;;  %9665 = vpow2.f32 %v5688_v40  ;;  %v5644_v3 = vsub.f32 0.0, %v13269_v50  ;;  %v13275_v2 = vadd.f32 %v13185_v58, %v5574_v42  ;;  %v5494_v47 = vpop.f32.mrf.mxu0 }
 0x618   : > { %v9642_v53 = vpop.eup %9641  ;;  %v5788_v10 = vmul.f32 %v9640_v29, %v13189_v11  ;;  %9667 = vrcp.f32 %v5727_v5  ;;  %v13279_v46 = vadd.f32 %v13185_v58, %v5577_v57  ;;  %v5575_v23 = vmul.f32 %v13181_v52, %v5494_v47 }
 0x619   : > { %v9644_v26 = vpop.eup %9643  ;;  %v5732_v43 = vadd.f32 1.0, %v9642_v53  ;;  %9669 = vpow2.f32 %v5684_v36  ;;  %v5694_v39 = vmul.f32 1.442695, %v5644_v3  ;;  %v5642_v28 = vsub.f32 0.0, %v13275_v2  ;;  %v9406_v31 = vpop.f32.mrf.mxu0 }
 0x61a   : > { %v9646_v19 = vpop.eup %9645  ;;  %5820 = vst.msk [vmem:[#allocation2 + $0xd1] sm:$0xff] %vm303_vm3, %v5788_v10  ;;  %v5786_v17 = vmul.f32 %v9644_v26, %v13194_v0  ;;  %v5645_v11 = vsub.f32 0.0, %v13279_v46  ;;  %v13287_v48 = vadd.f32 %v13185_v58, %v5575_v23  ;;  %v5580_v4 = vmul.f32 %v9406_v31, %v13181_v52 }
 0x61b   : > { %v9648_v41 = vpop.eup %9647  ;;  %9671 = vrcp.f32 %v5732_v43  ;;  %v5730_v24 = vadd.f32 1.0, %v9646_v19  ;;  %v5690_v1 = vmul.f32 1.442695, %v5642_v28  ;;  %v5507_v13 = vpop.f32.mrf.mxu0 }
 0x61c   : > { %v9650_v21 = vpop.eup %9649  ;;  %5818 = vst.msk [vmem:[#allocation2 + $0xb1] sm:$0xff] %vm303_vm3, %v5786_v17  ;;  %v5789_v8 = vmul.f32 %v9648_v41, %v13199_v33  ;;  %9673 = vpow2.f32 %v5694_v39  ;;  %v5696_v34 = vmul.f32 1.442695, %v5645_v11  ;;  %v5643_v0 = vsub.f32 0.0, %v13287_v48 }
 0x61d   : > { %v9652_v18 = vpop.eup %9651  ;;  %9675 = vrcp.f32 %v5730_v24  ;;  %v5733_v63 = vadd.f32 1.0, %v9650_v21  ;;  %v13294_v9 = vadd.f32 %v13185_v58, %v5580_v4  ;;  %v5578_v15 = vmul.f32 %v13181_v52, %v5507_v13  ;;  %v9407_v62 = vpop.f32.mrf.mxu0 }
 0x61e   : > { %v9654_v49 = vpop.eup %9653  ;;  %5821 = vst.msk [vmem:[#allocation2 + $0xe1] sm:$0xff] %vm303_vm3, %v5789_v8  ;;  %v5787_v60 = vmul.f32 %v9652_v18, %v13204_v56  ;;  %9677 = vpow2.f32 %v5690_v1  ;;  %v5692_v33 = vmul.f32 1.442695, %v5643_v0  ;;  %v5581_v22 = vmul.f32 %v9407_v62, %v13181_v52 }
 0x61f   : > { %v9656_v37 = vpop.eup %9655  ;;  %9679 = vrcp.f32 %v5733_v63  ;;  %v5731_v40 = vadd.f32 1.0, %v9654_v49  ;;  %v5648_v25 = vsub.f32 0.0, %v13294_v9  ;;  %v13302_v51 = vadd.f32 %v13185_v58, %v5578_v15  ;;  %v5510_v42 = vpop.f32.mrf.mxu0 }
 0x620   : > { %v9658_v38 = vpop.eup %9657  ;;  %5819 = vst.msk [vmem:[#allocation2 + $0xc1] sm:$0xff] %vm303_vm3, %v5787_v60  ;;  %v5736_v5 = vadd.f32 1.0, %v9656_v37  ;;  %9681 = vpow2.f32 %v5696_v34  ;;  %v13306_v56 = vadd.f32 %v13185_v58, %v5581_v22  ;;  %v5579_v36 = vmul.f32 %v13181_v52, %v5510_v42 }
 0x621   : > { %v9660_v57 = vpop.eup %9659  ;;  %v5792_v29 = vmul.f32 %v9658_v38, %v13210_v20  ;;  %9683 = vrcp.f32 %v5731_v40  ;;  %v5702_v3 = vmul.f32 1.442695, %v5648_v25  ;;  %v5646_v47 = vsub.f32 0.0, %v13302_v51  ;;  %v9410_v53 = vpop.f32.mrf.mxu0 }
 0x622   : > { %v9662_v10 = vpop.eup %9661  ;;  %v5790_v23 = vmul.f32 %v9660_v57, %v13213_v44  ;;  %9685 = vrcp.f32 %v5736_v5  ;;  %v5649_v26 = vsub.f32 0.0, %v13306_v56  ;;  %v13314_v43 = vadd.f32 %v13185_v58, %v5579_v36 }
 0x623   : > { %v9664_v39 = vpop.eup %9663  ;;  %5824 = vst.msk [vmem:[#allocation2 + $0x111] sm:$0xff] %vm303_vm3, %v5792_v29  ;;  %v5734_v28 = vadd.f32 1.0, %v9662_v10  ;;  %9687 = vpow2.f32 %v5692_v33  ;;  %v5698_v20 = vmul.f32 1.442695, %v5646_v47  ;;  %v5584_v31 = vmul.f32 %v9410_v53, %v13181_v52  ;;  %v5523_v19 = vpop.f32.mrf.mxu0 }
 0x624   : > { %v9666_v17 = vpop.eup %9665  ;;  %5822 = vst.msk [vmem:[#allocation2 + $0xf1] sm:$0xff] %vm303_vm3, %v5790_v23  ;;  %v5793_v44 = vmul.f32 %v9664_v39, %v13219_v45  ;;  %9689 = vpow2.f32 %v5702_v3  ;;  %v5704_v11 = vmul.f32 1.442695, %v5649_v26  ;;  %v5647_v4 = vsub.f32 0.0, %v13314_v43 }
 0x625   : > { %v9668_v41 = vpop.eup %9667  ;;  %9691 = vrcp.f32 %v5734_v28  ;;  %v5737_v24 = vadd.f32 1.0, %v9666_v17  ;;  %v13322_v1 = vadd.f32 %v13185_v58, %v5584_v31  ;;  %v5582_v13 = vmul.f32 %v13181_v52, %v5523_v19  ;;  %v9411_v21 = vpop.f32.mrf.mxu0 }
 0x626   : > { %v9670_v8 = vpop.eup %9669  ;;  %5825 = vst.msk [vmem:[#allocation2 + $0x121] sm:$0xff] %vm303_vm3, %v5793_v44  ;;  %v5791_v34 = vmul.f32 %v9668_v41, %v13224_v35  ;;  %9693 = vpow2.f32 %v5698_v20  ;;  %v5700_v45 = vmul.f32 1.442695, %v5647_v4  ;;  %v5585_v0 = vmul.f32 %v9411_v21, %v13181_v52 }
 0x627   : > { %9695 = vrcp.f32 %v5737_v24  ;;  %v5735_v18 = vadd.f32 1.0, %v9670_v8  ;;  %v5652_v63 = vsub.f32 0.0, %v13322_v1  ;;  %v13330_v15 = vadd.f32 %v13185_v58, %v5582_v13  ;;  %v5526_v62 = vpop.f32.mrf.mxu0 }
 0x628   : > { %v9672_v49 = vpop.eup %9671  ;;  %5823 = vst.msk [vmem:[#allocation2 + $0x101] sm:$0xff] %vm303_vm3, %v5791_v34  ;;  %9697 = vpow2.f32 %v5704_v11  ;;  %v13334_v60 = vadd.f32 %v13185_v58, %v5585_v0  ;;  %v5583_v35 = vmul.f32 %v13181_v52, %v5526_v62 }
 0x629   : > { %v9674_v33 = vpop.eup %9673  ;;  %v5796_v22 = vmul.f32 %v9672_v49, %v13229_v27  ;;  %9699 = vrcp.f32 %v5735_v18  ;;  %v5710_v37 = vmul.f32 1.442695, %v5652_v63  ;;  %v5650_v40 = vsub.f32 0.0, %v13330_v15  ;;  %v9414_v25 = vpop.f32.mrf.mxu0 }
 0x62a   : > { %v9676_v42 = vpop.eup %9675  ;;  %v5740_v38 = vadd.f32 1.0, %v9674_v33  ;;  %9701 = vpow2.f32 %v5700_v45  ;;  %v5653_v5 = vsub.f32 0.0, %v13334_v60  ;;  %v13341_v36 = vadd.f32 %v13185_v58, %v5583_v35 }
 0x62b   : > { %v9678_v57 = vpop.eup %9677  ;;  %5828 = vst.msk [vmem:[#allocation2 + $0x171] sm:$0xff] %vm303_vm3, %v5796_v22  ;;  %v5794_v29 = vmul.f32 %v9676_v42, %v13235_v30  ;;  %9703 = vpow2.f32 %v5710_v37  ;;  %v5706_v27 = vmul.f32 1.442695, %v5650_v40  ;;  %v5588_v3 = vmul.f32 %v9414_v25, %v13181_v52  ;;  %v5539_v47 = vpop.f32.mrf.mxu0 }
 0x62c   : > { %v9680_v53 = vpop.eup %9679  ;;  %9705 = vrcp.f32 %v5740_v38  ;;  %v5738_v10 = vadd.f32 1.0, %v9678_v57  ;;  %v5712_v23 = vmul.f32 1.442695, %v5653_v5  ;;  %v5651_v26 = vsub.f32 0.0, %v13341_v36 }
 0x62d   : > { %v9682_v39 = vpop.eup %9681  ;;  %5826 = vst.msk [vmem:[#allocation2 + $0x151] sm:$0xff] %vm303_vm3, %v5794_v29  ;;  %v5797_v28 = vmul.f32 %v9680_v53, %v13238_v6  ;;  %9707 = vpow2.f32 %v5706_v27  ;;  %v13350_v20 = vadd.f32 %v13185_v58, %v5588_v3  ;;  %v5586_v30 = vmul.f32 %v13181_v52, %v5539_v47  ;;  %v9415_v31 = vpop.f32.mrf.mxu0 }
 0x62e   : > { %v9684_v19 = vpop.eup %9683  ;;  %9709 = vrcp.f32 %v5738_v10  ;;  %v5741_v17 = vadd.f32 1.0, %v9682_v39  ;;  %v5708_v44 = vmul.f32 1.442695, %v5651_v26  ;;  %v5589_v11 = vmul.f32 %v9415_v31, %v13181_v52 }
 0x62f   : > { %v9686_v4 = vpop.eup %9685  ;;  %5829 = vst.msk [vmem:[#allocation2 + $0x181] sm:$0xff] %vm303_vm3, %v5797_v28  ;;  %v5795_v41 = vmul.f32 %v9684_v19, %v13245_v12  ;;  %9711 = vpow2.f32 %v5712_v23  ;;  %v5656_v6 = vsub.f32 0.0, %v13350_v20  ;;  %v13358_v24 = vadd.f32 %v13185_v58, %v5586_v30  ;;  %v5542_v13 = vpop.f32.mrf.mxu0 }
 0x630   : > { %v9688_v21 = vpop.eup %9687  ;;  %v5800_v8 = vmul.f32 %v9686_v4, %v13248_v14  ;;  %9713 = vrcp.f32 %v5741_v17  ;;  %v13362_v34 = vadd.f32 %v13185_v58, %v5589_v11  ;;  %v5587_v45 = vmul.f32 %v13181_v52, %v5542_v13 }
 0x631   : > { %v9690_v0 = vpop.eup %9689  ;;  %5827 = vst.msk [vmem:[#allocation2 + $0x161] sm:$0xff] %vm303_vm3, %v5795_v41  ;;  %v5739_v12 = vadd.f32 1.0, %v9688_v21  ;;  %9715 = vpow2.f32 %v5708_v44  ;;  %v5718_v18 = vmul.f32 1.442695, %v5656_v6  ;;  %v5654_v63 = vsub.f32 0.0, %v13358_v24 }
 0x632   : > { %v9692_v62 = vpop.eup %9691  ;;  %5832 = vst.msk [vmem:[#allocation2 + $0x1b1] sm:$0xff] %vm303_vm3, %v5800_v8  ;;  %v5744_v49 = vadd.f32 1.0, %v9690_v0  ;;  %v5657_v14 = vsub.f32 0.0, %v13362_v34  ;;  %v13370_v35 = vadd.f32 %v13185_v58, %v5587_v45 }
 0x633   : > { %v9694_v33 = vpop.eup %9693  ;;  %v5798_v52 = vmul.f32 %v9692_v62, %v13255_v16  ;;  %9717 = vrcp.f32 %v5739_v12  ;;  %v5714_v22 = vmul.f32 1.442695, %v5654_v63 }
 0x634   : > { %v9696_v37 = vpop.eup %9695  ;;  %9719 = vrcp.f32 %v5744_v49  ;;  %v5742_v40 = vadd.f32 1.0, %v9694_v33  ;;  %v5655_v25 = vsub.f32 0.0, %v13370_v35  ;;  %v5720_v5 = vmul.f32 1.442695, %v5657_v14 }
 0x635   : > { %v9698_v42 = vpop.eup %9697  ;;  %5830 = vst.msk [vmem:[#allocation2 + $0x191] sm:$0xff] %vm303_vm3, %v5798_v52  ;;  %v5801_v38 = vmul.f32 %v9696_v37, %v13258_v61  ;;  %9721 = vpow2.f32 %v5718_v18 }
 0x636   : > { %v9700_v57 = vpop.eup %9699  ;;  %9723 = vrcp.f32 %v5742_v40  ;;  %v5745_v58 = vadd.f32 1.0, %v9698_v42  ;;  %v5716_v47 = vmul.f32 1.442695, %v5655_v25 }
 0x637   : > { %v9702_v29 = vpop.eup %9701  ;;  %5833 = vst.msk [vmem:[#allocation2 + $0x1c1] sm:$0xff] %vm303_vm3, %v5801_v38  ;;  %v5799_v16 = vmul.f32 %v9700_v57, %v13264_v59  ;;  %9725 = vpow2.f32 %v5714_v22 }
 0x638   : > { %v9704_v27 = vpop.eup %9703  ;;  %9727 = vrcp.f32 %v5745_v58  ;;  %v5743_v3 = vadd.f32 1.0, %v9702_v29 }
 0x639   : > { %v9706_v53 = vpop.eup %9705  ;;  %5831 = vst.msk [vmem:[#allocation2 + $0x1a1] sm:$0xff] %vm303_vm3, %v5799_v16  ;;  %v5748_v10 = vadd.f32 1.0, %v9704_v27  ;;  %9729 = vpow2.f32 %v5720_v5 }
 0x63a   : > { %v9708_v61 = vpop.eup %9707  ;;  %v5804_v23 = vmul.f32 %v9706_v53, %v13269_v50  ;;  %9731 = vrcp.f32 %v5743_v3 }
 0x63b   : > { %v9710_v26 = vpop.eup %9709  ;;  %9733 = vrcp.f32 %v5748_v10  ;;  %v5746_v39 = vadd.f32 1.0, %v9708_v61 }
 0x63c   : > { %v9712_v28 = vpop.eup %9711  ;;  %5836 = vst.msk [vmem:[#allocation2 + $0x211] sm:$0xff] %vm303_vm3, %v5804_v23  ;;  %v5802_v59 = vmul.f32 %v9710_v26, %v13275_v2  ;;  %9735 = vpow2.f32 %v5716_v47 }
 0x63d   : > { %v9714_v30 = vpop.eup %9713  ;;  %9737 = vrcp.f32 %v5746_v39  ;;  %v5749_v31 = vadd.f32 1.0, %v9712_v28 }
 0x63e   : > { %v9716_v19 = vpop.eup %9715  ;;  %5834 = vst.msk [vmem:[#allocation2 + $0x1f1] sm:$0xff] %vm303_vm3, %v5802_v59  ;;  %v5805_v17 = vmul.f32 %v9714_v30, %v13279_v46 }
 0x63f   : > { %9739 = vrcp.f32 %v5749_v31  ;;  %v5747_v50 = vadd.f32 1.0, %v9716_v19 }
 0x640   : > { %v9718_v44 = vpop.eup %9717  ;;  %5837 = vst.msk [vmem:[#allocation2 + $0x221] sm:$0xff] %vm303_vm3, %v5805_v17 }
 0x641   : > { %v9720_v11 = vpop.eup %9719  ;;  %v5803_v4 = vmul.f32 %v9718_v44, %v13287_v48  ;;  %9741 = vrcp.f32 %v5747_v50 }
 0x642   : > { %v9722_v41 = vpop.eup %9721  ;;  %v5808_v2 = vmul.f32 %v9720_v11, %v13294_v9 }
 0x643   : > { %v9724_v6 = vpop.eup %9723  ;;  %5835 = vst.msk [vmem:[#allocation2 + $0x201] sm:$0xff] %vm303_vm3, %v5803_v4  ;;  %v5752_v13 = vadd.f32 1.0, %v9722_v41 }
 0x644   : > { %v9726_v21 = vpop.eup %9725  ;;  %5840 = vst.msk [vmem:[#allocation2 + $0x251] sm:$0xff] %vm303_vm3, %v5808_v2  ;;  %v5806_v46 = vmul.f32 %v9724_v6, %v13302_v51 }
 0x645   : > { %v9728_v8 = vpop.eup %9727  ;;  %9743 = vrcp.f32 %v5752_v13  ;;  %v5750_v45 = vadd.f32 1.0, %v9726_v21 }
 0x646   : > { %v9730_v0 = vpop.eup %9729  ;;  %5838 = vst.msk [vmem:[#allocation2 + $0x231] sm:$0xff] %vm303_vm3, %v5806_v46  ;;  %v5809_v48 = vmul.f32 %v9728_v8, %v13306_v56 }
 0x647   : > { %v9732_v12 = vpop.eup %9731  ;;  %9745 = vrcp.f32 %v5750_v45  ;;  %v5753_v9 = vadd.f32 1.0, %v9730_v0 }
 0x648   : > { %v9734_v18 = vpop.eup %9733  ;;  %5841 = vst.msk [vmem:[#allocation2 + $0x261] sm:$0xff] %vm303_vm3, %v5809_v48  ;;  %v5807_v63 = vmul.f32 %v9732_v12, %v13314_v43 }
 0x649   : > { %v9736_v62 = vpop.eup %9735  ;;  %v5812_v49 = vmul.f32 %v9734_v18, %v13322_v1  ;;  %9747 = vrcp.f32 %v5753_v9 }
 0x64a   : > { %v9738_v51 = vpop.eup %9737  ;;  %5839 = vst.msk [vmem:[#allocation2 + $0x241] sm:$0xff] %vm303_vm3, %v5807_v63  ;;  %v5751_v14 = vadd.f32 1.0, %v9736_v62 }
 0x64b   : > { %5844 = vst.msk [vmem:[#allocation2 + $0x2b1] sm:$0xff] %vm303_vm3, %v5812_v49  ;;  %v5810_v56 = vmul.f32 %v9738_v51, %v13330_v15 }
 0x64c   : > { %v9740_v33 = vpop.eup %9739  ;;  %9749 = vrcp.f32 %v5751_v14 }
 0x64d   : > { %5842 = vst.msk [vmem:[#allocation2 + $0x291] sm:$0xff] %vm303_vm3, %v5810_v56  ;;  %v5813_v52 = vmul.f32 %v9740_v33, %v13334_v60 }
 0x64e   : > { %v9742_v22 = vpop.eup %9741 }
 0x64f   : > { %5845 = vst.msk [vmem:[#allocation2 + $0x2c1] sm:$0xff] %vm303_vm3, %v5813_v52  ;;  %v5811_v43 = vmul.f32 %v9742_v22, %v13341_v36 }
 0x651   : > { %5843 = vst.msk [vmem:[#allocation2 + $0x2a1] sm:$0xff] %vm303_vm3, %v5811_v43 }
 0x652   : > { %v9744_v1 = vpop.eup %9743 }
 0x653   : > { %v5816_v37 = vmul.f32 %v9744_v1, %v13350_v20 }
 0x654   : > { %v9746_v40 = vpop.eup %9745 }
 0x655   : > { %5848 = vst.msk [vmem:[#allocation2 + $0x2f1] sm:$0xff] %vm303_vm3, %v5816_v37  ;;  %v5814_v15 = vmul.f32 %v9746_v40, %v13358_v24 }
 0x656   : > { %v9748_v25 = vpop.eup %9747 }
 0x657   : > { %5846 = vst.msk [vmem:[#allocation2 + $0x2d1] sm:$0xff] %vm303_vm3, %v5814_v15  ;;  %v5817_v60 = vmul.f32 %v9748_v25, %v13362_v34 }
 0x659   : > { %v9750_v42 = vpop.eup %9749  ;;  %5849 = vst.msk [vmem:[#allocation2 + $0x301] sm:$0xff] %vm303_vm3, %v5817_v60 }
 0x65a   : > { %v5815_v36 = vmul.f32 %v9750_v42, %v13370_v35 }
 0x65c   : > { %5847 = vst.msk [vmem:[#allocation2 + $0x2e1] sm:$0xff] %vm303_vm3, %v5815_v36 }
 0x65d LB: >> { %v15223_v32 = vld [vmem:[#allocation4_spill] sm:$0xff]  ;;  %v15224_v55 = vld [vmem:[#allocation74_spill] sm:$0xff]  ;;  %s5861_s23 = smul.u32 160, %s9925_s22  ;;  %v15225_v20 = vld [vmem:[#allocation5_spill] sm:$0xff]  ;;  %s9053_s26 = sshll.u32 %s9925_s22, 6  ;;  %s9925_s22 = sphi %s13411_s22, %s5860_s22  }
 0x65e   : >> { %v5932_v24 = vrot.slane %v15224_v55, %v15225_v20  ;;  %v15226_v34 = vld [vmem:[#allocation38_spill] sm:$0xff]  ;;  %v15227_v5 = vld [vmem:[#allocation77_spill] sm:$0xff]  ;;  %v15229_v29 = vld [vmem:[#allocation79_spill] sm:$0xff]  ;;  %v13447_v23 = vrot.slane %v15223_v32, %v15225_v20  ;;  %s7552_s27 = scalar_lea.vmem [#allocation3], %s9053_s26  ;;  %s5860_s22 = sadd.s32 1, %s9925_s22  }
 0x65f   : >> { %v5952_v38 = vrot.slane %v15224_v55, %v15226_v34  ;;  %v13423_v35 = vrot.slane %v15224_v55, %v15227_v5  ;;  %v15228_v57 = vld [vmem:[#allocation78_spill] sm:$0xff]  ;;  %v13431_v16 = vrot.slane %v15224_v55, %v15229_v29  ;;  %v15230_v27 = vld [vmem:[#allocation80_spill] sm:$0xff]  ;;  %v15231_v47 = vld [vmem:[#allocation81_spill] sm:$0xff]  ;;  %v13451_v26 = vrot.slane %v15223_v32, %v15226_v34  ;;  %s13457_s25 = scalar_lea.vmem [#allocation2], %s5861_s23  ;;  %p5857_p6 = scmp.ge.s32.totalorder %s5860_s22, 4  }
 0x660   : >> { %v13427_v58 = vrot.slane %v15224_v55, %v15228_v57  ;;  %v13435_v3 = vrot.slane %v15224_v55, %v15230_v27  ;;  %v13439_v53 = vrot.slane %v15224_v55, %v15231_v47  ;;  %v15233_v10 = vld [vmem:[#allocation82_spill] sm:$0xff]  ;;  %15235 = vst [vmem:[#allocation103_spill] sm:$0xff] %v13447_v23  ;;  %v13455_v39 = vrot.slane %v15223_v32, %v15227_v5 }
 0x661   : >> { %v13443_v61 = vrot.slane %v15224_v55, %v15233_v10  ;;  %15236 = vst [vmem:[#allocation104_spill] sm:$0xff] %v13451_v26  ;;  %v13466_v31 = vrot.slane %v15223_v32, %v15228_v57  ;;  %v13470_v19 = vrot.slane %v15223_v32, %v15229_v29  ;;  %v13474_v17 = vrot.slane %v15223_v32, %v15230_v27 }
 0x662   : >> { %15232 = vst [vmem:[#allocation101_spill] sm:$0xff] %v13439_v53  ;;  %15237 = vst [vmem:[#allocation105_spill] sm:$0xff] %v13455_v39  ;;  %v13478_v50 = vrot.slane %v15223_v32, %v15231_v47 }
 0x663   : >> { %15234 = vst [vmem:[#allocation102_spill] sm:$0xff] %v13443_v61  ;;  %v5863_v28 = vld [vmem:[%s13457_s25] sm:$0xff]  ;;  %v5864_v59 = vld [vmem:[%s13457_s25 + $0x8] sm:$0x3]  ;;  %v13462_v30 = vld [vmem:[%s13457_s25 + $0x10] sm:$0xff] }
 0x664   : >> { %15238 = vst [vmem:[#allocation106_spill] sm:$0xff] %v13466_v31  ;;  %15239 = vst [vmem:[#allocation107_spill] sm:$0xff] %v13470_v19  ;;  %v13481_v44 = vld [vmem:[%s13457_s25 + $0x18] sm:$0x3]  ;;  %v13484_v11 = vld [vmem:[%s13457_s25 + $0x20] sm:$0xff]  ;;  %v5933_v41 = vmul.f32 %v5932_v24, %v5863_v28  ;;  %v5934_v2 = vmul.f32 %v5932_v24, %v13462_v30  ;;  %v5953_v6 = vmul.f32 %v5952_v38, %v5863_v28 }
 0x665   : >> { %15240 = vst [vmem:[#allocation108_spill] sm:$0xff] %v13474_v17  ;;  %15241 = vst [vmem:[#allocation109_spill] sm:$0xff] %v13478_v50  ;;  %v13487_v4 = vld [vmem:[%s13457_s25 + $0x28] sm:$0x3]  ;;  %v5954_v13 = vmul.f32 %v5952_v38, %v5864_v59  ;;  %v13491_v21 = vld [vmem:[%s13457_s25 + $0x30] sm:$0xff]  ;;  %v5935_v45 = vmul.f32 %v5932_v24, %v13484_v11  ;;  %v5955_v0 = vmul.f32 %v5952_v38, %v13462_v30 }
 0x666   : >> { %v13494_v46 = vld [vmem:[%s13457_s25 + $0x38] sm:$0x3]  ;;  %v13497_v8 = vld [vmem:[%s13457_s25 + $0x40] sm:$0xff]  ;;  %v5956_v48 = vmul.f32 %v5952_v38, %v13481_v44  ;;  %v5957_v12 = vmul.f32 %v5952_v38, %v13484_v11  ;;  %v13504_v9 = vld [vmem:[%s13457_s25 + $0x48] sm:$0x3]  ;;  %v5936_v62 = vmul.f32 %v5932_v24, %v13491_v21  ;;  %v5958_v51 = vmul.f32 %v5952_v38, %v13487_v4 }
 0x667   : >> { %v13507_v18 = vld [vmem:[%s13457_s25 + $0x50] sm:$0xff]  ;;  %v13510_v63 = vld [vmem:[%s13457_s25 + $0x58] sm:$0x3]  ;;  %v5937_v49 = vmul.f32 %v5932_v24, %v13497_v8  ;;  %v5959_v14 = vmul.f32 %v5952_v38, %v13491_v21  ;;  %v13517_v56 = vld [vmem:[%s13457_s25 + $0x60] sm:$0xff]  ;;  %v5960_v43 = vmul.f32 %v5952_v38, %v13494_v46  ;;  %v5961_v1 = vmul.f32 %v5952_v38, %v13497_v8 }
 0x668   : >> { %v13520_v33 = vld [vmem:[%s13457_s25 + $0x68] sm:$0x3]  ;;  %v13523_v52 = vld [vmem:[%s13457_s25 + $0x70] sm:$0xff]  ;;  %v5938_v22 = vmul.f32 %v5932_v24, %v13507_v18  ;;  %v5962_v37 = vmul.f32 %v5952_v38, %v13504_v9  ;;  %v13530_v40 = vld [vmem:[%s13457_s25 + $0x78] sm:$0x3]  ;;  %v5939_v15 = vmul.f32 %v5932_v24, %v13517_v56  ;;  %v5963_v60 = vmul.f32 %v5952_v38, %v13507_v18 }
 0x669   : >> { %v5940_v25 = vmul.f32 %v5932_v24, %v13523_v52  ;;  %v5964_v42 = vmul.f32 %v5952_v38, %v13510_v63  ;;  %v5965_v36 = vmul.f32 %v5952_v38, %v13517_v56  ;;  %v5966_v55 = vmul.f32 %v5952_v38, %v13520_v33 }
 0x66a   : >> { %v5967_v7 = vmul.f32 %v5952_v38, %v13523_v52  ;;  %v5968_v47 = vmul.f32 %v5952_v38, %v13530_v40  ;;  %v5986_v27 = vrot.slane %v5953_v6, 1  ;;  %v6030_v29 = vmul.f32 %v13423_v35, %v5863_v28 }
 0x66b   : >> { %v6031_v57 = vmul.f32 %v13423_v35, %v5864_v59  ;;  %v6032_v24 = vmul.f32 %v13423_v35, %v13462_v30  ;;  %v5987_v5 = vrot.slane %v5954_v13, 1  ;;  %v5989_v34 = vrot.slane %v5955_v0, 1 }
 0x66c   : >> { %v6033_v54 = vmul.f32 %v13423_v35, %v13481_v44  ;;  %v6034_v20 = vmul.f32 %v13423_v35, %v13484_v11  ;;  %v5990_v32 = vrot.slane %v5956_v48, 1  ;;  %v6035_v38 = vmul.f32 %v13423_v35, %v13487_v4 }
 0x66d   : >> { %v6036_v28 = vmul.f32 %v13423_v35, %v13491_v21  ;;  %v6037_v59 = vmul.f32 %v13423_v35, %v13494_v46  ;;  %v5988_v6 = vsel %vm1587_vm5, %v5986_v27, %v5987_v5  ;;  %v5992_v13 = vrot.slane %v5957_v12, 1 }
 0x66e   : >> { %v5993_v0 = vrot.slane %v5958_v51, 1  ;;  %v6038_v10 = vmul.f32 %v13423_v35, %v13497_v8  ;;  %v5991_v50 = vsel %vm1587_vm5, %v5989_v34, %v5990_v32  ;;  %v5995_v17 = vrot.slane %v5959_v14, 1 }
 0x66f   : >> { %v6018_v48 = vadd.f32 %v5988_v6, %v5933_v41  ;;  %v6039_v19 = vmul.f32 %v13423_v35, %v13504_v9  ;;  %v5996_v39 = vrot.slane %v5960_v43, 1  ;;  %v5998_v26 = vrot.slane %v5961_v1, 1 }
 0x670   : >> { %v5994_v31 = vsel %vm1587_vm5, %v5992_v13, %v5993_v0  ;;  %v6019_v23 = vadd.f32 %v5991_v50, %v5934_v2  ;;  %v5999_v61 = vrot.slane %v5962_v37, 1  ;;  %v6040_v5 = vmul.f32 %v13423_v35, %v13507_v18 }
 0x671   : >> { %v6020_v53 = vadd.f32 %v5994_v31, %v5935_v45  ;;  %v6041_v27 = vmul.f32 %v13423_v35, %v13510_v63  ;;  %v5997_v32 = vsel %vm1587_vm5, %v5995_v17, %v5996_v39  ;;  %v6001_v34 = vrot.slane %v5963_v60, 1 }
 0x672   : >> { %v6002_v41 = vrot.slane %v5964_v42, 1  ;;  %v6042_v12 = vmul.f32 %v13423_v35, %v13517_v56  ;;  %v6000_v51 = vsel %vm1587_vm5, %v5998_v26, %v5999_v61  ;;  %v6004_v14 = vrot.slane %v5965_v36, 1 }
 0x673   : >> { %v6021_v43 = vadd.f32 %v5997_v32, %v5936_v62  ;;  %v6043_v31 = vmul.f32 %v13423_v35, %v13520_v33  ;;  %v6005_v2 = vrot.slane %v5966_v55, 1  ;;  %v6007_v45 = vrot.slane %v5967_v7, 1 }
 0x674   : >> { %v6003_v50 = vsel %vm1587_vm5, %v6001_v34, %v6002_v41  ;;  %v6022_v1 = vadd.f32 %v6000_v51, %v5937_v49  ;;  %v6008_v37 = vrot.slane %v5968_v47, 1  ;;  %v6044_v39 = vmul.f32 %v13423_v35, %v13523_v52 }
 0x675   : >> { %v6023_v6 = vadd.f32 %v6003_v50, %v5938_v22  ;;  %v6045_v17 = vmul.f32 %v13423_v35, %v13530_v40  ;;  %v6006_v61 = vsel %vm1587_vm5, %v6004_v14, %v6005_v2  ;;  %v6063_v26 = vrot.slane %v6030_v29, 2 }
 0x676   : >> { %v6064_v62 = vrot.slane %v6031_v57, 2  ;;  %v6107_v60 = vmul.f32 %v13427_v58, %v13462_v30  ;;  %v6009_v42 = vsel %vm1587_vm5, %v6007_v45, %v6008_v37  ;;  %v6024_v55 = vadd.f32 %v6006_v61, %v5939_v15 }
 0x677   : >> { %v6066_v7 = vrot.slane %v6032_v24, 2  ;;  %v6108_v47 = vmul.f32 %v13427_v58, %v13484_v11  ;;  %v6025_v49 = vadd.f32 %v6009_v42, %v5940_v25  ;;  %v6067_v36 = vrot.slane %v6033_v54, 2 }
 0x678   : >> { %v6065_v22 = vsel %vm1664_vm6, %v6063_v26, %v6064_v62  ;;  %v6069_v13 = vrot.slane %v6034_v20, 2  ;;  %v6070_v35 = vrot.slane %v6035_v38, 2  ;;  %v6072_v0 = vrot.slane %v6036_v28, 2  ;;  %v13589_v28 = vld [vmem:[%s13457_s25 + $0x80] sm:$0xff] }
 0x679   : >> { %v6073_v29 = vrot.slane %v6037_v59, 2  ;;  %v6075_v57 = vrot.slane %v6038_v10, 2  ;;  %v6068_v32 = vsel %vm1664_vm6, %v6066_v7, %v6067_v36  ;;  %v6076_v34 = vrot.slane %v6039_v19, 2 }
 0x67a   : >> { %v6078_v41 = vrot.slane %v6040_v5, 2  ;;  %v6079_v51 = vrot.slane %v6041_v27, 2  ;;  %v6071_v15 = vsel %vm1664_vm6, %v6069_v13, %v6070_v35  ;;  %v6081_v14 = vrot.slane %v6042_v12, 2 }
 0x67b   : >> { %v6074_v24 = vsel %vm1664_vm6, %v6072_v0, %v6073_v29  ;;  %v6082_v25 = vrot.slane %v6043_v31, 2  ;;  %v6077_v50 = vsel %vm1664_vm6, %v6075_v57, %v6076_v34  ;;  %v6084_v20 = vrot.slane %v6044_v39, 2 }
 0x67c   : >> { %v6080_v54 = vsel %vm1664_vm6, %v6078_v41, %v6079_v51  ;;  %v6085_v38 = vrot.slane %v6045_v17, 2  ;;  %v6095_v59 = vadd.f32 %v6065_v22, %v6018_v48  ;;  %v6096_v19 = vadd.f32 %v6068_v32, %v6019_v23 }
 0x67d   : >> { %v6083_v10 = vsel %vm1664_vm6, %v6081_v14, %v6082_v25  ;;  %v6097_v5 = vadd.f32 %v6071_v15, %v6020_v53  ;;  %v6098_v2 = vadd.f32 %v6074_v24, %v6021_v43  ;;  %v6099_v45 = vadd.f32 %v6077_v50, %v6022_v1 }
 0x67e   : >> { %v6086_v27 = vsel %vm1664_vm6, %v6084_v20, %v6085_v38  ;;  %v6100_v37 = vadd.f32 %v6080_v54, %v6023_v6  ;;  %v6101_v12 = vadd.f32 %v6083_v10, %v6024_v55  ;;  %v6109_v61 = vmul.f32 %v13427_v58, %v13491_v21 }
 0x67f   : >> { %v6102_v31 = vadd.f32 %v6086_v27, %v6025_v49  ;;  %v6110_v39 = vmul.f32 %v13427_v58, %v13497_v8  ;;  %v6111_v17 = vmul.f32 %v13427_v58, %v13507_v18  ;;  %v6112_v53 = vmul.f32 %v13427_v58, %v13517_v56  ;;  %v13606_v49 = vld [vmem:[%s13457_s25 + $0x88] sm:$0x3] }
 0x680   : >> { %v6113_v23 = vmul.f32 %v13427_v58, %v13523_v52  ;;  %v6114_v48 = vmul.f32 %v13427_v58, %v13589_v28  ;;  %v6115_v43 = vadd.f32 %v6107_v60, %v6095_v59  ;;  %v6116_v1 = vadd.f32 %v6108_v47, %v6096_v19 }
 0x681   : >> { %v6117_v6 = vadd.f32 %v6109_v61, %v6097_v5  ;;  %v6118_v26 = vadd.f32 %v6110_v39, %v6098_v2  ;;  %v6119_v62 = vadd.f32 %v6111_v17, %v6099_v45  ;;  %v6120_v42 = vadd.f32 %v6112_v53, %v6100_v37 }
 0x682   : >> { %v6121_v55 = vadd.f32 %v6113_v23, %v6101_v12  ;;  %v6122_v7 = vadd.f32 %v6114_v48, %v6102_v31  ;;  %v6127_v22 = vmul.f32 %v13431_v16, %v13462_v30  ;;  %v6128_v36 = vmul.f32 %v13431_v16, %v13481_v44 }
 0x683   : >> { %v6129_v13 = vmul.f32 %v13431_v16, %v13484_v11  ;;  %v6130_v58 = vmul.f32 %v13431_v16, %v13487_v4  ;;  %v6131_v60 = vmul.f32 %v13431_v16, %v13491_v21  ;;  %v6132_v47 = vmul.f32 %v13431_v16, %v13494_v46 }
 0x684   : >> { %v6133_v35 = vmul.f32 %v13431_v16, %v13497_v8  ;;  %v6134_v0 = vmul.f32 %v13431_v16, %v13504_v9  ;;  %v6135_v29 = vmul.f32 %v13431_v16, %v13507_v18  ;;  %v6136_v57 = vmul.f32 %v13431_v16, %v13510_v63 }
 0x685   : >> { %v6137_v32 = vmul.f32 %v13431_v16, %v13517_v56  ;;  %v6138_v34 = vmul.f32 %v13431_v16, %v13520_v33  ;;  %v6139_v41 = vmul.f32 %v13431_v16, %v13523_v52  ;;  %v6140_v51 = vmul.f32 %v13431_v16, %v13530_v40 }
 0x686   : >> { %v6141_v15 = vmul.f32 %v13431_v16, %v13589_v28  ;;  %v6142_v24 = vmul.f32 %v13431_v16, %v13606_v49  ;;  %v6159_v14 = vrot.slane %v6127_v22, 1  ;;  %v6160_v25 = vrot.slane %v6128_v36, 1 }
 0x687   : >> { %v6162_v50 = vrot.slane %v6129_v13, 1  ;;  %v6163_v54 = vrot.slane %v6130_v58, 1  ;;  %v6165_v20 = vrot.slane %v6131_v60, 1  ;;  %v6166_v38 = vrot.slane %v6132_v47, 1 }
 0x688   : >> { %v6168_v10 = vrot.slane %v6133_v35, 1  ;;  %v6169_v59 = vrot.slane %v6134_v0, 1  ;;  %v6161_v19 = vsel %vm1587_vm5, %v6159_v14, %v6160_v25  ;;  %v6171_v27 = vrot.slane %v6135_v29, 1 }
 0x689   : >> { %v6164_v5 = vsel %vm1587_vm5, %v6162_v50, %v6163_v54  ;;  %v6172_v2 = vrot.slane %v6136_v57, 1  ;;  %v6167_v45 = vsel %vm1587_vm5, %v6165_v20, %v6166_v38  ;;  %v6174_v12 = vrot.slane %v6137_v32, 1 }
 0x68a   : >> { %v6170_v37 = vsel %vm1587_vm5, %v6168_v10, %v6169_v59  ;;  %v6175_v16 = vrot.slane %v6138_v34, 1  ;;  %v6177_v61 = vrot.slane %v6139_v41, 1  ;;  %v6178_v39 = vrot.slane %v6140_v51, 1 }
 0x68b   : >> { %v6173_v31 = vsel %vm1587_vm5, %v6171_v27, %v6172_v2  ;;  %v6180_v17 = vrot.slane %v6141_v15, 1  ;;  %v6181_v23 = vrot.slane %v6142_v24, 1  ;;  %v6191_v48 = vadd.f32 %v6161_v19, %v6115_v43 }
 0x68c   : >> { %v6176_v53 = vsel %vm1587_vm5, %v6174_v12, %v6175_v16  ;;  %v6192_v22 = vadd.f32 %v6164_v5, %v6116_v1  ;;  %v6179_v36 = vsel %vm1587_vm5, %v6177_v61, %v6178_v39  ;;  %v6193_v13 = vadd.f32 %v6167_v45, %v6117_v6 }
 0x68d   : >> { %v6194_v58 = vadd.f32 %v6170_v37, %v6118_v26  ;;  %v6195_v60 = vadd.f32 %v6173_v31, %v6119_v62  ;;  %v6182_v47 = vsel %vm1587_vm5, %v6180_v17, %v6181_v23  ;;  %v6196_v35 = vadd.f32 %v6176_v53, %v6120_v42 }
 0x68e   : >> { %v6197_v0 = vadd.f32 %v6179_v36, %v6121_v55  ;;  %v6203_v29 = vmul.f32 %v13435_v3, %v13462_v30  ;;  %v6198_v57 = vadd.f32 %v6182_v47, %v6122_v7  ;;  %v6204_v32 = vmul.f32 %v13435_v3, %v13481_v44  ;;  %v13687_v36 = vld [vmem:[%s13457_s25 + $0x90] sm:$0xff] }
 0x68f   : >> { %v6205_v43 = vmul.f32 %v13435_v3, %v13484_v11  ;;  %v6206_v1 = vmul.f32 %v13435_v3, %v13487_v4  ;;  %v6207_v6 = vmul.f32 %v13435_v3, %v13491_v21  ;;  %v6208_v26 = vmul.f32 %v13435_v3, %v13494_v46 }
 0x690   : >> { %v6209_v62 = vmul.f32 %v13435_v3, %v13497_v8  ;;  %v6210_v30 = vmul.f32 %v13435_v3, %v13504_v9  ;;  %v6211_v44 = vmul.f32 %v13435_v3, %v13507_v18  ;;  %v6212_v42 = vmul.f32 %v13435_v3, %v13510_v63 }
 0x691   : >> { %v6213_v55 = vmul.f32 %v13435_v3, %v13517_v56  ;;  %v6214_v7 = vmul.f32 %v13435_v3, %v13520_v33  ;;  %v6215_v34 = vmul.f32 %v13435_v3, %v13523_v52  ;;  %v6216_v41 = vmul.f32 %v13435_v3, %v13530_v40 }
 0x692   : >> { %v6217_v51 = vmul.f32 %v13435_v3, %v13589_v28  ;;  %v6218_v15 = vmul.f32 %v13435_v3, %v13606_v49  ;;  %v6235_v24 = vrot.slane %v6203_v29, 2  ;;  %v6236_v14 = vrot.slane %v6204_v32, 2 }
 0x693   : >> { %v6238_v25 = vrot.slane %v6205_v43, 2  ;;  %v6239_v50 = vrot.slane %v6206_v1, 2  ;;  %v6241_v54 = vrot.slane %v6207_v6, 2  ;;  %v6242_v20 = vrot.slane %v6208_v26, 2 }
 0x694   : >> { %v6244_v38 = vrot.slane %v6209_v62, 2  ;;  %v6245_v10 = vrot.slane %v6210_v30, 2  ;;  %v6237_v59 = vsel %vm1664_vm6, %v6235_v24, %v6236_v14  ;;  %v6247_v5 = vrot.slane %v6211_v44, 2  ;;  %v15242_v62 = vld [vmem:[#allocation101_spill] sm:$0xff]  ;;  %v15243_v14 = vld [vmem:[#allocation102_spill] sm:$0xff] }
 0x695   : >> { %v6240_v19 = vsel %vm1664_vm6, %v6238_v25, %v6239_v50  ;;  %v6248_v27 = vrot.slane %v6212_v42, 2  ;;  %v6243_v2 = vsel %vm1664_vm6, %v6241_v54, %v6242_v20  ;;  %v6250_v3 = vrot.slane %v6213_v55, 2  ;;  %v13708_v24 = vld [vmem:[%s13457_s25 + $0x98] sm:$0x3] }
 0x696   : >> { %v6246_v45 = vsel %vm1664_vm6, %v6244_v38, %v6245_v10  ;;  %v6251_v37 = vrot.slane %v6214_v7, 2  ;;  %v6253_v16 = vrot.slane %v6215_v34, 2  ;;  %v6254_v31 = vrot.slane %v6216_v41, 2 }
 0x697   : >> { %v6249_v12 = vsel %vm1664_vm6, %v6247_v5, %v6248_v27  ;;  %v6256_v61 = vrot.slane %v6217_v51, 2  ;;  %v6257_v17 = vrot.slane %v6218_v15, 2  ;;  %v6267_v53 = vadd.f32 %v6237_v59, %v6191_v48 }
 0x698   : >> { %v6252_v39 = vsel %vm1664_vm6, %v6250_v3, %v6251_v37  ;;  %v6268_v23 = vadd.f32 %v6240_v19, %v6192_v22  ;;  %v6255_v47 = vsel %vm1664_vm6, %v6253_v16, %v6254_v31  ;;  %v6269_v29 = vadd.f32 %v6243_v2, %v6193_v13 }
 0x699   : >> { %v6270_v32 = vadd.f32 %v6246_v45, %v6194_v58  ;;  %v6271_v43 = vadd.f32 %v6249_v12, %v6195_v60  ;;  %v6258_v1 = vsel %vm1664_vm6, %v6256_v61, %v6257_v17  ;;  %v6272_v6 = vadd.f32 %v6252_v39, %v6196_v35 }
 0x69a   : >> { %v6273_v26 = vadd.f32 %v6255_v47, %v6197_v0  ;;  %v6279_v30 = vmul.f32 %v15242_v62, %v13484_v11  ;;  %v6274_v44 = vadd.f32 %v6258_v1, %v6198_v57  ;;  %v6280_v48 = vmul.f32 %v15242_v62, %v13491_v21 }
 0x69b   : >> { %v6281_v22 = vmul.f32 %v15242_v62, %v13497_v8  ;;  %v6282_v13 = vmul.f32 %v15242_v62, %v13507_v18  ;;  %v6283_v58 = vmul.f32 %v15242_v62, %v13517_v56  ;;  %v6284_v60 = vmul.f32 %v15242_v62, %v13523_v52 }
 0x69c   : >> { %v6285_v35 = vmul.f32 %v15242_v62, %v13589_v28  ;;  %v6286_v0 = vmul.f32 %v15242_v62, %v13687_v36  ;;  %v6287_v57 = vadd.f32 %v6279_v30, %v6267_v53  ;;  %v6288_v42 = vadd.f32 %v6280_v48, %v6268_v23 }
 0x69d   : >> { %v6289_v55 = vadd.f32 %v6281_v22, %v6269_v29  ;;  %v6290_v7 = vadd.f32 %v6282_v13, %v6270_v32  ;;  %v6291_v34 = vadd.f32 %v6283_v58, %v6271_v43  ;;  %v6292_v41 = vadd.f32 %v6284_v60, %v6272_v6 }
 0x69e   : >> { %v6293_v51 = vadd.f32 %v6285_v35, %v6273_v26  ;;  %v6294_v15 = vadd.f32 %v6286_v0, %v6274_v44  ;;  %v6299_v25 = vmul.f32 %v15243_v14, %v13484_v11  ;;  %v6300_v50 = vmul.f32 %v15243_v14, %v13487_v4 }
 0x69f   : >> { %v6301_v54 = vmul.f32 %v15243_v14, %v13491_v21  ;;  %v6302_v20 = vmul.f32 %v15243_v14, %v13494_v46  ;;  %v6303_v38 = vmul.f32 %v15243_v14, %v13497_v8  ;;  %v6304_v10 = vmul.f32 %v15243_v14, %v13504_v9 }
 0x6a0   : >> { %v6305_v59 = vmul.f32 %v15243_v14, %v13507_v18  ;;  %v6306_v19 = vmul.f32 %v15243_v14, %v13510_v63  ;;  %v6307_v5 = vmul.f32 %v15243_v14, %v13517_v56  ;;  %v6308_v27 = vmul.f32 %v15243_v14, %v13520_v33 }
 0x6a1   : >> { %v6309_v2 = vmul.f32 %v15243_v14, %v13523_v52  ;;  %v6310_v45 = vmul.f32 %v15243_v14, %v13530_v40  ;;  %v6311_v3 = vmul.f32 %v15243_v14, %v13589_v28  ;;  %v6312_v37 = vmul.f32 %v15243_v14, %v13606_v49 }
 0x6a2   : >> { %v6313_v12 = vmul.f32 %v15243_v14, %v13687_v36  ;;  %v6314_v16 = vmul.f32 %v15243_v14, %v13708_v24  ;;  %v6331_v31 = vrot.slane %v6299_v25, 1  ;;  %v6332_v61 = vrot.slane %v6300_v50, 1 }
 0x6a3   : >> { %v6334_v39 = vrot.slane %v6301_v54, 1  ;;  %v6335_v17 = vrot.slane %v6302_v20, 1  ;;  %v6337_v53 = vrot.slane %v6303_v38, 1  ;;  %v6338_v23 = vrot.slane %v6304_v10, 1 }
 0x6a4   : >> { %v6340_v47 = vrot.slane %v6305_v59, 1  ;;  %v6341_v29 = vrot.slane %v6306_v19, 1  ;;  %v6333_v32 = vsel %vm1587_vm5, %v6331_v31, %v6332_v61  ;;  %v6343_v1 = vrot.slane %v6307_v5, 1  ;;  %v15244_v19 = vld [vmem:[#allocation103_spill] sm:$0xff]  ;;  %v13787_v61 = vld [vmem:[%s13457_s25 + $0xa0] sm:$0xff] }
 0x6a5   : >> { %v6336_v43 = vsel %vm1587_vm5, %v6334_v39, %v6335_v17  ;;  %v6344_v6 = vrot.slane %v6308_v27, 1  ;;  %v6339_v26 = vsel %vm1587_vm5, %v6337_v53, %v6338_v23  ;;  %v6346_v30 = vrot.slane %v6309_v2, 1  ;;  %v13790_v39 = vld [vmem:[%s13457_s25 + $0xb0] sm:$0xff] }
 0x6a6   : >> { %v6342_v62 = vsel %vm1587_vm5, %v6340_v47, %v6341_v29  ;;  %v6347_v44 = vrot.slane %v6310_v45, 1  ;;  %v6349_v22 = vrot.slane %v6311_v3, 1  ;;  %v6350_v13 = vrot.slane %v6312_v37, 1  ;;  %v13794_v29 = vld [vmem:[%s13457_s25 + $0xc0] sm:$0xff] }
 0x6a7   : >> { %v6345_v48 = vsel %vm1587_vm5, %v6343_v1, %v6344_v6  ;;  %v6352_v58 = vrot.slane %v6313_v12, 1  ;;  %v6353_v35 = vrot.slane %v6314_v16, 1  ;;  %v6363_v0 = vadd.f32 %v6333_v32, %v6287_v57  ;;  %v13797_v32 = vld [vmem:[%s13457_s25 + $0xd0] sm:$0xff] }
 0x6a8   : >> { %v6348_v60 = vsel %vm1587_vm5, %v6346_v30, %v6347_v44  ;;  %v6364_v14 = vadd.f32 %v6336_v43, %v6288_v42  ;;  %v6351_v25 = vsel %vm1587_vm5, %v6349_v22, %v6350_v13  ;;  %v6365_v50 = vadd.f32 %v6339_v26, %v6289_v55  ;;  %v13800_v43 = vld [vmem:[%s13457_s25 + $0xe0] sm:$0xff]  ;;  %v13804_v30 = vld [vmem:[%s13457_s25 + $0xf0] sm:$0xff] }
 0x6a9   : >> { %v6366_v54 = vadd.f32 %v6342_v62, %v6290_v7  ;;  %v6367_v20 = vadd.f32 %v6345_v48, %v6291_v34  ;;  %v6354_v38 = vsel %vm1587_vm5, %v6352_v58, %v6353_v35  ;;  %v6368_v10 = vadd.f32 %v6348_v60, %v6292_v41  ;;  %v13807_v44 = vld [vmem:[%s13457_s25 + $0x100] sm:$0xff]  ;;  %v13810_v48 = vld [vmem:[%s13457_s25 + $0x110] sm:$0xff] }
 0x6aa   : >> { %v6369_v59 = vadd.f32 %v6351_v25, %v6293_v51  ;;  %v6375_v5 = vmul.f32 %v15244_v19, %v13484_v11  ;;  %v6370_v27 = vadd.f32 %v6354_v38, %v6294_v15  ;;  %v6376_v2 = vmul.f32 %v15244_v19, %v13487_v4 }
 0x6ab   : >> { %v6377_v57 = vmul.f32 %v15244_v19, %v13491_v21  ;;  %v6378_v42 = vmul.f32 %v15244_v19, %v13494_v46  ;;  %v6379_v55 = vmul.f32 %v15244_v19, %v13497_v8  ;;  %v6380_v7 = vmul.f32 %v15244_v19, %v13504_v9 }
 0x6ac   : >> { %v6381_v34 = vmul.f32 %v15244_v19, %v13507_v18  ;;  %v6382_v11 = vmul.f32 %v15244_v19, %v13510_v63  ;;  %v6383_v4 = vmul.f32 %v15244_v19, %v13517_v56  ;;  %v6384_v21 = vmul.f32 %v15244_v19, %v13520_v33 }
 0x6ad   : >> { %v6385_v46 = vmul.f32 %v15244_v19, %v13523_v52  ;;  %v6386_v8 = vmul.f32 %v15244_v19, %v13530_v40  ;;  %v6387_v9 = vmul.f32 %v15244_v19, %v13589_v28  ;;  %v6388_v18 = vmul.f32 %v15244_v19, %v13606_v49 }
 0x6ae   : >> { %v6389_v63 = vmul.f32 %v15244_v19, %v13687_v36  ;;  %v6390_v56 = vmul.f32 %v15244_v19, %v13708_v24  ;;  %v6407_v41 = vrot.slane %v6375_v5, 2  ;;  %v6408_v33 = vrot.slane %v6376_v2, 2  ;;  %v13826_v2 = vld [vmem:[%s13457_s25 + $0xb8] sm:$0x3] }
 0x6af   : >> { %v6410_v52 = vrot.slane %v6377_v57, 2  ;;  %v6411_v51 = vrot.slane %v6378_v42, 2  ;;  %v6413_v15 = vrot.slane %v6379_v55, 2  ;;  %v6414_v40 = vrot.slane %v6380_v7, 2  ;;  %v13837_v42 = vld [vmem:[%s13457_s25 + $0xc8] sm:$0x3] }
 0x6b0   : >> { %v6416_v45 = vrot.slane %v6381_v34, 2  ;;  %v6417_v28 = vrot.slane %v6382_v11, 2  ;;  %v6409_v49 = vsel %vm1664_vm6, %v6407_v41, %v6408_v33  ;;  %v6419_v3 = vrot.slane %v6383_v4, 2  ;;  %v13840_v55 = vld [vmem:[%s13457_s25 + $0xd8] sm:$0x3] }
 0x6b1   : >> { %v6412_v36 = vsel %vm1664_vm6, %v6410_v52, %v6411_v51  ;;  %v6420_v37 = vrot.slane %v6384_v21, 2  ;;  %v6415_v24 = vsel %vm1664_vm6, %v6413_v15, %v6414_v40  ;;  %v6422_v16 = vrot.slane %v6385_v46, 2  ;;  %v13843_v21 = vld [vmem:[%s13457_s25 + $0xe8] sm:$0x3]  ;;  %v13846_v46 = vld [vmem:[%s13457_s25 + $0xf8] sm:$0x3] }
 0x6b2   : >> { %v6418_v12 = vsel %vm1664_vm6, %v6416_v45, %v6417_v28  ;;  %v6423_v31 = vrot.slane %v6386_v8, 2  ;;  %v6425_v53 = vrot.slane %v6387_v9, 2  ;;  %v6426_v23 = vrot.slane %v6388_v18, 2  ;;  %v13852_v41 = vld [vmem:[%s13457_s25 + $0x118] sm:$0x3] }
 0x6b3   : >> { %v6421_v17 = vsel %vm1664_vm6, %v6419_v3, %v6420_v37  ;;  %v6428_v47 = vrot.slane %v6389_v63, 2  ;;  %v6429_v6 = vrot.slane %v6390_v56, 2  ;;  %v6439_v26 = vadd.f32 %v6409_v49, %v6363_v0  ;;  %v13849_v56 = vld [vmem:[%s13457_s25 + $0x108] sm:$0x3]  ;;  %v15246_v33 = vld [vmem:[#allocation105_spill] sm:$0xff] }
 0x6b4   : >> { %v6424_v1 = vsel %vm1664_vm6, %v6422_v16, %v6423_v31  ;;  %v6440_v62 = vadd.f32 %v6412_v36, %v6364_v14  ;;  %v6427_v22 = vsel %vm1664_vm6, %v6425_v53, %v6426_v23  ;;  %v6441_v13 = vadd.f32 %v6415_v24, %v6365_v50  ;;  %v15245_v14 = vld [vmem:[#allocation104_spill] sm:$0xff] }
 0x6b5   : >> { %v6442_v58 = vadd.f32 %v6418_v12, %v6366_v54  ;;  %v6443_v60 = vadd.f32 %v6421_v17, %v6367_v20  ;;  %v6430_v35 = vsel %vm1664_vm6, %v6428_v47, %v6429_v6  ;;  %v6444_v25 = vadd.f32 %v6424_v1, %v6368_v10  ;;  %v13823_v20 = vld [vmem:[%s13457_s25 + $0xa8] sm:$0x3] }
 0x6b6   : >> { %v6445_v0 = vadd.f32 %v6427_v22, %v6369_v59  ;;  %v6451_v38 = vmul.f32 %v13787_v61, %v15245_v14  ;;  %v6446_v19 = vadd.f32 %v6430_v35, %v6370_v27  ;;  %v6452_v5 = vmul.f32 %v13790_v39, %v15245_v14 }
 0x6b7   : >> { %v6453_v50 = vmul.f32 %v13794_v29, %v15245_v14  ;;  %v6454_v54 = vmul.f32 %v13797_v32, %v15245_v14  ;;  %v6455_v10 = vmul.f32 %v13800_v43, %v15245_v14  ;;  %v6456_v59 = vmul.f32 %v13804_v30, %v15245_v14 }
 0x6b8   : >> { %v6457_v27 = vmul.f32 %v13807_v44, %v15245_v14  ;;  %v6458_v57 = vmul.f32 %v13810_v48, %v15245_v14  ;;  %v6459_v7 = vadd.f32 %v6451_v38, %v6439_v26  ;;  %v6460_v34 = vadd.f32 %v6452_v5, %v6440_v62 }
 0x6b9   : >> { %v6461_v11 = vadd.f32 %v6453_v50, %v6441_v13  ;;  %v6462_v4 = vadd.f32 %v6454_v54, %v6442_v58  ;;  %v6463_v8 = vadd.f32 %v6455_v10, %v6443_v60  ;;  %v6464_v9 = vadd.f32 %v6456_v59, %v6444_v25 }
 0x6ba   : >> { %v6465_v18 = vadd.f32 %v6457_v27, %v6445_v0  ;;  %v6466_v63 = vadd.f32 %v6458_v57, %v6446_v19  ;;  %v6471_v52 = vmul.f32 %v13787_v61, %v15246_v33  ;;  %v6472_v51 = vmul.f32 %v13823_v20, %v15246_v33 }
 0x6bb   : >> { %v6473_v15 = vmul.f32 %v13790_v39, %v15246_v33  ;;  %v6474_v40 = vmul.f32 %v13826_v2, %v15246_v33  ;;  %v6475_v45 = vmul.f32 %v13794_v29, %v15246_v33  ;;  %v6476_v28 = vmul.f32 %v13837_v42, %v15246_v33 }
 0x6bc   : >> { %v6477_v49 = vmul.f32 %v13797_v32, %v15246_v33  ;;  %v6478_v36 = vmul.f32 %v13840_v55, %v15246_v33  ;;  %v6479_v3 = vmul.f32 %v13800_v43, %v15246_v33  ;;  %v6480_v37 = vmul.f32 %v13843_v21, %v15246_v33 }
 0x6bd   : >> { %v6481_v24 = vmul.f32 %v13804_v30, %v15246_v33  ;;  %v6482_v12 = vmul.f32 %v13846_v46, %v15246_v33  ;;  %v6483_v16 = vmul.f32 %v13807_v44, %v15246_v33  ;;  %v6484_v31 = vmul.f32 %v13849_v56, %v15246_v33 }
 0x6be   : >> { %v6485_v17 = vmul.f32 %v13810_v48, %v15246_v33  ;;  %v6486_v53 = vmul.f32 %v13852_v41, %v15246_v33  ;;  %v6503_v23 = vrot.slane %v6471_v52, 1  ;;  %v6504_v47 = vrot.slane %v6472_v51, 1 }
 0x6bf   : >> { %v6506_v1 = vrot.slane %v6473_v15, 1  ;;  %v6507_v6 = vrot.slane %v6474_v40, 1  ;;  %v6509_v26 = vrot.slane %v6475_v45, 1  ;;  %v6510_v62 = vrot.slane %v6476_v28, 1 }
 0x6c0   : >> { %v6512_v22 = vrot.slane %v6477_v49, 1  ;;  %v6513_v13 = vrot.slane %v6478_v36, 1  ;;  %v6505_v58 = vsel %vm1587_vm5, %v6503_v23, %v6504_v47  ;;  %v6515_v35 = vrot.slane %v6479_v3, 1  ;;  %v15247_v36 = vld [vmem:[#allocation106_spill] sm:$0xff] }
 0x6c1   : >> { %v6508_v60 = vsel %vm1587_vm5, %v6506_v1, %v6507_v6  ;;  %v6516_v25 = vrot.slane %v6480_v37, 1  ;;  %v6511_v0 = vsel %vm1587_vm5, %v6509_v26, %v6510_v62  ;;  %v6518_v38 = vrot.slane %v6481_v24, 1 }
 0x6c2   : >> { %v6514_v14 = vsel %vm1587_vm5, %v6512_v22, %v6513_v13  ;;  %v6519_v19 = vrot.slane %v6482_v12, 1  ;;  %v6521_v50 = vrot.slane %v6483_v16, 1  ;;  %v6522_v54 = vrot.slane %v6484_v31, 1 }
 0x6c3   : >> { %v6517_v5 = vsel %vm1587_vm5, %v6515_v35, %v6516_v25  ;;  %v6524_v10 = vrot.slane %v6485_v17, 1  ;;  %v6525_v27 = vrot.slane %v6486_v53, 1  ;;  %v6535_v57 = vadd.f32 %v6505_v58, %v6459_v7 }
 0x6c4   : >> { %v6520_v59 = vsel %vm1587_vm5, %v6518_v38, %v6519_v19  ;;  %v6536_v33 = vadd.f32 %v6508_v60, %v6460_v34  ;;  %v6523_v52 = vsel %vm1587_vm5, %v6521_v50, %v6522_v54  ;;  %v6537_v51 = vadd.f32 %v6511_v0, %v6461_v11 }
 0x6c5   : >> { %v6538_v15 = vadd.f32 %v6514_v14, %v6462_v4  ;;  %v6539_v40 = vadd.f32 %v6517_v5, %v6463_v8  ;;  %v6526_v45 = vsel %vm1587_vm5, %v6524_v10, %v6525_v27  ;;  %v6540_v28 = vadd.f32 %v6520_v59, %v6464_v9 }
 0x6c6   : >> { %v6541_v49 = vadd.f32 %v6523_v52, %v6465_v18  ;;  %v6547_v3 = vmul.f32 %v13787_v61, %v15247_v36  ;;  %v6542_v37 = vadd.f32 %v6526_v45, %v6466_v63  ;;  %v6548_v24 = vmul.f32 %v13823_v20, %v15247_v36  ;;  %v13933_v45 = vld [vmem:[%s13457_s25 + $0x120] sm:$0xff] }
 0x6c7   : >> { %v6549_v7 = vmul.f32 %v13790_v39, %v15247_v36  ;;  %v6550_v34 = vmul.f32 %v13826_v2, %v15247_v36  ;;  %v6551_v11 = vmul.f32 %v13794_v29, %v15247_v36  ;;  %v6552_v4 = vmul.f32 %v13837_v42, %v15247_v36 }
 0x6c8   : >> { %v6553_v8 = vmul.f32 %v13797_v32, %v15247_v36  ;;  %v6554_v61 = vmul.f32 %v13840_v55, %v15247_v36  ;;  %v6555_v20 = vmul.f32 %v13800_v43, %v15247_v36  ;;  %v6556_v9 = vmul.f32 %v13843_v21, %v15247_v36 }
 0x6c9   : >> { %v6557_v18 = vmul.f32 %v13804_v30, %v15247_v36  ;;  %v6558_v63 = vmul.f32 %v13846_v46, %v15247_v36  ;;  %v6559_v12 = vmul.f32 %v13807_v44, %v15247_v36  ;;  %v6560_v16 = vmul.f32 %v13849_v56, %v15247_v36 }
 0x6ca   : >> { %v6561_v31 = vmul.f32 %v13810_v48, %v15247_v36  ;;  %v6562_v17 = vmul.f32 %v13852_v41, %v15247_v36  ;;  %v6579_v53 = vrot.slane %v6547_v3, 2  ;;  %v6580_v23 = vrot.slane %v6548_v24, 2 }
 0x6cb   : >> { %v6582_v47 = vrot.slane %v6549_v7, 2  ;;  %v6583_v1 = vrot.slane %v6550_v34, 2  ;;  %v6585_v6 = vrot.slane %v6551_v11, 2  ;;  %v6586_v26 = vrot.slane %v6552_v4, 2 }
 0x6cc   : >> { %v6588_v62 = vrot.slane %v6553_v8, 2  ;;  %v6589_v22 = vrot.slane %v6554_v61, 2  ;;  %v6581_v13 = vsel %vm1664_vm6, %v6579_v53, %v6580_v23  ;;  %v6591_v60 = vrot.slane %v6555_v20, 2  ;;  %v15248_v8 = vld [vmem:[#allocation107_spill] sm:$0xff]  ;;  %v15249_v23 = vld [vmem:[#allocation108_spill] sm:$0xff] }
 0x6cd   : >> { %v6584_v58 = vsel %vm1664_vm6, %v6582_v47, %v6583_v1  ;;  %v6592_v35 = vrot.slane %v6556_v9, 2  ;;  %v6587_v25 = vsel %vm1664_vm6, %v6585_v6, %v6586_v26  ;;  %v6594_v14 = vrot.slane %v6557_v18, 2  ;;  %v13954_v53 = vld [vmem:[%s13457_s25 + $0x128] sm:$0x3] }
 0x6ce   : >> { %v6590_v0 = vsel %vm1664_vm6, %v6588_v62, %v6589_v22  ;;  %v6595_v38 = vrot.slane %v6558_v63, 2  ;;  %v6597_v5 = vrot.slane %v6559_v12, 2  ;;  %v6598_v50 = vrot.slane %v6560_v16, 2 }
 0x6cf   : >> { %v6593_v19 = vsel %vm1664_vm6, %v6591_v60, %v6592_v35  ;;  %v6600_v54 = vrot.slane %v6561_v31, 2  ;;  %v6601_v59 = vrot.slane %v6562_v17, 2  ;;  %v6611_v27 = vadd.f32 %v6581_v13, %v6535_v57 }
 0x6d0   : >> { %v6596_v10 = vsel %vm1664_vm6, %v6594_v14, %v6595_v38  ;;  %v6612_v52 = vadd.f32 %v6584_v58, %v6536_v33  ;;  %v6599_v36 = vsel %vm1664_vm6, %v6597_v5, %v6598_v50  ;;  %v6613_v3 = vadd.f32 %v6587_v25, %v6537_v51 }
 0x6d1   : >> { %v6614_v24 = vadd.f32 %v6590_v0, %v6538_v15  ;;  %v6615_v7 = vadd.f32 %v6593_v19, %v6539_v40  ;;  %v6602_v34 = vsel %vm1664_vm6, %v6600_v54, %v6601_v59  ;;  %v6616_v11 = vadd.f32 %v6596_v10, %v6540_v28 }
 0x6d2   : >> { %v6617_v4 = vadd.f32 %v6599_v36, %v6541_v49  ;;  %v6623_v61 = vmul.f32 %v13790_v39, %v15248_v8  ;;  %v6618_v20 = vadd.f32 %v6602_v34, %v6542_v37  ;;  %v6624_v57 = vmul.f32 %v13794_v29, %v15248_v8 }
 0x6d3   : >> { %v6625_v33 = vmul.f32 %v13797_v32, %v15248_v8  ;;  %v6626_v51 = vmul.f32 %v13800_v43, %v15248_v8  ;;  %v6627_v15 = vmul.f32 %v13804_v30, %v15248_v8  ;;  %v6628_v40 = vmul.f32 %v13807_v44, %v15248_v8 }
 0x6d4   : >> { %v6629_v28 = vmul.f32 %v13810_v48, %v15248_v8  ;;  %v6630_v49 = vmul.f32 %v13933_v45, %v15248_v8  ;;  %v6631_v37 = vadd.f32 %v6623_v61, %v6611_v27  ;;  %v6632_v9 = vadd.f32 %v6624_v57, %v6612_v52 }
 0x6d5   : >> { %v6633_v18 = vadd.f32 %v6625_v33, %v6613_v3  ;;  %v6634_v63 = vadd.f32 %v6626_v51, %v6614_v24  ;;  %v6635_v12 = vadd.f32 %v6627_v15, %v6615_v7  ;;  %v6636_v16 = vadd.f32 %v6628_v40, %v6616_v11 }
 0x6d6   : >> { %v6637_v31 = vadd.f32 %v6629_v28, %v6617_v4  ;;  %v6638_v17 = vadd.f32 %v6630_v49, %v6618_v20  ;;  %v6643_v47 = vmul.f32 %v13790_v39, %v15249_v23  ;;  %v6644_v1 = vmul.f32 %v13826_v2, %v15249_v23 }
 0x6d7   : >> { %v6645_v6 = vmul.f32 %v13794_v29, %v15249_v23  ;;  %v6646_v26 = vmul.f32 %v13837_v42, %v15249_v23  ;;  %v6647_v62 = vmul.f32 %v13797_v32, %v15249_v23  ;;  %v6648_v22 = vmul.f32 %v13840_v55, %v15249_v23 }
 0x6d8   : >> { %v6649_v13 = vmul.f32 %v13800_v43, %v15249_v23  ;;  %v6650_v58 = vmul.f32 %v13843_v21, %v15249_v23  ;;  %v6651_v60 = vmul.f32 %v13804_v30, %v15249_v23  ;;  %v6652_v35 = vmul.f32 %v13846_v46, %v15249_v23 }
 0x6d9   : >> { %v6653_v25 = vmul.f32 %v13807_v44, %v15249_v23  ;;  %v6654_v0 = vmul.f32 %v13849_v56, %v15249_v23  ;;  %v6655_v14 = vmul.f32 %v13810_v48, %v15249_v23  ;;  %v6656_v38 = vmul.f32 %v13852_v41, %v15249_v23 }
 0x6da   : >> { %v6657_v19 = vmul.f32 %v13933_v45, %v15249_v23  ;;  %v6658_v5 = vmul.f32 %v13954_v53, %v15249_v23  ;;  %v6675_v50 = vrot.slane %v6643_v47, 1  ;;  %v6676_v54 = vrot.slane %v6644_v1, 1 }
 0x6db   : >> { %v6678_v10 = vrot.slane %v6645_v6, 1  ;;  %v6679_v59 = vrot.slane %v6646_v26, 1  ;;  %v6681_v27 = vrot.slane %v6647_v62, 1  ;;  %v6682_v52 = vrot.slane %v6648_v22, 1 }
 0x6dc   : >> { %v6684_v36 = vrot.slane %v6649_v13, 1  ;;  %v6685_v3 = vrot.slane %v6650_v58, 1  ;;  %v6677_v24 = vsel %vm1587_vm5, %v6675_v50, %v6676_v54  ;;  %v6687_v34 = vrot.slane %v6651_v60, 1  ;;  %v15250_v58 = vld [vmem:[#allocation109_spill] sm:$0xff] }
 0x6dd   : >> { %v6680_v7 = vsel %vm1587_vm5, %v6678_v10, %v6679_v59  ;;  %v6688_v11 = vrot.slane %v6652_v35, 1  ;;  %v6683_v4 = vsel %vm1587_vm5, %v6681_v27, %v6682_v52  ;;  %v6690_v61 = vrot.slane %v6653_v25, 1 }
 0x6de   : >> { %v6686_v8 = vsel %vm1587_vm5, %v6684_v36, %v6685_v3  ;;  %v6691_v20 = vrot.slane %v6654_v0, 1  ;;  %v6693_v33 = vrot.slane %v6655_v14, 1  ;;  %v6694_v51 = vrot.slane %v6656_v38, 1 }
 0x6df   : >> { %v6689_v57 = vsel %vm1587_vm5, %v6687_v34, %v6688_v11  ;;  %v6696_v15 = vrot.slane %v6657_v19, 1  ;;  %v6697_v28 = vrot.slane %v6658_v5, 1  ;;  %v6707_v49 = vadd.f32 %v6677_v24, %v6631_v37 }
 0x6e0   : >> { %v6692_v40 = vsel %vm1587_vm5, %v6690_v61, %v6691_v20  ;;  %v6708_v23 = vadd.f32 %v6680_v7, %v6632_v9  ;;  %v6695_v47 = vsel %vm1587_vm5, %v6693_v33, %v6694_v51  ;;  %v6709_v1 = vadd.f32 %v6683_v4, %v6633_v18 }
 0x6e1   : >> { %v6710_v6 = vadd.f32 %v6686_v8, %v6634_v63  ;;  %v6711_v26 = vadd.f32 %v6689_v57, %v6635_v12  ;;  %v6698_v62 = vsel %vm1587_vm5, %v6696_v15, %v6697_v28  ;;  %v6712_v22 = vadd.f32 %v6692_v40, %v6636_v16 }
 0x6e2   : >> { %v6713_v13 = vadd.f32 %v6695_v47, %v6637_v31  ;;  %v6719_v60 = vmul.f32 %v13790_v39, %v15250_v58  ;;  %v6714_v35 = vadd.f32 %v6698_v62, %v6638_v17  ;;  %v6720_v25 = vmul.f32 %v13826_v2, %v15250_v58 }
 0x6e3   : >> { %v6721_v37 = vmul.f32 %v13794_v29, %v15250_v58  ;;  %v6722_v9 = vmul.f32 %v13837_v42, %v15250_v58  ;;  %v6723_v18 = vmul.f32 %v13797_v32, %v15250_v58  ;;  %v6724_v63 = vmul.f32 %v13840_v55, %v15250_v58 }
 0x6e4   : >> { %v6725_v12 = vmul.f32 %v13800_v43, %v15250_v58  ;;  %v6726_v39 = vmul.f32 %v13843_v21, %v15250_v58  ;;  %v6727_v2 = vmul.f32 %v13804_v30, %v15250_v58  ;;  %v6728_v16 = vmul.f32 %v13846_v46, %v15250_v58 }
 0x6e5   : >> { %v6729_v31 = vmul.f32 %v13807_v44, %v15250_v58  ;;  %v6730_v17 = vmul.f32 %v13849_v56, %v15250_v58  ;;  %v6731_v0 = vmul.f32 %v13810_v48, %v15250_v58  ;;  %v6732_v14 = vmul.f32 %v13852_v41, %v15250_v58 }
 0x6e6   : >> { %v6733_v38 = vmul.f32 %v13933_v45, %v15250_v58  ;;  %v6734_v19 = vmul.f32 %v13954_v53, %v15250_v58  ;;  %v6751_v5 = vrot.slane %v6719_v60, 2  ;;  %v6752_v50 = vrot.slane %v6720_v25, 2 }
 0x6e7   : >> { %v6754_v54 = vrot.slane %v6721_v37, 2  ;;  %v6755_v10 = vrot.slane %v6722_v9, 2  ;;  %v6757_v59 = vrot.slane %v6723_v18, 2  ;;  %v6758_v27 = vrot.slane %v6724_v63, 2  ;;  %v14036_v37 = vld [vmem:[%s13457_s25 + $0x130] sm:$0xff] }
 0x6e8   : >> { %v6760_v52 = vrot.slane %v6725_v12, 2  ;;  %v6761_v36 = vrot.slane %v6726_v39, 2  ;;  %v6753_v3 = vsel %vm1664_vm6, %v6751_v5, %v6752_v50  ;;  %v6763_v7 = vrot.slane %v6727_v2, 2  ;;  %v15251_v12 = vld [vmem:[#allocation82_spill] sm:$0xff]  ;;  %v15252_v39 = vld [vmem:[#allocation4_spill] sm:$0xff] }
 0x6e9   : >> { %v6756_v24 = vsel %vm1664_vm6, %v6754_v54, %v6755_v10  ;;  %v6764_v34 = vrot.slane %v6728_v16, 2  ;;  %v6759_v11 = vsel %vm1664_vm6, %v6757_v59, %v6758_v27  ;;  %v6766_v8 = vrot.slane %v6729_v31, 2  ;;  %v15253_v31 = vld [vmem:[#allocation5_spill] sm:$0xff] }
 0x6ea   : >> { %v6762_v4 = vsel %vm1664_vm6, %v6760_v52, %v6761_v36  ;;  %v6767_v61 = vrot.slane %v6730_v17, 2  ;;  %v6769_v57 = vrot.slane %v6731_v0, 2  ;;  %v6770_v33 = vrot.slane %v6732_v14, 2  ;;  %v15254_v17 = vld [vmem:[#allocation71_spill] sm:$0xff] }
 0x6eb   : >> { %v6765_v20 = vsel %vm1664_vm6, %v6763_v7, %v6764_v34  ;;  %v6772_v51 = vrot.slane %v6733_v38, 2  ;;  %v6773_v40 = vrot.slane %v6734_v19, 2  ;;  %v6783_v28 = vadd.f32 %v6753_v3, %v6707_v49  ;;  %v15255_v49 = vld [vmem:[#allocation38_spill] sm:$0xff] }
 0x6ec   : >> { %v6768_v15 = vsel %vm1664_vm6, %v6766_v8, %v6767_v61  ;;  %v6784_v47 = vadd.f32 %v6756_v24, %v6708_v23  ;;  %v6771_v62 = vsel %vm1664_vm6, %v6769_v57, %v6770_v33  ;;  %v6785_v58 = vadd.f32 %v6759_v11, %v6709_v1  ;;  %v15256_v1 = vld [vmem:[#allocation77_spill] sm:$0xff]  ;;  %v14060_v24 = vld [vmem:[%s13457_s25 + $0x138] sm:$0x3] }
 0x6ed   : >> { %v6786_v60 = vadd.f32 %v6762_v4, %v6710_v6  ;;  %v6787_v25 = vadd.f32 %v6765_v20, %v6711_v26  ;;  %v6774_v9 = vsel %vm1664_vm6, %v6772_v51, %v6773_v40  ;;  %v6788_v18 = vadd.f32 %v6768_v15, %v6712_v22 }
 0x6ee   : >> { %v6789_v63 = vadd.f32 %v6771_v62, %v6713_v13  ;;  %v6794_v2 = vrot.slane %v15252_v39, %v15251_v12  ;;  %v6790_v16 = vadd.f32 %v6774_v9, %v6714_v35  ;;  %v6814_v0 = vrot.slane %v15254_v17, %v15253_v31 }
 0x6ef   : >> { %v14045_v23 = vrot.slane %v15254_v17, %v15255_v49  ;;  %v14049_v6 = vrot.slane %v15254_v17, %v15256_v1 }
 0x6f0   : >> { %v6795_v26 = vmul.f32 %v13794_v29, %v6794_v2  ;;  %v6796_v22 = vmul.f32 %v13797_v32, %v6794_v2  ;;  %v6797_v13 = vmul.f32 %v13800_v43, %v6794_v2  ;;  %v6798_v35 = vmul.f32 %v13804_v30, %v6794_v2 }
 0x6f1   : >> { %v6799_v14 = vmul.f32 %v13807_v44, %v6794_v2  ;;  %v6800_v38 = vmul.f32 %v13810_v48, %v6794_v2  ;;  %v6801_v19 = vmul.f32 %v13933_v45, %v6794_v2  ;;  %v6802_v5 = vmul.f32 %v14036_v37, %v6794_v2 }
 0x6f2   : >> { %v6803_v50 = vadd.f32 %v6795_v26, %v6783_v28  ;;  %v6804_v54 = vadd.f32 %v6796_v22, %v6784_v47  ;;  %v6805_v10 = vadd.f32 %v6797_v13, %v6785_v58  ;;  %v6806_v59 = vadd.f32 %v6798_v35, %v6786_v60 }
 0x6f3   : >> { %v6807_v27 = vadd.f32 %v6799_v14, %v6787_v25  ;;  %v6808_v52 = vadd.f32 %v6800_v38, %v6788_v18  ;;  %v6809_v36 = vadd.f32 %v6801_v19, %v6789_v63  ;;  %v6810_v3 = vadd.f32 %v6802_v5, %v6790_v16 }
 0x6f4   : >> { %v6815_v7 = vmul.f32 %v13794_v29, %v6814_v0  ;;  %v6816_v34 = vmul.f32 %v13837_v42, %v6814_v0  ;;  %v6817_v11 = vmul.f32 %v13797_v32, %v6814_v0  ;;  %v6818_v4 = vmul.f32 %v13840_v55, %v6814_v0 }
 0x6f5   : >> { %v6819_v8 = vmul.f32 %v13800_v43, %v6814_v0  ;;  %v6820_v61 = vmul.f32 %v13843_v21, %v6814_v0  ;;  %v6821_v20 = vmul.f32 %v13804_v30, %v6814_v0  ;;  %v6822_v57 = vmul.f32 %v13846_v46, %v6814_v0 }
 0x6f6   : >> { %v6823_v33 = vmul.f32 %v13807_v44, %v6814_v0  ;;  %v6824_v51 = vmul.f32 %v13849_v56, %v6814_v0  ;;  %v6825_v15 = vmul.f32 %v13810_v48, %v6814_v0  ;;  %v6826_v40 = vmul.f32 %v13852_v41, %v6814_v0 }
 0x6f7   : >> { %v6827_v28 = vmul.f32 %v13933_v45, %v6814_v0  ;;  %v6828_v47 = vmul.f32 %v13954_v53, %v6814_v0  ;;  %v6829_v62 = vmul.f32 %v14036_v37, %v6814_v0  ;;  %v6830_v58 = vmul.f32 %v14060_v24, %v6814_v0 }
 0x6f8   : >> { %v6847_v60 = vrot.slane %v6815_v7, 1  ;;  %v6848_v25 = vrot.slane %v6816_v34, 1  ;;  %v6850_v9 = vrot.slane %v6817_v11, 1  ;;  %v6851_v18 = vrot.slane %v6818_v4, 1 }
 0x6f9   : >> { %v6853_v63 = vrot.slane %v6819_v8, 1  ;;  %v6854_v39 = vrot.slane %v6820_v61, 1  ;;  %v6856_v2 = vrot.slane %v6821_v20, 1  ;;  %v6857_v16 = vrot.slane %v6822_v57, 1 }
 0x6fa   : >> { %v6849_v26 = vsel %vm1587_vm5, %v6847_v60, %v6848_v25  ;;  %v6852_v22 = vsel %vm1587_vm5, %v6850_v9, %v6851_v18  ;;  %v6859_v13 = vrot.slane %v6823_v33, 1  ;;  %v6860_v35 = vrot.slane %v6824_v51, 1 }
 0x6fb   : >> { %v6855_v14 = vsel %vm1587_vm5, %v6853_v63, %v6854_v39  ;;  %v6858_v38 = vsel %vm1587_vm5, %v6856_v2, %v6857_v16  ;;  %v6862_v19 = vrot.slane %v6825_v15, 1  ;;  %v6863_v0 = vrot.slane %v6826_v40, 1  ;;  %v14123_v2 = vld [vmem:[%s13457_s25 + $0x140] sm:$0xff]  ;;  %v14126_v16 = vld [vmem:[%s13457_s25 + $0x150] sm:$0xff] }
 0x6fc   : >> { %v6861_v5 = vsel %vm1587_vm5, %v6859_v13, %v6860_v35  ;;  %v6865_v7 = vrot.slane %v6827_v28, 1  ;;  %v6866_v34 = vrot.slane %v6828_v47, 1  ;;  %v6868_v11 = vrot.slane %v6829_v62, 1 }
 0x6fd   : >> { %v6864_v4 = vsel %vm1587_vm5, %v6862_v19, %v6863_v0  ;;  %v6869_v8 = vrot.slane %v6830_v58, 1  ;;  %v6879_v61 = vadd.f32 %v6849_v26, %v6803_v50  ;;  %v6880_v20 = vadd.f32 %v6852_v22, %v6804_v54  ;;  %v14136_v19 = vld [vmem:[%s13457_s25 + $0x180] sm:$0xff] }
 0x6fe   : >> { %v6867_v57 = vsel %vm1587_vm5, %v6865_v7, %v6866_v34  ;;  %v6881_v33 = vadd.f32 %v6855_v14, %v6805_v10  ;;  %v6882_v51 = vadd.f32 %v6858_v38, %v6806_v59  ;;  %v6883_v60 = vadd.f32 %v6861_v5, %v6807_v27  ;;  %v14130_v14 = vld [vmem:[%s13457_s25 + $0x160] sm:$0xff]  ;;  %v14133_v38 = vld [vmem:[%s13457_s25 + $0x170] sm:$0xff] }
 0x6ff   : >> { %v6870_v25 = vsel %vm1587_vm5, %v6868_v11, %v6869_v8  ;;  %v6884_v9 = vadd.f32 %v6864_v4, %v6808_v52  ;;  %v6885_v15 = vadd.f32 %v6867_v57, %v6809_v36  ;;  %v6891_v40 = vmul.f32 %v13794_v29, %v14045_v23  ;;  %v14140_v11 = vld [vmem:[%s13457_s25 + $0x190] sm:$0xff]  ;;  %v14143_v4 = vld [vmem:[%s13457_s25 + $0x1a0] sm:$0xff] }
 0x700   : >> { %v6886_v28 = vadd.f32 %v6870_v25, %v6810_v3  ;;  %v6892_v47 = vmul.f32 %v13837_v42, %v14045_v23  ;;  %v6893_v50 = vmul.f32 %v13797_v32, %v14045_v23  ;;  %v6894_v54 = vmul.f32 %v13840_v55, %v14045_v23  ;;  %v14146_v8 = vld [vmem:[%s13457_s25 + $0x1b0] sm:$0xff] }
 0x701   : >> { %v6895_v10 = vmul.f32 %v13800_v43, %v14045_v23  ;;  %v6896_v59 = vmul.f32 %v13843_v21, %v14045_v23  ;;  %v6897_v27 = vmul.f32 %v13804_v30, %v14045_v23  ;;  %v6898_v29 = vmul.f32 %v13846_v46, %v14045_v23 }
 0x702   : >> { %v6899_v42 = vmul.f32 %v13807_v44, %v14045_v23  ;;  %v6900_v32 = vmul.f32 %v13849_v56, %v14045_v23  ;;  %v6901_v55 = vmul.f32 %v13810_v48, %v14045_v23  ;;  %v6902_v43 = vmul.f32 %v13852_v41, %v14045_v23 }
 0x703   : >> { %v6903_v21 = vmul.f32 %v13933_v45, %v14045_v23  ;;  %v6904_v30 = vmul.f32 %v13954_v53, %v14045_v23  ;;  %v6905_v46 = vmul.f32 %v14036_v37, %v14045_v23  ;;  %v6906_v44 = vmul.f32 %v14060_v24, %v14045_v23 }
 0x704   : >> { %v6923_v52 = vrot.slane %v6891_v40, 2  ;;  %v6924_v56 = vrot.slane %v6892_v47, 2  ;;  %v6926_v48 = vrot.slane %v6893_v50, 2  ;;  %v6927_v36 = vrot.slane %v6894_v54, 2 }
 0x705   : >> { %v6929_v3 = vrot.slane %v6895_v10, 2  ;;  %v6930_v41 = vrot.slane %v6896_v59, 2  ;;  %v6932_v62 = vrot.slane %v6897_v27, 2  ;;  %v6933_v45 = vrot.slane %v6898_v29, 2 }
 0x706   : >> { %v6925_v53 = vsel %vm1664_vm6, %v6923_v52, %v6924_v56  ;;  %v6928_v37 = vsel %vm1664_vm6, %v6926_v48, %v6927_v36  ;;  %v6935_v58 = vrot.slane %v6899_v42, 2  ;;  %v6936_v18 = vrot.slane %v6900_v32, 2  ;;  %v14184_v52 = vld [vmem:[%s13457_s25 + $0x178] sm:$0x3]  ;;  %v15257_v56 = vld [vmem:[#allocation78_spill] sm:$0xff] }
 0x707   : >> { %v6931_v23 = vsel %vm1664_vm6, %v6929_v3, %v6930_v41  ;;  %v6934_v24 = vsel %vm1664_vm6, %v6932_v62, %v6933_v45  ;;  %v6938_v63 = vrot.slane %v6901_v55, 2  ;;  %v6939_v39 = vrot.slane %v6902_v43, 2  ;;  %v14171_v55 = vld [vmem:[%s13457_s25 + $0x148] sm:$0x3]  ;;  %v14174_v43 = vld [vmem:[%s13457_s25 + $0x158] sm:$0x3] }
 0x708   : >> { %v6937_v26 = vsel %vm1664_vm6, %v6935_v58, %v6936_v18  ;;  %v6941_v22 = vrot.slane %v6903_v21, 2  ;;  %v6942_v13 = vrot.slane %v6904_v30, 2  ;;  %v6944_v35 = vrot.slane %v6905_v46, 2  ;;  %v15258_v36 = vld [vmem:[#allocation79_spill] sm:$0xff]  ;;  %v15259_v41 = vld [vmem:[#allocation80_spill] sm:$0xff]  ;;  %v15260_v45 = vld [vmem:[#allocation81_spill] sm:$0xff] }
 0x709   : >> { %v6940_v0 = vsel %vm1664_vm6, %v6938_v63, %v6939_v39  ;;  %v6945_v5 = vrot.slane %v6906_v44, 2  ;;  %v6955_v7 = vadd.f32 %v6925_v53, %v6879_v61  ;;  %v6956_v34 = vadd.f32 %v6928_v37, %v6880_v20  ;;  %v14201_v37 = vld [vmem:[%s13457_s25 + $0x188] sm:$0x3]  ;;  %v14204_v58 = vld [vmem:[%s13457_s25 + $0x198] sm:$0x3] }
 0x70a   : >> { %v6943_v57 = vsel %vm1664_vm6, %v6941_v22, %v6942_v13  ;;  %v6957_v25 = vadd.f32 %v6931_v23, %v6881_v33  ;;  %v6958_v40 = vadd.f32 %v6934_v24, %v6882_v51  ;;  %v6959_v47 = vadd.f32 %v6937_v26, %v6883_v60  ;;  %v15261_v23 = vld [vmem:[#allocation72_spill] sm:$0xff]  ;;  %v14223_v26 = vld [vmem:[%s13457_s25 + $0x1a8] sm:$0x3]  ;;  %v14226_v22 = vld [vmem:[%s13457_s25 + $0x1b8] sm:$0x3] }
 0x70b   : >> { %v6946_v50 = vsel %vm1664_vm6, %v6944_v35, %v6945_v5  ;;  %v6960_v54 = vadd.f32 %v6940_v0, %v6884_v9  ;;  %v6961_v10 = vadd.f32 %v6943_v57, %v6885_v15  ;;  %v6967_v61 = vmul.f32 %v14123_v2, %v14049_v6 }
 0x70c   : >> { %v6962_v20 = vadd.f32 %v6946_v50, %v6886_v28  ;;  %v6968_v59 = vmul.f32 %v14126_v16, %v14049_v6  ;;  %v6969_v27 = vmul.f32 %v14130_v14, %v14049_v6  ;;  %v6970_v33 = vmul.f32 %v14133_v38, %v14049_v6 }
 0x70d   : >> { %v6971_v51 = vmul.f32 %v14136_v19, %v14049_v6  ;;  %v6972_v60 = vmul.f32 %v14140_v11, %v14049_v6  ;;  %v6973_v9 = vmul.f32 %v14143_v4, %v14049_v6  ;;  %v6974_v15 = vmul.f32 %v14146_v8, %v14049_v6  ;;  %v14181_v6 = vld [vmem:[%s13457_s25 + $0x168] sm:$0x3] }
 0x70e   : >> { %v6975_v28 = vadd.f32 %v6967_v61, %v6955_v7  ;;  %v6976_v29 = vadd.f32 %v6968_v59, %v6956_v34  ;;  %v14166_v42 = vadd.f32 %v6969_v27, %v6957_v25  ;;  %v14168_v32 = vadd.f32 %v6970_v33, %v6958_v40 }
 0x70f   : >> { %v6979_v21 = vadd.f32 %v6971_v51, %v6959_v47  ;;  %v14176_v30 = vadd.f32 %v6972_v60, %v6960_v54  ;;  %v6981_v46 = vadd.f32 %v6973_v9, %v6961_v10  ;;  %v14178_v44 = vadd.f32 %v6974_v15, %v6962_v20 }
 0x710   : >> { %v6986_v48 = vrot.slane %v15254_v17, %v15257_v56  ;;  %v14190_v3 = vrot.slane %v15254_v17, %v15258_v36  ;;  %v14194_v62 = vrot.slane %v15254_v17, %v15259_v41  ;;  %v14198_v53 = vrot.slane %v15254_v17, %v15260_v45 }
 0x711   : >> { %v14208_v18 = vrot.slane %v15254_v17, %v15251_v12  ;;  %v14212_v24 = vrot.slane %v15261_v23, %v15253_v31  ;;  %v14216_v63 = vrot.slane %v15261_v23, %v15255_v49  ;;  %v14220_v39 = vrot.slane %v15261_v23, %v15256_v1 }
 0x712   : >> { %v6987_v13 = vmul.f32 %v14123_v2, %v6986_v48  ;;  %v6988_v12 = vmul.f32 %v14171_v55, %v6986_v48  ;;  %v6989_v35 = vmul.f32 %v14126_v16, %v6986_v48  ;;  %v6990_v31 = vmul.f32 %v14174_v43, %v6986_v48 }
 0x713   : >> { %v6991_v0 = vmul.f32 %v14130_v14, %v6986_v48  ;;  %v6992_v49 = vmul.f32 %v14181_v6, %v6986_v48  ;;  %v6993_v5 = vmul.f32 %v14133_v38, %v6986_v48  ;;  %v6994_v1 = vmul.f32 %v14184_v52, %v6986_v48 }
 0x714   : >> { %v6995_v7 = vmul.f32 %v14136_v19, %v6986_v48  ;;  %v6996_v34 = vmul.f32 %v14201_v37, %v6986_v48  ;;  %v6997_v57 = vmul.f32 %v14140_v11, %v6986_v48  ;;  %v6998_v25 = vmul.f32 %v14204_v58, %v6986_v48 }
 0x715   : >> { %v6999_v40 = vmul.f32 %v14143_v4, %v6986_v48  ;;  %v7000_v47 = vmul.f32 %v14223_v26, %v6986_v48  ;;  %v7001_v50 = vmul.f32 %v14146_v8, %v6986_v48  ;;  %v7002_v54 = vmul.f32 %v14226_v22, %v6986_v48 }
 0x716   : >> { %v7019_v10 = vrot.slane %v6987_v13, 1  ;;  %v7020_v61 = vrot.slane %v6988_v12, 1  ;;  %v7022_v20 = vrot.slane %v6989_v35, 1  ;;  %v7023_v59 = vrot.slane %v6990_v31, 1 }
 0x717   : >> { %v7025_v27 = vrot.slane %v6991_v0, 1  ;;  %v7026_v33 = vrot.slane %v6992_v49, 1  ;;  %v7028_v51 = vrot.slane %v6993_v5, 1  ;;  %v7029_v60 = vrot.slane %v6994_v1, 1 }
 0x718   : >> { %v7021_v9 = vsel %vm1587_vm5, %v7019_v10, %v7020_v61  ;;  %v7024_v15 = vsel %vm1587_vm5, %v7022_v20, %v7023_v59  ;;  %v7031_v56 = vrot.slane %v6995_v7, 1  ;;  %v7032_v36 = vrot.slane %v6996_v34, 1 }
 0x719   : >> { %v7027_v45 = vsel %vm1587_vm5, %v7025_v27, %v7026_v33  ;;  %v7030_v17 = vsel %vm1587_vm5, %v7028_v51, %v7029_v60  ;;  %v7034_v23 = vrot.slane %v6997_v57, 1  ;;  %v7035_v48 = vrot.slane %v6998_v25, 1 }
 0x71a   : >> { %v7033_v13 = vsel %vm1587_vm5, %v7031_v56, %v7032_v36  ;;  %v7037_v12 = vrot.slane %v6999_v40, 1  ;;  %v7038_v35 = vrot.slane %v7000_v47, 1  ;;  %v7040_v31 = vrot.slane %v7001_v50, 1 }
 0x71b   : >> { %v7036_v0 = vsel %vm1587_vm5, %v7034_v23, %v7035_v48  ;;  %v7041_v49 = vrot.slane %v7002_v54, 1  ;;  %v7051_v5 = vadd.f32 %v7021_v9, %v6975_v28  ;;  %v7052_v1 = vadd.f32 %v7024_v15, %v6976_v29 }
 0x71c   : >> { %v7039_v10 = vsel %vm1587_vm5, %v7037_v12, %v7038_v35  ;;  %v7053_v7 = vadd.f32 %v7027_v45, %v14166_v42  ;;  %v7054_v34 = vadd.f32 %v7030_v17, %v14168_v32  ;;  %v7055_v61 = vadd.f32 %v7033_v13, %v6979_v21 }
 0x71d   : >> { %v7042_v57 = vsel %vm1587_vm5, %v7040_v31, %v7041_v49  ;;  %v7056_v25 = vadd.f32 %v7036_v0, %v14176_v30  ;;  %v7057_v20 = vadd.f32 %v7039_v10, %v6981_v46  ;;  %v7063_v40 = vmul.f32 %v14123_v2, %v14190_v3 }
 0x71e   : >> { %v7058_v23 = vadd.f32 %v7042_v57, %v14178_v44  ;;  %v7064_v28 = vmul.f32 %v14171_v55, %v14190_v3  ;;  %v7065_v29 = vmul.f32 %v14126_v16, %v14190_v3  ;;  %v7066_v17 = vmul.f32 %v14174_v43, %v14190_v3 }
 0x71f   : >> { %v7067_v42 = vmul.f32 %v14130_v14, %v14190_v3  ;;  %v7068_v32 = vmul.f32 %v14181_v6, %v14190_v3  ;;  %v7069_v2 = vmul.f32 %v14133_v38, %v14190_v3  ;;  %v7070_v21 = vmul.f32 %v14184_v52, %v14190_v3 }
 0x720   : >> { %v7071_v55 = vmul.f32 %v14136_v19, %v14190_v3  ;;  %v7072_v30 = vmul.f32 %v14201_v37, %v14190_v3  ;;  %v7073_v46 = vmul.f32 %v14140_v11, %v14190_v3  ;;  %v7074_v44 = vmul.f32 %v14204_v58, %v14190_v3 }
 0x721   : >> { %v7075_v47 = vmul.f32 %v14143_v4, %v14190_v3  ;;  %v7076_v50 = vmul.f32 %v14223_v26, %v14190_v3  ;;  %v7077_v54 = vmul.f32 %v14146_v8, %v14190_v3  ;;  %v7078_v59 = vmul.f32 %v14226_v22, %v14190_v3 }
 0x722   : >> { %v7095_v27 = vrot.slane %v7063_v40, 2  ;;  %v7096_v33 = vrot.slane %v7064_v28, 2  ;;  %v7098_v51 = vrot.slane %v7065_v29, 2  ;;  %v7099_v60 = vrot.slane %v7066_v17, 2 }
 0x723   : >> { %v7101_v9 = vrot.slane %v7067_v42, 2  ;;  %v7102_v15 = vrot.slane %v7068_v32, 2  ;;  %v7104_v56 = vrot.slane %v7069_v2, 2  ;;  %v7105_v36 = vrot.slane %v7070_v21, 2  ;;  %v14295_v32 = vld [vmem:[%s13457_s25 + $0x1c0] sm:$0xff] }
 0x724   : >> { %v7097_v45 = vsel %vm1664_vm6, %v7095_v27, %v7096_v33  ;;  %v7100_v48 = vsel %vm1664_vm6, %v7098_v51, %v7099_v60  ;;  %v7107_v13 = vrot.slane %v7071_v55, 2  ;;  %v7108_v12 = vrot.slane %v7072_v30, 2 }
 0x725   : >> { %v7103_v35 = vsel %vm1664_vm6, %v7101_v9, %v7102_v15  ;;  %v7106_v31 = vsel %vm1664_vm6, %v7104_v56, %v7105_v36  ;;  %v7110_v3 = vrot.slane %v7073_v46, 2  ;;  %v7111_v0 = vrot.slane %v7074_v44, 2  ;;  %v14316_v56 = vld [vmem:[%s13457_s25 + $0x1c8] sm:$0x3] }
 0x726   : >> { %v7109_v49 = vsel %vm1664_vm6, %v7107_v13, %v7108_v12  ;;  %v7113_v10 = vrot.slane %v7075_v47, 2  ;;  %v7114_v57 = vrot.slane %v7076_v50, 2  ;;  %v7116_v40 = vrot.slane %v7077_v54, 2 }
 0x727   : >> { %v7112_v28 = vsel %vm1664_vm6, %v7110_v3, %v7111_v0  ;;  %v7117_v29 = vrot.slane %v7078_v59, 2  ;;  %v7127_v17 = vadd.f32 %v7097_v45, %v7051_v5  ;;  %v7128_v42 = vadd.f32 %v7100_v48, %v7052_v1 }
 0x728   : >> { %v7115_v2 = vsel %vm1664_vm6, %v7113_v10, %v7114_v57  ;;  %v7129_v21 = vadd.f32 %v7103_v35, %v7053_v7  ;;  %v7130_v55 = vadd.f32 %v7106_v31, %v7054_v34  ;;  %v7131_v30 = vadd.f32 %v7109_v49, %v7055_v61 }
 0x729   : >> { %v7118_v46 = vsel %vm1664_vm6, %v7116_v40, %v7117_v29  ;;  %v7132_v44 = vadd.f32 %v7112_v28, %v7056_v25  ;;  %v7133_v27 = vadd.f32 %v7115_v2, %v7057_v20  ;;  %v7139_v47 = vmul.f32 %v14126_v16, %v14194_v62 }
 0x72a   : >> { %v7134_v50 = vadd.f32 %v7118_v46, %v7058_v23  ;;  %v7140_v5 = vmul.f32 %v14130_v14, %v14194_v62  ;;  %v7141_v1 = vmul.f32 %v14133_v38, %v14194_v62  ;;  %v7142_v7 = vmul.f32 %v14136_v19, %v14194_v62 }
 0x72b   : >> { %v7143_v34 = vmul.f32 %v14140_v11, %v14194_v62  ;;  %v7144_v61 = vmul.f32 %v14143_v4, %v14194_v62  ;;  %v7145_v25 = vmul.f32 %v14146_v8, %v14194_v62  ;;  %v7146_v20 = vmul.f32 %v14295_v32, %v14194_v62 }
 0x72c   : >> { %v7147_v23 = vadd.f32 %v7139_v47, %v7127_v17  ;;  %v7148_v54 = vadd.f32 %v7140_v5, %v7128_v42  ;;  %v7149_v59 = vadd.f32 %v7141_v1, %v7129_v21  ;;  %v7150_v33 = vadd.f32 %v7142_v7, %v7130_v55 }
 0x72d   : >> { %v7151_v51 = vadd.f32 %v7143_v34, %v7131_v30  ;;  %v7152_v60 = vadd.f32 %v7144_v61, %v7132_v44  ;;  %v7153_v9 = vadd.f32 %v7145_v25, %v7133_v27  ;;  %v7154_v15 = vadd.f32 %v7146_v20, %v7134_v50 }
 0x72e   : >> { %v7159_v36 = vmul.f32 %v14126_v16, %v14198_v53  ;;  %v7160_v45 = vmul.f32 %v14174_v43, %v14198_v53  ;;  %v7161_v48 = vmul.f32 %v14130_v14, %v14198_v53  ;;  %v7162_v62 = vmul.f32 %v14181_v6, %v14198_v53 }
 0x72f   : >> { %v7163_v13 = vmul.f32 %v14133_v38, %v14198_v53  ;;  %v7164_v12 = vmul.f32 %v14184_v52, %v14198_v53  ;;  %v7165_v35 = vmul.f32 %v14136_v19, %v14198_v53  ;;  %v7166_v31 = vmul.f32 %v14201_v37, %v14198_v53 }
 0x730   : >> { %v7167_v3 = vmul.f32 %v14140_v11, %v14198_v53  ;;  %v7168_v0 = vmul.f32 %v14204_v58, %v14198_v53  ;;  %v7169_v49 = vmul.f32 %v14143_v4, %v14198_v53  ;;  %v7170_v10 = vmul.f32 %v14223_v26, %v14198_v53 }
 0x731   : >> { %v7171_v57 = vmul.f32 %v14146_v8, %v14198_v53  ;;  %v7172_v40 = vmul.f32 %v14226_v22, %v14198_v53  ;;  %v7173_v28 = vmul.f32 %v14295_v32, %v14198_v53  ;;  %v7174_v29 = vmul.f32 %v14316_v56, %v14198_v53 }
 0x732   : >> { %v7191_v17 = vrot.slane %v7159_v36, 1  ;;  %v7192_v42 = vrot.slane %v7160_v45, 1  ;;  %v7194_v2 = vrot.slane %v7161_v48, 1  ;;  %v7195_v21 = vrot.slane %v7162_v62, 1 }
 0x733   : >> { %v7197_v55 = vrot.slane %v7163_v13, 1  ;;  %v7198_v30 = vrot.slane %v7164_v12, 1  ;;  %v7200_v46 = vrot.slane %v7165_v35, 1  ;;  %v7201_v44 = vrot.slane %v7166_v31, 1 }
 0x734   : >> { %v7193_v27 = vsel %vm1587_vm5, %v7191_v17, %v7192_v42  ;;  %v7196_v47 = vsel %vm1587_vm5, %v7194_v2, %v7195_v21  ;;  %v7203_v50 = vrot.slane %v7167_v3, 1  ;;  %v7204_v5 = vrot.slane %v7168_v0, 1 }
 0x735   : >> { %v7199_v1 = vsel %vm1587_vm5, %v7197_v55, %v7198_v30  ;;  %v7202_v7 = vsel %vm1587_vm5, %v7200_v46, %v7201_v44  ;;  %v7206_v34 = vrot.slane %v7169_v49, 1  ;;  %v7207_v53 = vrot.slane %v7170_v10, 1 }
 0x736   : >> { %v7205_v61 = vsel %vm1587_vm5, %v7203_v50, %v7204_v5  ;;  %v7209_v25 = vrot.slane %v7171_v57, 1  ;;  %v7210_v20 = vrot.slane %v7172_v40, 1  ;;  %v7212_v36 = vrot.slane %v7173_v28, 1 }
 0x737   : >> { %v7208_v45 = vsel %vm1587_vm5, %v7206_v34, %v7207_v53  ;;  %v7213_v48 = vrot.slane %v7174_v29, 1  ;;  %v7223_v62 = vadd.f32 %v7193_v27, %v7147_v23  ;;  %v7224_v13 = vadd.f32 %v7196_v47, %v7148_v54 }
 0x738   : >> { %v7211_v12 = vsel %vm1587_vm5, %v7209_v25, %v7210_v20  ;;  %v7225_v35 = vadd.f32 %v7199_v1, %v7149_v59  ;;  %v7226_v31 = vadd.f32 %v7202_v7, %v7150_v33  ;;  %v7227_v3 = vadd.f32 %v7205_v61, %v7151_v51 }
 0x739   : >> { %v7214_v0 = vsel %vm1587_vm5, %v7212_v36, %v7213_v48  ;;  %v7228_v17 = vadd.f32 %v7208_v45, %v7152_v60  ;;  %v7229_v49 = vadd.f32 %v7211_v12, %v7153_v9  ;;  %v7235_v10 = vmul.f32 %v14126_v16, %v14208_v18 }
 0x73a   : >> { %v7230_v57 = vadd.f32 %v7214_v0, %v7154_v15  ;;  %v7236_v40 = vmul.f32 %v14174_v43, %v14208_v18  ;;  %v7237_v23 = vmul.f32 %v14130_v14, %v14208_v18  ;;  %v7238_v54 = vmul.f32 %v14181_v6, %v14208_v18 }
 0x73b   : >> { %v7239_v59 = vmul.f32 %v14133_v38, %v14208_v18  ;;  %v7240_v33 = vmul.f32 %v14184_v52, %v14208_v18  ;;  %v7241_v51 = vmul.f32 %v14136_v19, %v14208_v18  ;;  %v7242_v16 = vmul.f32 %v14201_v37, %v14208_v18 }
 0x73c   : >> { %v7243_v43 = vmul.f32 %v14140_v11, %v14208_v18  ;;  %v7244_v60 = vmul.f32 %v14204_v58, %v14208_v18  ;;  %v7245_v9 = vmul.f32 %v14143_v4, %v14208_v18  ;;  %v7246_v15 = vmul.f32 %v14223_v26, %v14208_v18 }
 0x73d   : >> { %v7247_v28 = vmul.f32 %v14146_v8, %v14208_v18  ;;  %v7248_v29 = vmul.f32 %v14226_v22, %v14208_v18  ;;  %v7249_v42 = vmul.f32 %v14295_v32, %v14208_v18  ;;  %v7250_v2 = vmul.f32 %v14316_v56, %v14208_v18 }
 0x73e   : >> { %v7267_v21 = vrot.slane %v7235_v10, 2  ;;  %v7268_v55 = vrot.slane %v7236_v40, 2  ;;  %v7270_v30 = vrot.slane %v7237_v23, 2  ;;  %v7271_v46 = vrot.slane %v7238_v54, 2  ;;  %v14397_v23 = vld [vmem:[%s13457_s25 + $0x1d0] sm:$0xff] }
 0x73f   : >> { %v7273_v44 = vrot.slane %v7239_v59, 2  ;;  %v7274_v27 = vrot.slane %v7240_v33, 2  ;;  %v7276_v47 = vrot.slane %v7241_v51, 2  ;;  %v7277_v50 = vrot.slane %v7242_v16, 2 }
 0x740   : >> { %v7269_v5 = vsel %vm1664_vm6, %v7267_v21, %v7268_v55  ;;  %v7272_v1 = vsel %vm1664_vm6, %v7270_v30, %v7271_v46  ;;  %v7279_v7 = vrot.slane %v7243_v43, 2  ;;  %v7280_v34 = vrot.slane %v7244_v60, 2  ;;  %v14418_v46 = vld [vmem:[%s13457_s25 + $0x1d8] sm:$0x3] }
 0x741   : >> { %v7275_v53 = vsel %vm1664_vm6, %v7273_v44, %v7274_v27  ;;  %v7278_v61 = vsel %vm1664_vm6, %v7276_v47, %v7277_v50  ;;  %v7282_v18 = vrot.slane %v7245_v9, 2  ;;  %v7283_v25 = vrot.slane %v7246_v15, 2 }
 0x742   : >> { %v7281_v20 = vsel %vm1664_vm6, %v7279_v7, %v7280_v34  ;;  %v7285_v36 = vrot.slane %v7247_v28, 2  ;;  %v7286_v45 = vrot.slane %v7248_v29, 2  ;;  %v7288_v48 = vrot.slane %v7249_v42, 2 }
 0x743   : >> { %v7284_v12 = vsel %vm1664_vm6, %v7282_v18, %v7283_v25  ;;  %v7289_v0 = vrot.slane %v7250_v2, 2  ;;  %v7299_v10 = vadd.f32 %v7269_v5, %v7223_v62  ;;  %v7300_v40 = vadd.f32 %v7272_v1, %v7224_v13 }
 0x744   : >> { %v7287_v54 = vsel %vm1664_vm6, %v7285_v36, %v7286_v45  ;;  %v7301_v59 = vadd.f32 %v7275_v53, %v7225_v35  ;;  %v7302_v33 = vadd.f32 %v7278_v61, %v7226_v31  ;;  %v7303_v51 = vadd.f32 %v7281_v20, %v7227_v3 }
 0x745   : >> { %v7290_v16 = vsel %vm1664_vm6, %v7288_v48, %v7289_v0  ;;  %v7304_v43 = vadd.f32 %v7284_v12, %v7228_v17  ;;  %v7305_v60 = vadd.f32 %v7287_v54, %v7229_v49  ;;  %v7311_v9 = vmul.f32 %v14130_v14, %v14212_v24 }
 0x746   : >> { %v7306_v15 = vadd.f32 %v7290_v16, %v7230_v57  ;;  %v7312_v62 = vmul.f32 %v14133_v38, %v14212_v24  ;;  %v7313_v13 = vmul.f32 %v14136_v19, %v14212_v24  ;;  %v7314_v35 = vmul.f32 %v14140_v11, %v14212_v24 }
 0x747   : >> { %v7315_v31 = vmul.f32 %v14143_v4, %v14212_v24  ;;  %v7316_v3 = vmul.f32 %v14146_v8, %v14212_v24  ;;  %v7317_v17 = vmul.f32 %v14295_v32, %v14212_v24  ;;  %v7318_v49 = vmul.f32 %v14397_v23, %v14212_v24 }
 0x748   : >> { %v7319_v57 = vadd.f32 %v7311_v9, %v7299_v10  ;;  %v7320_v28 = vadd.f32 %v7312_v62, %v7300_v40  ;;  %v7321_v29 = vadd.f32 %v7313_v13, %v7301_v59  ;;  %v7322_v42 = vadd.f32 %v7314_v35, %v7302_v33 }
 0x749   : >> { %v7323_v2 = vadd.f32 %v7315_v31, %v7303_v51  ;;  %v7324_v21 = vadd.f32 %v7316_v3, %v7304_v43  ;;  %v7325_v55 = vadd.f32 %v7317_v17, %v7305_v60  ;;  %v7326_v30 = vadd.f32 %v7318_v49, %v7306_v15 }
 0x74a   : >> { %v7331_v44 = vmul.f32 %v14130_v14, %v14216_v63  ;;  %v7332_v27 = vmul.f32 %v14181_v6, %v14216_v63  ;;  %v7333_v47 = vmul.f32 %v14133_v38, %v14216_v63  ;;  %v7334_v24 = vmul.f32 %v14184_v52, %v14216_v63 }
 0x74b   : >> { %v7335_v50 = vmul.f32 %v14136_v19, %v14216_v63  ;;  %v7336_v5 = vmul.f32 %v14201_v37, %v14216_v63  ;;  %v7337_v1 = vmul.f32 %v14140_v11, %v14216_v63  ;;  %v7338_v7 = vmul.f32 %v14204_v58, %v14216_v63 }
 0x74c   : >> { %v7339_v34 = vmul.f32 %v14143_v4, %v14216_v63  ;;  %v7340_v53 = vmul.f32 %v14223_v26, %v14216_v63  ;;  %v7341_v61 = vmul.f32 %v14146_v8, %v14216_v63  ;;  %v7342_v18 = vmul.f32 %v14226_v22, %v14216_v63 }
 0x74d   : >> { %v7343_v25 = vmul.f32 %v14295_v32, %v14216_v63  ;;  %v7344_v20 = vmul.f32 %v14316_v56, %v14216_v63  ;;  %v7345_v36 = vmul.f32 %v14397_v23, %v14216_v63  ;;  %v7346_v45 = vmul.f32 %v14418_v46, %v14216_v63 }
 0x74e   : >> { %v7363_v48 = vrot.slane %v7331_v44, 1  ;;  %v7364_v12 = vrot.slane %v7332_v27, 1  ;;  %v7366_v0 = vrot.slane %v7333_v47, 1  ;;  %v7367_v10 = vrot.slane %v7334_v24, 1 }
 0x74f   : >> { %v7369_v40 = vrot.slane %v7335_v50, 1  ;;  %v7370_v54 = vrot.slane %v7336_v5, 1  ;;  %v7372_v59 = vrot.slane %v7337_v1, 1  ;;  %v7373_v33 = vrot.slane %v7338_v7, 1 }
 0x750   : >> { %v7365_v51 = vsel %vm1587_vm5, %v7363_v48, %v7364_v12  ;;  %v7368_v16 = vsel %vm1587_vm5, %v7366_v0, %v7367_v10  ;;  %v7375_v43 = vrot.slane %v7339_v34, 1  ;;  %v7376_v60 = vrot.slane %v7340_v53, 1 }
 0x751   : >> { %v7371_v9 = vsel %vm1587_vm5, %v7369_v40, %v7370_v54  ;;  %v7374_v15 = vsel %vm1587_vm5, %v7372_v59, %v7373_v33  ;;  %v7378_v62 = vrot.slane %v7341_v61, 1  ;;  %v7379_v63 = vrot.slane %v7342_v18, 1 }
 0x752   : >> { %v7377_v13 = vsel %vm1587_vm5, %v7375_v43, %v7376_v60  ;;  %v7381_v35 = vrot.slane %v7343_v25, 1  ;;  %v7382_v31 = vrot.slane %v7344_v20, 1  ;;  %v7384_v3 = vrot.slane %v7345_v36, 1 }
 0x753   : >> { %v7380_v17 = vsel %vm1587_vm5, %v7378_v62, %v7379_v63  ;;  %v7385_v49 = vrot.slane %v7346_v45, 1  ;;  %v7395_v44 = vadd.f32 %v7365_v51, %v7319_v57  ;;  %v7396_v27 = vadd.f32 %v7368_v16, %v7320_v28 }
 0x754   : >> { %v7383_v47 = vsel %vm1587_vm5, %v7381_v35, %v7382_v31  ;;  %v7397_v24 = vadd.f32 %v7371_v9, %v7321_v29  ;;  %v7398_v50 = vadd.f32 %v7374_v15, %v7322_v42  ;;  %v7399_v5 = vadd.f32 %v7377_v13, %v7323_v2  ;;  %v15262_v13 = vld [vmem:[#allocation75_spill] sm:$0xff] }
 0x755   : >> { %v7386_v1 = vsel %vm1587_vm5, %v7384_v3, %v7385_v49  ;;  %v7400_v7 = vadd.f32 %v7380_v17, %v7324_v21  ;;  %v7401_v34 = vadd.f32 %v7383_v47, %v7325_v55  ;;  %v7407_v53 = vmul.f32 %v14130_v14, %v14220_v39  ;;  %v15263_v3 = vld [vmem:[#allocation76_spill] sm:$0xff] }
 0x756   : >> { %v7402_v61 = vadd.f32 %v7386_v1, %v7326_v30  ;;  %v7408_v18 = vmul.f32 %v14181_v6, %v14220_v39  ;;  %v7409_v57 = vmul.f32 %v14133_v38, %v14220_v39  ;;  %v7410_v28 = vmul.f32 %v14184_v52, %v14220_v39 }
 0x757   : >> { %v7411_v29 = vmul.f32 %v14136_v19, %v14220_v39  ;;  %v7412_v42 = vmul.f32 %v14201_v37, %v14220_v39  ;;  %v7413_v2 = vmul.f32 %v14140_v11, %v14220_v39  ;;  %v7414_v14 = vmul.f32 %v14204_v58, %v14220_v39 }
 0x758   : >> { %v7415_v6 = vmul.f32 %v14143_v4, %v14220_v39  ;;  %v7416_v38 = vmul.f32 %v14223_v26, %v14220_v39  ;;  %v7417_v52 = vmul.f32 %v14146_v8, %v14220_v39  ;;  %v7418_v19 = vmul.f32 %v14226_v22, %v14220_v39 }
 0x759   : >> { %v7419_v37 = vmul.f32 %v14295_v32, %v14220_v39  ;;  %v7420_v11 = vmul.f32 %v14316_v56, %v14220_v39  ;;  %v7421_v58 = vmul.f32 %v14397_v23, %v14220_v39  ;;  %v7422_v4 = vmul.f32 %v14418_v46, %v14220_v39 }
 0x75a   : >> { %v7439_v21 = vrot.slane %v7407_v53, 2  ;;  %v7440_v26 = vrot.slane %v7408_v18, 2  ;;  %v7442_v55 = vrot.slane %v7409_v57, 2  ;;  %v7443_v30 = vrot.slane %v7410_v28, 2 }
 0x75b   : >> { %v7445_v8 = vrot.slane %v7411_v29, 2  ;;  %v7446_v25 = vrot.slane %v7412_v42, 2  ;;  %v7448_v20 = vrot.slane %v7413_v2, 2  ;;  %v7449_v22 = vrot.slane %v7414_v14, 2 }
 0x75c   : >> { %v7441_v36 = vsel %vm1664_vm6, %v7439_v21, %v7440_v26  ;;  %v7444_v32 = vsel %vm1664_vm6, %v7442_v55, %v7443_v30  ;;  %v7451_v45 = vrot.slane %v7415_v6, 2  ;;  %v7452_v56 = vrot.slane %v7416_v38, 2 }
 0x75d   : >> { %v7447_v48 = vsel %vm1664_vm6, %v7445_v8, %v7446_v25  ;;  %v7450_v23 = vsel %vm1664_vm6, %v7448_v20, %v7449_v22  ;;  %v7454_v12 = vrot.slane %v7417_v52, 2  ;;  %v7455_v39 = vrot.slane %v7418_v19, 2  ;;  %v9751_v8 = vld [vmem:[%s13457_s25 + $0xb0] sm:$0xff]  ;;  %v9752_v20 = vld [vmem:[%s13457_s25 + $0xb8] sm:$0x3] }
 0x75e   : >> { %v7453_v46 = vsel %vm1664_vm6, %v7451_v45, %v7452_v56  ;;  %v7457_v0 = vrot.slane %v7419_v37, 2  ;;  %v7458_v10 = vrot.slane %v7420_v11, 2  ;;  %v7460_v40 = vrot.slane %v7421_v58, 2  ;;  %v9754_v45 = vld [vmem:[%s13457_s25 + $0xc8] sm:$0x3] }
 0x75f   : >> { %v7456_v54 = vsel %vm1664_vm6, %v7454_v12, %v7455_v39  ;;  %v7461_v59 = vrot.slane %v7422_v4, 2  ;;  %v7471_v33 = vadd.f32 %v7441_v36, %v7395_v44  ;;  %v7472_v51 = vadd.f32 %v7444_v32, %v7396_v27  ;;  %v9753_v36 = vld [vmem:[%s13457_s25 + $0xc0] sm:$0xff]  ;;  %v9756_v12 = vld [vmem:[%s13457_s25 + $0xd8] sm:$0x3] }
 0x760   : >> { %v7459_v16 = vsel %vm1664_vm6, %v7457_v0, %v7458_v10  ;;  %v7473_v43 = vadd.f32 %v7447_v48, %v7397_v24  ;;  %v7474_v60 = vadd.f32 %v7450_v23, %v7398_v50  ;;  %v7475_v9 = vadd.f32 %v7453_v46, %v7399_v5  ;;  %v9755_v48 = vld [vmem:[%s13457_s25 + $0xd0] sm:$0xff]  ;;  %v9757_v46 = vld [vmem:[%s13457_s25 + $0xe0] sm:$0xff]  ;;  %v9758_v10 = vld [vmem:[%s13457_s25 + $0xe8] sm:$0x3] }
 0x761   : >> { %v7462_v15 = vsel %vm1664_vm6, %v7460_v40, %v7461_v59  ;;  %v7476_v62 = vadd.f32 %v7456_v54, %v7400_v7  ;;  %v7477_v63 = vadd.f32 %v7459_v16, %v7401_v34  ;;  %v7482_v35 = vrot.slane %v15262_v13, %v15259_v41  ;;  %v9759_v54 = vld [vmem:[%s13457_s25 + $0xf0] sm:$0xff]  ;;  %v9761_v16 = vld [vmem:[%s13457_s25 + $0x100] sm:$0xff] }
 0x762   : >> { %v7478_v31 = vadd.f32 %v7462_v15, %v7402_v61  ;;  %v7494_v17 = vrot.slane %v15263_v3, %v15259_v41  ;;  %v9763_v15 = vld [vmem:[%s13457_s25 + $0x110] sm:$0xff]  ;;  %v9766_v3 = vld [vmem:[%s13457_s25 + $0x128] sm:$0x3] }
 0x763   : >> { %v7483_v49 = vmul.f32 %v7482_v35, %v7471_v33  ;;  %v7484_v47 = vmul.f32 %v7482_v35, %v7472_v51  ;;  %v7485_v44 = vmul.f32 %v7482_v35, %v7473_v43  ;;  %v7486_v27 = vmul.f32 %v7482_v35, %v7474_v60  ;;  %v9760_v33 = vld [vmem:[%s13457_s25 + $0xf8] sm:$0x3]  ;;  %v9762_v60 = vld [vmem:[%s13457_s25 + $0x108] sm:$0x3] }
 0x764   : >> { %v7487_v1 = vmul.f32 %v7482_v35, %v7475_v9  ;;  %v7488_v24 = vmul.f32 %v7482_v35, %v7476_v62  ;;  %v7489_v50 = vmul.f32 %v7482_v35, %v7477_v63  ;;  %v7490_v5 = vmul.f32 %v7482_v35, %v7478_v31  ;;  %v9764_v63 = vld [vmem:[%s13457_s25 + $0x118] sm:$0x3]  ;;  %v9765_v35 = vld [vmem:[%s13457_s25 + $0x120] sm:$0xff] }
 0x765   : >> { %v7495_v53 = vadd.f32 %v7494_v17, %v7483_v49  ;;  %v7496_v18 = vadd.f32 %v7494_v17, %v7484_v47  ;;  %v7497_v7 = vadd.f32 %v7494_v17, %v7485_v44  ;;  %v7498_v34 = vadd.f32 %v7494_v17, %v7486_v27  ;;  %v9054_v49 = vld [vmem:[%s14889_s4 + $0xc] sm:$0xf] (%p5857_p6) }
 0x766   : >> { %v7499_v57 = vadd.f32 %v7494_v17, %v7487_v1  ;;  %v7500_v28 = vadd.f32 %v7494_v17, %v7488_v24  ;;  %v7501_v29 = vadd.f32 %v7494_v17, %v7489_v50  ;;  %v7502_v61 = vadd.f32 %v7494_v17, %v7490_v5  ;;  %9523 = vmatprep.subr.msk.bf16.mxu1 (%p5857_p6), %vm1151_vm1, %v9054_v49 }
 0x767   : >> { %v7503_v42 = vmax.f32 %v7495_v53, 0.0  ;;  %v7504_v2 = vmax.f32 %v7496_v18, 0.0  ;;  %v7505_v41 = vmax.f32 %v7497_v7, 0.0  ;;  %v7506_v14 = vmax.f32 %v7498_v34, 0.0 }
 0x768   : >> { %v7507_v6 = vmax.f32 %v7499_v57, 0.0  ;;  %v7508_v38 = vmax.f32 %v7500_v28, 0.0  ;;  %v7509_v52 = vmax.f32 %v7501_v29, 0.0  ;;  %v7510_v19 = vmax.f32 %v7502_v61, 0.0 }
 0x769   : >> { %v7519_v37 = vrot.slane %v7503_v42, 7  ;;  %v7520_v11 = vrot.slane %v7504_v2, 7  ;;  %v7521_v58 = vrot.slane %v7505_v41, 7  ;;  %v7522_v4 = vrot.slane %v7506_v14, 7  ;;  %v9071_v2 = vld [vmem:[%s14889_s4 + $0x10] sm:$0xf] (%p5857_p6) }
 0x76a   : >> { %v7523_v21 = vrot.slane %v7507_v6, 7  ;;  %v7524_v26 = vrot.slane %v7508_v38, 7  ;;  %v7525_v55 = vrot.slane %v7509_v52, 7  ;;  %v7526_v30 = vrot.slane %v7510_v19, 7 }
 0x76b   : >> { %v7535_v25 = vadd.f32 %v9751_v8, %v7519_v37  ;;  %v7536_v22 = vadd.f32 %v9752_v20, %v7519_v37  ;;  %v7537_v32 = vadd.f32 %v9753_v36, %v7520_v11  ;;  %v7538_v56 = vadd.f32 %v9754_v45, %v7520_v11 }
 0x76c   : >> { %v7539_v23 = vadd.f32 %v9755_v48, %v7521_v58  ;;  %v7540_v39 = vadd.f32 %v9756_v12, %v7521_v58  ;;  %v7541_v0 = vadd.f32 %v9757_v46, %v7522_v4  ;;  %v7542_v40 = vadd.f32 %v9758_v10, %v7522_v4 }
 0x76d   : >> { %v7543_v59 = vadd.f32 %v9759_v54, %v7523_v21  ;;  %v7544_v51 = vadd.f32 %v9760_v33, %v7523_v21  ;;  %v7545_v43 = vadd.f32 %v9761_v16, %v7524_v26  ;;  %v7546_v9 = vadd.f32 %v9762_v60, %v7524_v26  ;;  %7554 = vst.msk [vmem:[%s7552_s27 - $0x1] sm:$0xfe] %vm3155_vm7, %v7535_v25  ;;  %v9072_v16 = vld [vmem:[%s14889_s4 + $0x14] sm:$0xf] (%p5857_p6)  ;;  %v15264_v60 = vld [vmem:[#allocation40_spill] sm:$0xff] (%p5857_p6) }
 0x76e   : >> { %7556 = vst.msk [vmem:[%s7552_s27 + $0x7] sm:$0x1] %vm3157_vm8, %v7536_v22  ;;  %7558 = vst.msk [vmem:[%s7552_s27 + $0xf] sm:$0x1] %vm3157_vm8, %v7538_v56  ;;  %v7547_v62 = vadd.f32 %v9763_v15, %v7525_v55  ;;  %v7548_v13 = vadd.f32 %v9764_v63, %v7525_v55  ;;  %v7549_v31 = vadd.f32 %v9765_v35, %v7526_v30  ;;  %v7670_v27 = vsel (%p5857_p6), %vm1151_vm1, %v9054_v49, 0  ;;  %v15267_v63 = vld [vmem:[#allocation41_spill] sm:$0xff] (%p5857_p6) }
 0x76f   : >> { %7557 = vst.msk [vmem:[%s7552_s27 + $0x7] sm:$0xfe] %vm3155_vm7, %v7537_v32  ;;  %v7550_v17 = vadd.f32 %v9766_v3, %v7526_v30  ;;  %7559 = vst.msk [vmem:[%s7552_s27 + $0xf] sm:$0xfe] %vm3155_vm7, %v7539_v23  ;;  %9417 = vmatpush3.bf16.msra.mxu1 (%p5857_p6), %v7670_v27  ;;  %v8386_v41 = vsel (%p5857_p6), %vm1151_vm1, %v9071_v2, 0  ;;  %9524 = vmatprep.subr.msk.bf16.mxu0 (%p5857_p6), %vm1151_vm1, %v9072_v16  ;;  %v15268_v35 = vld [vmem:[#allocation44_spill] sm:$0xff] (%p5857_p6) }
 0x770   : >> { %7560 = vst.msk [vmem:[%s7552_s27 + $0x17] sm:$0x1] %vm3157_vm8, %v7540_v39  ;;  %7562 = vst.msk [vmem:[%s7552_s27 + $0x1f] sm:$0x1] %vm3157_vm8, %v7542_v40  ;;  %9525 = vmatprep.subr.msk.bf16.mxu1 (%p5857_p6), %vm1151_vm1, %v9071_v2  ;;  %v15271_v49 = vld [vmem:[#allocation45_spill] sm:$0xff] (%p5857_p6)  ;;  %v15273_v27 = vld [vmem:[#allocation50_spill] sm:$0xff] (%p5857_p6) }
 0x771   : >> { %7561 = vst.msk [vmem:[%s7552_s27 + $0x17] sm:$0xfe] %vm3155_vm7, %v7541_v0  ;;  %7563 = vst.msk [vmem:[%s7552_s27 + $0x1f] sm:$0xfe] %vm3155_vm7, %v7543_v59  ;;  %5859 = sbr.rel (!%p5857_p6) target bundleno = 1629 (0x65d), region = 145  ;;  %v15282_v2 = vld [vmem:[#allocation55_spill] sm:$0xff] (%p5857_p6) }
 0x772   : >> { %7564 = vst.msk [vmem:[%s7552_s27 + $0x27] sm:$0x1] %vm3157_vm8, %v7544_v51  ;;  %7566 = vst.msk [vmem:[%s7552_s27 + $0x2f] sm:$0x1] %vm3157_vm8, %v7546_v9  ;;  %v15265_v9 = vld [vmem:[#allocation42_spill] sm:$0xff] (%p5857_p6) }
 0x773   : >> { %7565 = vst.msk [vmem:[%s7552_s27 + $0x27] sm:$0xfe] %vm3155_vm7, %v7545_v43  ;;  %7567 = vst.msk [vmem:[%s7552_s27 + $0x2f] sm:$0xfe] %vm3155_vm7, %v7547_v62  ;;  %v8174_v43 = vsel (%p5857_p6), %vm1151_vm1, %v9072_v16, 0  ;;  %v8107_v15 = vpack.c.bf16 (%p5857_p6), %v15265_v9, %v15264_v60  ;;  %v15266_v62 = vld [vmem:[#allocation39_spill] sm:$0xff] (%p5857_p6) }
 0x774   : >> { %7568 = vst.msk [vmem:[%s7552_s27 + $0x37] sm:$0x1] %vm3157_vm8, %v7548_v13  ;;  %7570 = vst.msk [vmem:[%s7552_s27 + $0x3f] sm:$0x1] %vm3157_vm8, %v7550_v17  ;;  %9451 = vmatpush3.bf16.msra.mxu0 (%p5857_p6), %v8174_v43  ;;  %v8108_v13 = vpack.c.bf16 (%p5857_p6), %v15267_v63, %v15266_v62  ;;  %v15270_v17 = vld [vmem:[#allocation43_spill] sm:$0xff] (%p5857_p6) }
 0x775   : >> { %7569 = vst.msk [vmem:[%s7552_s27 + $0x37] sm:$0xfe] %vm3155_vm7, %v7549_v31  ;;  %9452 = vmatprep.mubr.msk.bf16.mxu0 (%p5857_p6), %vm303_vm3, %v8107_v15  ;;  %v15269_v31 = vld [vmem:[#allocation46_spill] sm:$0xff] (%p5857_p6) }
 0x776   : > { %v8109_v3 = vpack.c.bf16 %v15269_v31, %v15268_v35 }
 0x777   : > { %9453 = vmatmul.mubr.msk.bf16.vlgmr.msra.gmra.mxu0 %vm303_vm3, %v8108_v13 }
 0x778   : > { %9456 = vmatprep.mubr.msk.bf16.mxu0 %vm303_vm3, %v8109_v3 }
 0x77c   : > { %v7571_v47 = vld [vmem:[#allocation3] sm:$0xff]  ;;  %v7572_v44 = vld [vmem:[#allocation3 + $0x8] sm:$0xff]  ;;  %v7573_v24 = vld [vmem:[#allocation3 + $0x10] sm:$0xff] }
 0x77d   : > { %v7603_v1 = vpack.c.bf16 %v7572_v44, %v7571_v47  ;;  %v7574_v50 = vld [vmem:[#allocation3 + $0x18] sm:$0xff]  ;;  %v7575_v5 = vld [vmem:[#allocation3 + $0x20] sm:$0xff]  ;;  %v7576_v18 = vld [vmem:[#allocation3 + $0x28] sm:$0xff]  ;;  %v8110_v47 = vpack.c.bf16 %v15271_v49, %v15270_v17 }
 0x77e   : > { %v7604_v53 = vpack.c.bf16 %v7574_v50, %v7573_v24  ;;  %v7605_v7 = vpack.c.bf16 %v7576_v18, %v7575_v5  ;;  %v7577_v34 = vld [vmem:[#allocation3 + $0x30] sm:$0xff]  ;;  %v7578_v57 = vld [vmem:[#allocation3 + $0x38] sm:$0xff]  ;;  %v7579_v28 = vld [vmem:[#allocation3 + $0x40] sm:$0xff] }
 0x77f   : > { %9418 = vmatprep.mubr.msk.bf16.mxu1 %vm303_vm3, %v7603_v1  ;;  %v7580_v29 = vld [vmem:[#allocation3 + $0x48] sm:$0xff]  ;;  %v7606_v61 = vpack.c.bf16 %v7578_v57, %v7577_v34  ;;  %v7581_v14 = vld [vmem:[#allocation3 + $0x50] sm:$0xff]  ;;  %v7582_v6 = vld [vmem:[#allocation3 + $0x58] sm:$0xff]  ;;  %9457 = vmatmul.mubr.msk.bf16.gmra.mxu0 %vm303_vm3, %v8110_v47 }
 0x780   : > { %9419 = vmatmul.mubr.msk.bf16.vlgmr.msra.gmra.mxu1 %vm303_vm3, %v7604_v53  ;;  %v7607_v42 = vpack.c.bf16 %v7580_v29, %v7579_v28  ;;  %v7583_v38 = vld [vmem:[#allocation3 + $0x60] sm:$0xff]  ;;  %v7584_v52 = vld [vmem:[#allocation3 + $0x68] sm:$0xff]  ;;  %v7608_v19 = vpack.c.bf16 %v7582_v6, %v7581_v14  ;;  %v7585_v11 = vld [vmem:[#allocation3 + $0x70] sm:$0xff] }
 0x781   : > { %9422 = vmatprep.mubr.msk.bf16.mxu1 %vm303_vm3, %v7605_v7  ;;  %9485 = vmatpush3.bf16.msra.mxu1 %v8386_v41  ;;  %v7609_v37 = vpack.c.bf16 %v7584_v52, %v7583_v38  ;;  %v7586_v58 = vld [vmem:[#allocation3 + $0x78] sm:$0xff]  ;;  %v7587_v4 = vld [vmem:[#allocation3 + $0x80] sm:$0xff]  ;;  %v7588_v21 = vld [vmem:[#allocation3 + $0x88] sm:$0xff] }
 0x782   : > { %v7610_v26 = vpack.c.bf16 %v7586_v58, %v7585_v11  ;;  %v7611_v55 = vpack.c.bf16 %v7588_v21, %v7587_v4  ;;  %v7589_v30 = vld [vmem:[#allocation3 + $0x90] sm:$0xff]  ;;  %v7590_v8 = vld [vmem:[#allocation3 + $0x98] sm:$0xff]  ;;  %v7591_v25 = vld [vmem:[#allocation3 + $0xa0] sm:$0xff] }
 0x783   : > { %v7592_v20 = vld [vmem:[#allocation3 + $0xa8] sm:$0xff]  ;;  %v7612_v22 = vpack.c.bf16 %v7590_v8, %v7589_v30  ;;  %v7593_v32 = vld [vmem:[#allocation3 + $0xb0] sm:$0xff]  ;;  %v7594_v45 = vld [vmem:[#allocation3 + $0xb8] sm:$0xff] }
 0x784   : > { %v7613_v36 = vpack.c.bf16 %v7592_v20, %v7591_v25  ;;  %v7595_v56 = vld [vmem:[#allocation3 + $0xc0] sm:$0xff]  ;;  %v7596_v48 = vld [vmem:[#allocation3 + $0xc8] sm:$0xff]  ;;  %v7614_v23 = vpack.c.bf16 %v7594_v45, %v7593_v32  ;;  %v7597_v39 = vld [vmem:[#allocation3 + $0xd0] sm:$0xff] }
 0x785   : > { %v7615_v12 = vpack.c.bf16 %v7596_v48, %v7595_v56  ;;  %v7598_v46 = vld [vmem:[#allocation3 + $0xd8] sm:$0xff]  ;;  %v7599_v0 = vld [vmem:[#allocation3 + $0xe0] sm:$0xff]  ;;  %v7600_v10 = vld [vmem:[#allocation3 + $0xe8] sm:$0xff] }
 0x786   : > { %v7616_v40 = vpack.c.bf16 %v7598_v46, %v7597_v39  ;;  %v7617_v54 = vpack.c.bf16 %v7600_v10, %v7599_v0  ;;  %v7601_v59 = vld [vmem:[#allocation3 + $0xf0] sm:$0xff]  ;;  %v7602_v33 = vld [vmem:[#allocation3 + $0xf8] sm:$0xff]  ;;  %v15272_v44 = vld [vmem:[#allocation48_spill] sm:$0xff] }
 0x787   : > { %v7618_v51 = vpack.c.bf16 %v7602_v33, %v7601_v59  ;;  %v8111_v1 = vpack.c.bf16 %v15273_v27, %v15272_v44  ;;  %v15274_v24 = vld [vmem:[#allocation47_spill] sm:$0xff]  ;;  %v15275_v50 = vld [vmem:[#allocation49_spill] sm:$0xff]  ;;  %v15276_v53 = vld [vmem:[#allocation52_spill] sm:$0xff] }
 0x788   : > { %9423 = vmatmul.mubr.msk.bf16.gmra.mxu1 %vm303_vm3, %v7606_v61  ;;  %v8112_v5 = vpack.c.bf16 %v15275_v50, %v15274_v24  ;;  %v15277_v18 = vld [vmem:[#allocation54_spill] sm:$0xff]  ;;  %v15278_v34 = vld [vmem:[#allocation51_spill] sm:$0xff]  ;;  %v15279_v57 = vld [vmem:[#allocation53_spill] sm:$0xff] }
 0x789   : > { %9426 = vmatprep.mubr.msk.bf16.mxu1 %vm303_vm3, %v7607_v42  ;;  %9460 = vmatprep.mubr.msk.bf16.mxu0 %vm303_vm3, %v8111_v1  ;;  %v8113_v7 = vpack.c.bf16 %v15277_v18, %v15276_v53  ;;  %v8114_v28 = vpack.c.bf16 %v15279_v57, %v15278_v34  ;;  %v15280_v29 = vld [vmem:[#allocation56_spill] sm:$0xff]  ;;  %v15281_v61 = vld [vmem:[#allocation58_spill] sm:$0xff]  ;;  %v15283_v41 = vld [vmem:[#allocation57_spill] sm:$0xff] }
 0x78a   : > { %9461 = vmatmul.mubr.msk.bf16.gmra.mxu0 %vm303_vm3, %v8112_v5  ;;  %v8115_v42 = vpack.c.bf16 %v15281_v61, %v15280_v29  ;;  %v8116_v14 = vpack.c.bf16 %v15283_v41, %v15282_v2  ;;  %v15284_v6 = vld [vmem:[#allocation60_spill] sm:$0xff]  ;;  %v15285_v38 = vld [vmem:[#allocation62_spill] sm:$0xff] }
 0x78b   : > { %9464 = vmatprep.mubr.msk.bf16.mxu0 %vm303_vm3, %v8113_v7  ;;  %v8117_v52 = vpack.c.bf16 %v15285_v38, %v15284_v6  ;;  %v15288_v58 = vld [vmem:[#allocation64_spill] sm:$0xff]  ;;  %v15289_v4 = vld [vmem:[#allocation66_spill] sm:$0xff] }
 0x78c   : > { %v8119_v21 = vpack.c.bf16 %v15289_v4, %v15288_v58  ;;  %v15292_v8 = vld [vmem:[#allocation68_spill] sm:$0xff]  ;;  %v15293_v25 = vld [vmem:[#allocation70_spill] sm:$0xff] }
 0x78d   : > { %v8121_v20 = vpack.c.bf16 %v15293_v25, %v15292_v8 }
 0x790   : > { %9427 = vmatmul.mubr.msk.bf16.gmra.mxu1 %vm303_vm3, %v7608_v19  ;;  %v15286_v19 = vld [vmem:[#allocation59_spill] sm:$0xff] }
 0x791   : > { %9430 = vmatprep.mubr.msk.bf16.mxu1 %vm303_vm3, %v7609_v37  ;;  %v15287_v37 = vld [vmem:[#allocation61_spill] sm:$0xff] }
 0x792   : > { %9465 = vmatmul.mubr.msk.bf16.gmra.mxu0 %vm303_vm3, %v8114_v28  ;;  %v8118_v11 = vpack.c.bf16 %v15287_v37, %v15286_v19 }
 0x793   : > { %9468 = vmatprep.mubr.msk.bf16.mxu0 %vm303_vm3, %v8115_v42 }
 0x798   : > { %9431 = vmatmul.mubr.msk.bf16.gmra.mxu1 %vm303_vm3, %v7610_v26  ;;  %v15290_v26 = vld [vmem:[#allocation63_spill] sm:$0xff] }
 0x799   : > { %9434 = vmatprep.mubr.msk.bf16.mxu1 %vm303_vm3, %v7611_v55  ;;  %v15291_v55 = vld [vmem:[#allocation65_spill] sm:$0xff] }
 0x79a   : > { %9469 = vmatmul.mubr.msk.bf16.gmra.mxu0 %vm303_vm3, %v8116_v14  ;;  %v8120_v30 = vpack.c.bf16 %v15291_v55, %v15290_v26 }
 0x79b   : > { %9472 = vmatprep.mubr.msk.bf16.mxu0 %vm303_vm3, %v8117_v52 }
 0x7a0   : > { %9435 = vmatmul.mubr.msk.bf16.gmra.mxu1 %vm303_vm3, %v7612_v22  ;;  %v15294_v22 = vld [vmem:[#allocation67_spill] sm:$0xff] }
 0x7a1   : > { %9438 = vmatprep.mubr.msk.bf16.mxu1 %vm303_vm3, %v7613_v36  ;;  %v15295_v36 = vld [vmem:[#allocation69_spill] sm:$0xff] }
 0x7a2   : > { %9473 = vmatmul.mubr.msk.bf16.gmra.mxu0 %vm303_vm3, %v8118_v11  ;;  %v8122_v32 = vpack.c.bf16 %v15295_v36, %v15294_v22 }
 0x7a3   : > { %9476 = vmatprep.mubr.msk.bf16.mxu0 %vm303_vm3, %v8119_v21 }
 0x7a8   : > { %9439 = vmatmul.mubr.msk.bf16.gmra.mxu1 %vm303_vm3, %v7614_v23 }
 0x7a9   : > { %9442 = vmatprep.mubr.msk.bf16.mxu1 %vm303_vm3, %v7615_v12 }
 0x7aa   : > { %9477 = vmatmul.mubr.msk.bf16.gmra.mxu0 %vm303_vm3, %v8120_v30 }
 0x7ab   : > { %9480 = vmatprep.mubr.msk.bf16.mxu0 %vm303_vm3, %v8121_v20 }
 0x7b0   : > { %9443 = vmatmul.mubr.msk.bf16.gmra.mxu1 %vm303_vm3, %v7616_v40 }
 0x7b1   : > { %9446 = vmatprep.mubr.msk.bf16.mxu1 %vm303_vm3, %v7617_v54 }
 0x7b2   : > { %9481 = vmatmul.mubr.msk.bf16.gmra.mxu0 %vm303_vm3, %v8122_v32 }
 0x7b8   : > { %9447 = vmatmul.mubr.msk.bf16.gmra.mxu1 %vm303_vm3, %v7618_v51 }
 0x840   : > { %v9420_v45 = vpop.f32.mrf.mxu1 }
 0x841   : > { %v7835_v56 = vmax.f32 %v9420_v45, 0.0 }
 0x842   : > { %v7706_v48 = vpop.f32.mrf.mxu1 }
 0x843   : > { %v7867_v23 = vsub.f32 0.0, %v7835_v56  ;;  %v7833_v12 = vmax.f32 %v7706_v48, 0.0 }
 0x844   : > { %v9421_v39 = vpop.f32.mrf.mxu1 }
 0x845   : > { %v7901_v46 = vmul.f32 1.442695, %v7867_v23  ;;  %v7865_v0 = vsub.f32 0.0, %v7833_v12  ;;  %v7836_v10 = vmax.f32 %v9421_v39, 0.0 }
 0x846   : > { %v7709_v40 = vpop.f32.mrf.mxu1 }
 0x847   : > { %9767 = vpow2.f32 %v7901_v46  ;;  %v7897_v54 = vmul.f32 1.442695, %v7865_v0  ;;  %v7868_v59 = vsub.f32 0.0, %v7836_v10  ;;  %v7834_v33 = vmax.f32 %v7709_v40, 0.0 }
 0x848   : > { %v9424_v51 = vpop.f32.mrf.mxu1 }
 0x849   : > { %9769 = vpow2.f32 %v7897_v54  ;;  %v7903_v16 = vmul.f32 1.442695, %v7868_v59  ;;  %v7866_v43 = vsub.f32 0.0, %v7834_v33  ;;  %v7839_v60 = vmax.f32 %v9424_v51, 0.0 }
 0x84a   : > { %v7722_v9 = vpop.f32.mrf.mxu1 }
 0x84b   : > { %9771 = vpow2.f32 %v7903_v16  ;;  %v7899_v15 = vmul.f32 1.442695, %v7866_v43  ;;  %v7871_v62 = vsub.f32 0.0, %v7839_v60  ;;  %v7837_v63 = vmax.f32 %v7722_v9, 0.0 }
 0x84c   : > { %v9425_v13 = vpop.f32.mrf.mxu1 }
 0x84d   : > { %9773 = vpow2.f32 %v7899_v15  ;;  %v7909_v35 = vmul.f32 1.442695, %v7871_v62  ;;  %v7869_v31 = vsub.f32 0.0, %v7837_v63  ;;  %v7840_v3 = vmax.f32 %v9425_v13, 0.0 }
 0x84e   : > { %v7725_v17 = vpop.f32.mrf.mxu1 }
 0x84f   : > { %9775 = vpow2.f32 %v7909_v35  ;;  %v7905_v49 = vmul.f32 1.442695, %v7869_v31  ;;  %v7872_v47 = vsub.f32 0.0, %v7840_v3  ;;  %v7838_v44 = vmax.f32 %v7725_v17, 0.0  ;;  %v15296_v3 = vld [vmem:[#allocation9_spill] sm:$0xff] }
 0x850   : > { %v9428_v27 = vpop.f32.mrf.mxu1 }
 0x851   : > { %9777 = vpow2.f32 %v7905_v49  ;;  %v7911_v1 = vmul.f32 1.442695, %v7872_v47  ;;  %v7870_v24 = vsub.f32 0.0, %v7838_v44  ;;  %v7843_v50 = vmax.f32 %v9428_v27, 0.0 }
 0x852   : > { %v7738_v5 = vpop.f32.mrf.mxu1 }
 0x853   : > { %9779 = vpow2.f32 %v7911_v1  ;;  %v7907_v53 = vmul.f32 1.442695, %v7870_v24  ;;  %v7875_v18 = vsub.f32 0.0, %v7843_v50  ;;  %v7841_v7 = vmax.f32 %v7738_v5, 0.0 }
 0x854   : > { %v9768_v34 = vpop.eup %9767  ;;  %v9429_v57 = vpop.f32.mrf.mxu1 }
 0x855   : > { %v7963_v28 = vadd.f32 1.0, %v9768_v34  ;;  %9781 = vpow2.f32 %v7907_v53  ;;  %v7917_v29 = vmul.f32 1.442695, %v7875_v18  ;;  %v7873_v61 = vsub.f32 0.0, %v7841_v7 }
 0x856   : > { %v9770_v42 = vpop.eup %9769  ;;  %v7844_v2 = vmax.f32 %v9429_v57, 0.0  ;;  %v7741_v41 = vpop.f32.mrf.mxu1 }
 0x857   : > { %9783 = vrcp.f32 %v7963_v28  ;;  %v7961_v14 = vadd.f32 1.0, %v9770_v42  ;;  %v7913_v6 = vmul.f32 1.442695, %v7873_v61  ;;  %v7842_v38 = vmax.f32 %v7741_v41, 0.0 }
 0x858   : > { %v9772_v52 = vpop.eup %9771  ;;  %9785 = vpow2.f32 %v7917_v29  ;;  %v7876_v19 = vsub.f32 0.0, %v7844_v2  ;;  %v9432_v37 = vpop.f32.mrf.mxu1  ;;  %v15297_v29 = vld [vmem:[#allocation7_spill] sm:$0xff]  ;;  %v15298_v2 = vld [vmem:[#allocation6_spill] sm:$0xff] }
 0x859   : > { %9787 = vrcp.f32 %v7961_v14  ;;  %v7964_v11 = vadd.f32 1.0, %v9772_v52  ;;  %v7874_v58 = vsub.f32 0.0, %v7842_v38  ;;  %v7847_v4 = vmax.f32 %v9432_v37, 0.0 }
 0x85a   : > { %v9774_v21 = vpop.eup %9773  ;;  %9789 = vpow2.f32 %v7913_v6  ;;  %v7919_v26 = vmul.f32 1.442695, %v7876_v19  ;;  %v7754_v55 = vpop.f32.mrf.mxu1 }
 0x85b   : > { %9791 = vrcp.f32 %v7964_v11  ;;  %v7962_v30 = vadd.f32 1.0, %v9774_v21  ;;  %v7915_v8 = vmul.f32 1.442695, %v7874_v58  ;;  %v7879_v25 = vsub.f32 0.0, %v7847_v4 }
 0x85c   : > { %v9776_v20 = vpop.eup %9775  ;;  %9793 = vpow2.f32 %v7919_v26  ;;  %v7845_v22 = vmax.f32 %v7754_v55, 0.0  ;;  %v9433_v36 = vpop.f32.mrf.mxu1 }
 0x85d   : > { %9795 = vrcp.f32 %v7962_v30  ;;  %v7967_v32 = vadd.f32 1.0, %v9776_v20  ;;  %v7925_v45 = vmul.f32 1.442695, %v7879_v25  ;;  %v7848_v56 = vmax.f32 %v9433_v36, 0.0  ;;  %v15299_v20 = vld [vmem:[#allocation8_spill] sm:$0xff] }
 0x85e   : > { %v9778_v48 = vpop.eup %9777  ;;  %9797 = vpow2.f32 %v7915_v8  ;;  %v7877_v23 = vsub.f32 0.0, %v7845_v22  ;;  %v7757_v12 = vpop.f32.mrf.mxu1 }
 0x85f   : > { %9799 = vrcp.f32 %v7967_v32  ;;  %v7965_v39 = vadd.f32 1.0, %v9778_v48  ;;  %v7880_v46 = vsub.f32 0.0, %v7848_v56  ;;  %v7846_v0 = vmax.f32 %v7757_v12, 0.0 }
 0x860   : > { %v9780_v10 = vpop.eup %9779  ;;  %9801 = vpow2.f32 %v7925_v45  ;;  %v7921_v40 = vmul.f32 1.442695, %v7877_v23  ;;  %v9436_v54 = vpop.f32.mrf.mxu1 }
 0x861   : > { %9803 = vrcp.f32 %v7965_v39  ;;  %v7968_v59 = vadd.f32 1.0, %v9780_v10  ;;  %v7927_v33 = vmul.f32 1.442695, %v7880_v46  ;;  %v7878_v51 = vsub.f32 0.0, %v7846_v0 }
 0x862   : > { %v9782_v16 = vpop.eup %9781  ;;  %9805 = vpow2.f32 %v7921_v40  ;;  %v7851_v43 = vmax.f32 %v9436_v54, 0.0  ;;  %v7770_v60 = vpop.f32.mrf.mxu1 }
 0x863   : > { %9807 = vrcp.f32 %v7968_v59  ;;  %v7966_v9 = vadd.f32 1.0, %v9782_v16  ;;  %v7923_v15 = vmul.f32 1.442695, %v7878_v51  ;;  %v7849_v62 = vmax.f32 %v7770_v60, 0.0 }
 0x864   : > { %v9784_v63 = vpop.eup %9783  ;;  %9809 = vpow2.f32 %v7927_v33  ;;  %v7883_v13 = vsub.f32 0.0, %v7851_v43  ;;  %v9437_v35 = vpop.f32.mrf.mxu1  ;;  %v15300_v43 = vld [vmem:[#allocation11_spill] sm:$0xff] }
 0x865   : > { %v9786_v31 = vpop.eup %9785  ;;  %v8027_v17 = vmul.f32 %v9784_v63, %v15296_v3  ;;  %9811 = vrcp.f32 %v7966_v9  ;;  %v7881_v49 = vsub.f32 0.0, %v7849_v62  ;;  %v7852_v47 = vmax.f32 %v9437_v35, 0.0 }
 0x866   : > { %v9788_v44 = vpop.eup %9787  ;;  %v7971_v27 = vadd.f32 1.0, %v9786_v31  ;;  %9813 = vpow2.f32 %v7923_v15  ;;  %v7933_v1 = vmul.f32 1.442695, %v7883_v13  ;;  %v7773_v24 = vpop.f32.mrf.mxu1 }
 0x867   : > { %v9790_v50 = vpop.eup %9789  ;;  %v7929_v5 = vmul.f32 1.442695, %v7881_v49  ;;  %v7884_v53 = vsub.f32 0.0, %v7852_v47  ;;  %v7850_v18 = vmax.f32 %v7773_v24, 0.0  ;;  %v14623_v34 = vadd.f32 %v8027_v17, %v15296_v3  ;;  %v15301_v17 = vld [vmem:[#allocation13_spill] sm:$0xff] }
 0x868   : > { %v9792_v7 = vpop.eup %9791  ;;  %9815 = vrcp.f32 %v7971_v27  ;;  %v7969_v57 = vadd.f32 1.0, %v9790_v50  ;;  %v9440_v28 = vpop.f32.mrf.mxu1  ;;  %v8025_v61 = vmul.f32 %v9788_v44, %v15297_v29 }
 0x869   : > { %v9794_v42 = vpop.eup %9793  ;;  %v8028_v41 = vmul.f32 %v9792_v7, %v15298_v2  ;;  %9817 = vpow2.f32 %v7933_v1  ;;  %v7935_v14 = vmul.f32 1.442695, %v7884_v53  ;;  %v7882_v6 = vsub.f32 0.0, %v7850_v18  ;;  %v15303_v18 = vld [vmem:[#allocation10_spill] sm:$0xff] }
 0x86a   : > { %v9796_v38 = vpop.eup %9795  ;;  %9819 = vrcp.f32 %v7969_v57  ;;  %v7972_v52 = vadd.f32 1.0, %v9794_v42  ;;  %v7855_v19 = vmax.f32 %v9440_v28, 0.0  ;;  %v7786_v37 = vpop.f32.mrf.mxu1  ;;  %v8057_v11 = vadd.f32 %v8025_v61, %v15297_v29 }
 0x86b   : > { %v9798_v58 = vpop.eup %9797  ;;  %v8060_v4 = vadd.f32 %v8028_v41, %v15298_v2  ;;  %9821 = vpow2.f32 %v7929_v5  ;;  %v7931_v21 = vmul.f32 1.442695, %v7882_v6  ;;  %v7853_v26 = vmax.f32 %v7786_v37, 0.0  ;;  %v15302_v5 = vld [vmem:[#allocation12_spill] sm:$0xff] }
 0x86c   : > { %v9800_v55 = vpop.eup %9799  ;;  %9823 = vrcp.f32 %v7972_v52  ;;  %v7970_v30 = vadd.f32 1.0, %v9798_v58  ;;  %v7887_v8 = vsub.f32 0.0, %v7855_v19  ;;  %v9441_v25 = vpop.f32.mrf.mxu1  ;;  %v8026_v22 = vmul.f32 %v9796_v38, %v15299_v20 }
 0x86d   : > { %v9802_v36 = vpop.eup %9801  ;;  %9825 = vpow2.f32 %v7935_v14  ;;  %v7885_v32 = vsub.f32 0.0, %v7853_v26  ;;  %v7856_v45 = vmax.f32 %v9441_v25, 0.0  ;;  %v8090_v56 = vpack.c.bf16 %v8060_v4, %v14623_v34 }
 0x86e   : > { %v9804_v48 = vpop.eup %9803  ;;  %9827 = vrcp.f32 %v7970_v30  ;;  %v7975_v23 = vadd.f32 1.0, %v9802_v36  ;;  %v7941_v12 = vmul.f32 1.442695, %v7887_v8  ;;  %v7789_v39 = vpop.f32.mrf.mxu1  ;;  %v8058_v46 = vadd.f32 %v8026_v22, %v15299_v20  ;;  %v15304_v36 = vld [vmem:[#allocation15_spill] sm:$0xff] }
 0x86f   : > { %v9806_v0 = vpop.eup %9805  ;;  %9829 = vpow2.f32 %v7931_v21  ;;  %v7937_v10 = vmul.f32 1.442695, %v7885_v32  ;;  %v7888_v40 = vsub.f32 0.0, %v7856_v45  ;;  %v7854_v54 = vmax.f32 %v7789_v39, 0.0  ;;  %v15305_v45 = vld [vmem:[#allocation17_spill] sm:$0xff] }
 0x870   : > { %v9808_v59 = vpop.eup %9807  ;;  %9831 = vrcp.f32 %v7975_v23  ;;  %v7973_v33 = vadd.f32 1.0, %v9806_v0  ;;  %v9444_v51 = vpop.f32.mrf.mxu1  ;;  %v8089_v16 = vpack.c.bf16 %v8058_v46, %v8057_v11  ;;  %v8029_v60 = vmul.f32 %v9804_v48, %v15300_v43 }
 0x871   : > { %v9810_v9 = vpop.eup %9809  ;;  %9833 = vpow2.f32 %v7941_v12  ;;  %v7943_v15 = vmul.f32 1.442695, %v7888_v40  ;;  %v7886_v62 = vsub.f32 0.0, %v7854_v54  ;;  %v7859_v63 = vmax.f32 %v9444_v51, 0.0  ;;  %v15306_v40 = vld [vmem:[#allocation16_spill] sm:$0xff] }
 0x872   : > { %v9812_v13 = vpop.eup %9811  ;;  %9835 = vrcp.f32 %v7973_v33  ;;  %v7976_v35 = vadd.f32 1.0, %v9810_v9  ;;  %9486 = vmatprep.mubr.msk.bf16.mxu1 %vm303_vm3, %v8089_v16  ;;  %v7802_v31 = vpop.f32.mrf.mxu1  ;;  %v8061_v3 = vadd.f32 %v8029_v60, %v15300_v43  ;;  %v8031_v49 = vmul.f32 %v9800_v55, %v15301_v17 }
 0x873   : > { %v9814_v47 = vpop.eup %9813  ;;  %9837 = vpow2.f32 %v7937_v10  ;;  %v7939_v44 = vmul.f32 1.442695, %v7886_v62  ;;  %v7891_v27 = vsub.f32 0.0, %v7859_v63  ;;  %v7857_v1 = vmax.f32 %v7802_v31, 0.0  ;;  %9487 = vmatmul.mubr.msk.bf16.vlgmr.msra.gmra.mxu1 %vm303_vm3, %v8090_v56  ;;  %v15307_v63 = vld [vmem:[#allocation14_spill] sm:$0xff] }
 0x874   : > { %9839 = vrcp.f32 %v7976_v35  ;;  %v7974_v24 = vadd.f32 1.0, %v9814_v47  ;;  %v9445_v50 = vpop.f32.mrf.mxu1  ;;  %v8030_v53 = vmul.f32 %v9812_v13, %v15302_v5  ;;  %v8032_v7 = vmul.f32 %v9808_v59, %v15303_v18 }
 0x875   : > { %v9816_v34 = vpop.eup %9815  ;;  %9841 = vpow2.f32 %v7943_v15  ;;  %v7949_v57 = vmul.f32 1.442695, %v7891_v27  ;;  %v7889_v28 = vsub.f32 0.0, %v7857_v1  ;;  %v7860_v29 = vmax.f32 %v9445_v50, 0.0 }
 0x876   : > { %v9818_v61 = vpop.eup %9817  ;;  %9843 = vrcp.f32 %v7974_v24  ;;  %v7805_v42 = vpop.f32.mrf.mxu1  ;;  %v8062_v2 = vadd.f32 %v8030_v53, %v15302_v5  ;;  %v8063_v41 = vadd.f32 %v8031_v49, %v15301_v17  ;;  %v8064_v14 = vadd.f32 %v8032_v7, %v15303_v18  ;;  %v15308_v7 = vld [vmem:[#allocation19_spill] sm:$0xff] }
 0x877   : > { %v9820_v6 = vpop.eup %9819  ;;  %v7979_v38 = vadd.f32 1.0, %v9818_v61  ;;  %9845 = vpow2.f32 %v7939_v44  ;;  %v7945_v52 = vmul.f32 1.442695, %v7889_v28  ;;  %v7892_v19 = vsub.f32 0.0, %v7860_v29 }
 0x878   : > { %v9822_v37 = vpop.eup %9821  ;;  %9847 = vpow2.f32 %v7949_v57  ;;  %v7858_v11 = vmax.f32 %v7805_v42, 0.0  ;;  %v9448_v58 = vpop.f32.mrf.mxu1  ;;  %v8091_v4 = vpack.c.bf16 %v8062_v2, %v8061_v3  ;;  %v8092_v21 = vpack.c.bf16 %v8064_v14, %v8063_v41  ;;  %v15309_v2 = vld [vmem:[#allocation20_spill] sm:$0xff]  ;;  %v15310_v14 = vld [vmem:[#allocation18_spill] sm:$0xff] }
 0x879   : > { %v9824_v26 = vpop.eup %9823  ;;  %9849 = vrcp.f32 %v7979_v38  ;;  %v7977_v55 = vadd.f32 1.0, %v9822_v37  ;;  %v7951_v30 = vmul.f32 1.442695, %v7892_v19  ;;  %v7863_v8 = vmax.f32 %v9448_v58, 0.0  ;;  %v15311_v19 = vld [vmem:[#allocation21_spill] sm:$0xff] }
 0x87a   : > { %v9826_v25 = vpop.eup %9825  ;;  %9851 = vpow2.f32 %v7945_v52  ;;  %v7890_v20 = vsub.f32 0.0, %v7858_v11  ;;  %9490 = vmatprep.mubr.msk.bf16.mxu1 %vm303_vm3, %v8091_v4  ;;  %v7818_v22 = vpop.f32.mrf.mxu1  ;;  %v8033_v32 = vmul.f32 %v9820_v6, %v15304_v36  ;;  %v8035_v56 = vmul.f32 %v9816_v34, %v15305_v45 }
 0x87b   : > { %v9828_v48 = vpop.eup %9827  ;;  %9853 = vrcp.f32 %v7977_v55  ;;  %v7980_v23 = vadd.f32 1.0, %v9826_v25  ;;  %v7895_v12 = vsub.f32 0.0, %v7863_v8  ;;  %v7861_v39 = vmax.f32 %v7818_v22, 0.0  ;;  %9491 = vmatmul.mubr.msk.bf16.gmra.mxu1 %vm303_vm3, %v8092_v21 }
 0x87c   : > { %v9830_v46 = vpop.eup %9829  ;;  %9855 = vpow2.f32 %v7951_v30  ;;  %v7947_v0 = vmul.f32 1.442695, %v7890_v20  ;;  %v9449_v10 = vpop.f32.mrf.mxu1  ;;  %v8034_v54 = vmul.f32 %v9828_v48, %v15306_v40  ;;  %v8065_v59 = vadd.f32 %v8033_v32, %v15304_v36  ;;  %v15312_v48 = vld [vmem:[#allocation23_spill] sm:$0xff] }
 0x87d   : > { %v9832_v33 = vpop.eup %9831  ;;  %9857 = vrcp.f32 %v7980_v23  ;;  %v7978_v51 = vadd.f32 1.0, %v9830_v46  ;;  %v7957_v16 = vmul.f32 1.442695, %v7895_v12  ;;  %v7893_v43 = vsub.f32 0.0, %v7861_v39  ;;  %v15313_v12 = vld [vmem:[#allocation22_spill] sm:$0xff] }
 0x87e   : > { %v9834_v60 = vpop.eup %9833  ;;  %9859 = vpow2.f32 %v7947_v0  ;;  %v7864_v9 = vmax.f32 %v9449_v10, 0.0  ;;  %v7821_v15 = vpop.f32.mrf.mxu1  ;;  %v8066_v62 = vadd.f32 %v8034_v54, %v15306_v40  ;;  %v8036_v13 = vmul.f32 %v9824_v26, %v15307_v63  ;;  %v15314_v40 = vld [vmem:[#allocation24_spill] sm:$0xff] }
 0x87f   : > { %v9836_v35 = vpop.eup %9835  ;;  %9861 = vrcp.f32 %v7978_v51  ;;  %v7983_v31 = vadd.f32 1.0, %v9834_v60  ;;  %v7953_v3 = vmul.f32 1.442695, %v7893_v43  ;;  %v7862_v17 = vmax.f32 %v7821_v15, 0.0 }
 0x880   : > { %v9838_v49 = vpop.eup %9837  ;;  %9863 = vpow2.f32 %v7957_v16  ;;  %v7896_v47 = vsub.f32 0.0, %v7864_v9  ;;  %v8093_v44 = vpack.c.bf16 %v8066_v62, %v8065_v59  ;;  %v8067_v27 = vadd.f32 %v8035_v56, %v15305_v45  ;;  %v15315_v59 = vld [vmem:[#allocation25_spill] sm:$0xff] }
 0x881   : > { %v9840_v1 = vpop.eup %9839  ;;  %9865 = vrcp.f32 %v7983_v31  ;;  %v7981_v24 = vadd.f32 1.0, %v9838_v49  ;;  %v7894_v50 = vsub.f32 0.0, %v7862_v17  ;;  %v8068_v5 = vadd.f32 %v8036_v13, %v15307_v63 }
 0x882   : > { %v9842_v53 = vpop.eup %9841  ;;  %9867 = vpow2.f32 %v7953_v3  ;;  %v7959_v18 = vmul.f32 1.442695, %v7896_v47  ;;  %9494 = vmatprep.mubr.msk.bf16.mxu1 %vm303_vm3, %v8093_v44  ;;  %v8037_v34 = vmul.f32 %v9836_v35, %v15308_v7  ;;  %v8040_v6 = vmul.f32 %v9840_v1, %v15310_v14  ;;  %v15316_v44 = vld [vmem:[#allocation27_spill] sm:$0xff]  ;;  %v15317_v1 = vld [vmem:[#allocation26_spill] sm:$0xff] }
 0x883   : > { %v9844_v57 = vpop.eup %9843  ;;  %9869 = vrcp.f32 %v7981_v24  ;;  %v7984_v28 = vadd.f32 1.0, %v9842_v53  ;;  %v7955_v29 = vmul.f32 1.442695, %v7894_v50  ;;  %v8094_v61 = vpack.c.bf16 %v8068_v5, %v8067_v27  ;;  %v15318_v53 = vld [vmem:[#allocation28_spill] sm:$0xff] }
 0x884   : > { %v9846_v42 = vpop.eup %9845  ;;  %9871 = vpow2.f32 %v7959_v18  ;;  %v8038_v41 = vmul.f32 %v9844_v57, %v15309_v2  ;;  %v8039_v37 = vmul.f32 %v9832_v33, %v15311_v19  ;;  %v8069_v58 = vadd.f32 %v8037_v34, %v15308_v7  ;;  %v15319_v7 = vld [vmem:[#allocation29_spill] sm:$0xff] }
 0x885   : > { %v9848_v38 = vpop.eup %9847  ;;  %9873 = vrcp.f32 %v7984_v28  ;;  %v7982_v52 = vadd.f32 1.0, %v9846_v42  ;;  %9495 = vmatmul.mubr.msk.bf16.gmra.mxu1 %vm303_vm3, %v8094_v61  ;;  %v8072_v26 = vadd.f32 %v8040_v6, %v15310_v14  ;;  %v15320_v6 = vld [vmem:[#allocation31_spill] sm:$0xff] }
 0x886   : > { %v9850_v11 = vpop.eup %9849  ;;  %9875 = vpow2.f32 %v7955_v29  ;;  %v8070_v4 = vadd.f32 %v8038_v41, %v15309_v2  ;;  %v7987_v20 = vadd.f32 1.0, %v9848_v38  ;;  %v8071_v22 = vadd.f32 %v8039_v37, %v15311_v19  ;;  %v15321_v37 = vld [vmem:[#allocation30_spill] sm:$0xff] }
 0x887   : > { %v9852_v21 = vpop.eup %9851  ;;  %9877 = vrcp.f32 %v7982_v52  ;;  %v8043_v33 = vmul.f32 %v9850_v11, %v15315_v59 }
 0x888   : > { %v9854_v55 = vpop.eup %9853  ;;  %v7985_v30 = vadd.f32 1.0, %v9852_v21  ;;  %v8095_v8 = vpack.c.bf16 %v8070_v4, %v8069_v58  ;;  %v8096_v56 = vpack.c.bf16 %v8072_v26, %v8071_v22  ;;  %v15322_v58 = vld [vmem:[#allocation32_spill] sm:$0xff]  ;;  %v15323_v21 = vld [vmem:[#allocation33_spill] sm:$0xff] }
 0x889   : > { %v9856_v25 = vpop.eup %9855  ;;  %v8041_v23 = vmul.f32 %v9854_v55, %v15312_v48  ;;  %v8075_v31 = vadd.f32 %v8043_v33, %v15315_v59 }
 0x88a   : > { %v9858_v36 = vpop.eup %9857  ;;  %9879 = vrcp.f32 %v7985_v30  ;;  %v7988_v32 = vadd.f32 1.0, %v9856_v25  ;;  %9498 = vmatprep.mubr.msk.bf16.mxu1 %vm303_vm3, %v8095_v8 }
 0x88b   : > { %v9860_v45 = vpop.eup %9859  ;;  %v8044_v39 = vmul.f32 %v9858_v36, %v15313_v12  ;;  %v8073_v43 = vadd.f32 %v8041_v23, %v15312_v48 }
 0x88c   : > { %v9862_v46 = vpop.eup %9861  ;;  %9881 = vrcp.f32 %v7988_v32  ;;  %v7986_v0 = vadd.f32 1.0, %v9860_v45  ;;  %v15324_v45 = vld [vmem:[#allocation35_spill] sm:$0xff] }
 0x88d   : > { %v9864_v10 = vpop.eup %9863  ;;  %9883 = vrcp.f32 %v7987_v20  ;;  %9499 = vmatmul.mubr.msk.bf16.gmra.mxu1 %vm303_vm3, %v8096_v56  ;;  %v8042_v54 = vmul.f32 %v9862_v46, %v15314_v40  ;;  %v8076_v9 = vadd.f32 %v8044_v39, %v15313_v12  ;;  %v15325_v12 = vld [vmem:[#allocation34_spill] sm:$0xff]  ;;  %v15326_v46 = vld [vmem:[#allocation36_spill] sm:$0xff] }
 0x88e   : > { %v9866_v51 = vpop.eup %9865  ;;  %9885 = vrcp.f32 %v7986_v0  ;;  %v7991_v13 = vadd.f32 1.0, %v9864_v10  ;;  %v15327_v10 = vld [vmem:[#allocation37_spill] sm:$0xff] }
 0x88f   : > { %v9868_v16 = vpop.eup %9867  ;;  %v8074_v60 = vadd.f32 %v8042_v54, %v15314_v40  ;;  %v8098_v47 = vpack.c.bf16 %v8076_v9, %v8075_v31  ;;  %v8047_v34 = vmul.f32 %v9866_v51, %v15319_v7 }
 0x890   : > { %v9870_v15 = vpop.eup %9869  ;;  %v7989_v62 = vadd.f32 1.0, %v9868_v16 }
 0x891   : > { %v9872_v63 = vpop.eup %9871  ;;  %v8097_v35 = vpack.c.bf16 %v8074_v60, %v8073_v43  ;;  %v8045_v27 = vmul.f32 %v9870_v15, %v15316_v44  ;;  %v8079_v41 = vadd.f32 %v8047_v34, %v15319_v7  ;;  %v9454_v60 = vpop.f32.mrf.mxu0  ;;  %v15330_v34 = vld [vmem:[#allocation76_spill] sm:$0xff] }
 0x892   : > { %v9874_v3 = vpop.eup %9873  ;;  %9887 = vrcp.f32 %v7989_v62  ;;  %v7992_v17 = vadd.f32 1.0, %v9872_v63 }
 0x893   : > { %v9876_v49 = vpop.eup %9875  ;;  %9502 = vmatprep.mubr.msk.bf16.mxu1 %vm303_vm3, %v8097_v35  ;;  %v8048_v24 = vmul.f32 %v9874_v3, %v15317_v1  ;;  %v8077_v28 = vadd.f32 %v8045_v27, %v15316_v44  ;;  %v8210_v9 = vpop.f32.mrf.mxu0 }
 0x894   : > { %v9878_v50 = vpop.eup %9877  ;;  %9889 = vrcp.f32 %v7992_v17  ;;  %v7990_v5 = vadd.f32 1.0, %v9876_v49 }
 0x895   : > { %9891 = vrcp.f32 %v7991_v13  ;;  %9503 = vmatmul.mubr.msk.bf16.gmra.mxu1 %vm303_vm3, %v8098_v47  ;;  %v8046_v18 = vmul.f32 %v9878_v50, %v15318_v53  ;;  %v8080_v61 = vadd.f32 %v8048_v24, %v15317_v1  ;;  %v9455_v15 = vpop.f32.mrf.mxu0  ;;  %v15328_v24 = vld [vmem:[#allocation81_spill] sm:$0xff]  ;;  %v15329_v50 = vld [vmem:[#allocation75_spill] sm:$0xff] }
 0x896   : > { %9893 = vrcp.f32 %v7990_v5  ;;  %v14718_v5 = vrot.slane %v15329_v50, %v15328_v24 }
 0x897   : > { %v9880_v57 = vpop.eup %9879  ;;  %v8078_v29 = vadd.f32 %v8046_v18, %v15318_v53  ;;  %v8100_v19 = vpack.c.bf16 %v8080_v61, %v8079_v41  ;;  %v8213_v62 = vpop.f32.mrf.mxu0 }
 0x898   : > { %v8049_v38 = vmul.f32 %v9880_v57, %v15320_v6  ;;  %v14724_v57 = vrot.slane %v15330_v34, %v15328_v24 }
 0x899   : > { %v9882_v42 = vpop.eup %9881  ;;  %v8099_v2 = vpack.c.bf16 %v8078_v29, %v8077_v28  ;;  %v9458_v63 = vpop.f32.mrf.mxu0 }
 0x89a   : > { %v9884_v14 = vpop.eup %9883  ;;  %v8052_v11 = vmul.f32 %v9882_v42, %v15321_v37  ;;  %v8081_v55 = vadd.f32 %v8049_v38, %v15320_v6 }
 0x89b   : > { %v9886_v52 = vpop.eup %9885  ;;  %9506 = vmatprep.mubr.msk.bf16.mxu1 %vm303_vm3, %v8099_v2  ;;  %v8051_v26 = vmul.f32 %v9884_v14, %v15323_v21  ;;  %v8226_v13 = vpop.f32.mrf.mxu0 }
 0x89c   : > { %v8050_v4 = vmul.f32 %v9886_v52, %v15322_v58  ;;  %v8084_v25 = vadd.f32 %v8052_v11, %v15321_v37 }
 0x89d   : > { %9507 = vmatmul.mubr.msk.bf16.gmra.mxu1 %vm303_vm3, %v8100_v19  ;;  %v8083_v36 = vadd.f32 %v8051_v26, %v15323_v21  ;;  %v9459_v35 = vpop.f32.mrf.mxu0 }
 0x89e   : > { %v8082_v30 = vadd.f32 %v8050_v4, %v15322_v58 }
 0x89f   : > { %v9888_v8 = vpop.eup %9887  ;;  %v8102_v23 = vpack.c.bf16 %v8084_v25, %v8083_v36  ;;  %v8229_v31 = vpop.f32.mrf.mxu0 }
 0x8a0   : > { %v8101_v20 = vpack.c.bf16 %v8082_v30, %v8081_v55  ;;  %v8053_v56 = vmul.f32 %v9888_v8, %v15324_v45 }
 0x8a1   : > { %v9890_v22 = vpop.eup %9889  ;;  %v9462_v3 = vpop.f32.mrf.mxu0 }
 0x8a2   : > { %v9892_v32 = vpop.eup %9891  ;;  %9510 = vmatprep.mubr.msk.bf16.mxu1 %vm303_vm3, %v8101_v20  ;;  %v8056_v39 = vmul.f32 %v9890_v22, %v15325_v12  ;;  %v8085_v54 = vadd.f32 %v8053_v56, %v15324_v45 }
 0x8a3   : > { %v9894_v48 = vpop.eup %9893  ;;  %v8055_v40 = vmul.f32 %v9892_v32, %v15327_v10  ;;  %v14704_v17 = vpop.f32.mrf.mxu0 }
 0x8a4   : > { %v8054_v0 = vmul.f32 %v9894_v48, %v15326_v46  ;;  %v8088_v33 = vadd.f32 %v8056_v39, %v15325_v12 }
 0x8a5   : > { %9511 = vmatmul.mubr.msk.bf16.gmra.mxu1 %vm303_vm3, %v8102_v23  ;;  %v8087_v16 = vadd.f32 %v8055_v40, %v15327_v10  ;;  %v14706_v49 = vpop.f32.mrf.mxu0 }
 0x8a6   : > { %v8086_v59 = vadd.f32 %v8054_v0, %v15326_v46 }
 0x8a7   : > { %v8104_v43 = vpack.c.bf16 %v8088_v33, %v8087_v16  ;;  %v14708_v47 = vpop.f32.mrf.mxu0 }
 0x8a8   : > { %v8103_v51 = vpack.c.bf16 %v8086_v59, %v8085_v54 }
 0x8a9   : > { %v14710_v44 = vpop.f32.mrf.mxu0 }
 0x8aa   : > { %9514 = vmatprep.mubr.msk.bf16.mxu1 %vm303_vm3, %v8103_v51 }
 0x8ab   : > { %v14712_v27 = vpop.f32.mrf.mxu0 }
 0x8ad   : > { %9515 = vmatmul.mubr.msk.bf16.gmra.mxu1 %vm303_vm3, %v8104_v43  ;;  %v14714_v1 = vpop.f32.mrf.mxu0 }
 0x8af   : > { %v14720_v18 = vpop.f32.mrf.mxu0 }
 0x8b1   : > { %v14727_v2 = vpop.f32.mrf.mxu0 }
 0x8b3   : > { %v14733_v4 = vpop.f32.mrf.mxu0 }
 0x8b5   : > { %v14743_v45 = vpop.f32.mrf.mxu0 }
 0x8b7   : > { %v14753_v54 = vpop.f32.mrf.mxu0 }
 0x933   : > { %v9488_v53 = vpop.f32.mrf.mxu1 }
 0x934   : > { %v8431_v7 = vadd.f32 %v9488_v53, %v9454_v60 }
 0x935   : > { %v8422_v28 = vpop.f32.mrf.mxu1 }
 0x936   : > { %v8555_v29 = vmul.f32 %v14718_v5, %v8431_v7  ;;  %v8423_v61 = vadd.f32 %v8422_v28, %v8210_v9 }
 0x937   : > { %v9489_v42 = vpop.f32.mrf.mxu1 }
 0x938   : > { %v8591_v41 = vadd.f32 %v14724_v57, %v8555_v29  ;;  %v8553_v14 = vmul.f32 %v14718_v5, %v8423_v61  ;;  %v8434_v6 = vadd.f32 %v9489_v42, %v9455_v15 }
 0x939   : > { %v8425_v38 = vpop.f32.mrf.mxu1 }
 0x93a   : > { %v8623_v52 = vmax.f32 %v8591_v41, 0.0  ;;  %v8589_v19 = vadd.f32 %v14724_v57, %v8553_v14  ;;  %v8556_v37 = vmul.f32 %v14718_v5, %v8434_v6  ;;  %v8426_v11 = vadd.f32 %v8425_v38, %v8213_v62  ;;  %v14762_v62 = vpop.f32.mrf.mxu0 }
 0x93b   : > { %v9492_v58 = vpop.f32.mrf.mxu1 }
 0x93c   : > { %8655 = vst.msk [vmem:[%s9999_s14 + $0x10] sm:$0xff] %vm303_vm3, %v8623_v52  ;;  %v8621_v21 = vmax.f32 %v8589_v19, 0.0  ;;  %v8592_v26 = vadd.f32 %v14724_v57, %v8556_v37  ;;  %v8554_v55 = vmul.f32 %v14718_v5, %v8426_v11  ;;  %v8447_v30 = vadd.f32 %v9492_v58, %v9458_v63  ;;  %v14773_v7 = vpop.f32.mrf.mxu0 }
 0x93d   : > { %v8438_v8 = vpop.f32.mrf.mxu1 }
 0x93e   : > { %8653 = vst.msk [vmem:[%s9999_s14] sm:$0xff] %vm303_vm3, %v8621_v21  ;;  %v8624_v25 = vmax.f32 %v8592_v26, 0.0  ;;  %v8590_v20 = vadd.f32 %v14724_v57, %v8554_v55  ;;  %v8559_v22 = vmul.f32 %v14718_v5, %v8447_v30  ;;  %v8439_v36 = vadd.f32 %v8438_v8, %v8226_v13  ;;  %v14783_v38 = vpop.f32.mrf.mxu0 }
 0x93f   : > { %v9493_v32 = vpop.f32.mrf.mxu1 }
 0x940   : > { %8656 = vst.msk [vmem:[%s9999_s14 + $0x18] sm:$0xff] %vm303_vm3, %v8624_v25  ;;  %v8622_v56 = vmax.f32 %v8590_v20, 0.0  ;;  %v8595_v48 = vadd.f32 %v14724_v57, %v8559_v22  ;;  %v8557_v23 = vmul.f32 %v14718_v5, %v8439_v36  ;;  %v8450_v12 = vadd.f32 %v9493_v32, %v9459_v35  ;;  %v8293_v30 = vpop.f32.mrf.mxu0 }
 0x941   : > { %v8441_v39 = vpop.f32.mrf.mxu1 }
 0x942   : > { %8654 = vst.msk [vmem:[%s9999_s14 + $0x8] sm:$0xff] %vm303_vm3, %v8622_v56  ;;  %v8627_v46 = vmax.f32 %v8595_v48, 0.0  ;;  %v8593_v0 = vadd.f32 %v14724_v57, %v8557_v23  ;;  %v8560_v10 = vmul.f32 %v14718_v5, %v8450_v12  ;;  %v8442_v40 = vadd.f32 %v8441_v39, %v8229_v31  ;;  %v9478_v23 = vpop.f32.mrf.mxu0 }
 0x944   : > { %8659 = vst.msk [vmem:[%s9999_s14 + $0x30] sm:$0xff] %vm303_vm3, %v8627_v46  ;;  %v8625_v59 = vmax.f32 %v8593_v0, 0.0  ;;  %v8596_v33 = vadd.f32 %v14724_v57, %v8560_v10  ;;  %v8558_v51 = vmul.f32 %v14718_v5, %v8442_v40 }
 0x945   : > { %v9496_v16 = vpop.f32.mrf.mxu1 }
 0x946   : > { %8657 = vst.msk [vmem:[%s9999_s14 + $0x20] sm:$0xff] %vm303_vm3, %v8625_v59  ;;  %v8628_v43 = vmax.f32 %v8596_v33, 0.0  ;;  %v8594_v60 = vadd.f32 %v14724_v57, %v8558_v51  ;;  %v8463_v9 = vadd.f32 %v9496_v16, %v9462_v3  ;;  %v8306_v51 = vpop.f32.mrf.mxu0 }
 0x947   : > { %v8454_v15 = vpop.f32.mrf.mxu1 }
 0x948   : > { %8660 = vst.msk [vmem:[%s9999_s14 + $0x38] sm:$0xff] %vm303_vm3, %v8628_v43  ;;  %v8626_v63 = vmax.f32 %v8594_v60, 0.0  ;;  %v8563_v13 = vmul.f32 %v14718_v5, %v8463_v9  ;;  %v8455_v35 = vadd.f32 %v8454_v15, %v14704_v17 }
 0x949   : > { %v9497_v31 = vpop.f32.mrf.mxu1 }
 0x94a   : > { %8658 = vst.msk [vmem:[%s9999_s14 + $0x28] sm:$0xff] %vm303_vm3, %v8626_v63  ;;  %v8599_v24 = vadd.f32 %v14724_v57, %v8563_v13  ;;  %v8561_v50 = vmul.f32 %v14718_v5, %v8455_v35  ;;  %v8466_v3 = vadd.f32 %v9497_v31, %v14706_v49  ;;  %v9479_v31 = vpop.f32.mrf.mxu0 }
 0x94b   : > { %v8457_v53 = vpop.f32.mrf.mxu1 }
 0x94c   : > { %v8631_v34 = vmax.f32 %v8599_v24, 0.0  ;;  %v8597_v28 = vadd.f32 %v14724_v57, %v8561_v50  ;;  %v8564_v29 = vmul.f32 %v14718_v5, %v8466_v3  ;;  %v8458_v17 = vadd.f32 %v8457_v53, %v14708_v47 }
 0x94d   : > { %v9500_v61 = vpop.f32.mrf.mxu1 }
 0x94e   : > { %8663 = vst.msk [vmem:[%s9999_s14 + $0x50] sm:$0xff] %vm303_vm3, %v8631_v34  ;;  %v8629_v42 = vmax.f32 %v8597_v28, 0.0  ;;  %v8600_v41 = vadd.f32 %v14724_v57, %v8564_v29  ;;  %v8562_v14 = vmul.f32 %v14718_v5, %v8458_v17  ;;  %v8479_v49 = vadd.f32 %v9500_v61, %v14710_v44  ;;  %v8309_v61 = vpop.f32.mrf.mxu0 }
 0x94f   : > { %v8470_v6 = vpop.f32.mrf.mxu1 }
 0x950   : > { %8661 = vst.msk [vmem:[%s9999_s14 + $0x40] sm:$0xff] %vm303_vm3, %v8629_v42  ;;  %v8632_v52 = vmax.f32 %v8600_v41, 0.0  ;;  %v8598_v19 = vadd.f32 %v14724_v57, %v8562_v14  ;;  %v8567_v47 = vmul.f32 %v14718_v5, %v8479_v49  ;;  %v8471_v37 = vadd.f32 %v8470_v6, %v14712_v27 }
 0x951   : > { %v9501_v11 = vpop.f32.mrf.mxu1 }
 0x952   : > { %8664 = vst.msk [vmem:[%s9999_s14 + $0x58] sm:$0xff] %vm303_vm3, %v8632_v52  ;;  %v8630_v58 = vmax.f32 %v8598_v19, 0.0  ;;  %v8603_v44 = vadd.f32 %v14724_v57, %v8567_v47  ;;  %v8565_v21 = vmul.f32 %v14718_v5, %v8471_v37  ;;  %v8482_v26 = vadd.f32 %v9501_v11, %v14714_v1  ;;  %v9482_v47 = vpop.f32.mrf.mxu0 }
 0x953   : > { %v8473_v55 = vpop.f32.mrf.mxu1 }
 0x954   : > { %8662 = vst.msk [vmem:[%s9999_s14 + $0x48] sm:$0xff] %vm303_vm3, %v8630_v58  ;;  %v8635_v8 = vmax.f32 %v8603_v44, 0.0  ;;  %v8601_v25 = vadd.f32 %v14724_v57, %v8565_v21  ;;  %v8568_v27 = vmul.f32 %v14718_v5, %v8482_v26  ;;  %v8474_v20 = vadd.f32 %v8473_v55, %v14720_v18 }
 0x955   : > { %v9504_v22 = vpop.f32.mrf.mxu1 }
 0x956   : > { %8667 = vst.msk [vmem:[%s9999_s14 + $0x70] sm:$0xff] %vm303_vm3, %v8635_v8  ;;  %v8633_v36 = vmax.f32 %v8601_v25, 0.0  ;;  %v8604_v32 = vadd.f32 %v14724_v57, %v8568_v27  ;;  %v8566_v1 = vmul.f32 %v14718_v5, %v8474_v20  ;;  %v8495_v56 = vadd.f32 %v9504_v22, %v14727_v2  ;;  %v8322_v27 = vpop.f32.mrf.mxu0 }
 0x957   : > { %v8486_v48 = vpop.f32.mrf.mxu1 }
 0x958   : > { %8665 = vst.msk [vmem:[%s9999_s14 + $0x60] sm:$0xff] %vm303_vm3, %v8633_v36  ;;  %v8636_v12 = vmax.f32 %v8604_v32, 0.0  ;;  %v8602_v39 = vadd.f32 %v14724_v57, %v8566_v1  ;;  %v8571_v18 = vmul.f32 %v14718_v5, %v8495_v56  ;;  %v8487_v46 = vadd.f32 %v8486_v48, %v14733_v4 }
 0x959   : > { %v9505_v0 = vpop.f32.mrf.mxu1 }
 0x95a   : > { %8668 = vst.msk [vmem:[%s9999_s14 + $0x78] sm:$0xff] %vm303_vm3, %v8636_v12  ;;  %v8634_v10 = vmax.f32 %v8602_v39, 0.0  ;;  %v8607_v40 = vadd.f32 %v14724_v57, %v8571_v18  ;;  %v8569_v2 = vmul.f32 %v14718_v5, %v8487_v46  ;;  %v8498_v59 = vadd.f32 %v9505_v0, %v14743_v45  ;;  %v9483_v18 = vpop.f32.mrf.mxu0 }
 0x95b   : > { %v8489_v33 = vpop.f32.mrf.mxu1 }
 0x95c   : > { %8666 = vst.msk [vmem:[%s9999_s14 + $0x68] sm:$0xff] %vm303_vm3, %v8634_v10  ;;  %v8639_v16 = vmax.f32 %v8607_v40, 0.0  ;;  %v8605_v43 = vadd.f32 %v14724_v57, %v8569_v2  ;;  %v8572_v4 = vmul.f32 %v14718_v5, %v8498_v59  ;;  %v8490_v60 = vadd.f32 %v8489_v33, %v14753_v54 }
 0x95d   : > { %v9508_v9 = vpop.f32.mrf.mxu1 }
 0x95e   : > { %8671 = vst.msk [vmem:[%s9999_s14 + $0x90] sm:$0xff] %vm303_vm3, %v8639_v16  ;;  %v8637_v15 = vmax.f32 %v8605_v43, 0.0  ;;  %v8608_v63 = vadd.f32 %v14724_v57, %v8572_v4  ;;  %v8570_v45 = vmul.f32 %v14718_v5, %v8490_v60  ;;  %v8511_v13 = vadd.f32 %v9508_v9, %v14762_v62  ;;  %v8325_v4 = vpop.f32.mrf.mxu0 }
 0x95f   : > { %v8502_v35 = vpop.f32.mrf.mxu1 }
 0x960   : > { %8669 = vst.msk [vmem:[%s9999_s14 + $0x80] sm:$0xff] %vm303_vm3, %v8637_v15  ;;  %v8640_v24 = vmax.f32 %v8608_v63, 0.0  ;;  %v8606_v50 = vadd.f32 %v14724_v57, %v8570_v45  ;;  %v8575_v54 = vmul.f32 %v14718_v5, %v8511_v13  ;;  %v8503_v3 = vadd.f32 %v8502_v35, %v14773_v7 }
 0x961   : > { %v9509_v53 = vpop.f32.mrf.mxu1 }
 0x962   : > { %8672 = vst.msk [vmem:[%s9999_s14 + $0x98] sm:$0xff] %vm303_vm3, %v8640_v24  ;;  %v8638_v34 = vmax.f32 %v8606_v50, 0.0  ;;  %v8611_v28 = vadd.f32 %v14724_v57, %v8575_v54  ;;  %v8573_v62 = vmul.f32 %v14718_v5, %v8503_v3  ;;  %v8514_v29 = vadd.f32 %v9509_v53, %v14783_v38 }
 0x963   : > { %v8505_v17 = vpop.f32.mrf.mxu1 }
 0x964   : > { %8670 = vst.msk [vmem:[%s9999_s14 + $0x88] sm:$0xff] %vm303_vm3, %v8638_v34  ;;  %v8643_v42 = vmax.f32 %v8611_v28, 0.0  ;;  %v8609_v41 = vadd.f32 %v14724_v57, %v8573_v62  ;;  %v8576_v7 = vmul.f32 %v14718_v5, %v8514_v29  ;;  %v8506_v14 = vadd.f32 %v8505_v17, %v8293_v30 }
 0x965   : > { %v9512_v49 = vpop.f32.mrf.mxu1 }
 0x966   : > { %8675 = vst.msk [vmem:[%s9999_s14 + $0xb0] sm:$0xff] %vm303_vm3, %v8643_v42  ;;  %v8641_v6 = vmax.f32 %v8609_v41, 0.0  ;;  %v8612_v52 = vadd.f32 %v14724_v57, %v8576_v7  ;;  %v8574_v38 = vmul.f32 %v14718_v5, %v8506_v14  ;;  %v8527_v19 = vadd.f32 %v9512_v49, %v9478_v23 }
 0x967   : > { %v8518_v37 = vpop.f32.mrf.mxu1 }
 0x968   : > { %8673 = vst.msk [vmem:[%s9999_s14 + $0xa0] sm:$0xff] %vm303_vm3, %v8641_v6  ;;  %v8644_v11 = vmax.f32 %v8612_v52, 0.0  ;;  %v8610_v58 = vadd.f32 %v14724_v57, %v8574_v38  ;;  %v8579_v44 = vmul.f32 %v14718_v5, %v8527_v19  ;;  %v8519_v21 = vadd.f32 %v8518_v37, %v8306_v51 }
 0x969   : > { %v9513_v26 = vpop.f32.mrf.mxu1 }
 0x96a   : > { %8676 = vst.msk [vmem:[%s9999_s14 + $0xb8] sm:$0xff] %vm303_vm3, %v8644_v11  ;;  %v8642_v55 = vmax.f32 %v8610_v58, 0.0  ;;  %v8615_v30 = vadd.f32 %v14724_v57, %v8579_v44  ;;  %v8577_v8 = vmul.f32 %v14718_v5, %v8519_v21  ;;  %v8530_v25 = vadd.f32 %v9513_v26, %v9479_v31 }
 0x96b   : > { %v8521_v20 = vpop.f32.mrf.mxu1 }
 0x96c   : > { %8674 = vst.msk [vmem:[%s9999_s14 + $0xa8] sm:$0xff] %vm303_vm3, %v8642_v55  ;;  %v8647_v22 = vmax.f32 %v8615_v30, 0.0  ;;  %v8613_v36 = vadd.f32 %v14724_v57, %v8577_v8  ;;  %v8580_v32 = vmul.f32 %v14718_v5, %v8530_v25  ;;  %v8522_v1 = vadd.f32 %v8521_v20, %v8309_v61 }
 0x96d   : > { %v9516_v56 = vpop.f32.mrf.mxu1 }
 0x96e   : > { %8679 = vst.msk [vmem:[%s9999_s14 + $0xd0] sm:$0xff] %vm303_vm3, %v8647_v22  ;;  %v8645_v48 = vmax.f32 %v8613_v36, 0.0  ;;  %v8616_v23 = vadd.f32 %v14724_v57, %v8580_v32  ;;  %v8578_v12 = vmul.f32 %v14718_v5, %v8522_v1  ;;  %v8543_v39 = vadd.f32 %v9516_v56, %v9482_v47 }
 0x96f   : > { %v8534_v46 = vpop.f32.mrf.mxu1 }
 0x970   : > { %8677 = vst.msk [vmem:[%s9999_s14 + $0xc0] sm:$0xff] %vm303_vm3, %v8645_v48  ;;  %v8648_v0 = vmax.f32 %v8616_v23, 0.0  ;;  %v8614_v10 = vadd.f32 %v14724_v57, %v8578_v12  ;;  %v8583_v40 = vmul.f32 %v14718_v5, %v8543_v39  ;;  %v8535_v2 = vadd.f32 %v8534_v46, %v8322_v27 }
 0x971   : > { %v9517_v59 = vpop.f32.mrf.mxu1 }
 0x972   : > { %8680 = vst.msk [vmem:[%s9999_s14 + $0xd8] sm:$0xff] %vm303_vm3, %v8648_v0  ;;  %v8646_v33 = vmax.f32 %v8614_v10, 0.0  ;;  %v8619_v51 = vadd.f32 %v14724_v57, %v8583_v40  ;;  %v8581_v16 = vmul.f32 %v14718_v5, %v8535_v2  ;;  %v8546_v43 = vadd.f32 %v9517_v59, %v9483_v18 }
 0x973   : > { %v8537_v60 = vpop.f32.mrf.mxu1 }
 0x974   : > { %8678 = vst.msk [vmem:[%s9999_s14 + $0xc8] sm:$0xff] %vm303_vm3, %v8646_v33  ;;  %v8651_v9 = vmax.f32 %v8619_v51, 0.0  ;;  %v8617_v15 = vadd.f32 %v14724_v57, %v8581_v16  ;;  %v8584_v63 = vmul.f32 %v14718_v5, %v8546_v43  ;;  %v8538_v45 = vadd.f32 %v8537_v60, %v8325_v4 }
 0x976   : > { %8683 = vst.msk [vmem:[%s9999_s14 + $0xf0] sm:$0xff] %vm303_vm3, %v8651_v9  ;;  %v8649_v13 = vmax.f32 %v8617_v15, 0.0  ;;  %v8620_v35 = vadd.f32 %v14724_v57, %v8584_v63  ;;  %v8582_v31 = vmul.f32 %v14718_v5, %v8538_v45 }
 0x978   : > { %8681 = vst.msk [vmem:[%s9999_s14 + $0xe0] sm:$0xff] %vm303_vm3, %v8649_v13  ;;  %v8652_v24 = vmax.f32 %v8620_v35, 0.0  ;;  %v8618_v50 = vadd.f32 %v14724_v57, %v8582_v31 }
 0x97a   : > { %8684 = vst.msk [vmem:[%s9999_s14 + $0xf8] sm:$0xff] %vm303_vm3, %v8652_v24  ;;  %v8650_v54 = vmax.f32 %v8618_v50, 0.0 }
 0x97c   : > { %8682 = vst.msk [vmem:[%s9999_s14 + $0xe8] sm:$0xff] %vm303_vm3, %v8650_v54 }
 0x97d PF: > { %s17_s24 = sadd.s32 1, %s9913_s24  }
 0x97e   : > { %p14_p7 = scmp.ge.s32.totalorder %s17_s24, 4  }
 0x980   :  { %16 = sbr.rel (!%p14_p7) target bundleno = 1 (0x1), region = 156 }

</bundles_post_ra>
